<compile_context>
chip_gen: v7x
topology: tpu7x:2x2x1
jax: 0.10.0
libtpu: 0.0.40
codegen_flags: <defaults>
</compile_context>

<pallas_src>
import functools

import jax
import jax.numpy as jnp
from jax import lax
from jax.experimental import pallas as pl
from jax.experimental.pallas import tpu as pltpu

LN_EPS = 1e-5  # nn.LayerNorm default


def _layernorm(z, gamma, beta):
    # PyTorch LayerNorm: biased variance over the last dim (two-pass form for
    # numerical stability).
    mean = jnp.mean(z, axis=-1, keepdims=True)
    zc = z - mean
    var = jnp.mean(zc * zc, axis=-1, keepdims=True)
    return zc * lax.rsqrt(var + LN_EPS) * gamma + beta


def _lstm_seq_kernel(gx_ref, h0_ref, c0_ref, whh_ref, gamma_ref, beta_ref,
                     y_ref, hn_ref, cn_ref, h_sc, c_sc, *, mxu_dtype):
    # grid = (batch_tiles, T // Tt): axis 0 = batch tile (parallel), axis 1 =
    # time chunk (sequential).
    tc = pl.program_id(1)
    H = h_sc.shape[-1]          # hidden size
    Tt = gx_ref.shape[0]        # timesteps in this chunk (static)

    # Initialize the recurrent carry at the start of each batch tile's sequence.
    @pl.when(tc == 0)
    def _():
        h_sc[...] = h0_ref[...].astype(jnp.float32)
        c_sc[...] = c0_ref[...].astype(jnp.float32)

    gam = gamma_ref[...]        # (5, H): rows [i, f, g(cx), o, cy]
    bet = beta_ref[...]

    def step(tt, carry):
        # Only the recurrent half of the contraction is on the serial path.
        h_mxu = h_sc[...].astype(mxu_dtype)       # f32 carry, cast at the dot
        gates = gx_ref[tt] + jnp.dot(h_mxu, whh_ref[...],
                                     preferred_element_type=jnp.float32)

        i_g = jax.nn.sigmoid(
            _layernorm(gates[:, 0 * H:1 * H], gam[0:1, :], bet[0:1, :]))
        f_g = jax.nn.sigmoid(
            _layernorm(gates[:, 1 * H:2 * H], gam[1:2, :], bet[1:2, :]))
        g_g = jnp.tanh(
            _layernorm(gates[:, 2 * H:3 * H], gam[2:3, :], bet[2:3, :]))
        o_g = jax.nn.sigmoid(
            _layernorm(gates[:, 3 * H:4 * H], gam[3:4, :], bet[3:4, :]))

        cy = _layernorm(f_g * c_sc[...] + i_g * g_g, gam[4:5, :], bet[4:5, :])
        hy = o_g * jnp.tanh(cy)

        h_sc[...] = hy
        c_sc[...] = cy
        y_ref[tt] = hy.astype(y_ref.dtype)
        return carry

    lax.fori_loop(0, Tt, step, 0, unroll=True)

    # hn/cn are accumulator-style resident outputs: write once, at the end.
    @pl.when(tc == pl.num_programs(1) - 1)
    def _():
        hn_ref[...] = h_sc[...].astype(hn_ref.dtype)
        cn_ref[...] = c_sc[...].astype(cn_ref.dtype)


def layernorm_lstm_layer(x, h0, c0, params, *, mxu_dtype=jnp.bfloat16,
                         batch_block=None, time_block=None, out_dtype=None):
    """Pallas-backed LayerNormLSTMLayer forward.

    Args:
      x:  (B, T, input_size)  -- batch_first, like the PyTorch module.
      h0, c0: (B, hidden_size).
      params: PyTorch-layout params (see init_params).
      mxu_dtype: dtype of the MXU operands (weights / cast activations at the
        dot). bf16 by default (all generations are bf16-native on the MXU);
        accumulation, the recurrent h/c carry and all LayerNorm / gate math
        stay f32.
      batch_block: optional batch tile size (must divide B and be a multiple
        of 8 unless == B). Leave None on v5e/v6e (single TensorCore); on v7x
        pass B // 2 so the "parallel" batch axis shards across both cores.
      time_block: timesteps per grid step (must divide T). Default picks the
        largest divisor <= 32 whose gates_x block fits a small VMEM budget.
      out_dtype: dtype of the (B, T, H) output slab (e.g. bf16 to halve the
        writeback HBM traffic on v5e). Defaults to x.dtype.

    Returns: (output (B, T, H), h_n (B, H), c_n (B, H)).
    """
    # TODO(synk): proj_size > 0 (weight_hr output projection) is not implemented.
    B, T, num_in = x.shape
    H4 = params["weight_ih"].shape[0]
    H = H4 // 4
    assert h0.shape == (B, H) and c0.shape == (B, H)

    mxu_dtype = jnp.dtype(mxu_dtype)
    out_dtype = jnp.dtype(x.dtype if out_dtype is None else out_dtype)

    bb = B if batch_block is None else int(batch_block)
    assert B % bb == 0, "batch_block must divide the batch size"
    assert bb == B or bb % 8 == 0, "batch_block must be a multiple of 8 (tiling)"
    nb = B // bb

    if time_block is None:
        budget = 4 * 1024 * 1024          # one gates_x pipeline buffer (bytes)
        time_block = 1
        for tt in (32, 16, 8, 4, 2, 1):
            if T % tt == 0 and tt * bb * H4 * 4 <= budget:
                time_block = tt
                break
    Tt = int(time_block)
    assert T % Tt == 0, "time_block must divide the sequence length"
    nt = T // Tt

    # ---- Hoisted input projection: one big fully-parallel matmul (M = T*B) ---
    # Produced time-major so it lands directly in the layout the sequential
    # kernel streams (no output-side transpose of the large gates_x array).
    b_all = (params["bias_ih"] + params["bias_hh"]).astype(jnp.float32)
    xt = jnp.swapaxes(x, 0, 1)                                     # (T, B, I)
    prec = lax.Precision.HIGHEST if mxu_dtype == jnp.float32 else None
    gx = jnp.einsum("tbi,gi->tbg",
                    xt.astype(mxu_dtype),
                    params["weight_ih"].astype(mxu_dtype),
                    precision=prec,
                    preferred_element_type=jnp.float32) + b_all    # (T, B, 4H) f32

    w_hh = params["weight_hh"].T.astype(mxu_dtype)                 # (H, 4H)
    gamma = params["gamma"].astype(jnp.float32)                    # (5, H)
    beta = params["beta"].astype(jnp.float32)                      # (5, H)

    # VMEM budget for the resident + pipelined working set (with headroom).
    # NOTE: on v7x (64 MiB physical) keep mxu_dtype=bf16 for large H.
    resident = (
        w_hh.size * mxu_dtype.itemsize            # W_hh, single-buffered
        + 2 * 5 * H * 4                           # gamma, beta
        + 2 * Tt * bb * H4 * 4                    # gates_x blocks (double buf)
        + 2 * Tt * bb * H * out_dtype.itemsize    # y blocks
        + 4 * bb * H * 4                          # h0/c0 blocks
        + 4 * bb * H * out_dtype.itemsize         # hn/cn blocks
        + 2 * bb * H * 4                          # h/c f32 scratch
        + 4 * bb * H4 * 4                         # gates working-set slack
    )
    vmem_limit = int(min(max(2 * resident, 8 * 1024 * 1024), 128 * 1024 * 1024))

    flops = int(T * B * (2 * H * H4 + 24 * H))
    transcendentals = int(T * B * (5 * H + 5))
    bytes_accessed = int(
        gx.size * 4 + T * B * H * out_dtype.itemsize + 4 * B * H * 4
        + nb * (w_hh.size * mxu_dtype.itemsize + 10 * H * 4))

    kernel = functools.partial(_lstm_seq_kernel, mxu_dtype=mxu_dtype)

    def call(single_buffer_consts):
        const_kw = ({"pipeline_mode": pl.Buffered(1)}
                    if single_buffer_consts else {})
        return pl.pallas_call(
            kernel,
            out_shape=(
                jax.ShapeDtypeStruct((T, B, H), out_dtype),
                jax.ShapeDtypeStruct((B, H), x.dtype),
                jax.ShapeDtypeStruct((B, H), x.dtype),
            ),
            grid_spec=pltpu.PrefetchScalarGridSpec(
                num_scalar_prefetch=0,
                grid=(nb, nt),
                in_specs=[
                    pl.BlockSpec((Tt, bb, H4), lambda b, t: (t, b, 0)),      # gates_x
                    pl.BlockSpec((bb, H), lambda b, t: (b, 0)),              # h0
                    pl.BlockSpec((bb, H), lambda b, t: (b, 0)),              # c0
                    pl.BlockSpec((H, H4), lambda b, t: (0, 0), **const_kw),  # W_hh
                    pl.BlockSpec((5, H), lambda b, t: (0, 0), **const_kw),   # gamma
                    pl.BlockSpec((5, H), lambda b, t: (0, 0), **const_kw),   # beta
                ],
                out_specs=[
                    pl.BlockSpec((Tt, bb, H), lambda b, t: (t, b, 0)),       # y chunk
                    pl.BlockSpec((bb, H), lambda b, t: (b, 0)),              # h_n
                    pl.BlockSpec((bb, H), lambda b, t: (b, 0)),              # c_n
                ],
                scratch_shapes=[
                    pltpu.VMEM((bb, H), jnp.float32),   # h carry (f32)
                    pltpu.VMEM((bb, H), jnp.float32),   # c carry (f32)
                ],
            ),
            compiler_params=pltpu.CompilerParams(
                dimension_semantics=("parallel", "arbitrary"),
                vmem_limit_bytes=vmem_limit),
            cost_estimate=pl.CostEstimate(
                flops=flops, transcendentals=transcendentals,
                bytes_accessed=bytes_accessed),
        )(gx, h0, c0, w_hh, gamma, beta)

    try:
        y, hn, cn = call(True)
    except Exception:  # fall back if Buffered(1) is unsupported by this Pallas
        y, hn, cn = call(False)

    return jnp.swapaxes(y, 0, 1), hn, cn


def layernorm_lstm_layer_ref(x, h0, c0, params):
    """Pure-JAX reference mirroring the PyTorch forward (untouched layout)."""
    wih, whh = params["weight_ih"], params["weight_hh"]
    bih, bhh = params["bias_ih"], params["bias_hh"]
    gamma, beta = params["gamma"], params["beta"]

    def ln(z, g, b):
        m = z.mean(-1, keepdims=True)
        v = ((z - m) ** 2).mean(-1, keepdims=True)
        return (z - m) / jnp.sqrt(v + LN_EPS) * g + b

    h, c = h0, c0
    outs = []
    for t in range(x.shape[1]):
        xt = x[:, t, :]
        gates = xt @ wih.T + bih + h @ whh.T + bhh
        i_g, f_g, g_g, o_g = jnp.split(gates, 4, axis=1)
        i_g = jax.nn.sigmoid(ln(i_g, gamma[0], beta[0]))
        f_g = jax.nn.sigmoid(ln(f_g, gamma[1], beta[1]))
        g_g = jnp.tanh(ln(g_g, gamma[2], beta[2]))
        o_g = jax.nn.sigmoid(ln(o_g, gamma[3], beta[3]))
        c = ln(f_g * c + i_g * g_g, gamma[4], beta[4])
        h = o_g * jnp.tanh(c)
        outs.append(h)
    return jnp.stack(outs, axis=1), h, c


def init_params(key, input_size, hidden_size, dtype=jnp.float32):
    """PyTorch-layout params; weights U(-stdv, stdv) like reset_parameters()."""
    stdv = 1.0 / (hidden_size ** 0.5)
    ks = jax.random.split(key, 6)
    u = lambda k, shape: jax.random.uniform(k, shape, dtype, minval=-stdv, maxval=stdv)
    return {
        "weight_ih": u(ks[0], (4 * hidden_size, input_size)),
        "weight_hh": u(ks[1], (4 * hidden_size, hidden_size)),
        "bias_ih": u(ks[2], (4 * hidden_size,)),
        "bias_hh": u(ks[3], (4 * hidden_size,)),
        # nn.LayerNorm defaults are gamma=1, beta=0; perturb slightly so the
        # affine path is exercised (rows: [i, f, g(cx), o, cy]).
        "gamma": 1.0 + 0.1 * u(ks[4], (5, hidden_size)),
        "beta": 0.1 * u(ks[5], (5, hidden_size)),
    }


if __name__ == "__main__":
    B, T, INPUT_SIZE, HIDDEN_SIZE = 4, 8, 16, 32

    key = jax.random.PRNGKey(0)
    kp, kx, kh, kc = jax.random.split(key, 4)

    params = init_params(kp, INPUT_SIZE, HIDDEN_SIZE)
    x = jax.random.uniform(kx, (B, T, INPUT_SIZE), jnp.float32)
    h0 = jax.random.uniform(kh, (B, HIDDEN_SIZE), jnp.float32)
    c0 = jax.random.uniform(kc, (B, HIDDEN_SIZE), jnp.float32)

    want_y, want_h, want_c = layernorm_lstm_layer_ref(x, h0, c0, params)

    # Exact-parity path: f32 MXU operands, default (single) time chunk.
    out, hn, cn = layernorm_lstm_layer(x, h0, c0, params, mxu_dtype=jnp.float32)
    jax.block_until_ready((out, hn, cn))
    assert out.shape == (B, T, HIDDEN_SIZE)
    assert hn.shape == (B, HIDDEN_SIZE) and cn.shape == (B, HIDDEN_SIZE)
    for got, want, name in ((out, want_y, "out"), (hn, want_h, "hn"), (cn, want_c, "cn")):
        assert jnp.allclose(got, want, atol=1e-4, rtol=1e-4), (
            name, float(jnp.max(jnp.abs(got - want))))

    # Exercise the carry across multiple time chunks (nt > 1).
    out_c, hn_c, cn_c = layernorm_lstm_layer(x, h0, c0, params,
                                             mxu_dtype=jnp.float32, time_block=2)
    jax.block_until_ready((out_c, hn_c, cn_c))
    for got, want, name in ((out_c, want_y, "out_tc"), (hn_c, want_h, "hn_tc"),
                            (cn_c, want_c, "cn_tc")):
        assert jnp.allclose(got, want, atol=1e-4, rtol=1e-4), (
            name, float(jnp.max(jnp.abs(got - want))))

    # Exercise batch tiling (nb > 1) together with time chunking.
    B2 = 16
    kx2, kh2, kc2 = jax.random.split(jax.random.PRNGKey(1), 3)
    x2 = jax.random.uniform(kx2, (B2, T, INPUT_SIZE), jnp.float32)
    h02 = jax.random.uniform(kh2, (B2, HIDDEN_SIZE), jnp.float32)
    c02 = jax.random.uniform(kc2, (B2, HIDDEN_SIZE), jnp.float32)
    want2 = layernorm_lstm_layer_ref(x2, h02, c02, params)
    got2 = layernorm_lstm_layer(x2, h02, c02, params, mxu_dtype=jnp.float32,
                                batch_block=8, time_block=2)
    jax.block_until_ready(got2)
    for got, want, name in zip(got2, want2, ("out_b", "hn_b", "cn_b")):
        assert jnp.allclose(got, want, atol=1e-4, rtol=1e-4), (
            name, float(jnp.max(jnp.abs(got - want))))

    # Production default: bf16 MXU operands (f32 accumulation / carry / LN math).
    out16, hn16, cn16 = layernorm_lstm_layer(x, h0, c0, params)
    jax.block_until_ready((out16, hn16, cn16))
    assert bool(jnp.all(jnp.isfinite(out16)))
    for got, want, name in ((out16, want_y, "out_bf16"), (hn16, want_h, "hn_bf16"),
                            (cn16, want_c, "cn_bf16")):
        assert jnp.allclose(got, want, atol=3e-2, rtol=3e-2), (
            name, float(jnp.max(jnp.abs(got - want))))

    print("KERNEL_OK")
</pallas_src>

<mosaic_0001>
module attributes {stable_mosaic.version = 11 : i64} {
  func.func @_lstm_seq_kernel(%arg0: i32, %arg1: i32, %arg2: memref<8x4x128xf32, #tpu.memory_space<vmem>>, %arg3: memref<4x32xf32, #tpu.memory_space<vmem>>, %arg4: memref<4x32xf32, #tpu.memory_space<vmem>>, %arg5: memref<32x128xf32, #tpu.memory_space<vmem>>, %arg6: memref<5x32xf32, #tpu.memory_space<vmem>>, %arg7: memref<5x32xf32, #tpu.memory_space<vmem>>, %arg8: memref<8x4x32xf32, #tpu.memory_space<vmem>>, %arg9: memref<4x32xf32, #tpu.memory_space<vmem>>, %arg10: memref<4x32xf32, #tpu.memory_space<vmem>>, %arg11: memref<4x32xf32, #tpu.memory_space<vmem>>, %arg12: memref<4x32xf32, #tpu.memory_space<vmem>>) attributes {dimension_semantics = [#tpu.dimension_semantics<parallel>, #tpu.dimension_semantics<arbitrary>], iteration_bounds = array<i64: 1, 1>, scalar_prefetch = 0 : i64, scratch_operands = 2 : i64, tpu.core_type = #tpu.core_type<tc>, window_params = [{transform_indices = @transform_0, window_bounds = array<i64: 8, 4, 128>}, {transform_indices = @transform_1, window_bounds = array<i64: 4, 32>}, {transform_indices = @transform_2, window_bounds = array<i64: 4, 32>}, {pipeline_mode = #tpu.pipeline_mode<synchronous>, transform_indices = @transform_3, window_bounds = array<i64: 32, 128>}, {pipeline_mode = #tpu.pipeline_mode<synchronous>, transform_indices = @transform_4, window_bounds = array<i64: 5, 32>}, {pipeline_mode = #tpu.pipeline_mode<synchronous>, transform_indices = @transform_5, window_bounds = array<i64: 5, 32>}, {transform_indices = @transform_6, window_bounds = array<i64: 8, 4, 32>}, {transform_indices = @transform_7, window_bounds = array<i64: 4, 32>}, {transform_indices = @transform_8, window_bounds = array<i64: 4, 32>}]} {
    %c0_i32 = arith.constant 0 : i32
    %0 = arith.cmpi eq, %arg1, %c0_i32 : i32
    %1 = arith.extui %0 : i1 to i32
    %c0_i32_0 = arith.constant 0 : i32
    %2 = arith.cmpi ne, %1, %c0_i32_0 : i32
    scf.if %2 {
      %c0_350 = arith.constant 0 : index
      %c0_351 = arith.constant 0 : index
      %1200 = vector.load %arg3[%c0_350, %c0_351] : memref<4x32xf32, #tpu.memory_space<vmem>>, vector<4x32xf32>
      %c0_352 = arith.constant 0 : index
      %c0_353 = arith.constant 0 : index
      %1201 = vector.load %arg11[%c0_352, %c0_353] : memref<4x32xf32, #tpu.memory_space<vmem>>, vector<4x32xf32>
      tpu.vector_store %arg11[%c0_352, %c0_353], %1200 {strides = array<i32>} : memref<4x32xf32, #tpu.memory_space<vmem>>, vector<4x32xf32>,
      %c0_354 = arith.constant 0 : index
      %c0_355 = arith.constant 0 : index
      %1202 = vector.load %arg4[%c0_354, %c0_355] : memref<4x32xf32, #tpu.memory_space<vmem>>, vector<4x32xf32>
      %c0_356 = arith.constant 0 : index
      %c0_357 = arith.constant 0 : index
      %1203 = vector.load %arg12[%c0_356, %c0_357] : memref<4x32xf32, #tpu.memory_space<vmem>>, vector<4x32xf32>
      tpu.vector_store %arg12[%c0_356, %c0_357], %1202 {strides = array<i32>} : memref<4x32xf32, #tpu.memory_space<vmem>>, vector<4x32xf32>,
    } else {
    }
    %c0 = arith.constant 0 : index
    %c0_1 = arith.constant 0 : index
    %3 = vector.load %arg6[%c0, %c0_1] : memref<5x32xf32, #tpu.memory_space<vmem>>, vector<5x32xf32>
    %c0_2 = arith.constant 0 : index
    %c0_3 = arith.constant 0 : index
    %4 = vector.load %arg7[%c0_2, %c0_3] : memref<5x32xf32, #tpu.memory_space<vmem>>, vector<5x32xf32>
    %c0_i32_4 = arith.constant 0 : i32
    %c0_5 = arith.constant 0 : index
    %c0_6 = arith.constant 0 : index
    %5 = vector.load %arg11[%c0_5, %c0_6] : memref<4x32xf32, #tpu.memory_space<vmem>>, vector<4x32xf32>
    %6 = arith.index_cast %c0_i32_4 : i32 to index
    %c0_7 = arith.constant 0 : index
    %c0_8 = arith.constant 0 : index
    %7 = vector.load %arg2[%6, %c0_7, %c0_8] : memref<8x4x128xf32, #tpu.memory_space<vmem>>, vector<1x4x128xf32>
    %8 = vector.shape_cast %7 : vector<1x4x128xf32> to vector<4x128xf32>
    %c0_9 = arith.constant 0 : index
    %c0_10 = arith.constant 0 : index
    %9 = vector.load %arg5[%c0_9, %c0_10] : memref<32x128xf32, #tpu.memory_space<vmem>>, vector<32x128xf32>
    %cst = arith.constant dense<0.000000e+00> : vector<4x128xf32>
    %10 = tpu.matmul %5, %9, %cst {dimension_numbers = #tpu.dot_dimension_numbers<[1], [0], [0], [1], [0, 0, 1, 1], [], []>} : vector<4x32xf32>, vector<32x128xf32>, vector<4x128xf32> -> vector<4x128xf32>
    %11 = arith.addf %8, %10 : vector<4x128xf32>
    %12 = vector.extract_strided_slice %11 {offsets = [0, 0], sizes = [4, 32], strides = [1, 1]} : vector<4x128xf32> to vector<4x32xf32>
    %13 = vector.extract_strided_slice %3 {offsets = [0, 0], sizes = [1, 32], strides = [1, 1]} : vector<5x32xf32> to vector<1x32xf32>
    %14 = vector.extract_strided_slice %4 {offsets = [0, 0], sizes = [1, 32], strides = [1, 1]} : vector<5x32xf32> to vector<1x32xf32>
    %cst_11 = arith.constant dense<0.000000e+00> : vector<4xf32>
    %15 = vector.multi_reduction <add>, %12, %cst_11 [1] : vector<4x32xf32> to vector<4xf32>
    %16 = vector.shape_cast %15 : vector<4xf32> to vector<4x1xf32>
    %cst_12 = arith.constant 3.200000e+01 : f32
    %17 = vector.broadcast %cst_12 : f32 to vector<4x1xf32>
    %18 = arith.divf %16, %17 : vector<4x1xf32>
    %19 = vector.broadcast %18 : vector<4x1xf32> to vector<4x32xf32>
    %20 = arith.subf %12, %19 : vector<4x32xf32>
    %21 = arith.mulf %20, %20 : vector<4x32xf32>
    %cst_13 = arith.constant dense<0.000000e+00> : vector<4xf32>
    %22 = vector.multi_reduction <add>, %21, %cst_13 [1] : vector<4x32xf32> to vector<4xf32>
    %23 = vector.shape_cast %22 : vector<4xf32> to vector<4x1xf32>
    %cst_14 = arith.constant 3.200000e+01 : f32
    %24 = vector.broadcast %cst_14 : f32 to vector<4x1xf32>
    %25 = arith.divf %23, %24 : vector<4x1xf32>
    %cst_15 = arith.constant 9.99999974E-6 : f32
    %26 = vector.broadcast %cst_15 : f32 to vector<4x1xf32>
    %27 = arith.addf %25, %26 : vector<4x1xf32>
    %28 = math.rsqrt %27 : vector<4x1xf32>
    %29 = vector.broadcast %28 : vector<4x1xf32> to vector<4x32xf32>
    %30 = arith.mulf %20, %29 : vector<4x32xf32>
    %31 = vector.broadcast %13 : vector<1x32xf32> to vector<4x32xf32>
    %32 = arith.mulf %30, %31 : vector<4x32xf32>
    %33 = vector.broadcast %14 : vector<1x32xf32> to vector<4x32xf32>
    %34 = arith.addf %32, %33 : vector<4x32xf32>
    %35 = arith.negf %34 : vector<4x32xf32>
    %36 = math.exp %35 : vector<4x32xf32>
    %cst_16 = arith.constant 1.000000e+00 : f32
    %37 = vector.broadcast %cst_16 : f32 to vector<4x32xf32>
    %38 = arith.addf %37, %36 : vector<4x32xf32>
    %39 = arith.divf %37, %38 : vector<4x32xf32>
    %40 = vector.extract_strided_slice %11 {offsets = [0, 32], sizes = [4, 32], strides = [1, 1]} : vector<4x128xf32> to vector<4x32xf32>
    %41 = vector.extract_strided_slice %3 {offsets = [1, 0], sizes = [1, 32], strides = [1, 1]} : vector<5x32xf32> to vector<1x32xf32>
    %42 = vector.extract_strided_slice %4 {offsets = [1, 0], sizes = [1, 32], strides = [1, 1]} : vector<5x32xf32> to vector<1x32xf32>
    %cst_17 = arith.constant dense<0.000000e+00> : vector<4xf32>
    %43 = vector.multi_reduction <add>, %40, %cst_17 [1] : vector<4x32xf32> to vector<4xf32>
    %44 = vector.shape_cast %43 : vector<4xf32> to vector<4x1xf32>
    %cst_18 = arith.constant 3.200000e+01 : f32
    %45 = vector.broadcast %cst_18 : f32 to vector<4x1xf32>
    %46 = arith.divf %44, %45 : vector<4x1xf32>
    %47 = vector.broadcast %46 : vector<4x1xf32> to vector<4x32xf32>
    %48 = arith.subf %40, %47 : vector<4x32xf32>
    %49 = arith.mulf %48, %48 : vector<4x32xf32>
    %cst_19 = arith.constant dense<0.000000e+00> : vector<4xf32>
    %50 = vector.multi_reduction <add>, %49, %cst_19 [1] : vector<4x32xf32> to vector<4xf32>
    %51 = vector.shape_cast %50 : vector<4xf32> to vector<4x1xf32>
    %cst_20 = arith.constant 3.200000e+01 : f32
    %52 = vector.broadcast %cst_20 : f32 to vector<4x1xf32>
    %53 = arith.divf %51, %52 : vector<4x1xf32>
    %cst_21 = arith.constant 9.99999974E-6 : f32
    %54 = vector.broadcast %cst_21 : f32 to vector<4x1xf32>
    %55 = arith.addf %53, %54 : vector<4x1xf32>
    %56 = math.rsqrt %55 : vector<4x1xf32>
    %57 = vector.broadcast %56 : vector<4x1xf32> to vector<4x32xf32>
    %58 = arith.mulf %48, %57 : vector<4x32xf32>
    %59 = vector.broadcast %41 : vector<1x32xf32> to vector<4x32xf32>
    %60 = arith.mulf %58, %59 : vector<4x32xf32>
    %61 = vector.broadcast %42 : vector<1x32xf32> to vector<4x32xf32>
    %62 = arith.addf %60, %61 : vector<4x32xf32>
    %63 = arith.negf %62 : vector<4x32xf32>
    %64 = math.exp %63 : vector<4x32xf32>
    %cst_22 = arith.constant 1.000000e+00 : f32
    %65 = vector.broadcast %cst_22 : f32 to vector<4x32xf32>
    %66 = arith.addf %65, %64 : vector<4x32xf32>
    %67 = arith.divf %65, %66 : vector<4x32xf32>
    %68 = vector.extract_strided_slice %11 {offsets = [0, 64], sizes = [4, 32], strides = [1, 1]} : vector<4x128xf32> to vector<4x32xf32>
    %69 = vector.extract_strided_slice %3 {offsets = [2, 0], sizes = [1, 32], strides = [1, 1]} : vector<5x32xf32> to vector<1x32xf32>
    %70 = vector.extract_strided_slice %4 {offsets = [2, 0], sizes = [1, 32], strides = [1, 1]} : vector<5x32xf32> to vector<1x32xf32>
    %cst_23 = arith.constant dense<0.000000e+00> : vector<4xf32>
    %71 = vector.multi_reduction <add>, %68, %cst_23 [1] : vector<4x32xf32> to vector<4xf32>
    %72 = vector.shape_cast %71 : vector<4xf32> to vector<4x1xf32>
    %cst_24 = arith.constant 3.200000e+01 : f32
    %73 = vector.broadcast %cst_24 : f32 to vector<4x1xf32>
    %74 = arith.divf %72, %73 : vector<4x1xf32>
    %75 = vector.broadcast %74 : vector<4x1xf32> to vector<4x32xf32>
    %76 = arith.subf %68, %75 : vector<4x32xf32>
    %77 = arith.mulf %76, %76 : vector<4x32xf32>
    %cst_25 = arith.constant dense<0.000000e+00> : vector<4xf32>
    %78 = vector.multi_reduction <add>, %77, %cst_25 [1] : vector<4x32xf32> to vector<4xf32>
    %79 = vector.shape_cast %78 : vector<4xf32> to vector<4x1xf32>
    %cst_26 = arith.constant 3.200000e+01 : f32
    %80 = vector.broadcast %cst_26 : f32 to vector<4x1xf32>
    %81 = arith.divf %79, %80 : vector<4x1xf32>
    %cst_27 = arith.constant 9.99999974E-6 : f32
    %82 = vector.broadcast %cst_27 : f32 to vector<4x1xf32>
    %83 = arith.addf %81, %82 : vector<4x1xf32>
    %84 = math.rsqrt %83 : vector<4x1xf32>
    %85 = vector.broadcast %84 : vector<4x1xf32> to vector<4x32xf32>
    %86 = arith.mulf %76, %85 : vector<4x32xf32>
    %87 = vector.broadcast %69 : vector<1x32xf32> to vector<4x32xf32>
    %88 = arith.mulf %86, %87 : vector<4x32xf32>
    %89 = vector.broadcast %70 : vector<1x32xf32> to vector<4x32xf32>
    %90 = arith.addf %88, %89 : vector<4x32xf32>
    %91 = math.tanh %90 : vector<4x32xf32>
    %92 = vector.extract_strided_slice %11 {offsets = [0, 96], sizes = [4, 32], strides = [1, 1]} : vector<4x128xf32> to vector<4x32xf32>
    %93 = vector.extract_strided_slice %3 {offsets = [3, 0], sizes = [1, 32], strides = [1, 1]} : vector<5x32xf32> to vector<1x32xf32>
    %94 = vector.extract_strided_slice %4 {offsets = [3, 0], sizes = [1, 32], strides = [1, 1]} : vector<5x32xf32> to vector<1x32xf32>
    %cst_28 = arith.constant dense<0.000000e+00> : vector<4xf32>
    %95 = vector.multi_reduction <add>, %92, %cst_28 [1] : vector<4x32xf32> to vector<4xf32>
    %96 = vector.shape_cast %95 : vector<4xf32> to vector<4x1xf32>
    %cst_29 = arith.constant 3.200000e+01 : f32
    %97 = vector.broadcast %cst_29 : f32 to vector<4x1xf32>
    %98 = arith.divf %96, %97 : vector<4x1xf32>
    %99 = vector.broadcast %98 : vector<4x1xf32> to vector<4x32xf32>
    %100 = arith.subf %92, %99 : vector<4x32xf32>
    %101 = arith.mulf %100, %100 : vector<4x32xf32>
    %cst_30 = arith.constant dense<0.000000e+00> : vector<4xf32>
    %102 = vector.multi_reduction <add>, %101, %cst_30 [1] : vector<4x32xf32> to vector<4xf32>
    %103 = vector.shape_cast %102 : vector<4xf32> to vector<4x1xf32>
    %cst_31 = arith.constant 3.200000e+01 : f32
    %104 = vector.broadcast %cst_31 : f32 to vector<4x1xf32>
    %105 = arith.divf %103, %104 : vector<4x1xf32>
    %cst_32 = arith.constant 9.99999974E-6 : f32
    %106 = vector.broadcast %cst_32 : f32 to vector<4x1xf32>
    %107 = arith.addf %105, %106 : vector<4x1xf32>
    %108 = math.rsqrt %107 : vector<4x1xf32>
    %109 = vector.broadcast %108 : vector<4x1xf32> to vector<4x32xf32>
    %110 = arith.mulf %100, %109 : vector<4x32xf32>
    %111 = vector.broadcast %93 : vector<1x32xf32> to vector<4x32xf32>
    %112 = arith.mulf %110, %111 : vector<4x32xf32>
    %113 = vector.broadcast %94 : vector<1x32xf32> to vector<4x32xf32>
    %114 = arith.addf %112, %113 : vector<4x32xf32>
    %115 = arith.negf %114 : vector<4x32xf32>
    %116 = math.exp %115 : vector<4x32xf32>
    %cst_33 = arith.constant 1.000000e+00 : f32
    %117 = vector.broadcast %cst_33 : f32 to vector<4x32xf32>
    %118 = arith.addf %117, %116 : vector<4x32xf32>
    %119 = arith.divf %117, %118 : vector<4x32xf32>
    %c0_34 = arith.constant 0 : index
    %c0_35 = arith.constant 0 : index
    %120 = vector.load %arg12[%c0_34, %c0_35] : memref<4x32xf32, #tpu.memory_space<vmem>>, vector<4x32xf32>
    %121 = arith.mulf %67, %120 : vector<4x32xf32>
    %122 = arith.mulf %39, %91 : vector<4x32xf32>
    %123 = arith.addf %121, %122 : vector<4x32xf32>
    %124 = vector.extract_strided_slice %3 {offsets = [4, 0], sizes = [1, 32], strides = [1, 1]} : vector<5x32xf32> to vector<1x32xf32>
    %125 = vector.extract_strided_slice %4 {offsets = [4, 0], sizes = [1, 32], strides = [1, 1]} : vector<5x32xf32> to vector<1x32xf32>
    %cst_36 = arith.constant dense<0.000000e+00> : vector<4xf32>
    %126 = vector.multi_reduction <add>, %123, %cst_36 [1] : vector<4x32xf32> to vector<4xf32>
    %127 = vector.shape_cast %126 : vector<4xf32> to vector<4x1xf32>
    %cst_37 = arith.constant 3.200000e+01 : f32
    %128 = vector.broadcast %cst_37 : f32 to vector<4x1xf32>
    %129 = arith.divf %127, %128 : vector<4x1xf32>
    %130 = vector.broadcast %129 : vector<4x1xf32> to vector<4x32xf32>
    %131 = arith.subf %123, %130 : vector<4x32xf32>
    %132 = arith.mulf %131, %131 : vector<4x32xf32>
    %cst_38 = arith.constant dense<0.000000e+00> : vector<4xf32>
    %133 = vector.multi_reduction <add>, %132, %cst_38 [1] : vector<4x32xf32> to vector<4xf32>
    %134 = vector.shape_cast %133 : vector<4xf32> to vector<4x1xf32>
    %cst_39 = arith.constant 3.200000e+01 : f32
    %135 = vector.broadcast %cst_39 : f32 to vector<4x1xf32>
    %136 = arith.divf %134, %135 : vector<4x1xf32>
    %cst_40 = arith.constant 9.99999974E-6 : f32
    %137 = vector.broadcast %cst_40 : f32 to vector<4x1xf32>
    %138 = arith.addf %136, %137 : vector<4x1xf32>
    %139 = math.rsqrt %138 : vector<4x1xf32>
    %140 = vector.broadcast %139 : vector<4x1xf32> to vector<4x32xf32>
    %141 = arith.mulf %131, %140 : vector<4x32xf32>
    %142 = vector.broadcast %124 : vector<1x32xf32> to vector<4x32xf32>
    %143 = arith.mulf %141, %142 : vector<4x32xf32>
    %144 = vector.broadcast %125 : vector<1x32xf32> to vector<4x32xf32>
    %145 = arith.addf %143, %144 : vector<4x32xf32>
    %146 = math.tanh %145 : vector<4x32xf32>
    %147 = arith.mulf %119, %146 : vector<4x32xf32>
    %c0_41 = arith.constant 0 : index
    %c0_42 = arith.constant 0 : index
    %148 = vector.load %arg11[%c0_41, %c0_42] : memref<4x32xf32, #tpu.memory_space<vmem>>, vector<4x32xf32>
    tpu.vector_store %arg11[%c0_41, %c0_42], %147 {strides = array<i32>} : memref<4x32xf32, #tpu.memory_space<vmem>>, vector<4x32xf32>,
    %c0_43 = arith.constant 0 : index
    %c0_44 = arith.constant 0 : index
    %149 = vector.load %arg12[%c0_43, %c0_44] : memref<4x32xf32, #tpu.memory_space<vmem>>, vector<4x32xf32>
    tpu.vector_store %arg12[%c0_43, %c0_44], %145 {strides = array<i32>} : memref<4x32xf32, #tpu.memory_space<vmem>>, vector<4x32xf32>,
    %150 = arith.index_cast %c0_i32_4 : i32 to index
    %c0_45 = arith.constant 0 : index
    %c0_46 = arith.constant 0 : index
    %151 = vector.load %arg8[%150, %c0_45, %c0_46] : memref<8x4x32xf32, #tpu.memory_space<vmem>>, vector<1x4x32xf32>
    %152 = vector.shape_cast %151 : vector<1x4x32xf32> to vector<4x32xf32>
    %153 = vector.shape_cast %147 : vector<4x32xf32> to vector<1x4x32xf32>
    tpu.vector_store %arg8[%150, %c0_45, %c0_46], %153 {strides = array<i32>} : memref<8x4x32xf32, #tpu.memory_space<vmem>>, vector<1x4x32xf32>,
    %c1_i32 = arith.constant 1 : i32
    %c0_47 = arith.constant 0 : index
    %c0_48 = arith.constant 0 : index
    %154 = vector.load %arg11[%c0_47, %c0_48] : memref<4x32xf32, #tpu.memory_space<vmem>>, vector<4x32xf32>
    %155 = arith.index_cast %c1_i32 : i32 to index
    %c0_49 = arith.constant 0 : index
    %c0_50 = arith.constant 0 : index
    %156 = vector.load %arg2[%155, %c0_49, %c0_50] : memref<8x4x128xf32, #tpu.memory_space<vmem>>, vector<1x4x128xf32>
    %157 = vector.shape_cast %156 : vector<1x4x128xf32> to vector<4x128xf32>
    %c0_51 = arith.constant 0 : index
    %c0_52 = arith.constant 0 : index
    %158 = vector.load %arg5[%c0_51, %c0_52] : memref<32x128xf32, #tpu.memory_space<vmem>>, vector<32x128xf32>
    %cst_53 = arith.constant dense<0.000000e+00> : vector<4x128xf32>
    %159 = tpu.matmul %154, %158, %cst_53 {dimension_numbers = #tpu.dot_dimension_numbers<[1], [0], [0], [1], [0, 0, 1, 1], [], []>} : vector<4x32xf32>, vector<32x128xf32>, vector<4x128xf32> -> vector<4x128xf32>
    %160 = arith.addf %157, %159 : vector<4x128xf32>
    %161 = vector.extract_strided_slice %160 {offsets = [0, 0], sizes = [4, 32], strides = [1, 1]} : vector<4x128xf32> to vector<4x32xf32>
    %162 = vector.extract_strided_slice %3 {offsets = [0, 0], sizes = [1, 32], strides = [1, 1]} : vector<5x32xf32> to vector<1x32xf32>
    %163 = vector.extract_strided_slice %4 {offsets = [0, 0], sizes = [1, 32], strides = [1, 1]} : vector<5x32xf32> to vector<1x32xf32>
    %cst_54 = arith.constant dense<0.000000e+00> : vector<4xf32>
    %164 = vector.multi_reduction <add>, %161, %cst_54 [1] : vector<4x32xf32> to vector<4xf32>
    %165 = vector.shape_cast %164 : vector<4xf32> to vector<4x1xf32>
    %cst_55 = arith.constant 3.200000e+01 : f32
    %166 = vector.broadcast %cst_55 : f32 to vector<4x1xf32>
    %167 = arith.divf %165, %166 : vector<4x1xf32>
    %168 = vector.broadcast %167 : vector<4x1xf32> to vector<4x32xf32>
    %169 = arith.subf %161, %168 : vector<4x32xf32>
    %170 = arith.mulf %169, %169 : vector<4x32xf32>
    %cst_56 = arith.constant dense<0.000000e+00> : vector<4xf32>
    %171 = vector.multi_reduction <add>, %170, %cst_56 [1] : vector<4x32xf32> to vector<4xf32>
    %172 = vector.shape_cast %171 : vector<4xf32> to vector<4x1xf32>
    %cst_57 = arith.constant 3.200000e+01 : f32
    %173 = vector.broadcast %cst_57 : f32 to vector<4x1xf32>
    %174 = arith.divf %172, %173 : vector<4x1xf32>
    %cst_58 = arith.constant 9.99999974E-6 : f32
    %175 = vector.broadcast %cst_58 : f32 to vector<4x1xf32>
    %176 = arith.addf %174, %175 : vector<4x1xf32>
    %177 = math.rsqrt %176 : vector<4x1xf32>
    %178 = vector.broadcast %177 : vector<4x1xf32> to vector<4x32xf32>
    %179 = arith.mulf %169, %178 : vector<4x32xf32>
    %180 = vector.broadcast %162 : vector<1x32xf32> to vector<4x32xf32>
    %181 = arith.mulf %179, %180 : vector<4x32xf32>
    %182 = vector.broadcast %163 : vector<1x32xf32> to vector<4x32xf32>
    %183 = arith.addf %181, %182 : vector<4x32xf32>
    %184 = arith.negf %183 : vector<4x32xf32>
    %185 = math.exp %184 : vector<4x32xf32>
    %cst_59 = arith.constant 1.000000e+00 : f32
    %186 = vector.broadcast %cst_59 : f32 to vector<4x32xf32>
    %187 = arith.addf %186, %185 : vector<4x32xf32>
    %188 = arith.divf %186, %187 : vector<4x32xf32>
    %189 = vector.extract_strided_slice %160 {offsets = [0, 32], sizes = [4, 32], strides = [1, 1]} : vector<4x128xf32> to vector<4x32xf32>
    %190 = vector.extract_strided_slice %3 {offsets = [1, 0], sizes = [1, 32], strides = [1, 1]} : vector<5x32xf32> to vector<1x32xf32>
    %191 = vector.extract_strided_slice %4 {offsets = [1, 0], sizes = [1, 32], strides = [1, 1]} : vector<5x32xf32> to vector<1x32xf32>
    %cst_60 = arith.constant dense<0.000000e+00> : vector<4xf32>
    %192 = vector.multi_reduction <add>, %189, %cst_60 [1] : vector<4x32xf32> to vector<4xf32>
    %193 = vector.shape_cast %192 : vector<4xf32> to vector<4x1xf32>
    %cst_61 = arith.constant 3.200000e+01 : f32
    %194 = vector.broadcast %cst_61 : f32 to vector<4x1xf32>
    %195 = arith.divf %193, %194 : vector<4x1xf32>
    %196 = vector.broadcast %195 : vector<4x1xf32> to vector<4x32xf32>
    %197 = arith.subf %189, %196 : vector<4x32xf32>
    %198 = arith.mulf %197, %197 : vector<4x32xf32>
    %cst_62 = arith.constant dense<0.000000e+00> : vector<4xf32>
    %199 = vector.multi_reduction <add>, %198, %cst_62 [1] : vector<4x32xf32> to vector<4xf32>
    %200 = vector.shape_cast %199 : vector<4xf32> to vector<4x1xf32>
    %cst_63 = arith.constant 3.200000e+01 : f32
    %201 = vector.broadcast %cst_63 : f32 to vector<4x1xf32>
    %202 = arith.divf %200, %201 : vector<4x1xf32>
    %cst_64 = arith.constant 9.99999974E-6 : f32
    %203 = vector.broadcast %cst_64 : f32 to vector<4x1xf32>
    %204 = arith.addf %202, %203 : vector<4x1xf32>
    %205 = math.rsqrt %204 : vector<4x1xf32>
    %206 = vector.broadcast %205 : vector<4x1xf32> to vector<4x32xf32>
    %207 = arith.mulf %197, %206 : vector<4x32xf32>
    %208 = vector.broadcast %190 : vector<1x32xf32> to vector<4x32xf32>
    %209 = arith.mulf %207, %208 : vector<4x32xf32>
    %210 = vector.broadcast %191 : vector<1x32xf32> to vector<4x32xf32>
    %211 = arith.addf %209, %210 : vector<4x32xf32>
    %212 = arith.negf %211 : vector<4x32xf32>
    %213 = math.exp %212 : vector<4x32xf32>
    %cst_65 = arith.constant 1.000000e+00 : f32
    %214 = vector.broadcast %cst_65 : f32 to vector<4x32xf32>
    %215 = arith.addf %214, %213 : vector<4x32xf32>
    %216 = arith.divf %214, %215 : vector<4x32xf32>
    %217 = vector.extract_strided_slice %160 {offsets = [0, 64], sizes = [4, 32], strides = [1, 1]} : vector<4x128xf32> to vector<4x32xf32>
    %218 = vector.extract_strided_slice %3 {offsets = [2, 0], sizes = [1, 32], strides = [1, 1]} : vector<5x32xf32> to vector<1x32xf32>
    %219 = vector.extract_strided_slice %4 {offsets = [2, 0], sizes = [1, 32], strides = [1, 1]} : vector<5x32xf32> to vector<1x32xf32>
    %cst_66 = arith.constant dense<0.000000e+00> : vector<4xf32>
    %220 = vector.multi_reduction <add>, %217, %cst_66 [1] : vector<4x32xf32> to vector<4xf32>
    %221 = vector.shape_cast %220 : vector<4xf32> to vector<4x1xf32>
    %cst_67 = arith.constant 3.200000e+01 : f32
    %222 = vector.broadcast %cst_67 : f32 to vector<4x1xf32>
    %223 = arith.divf %221, %222 : vector<4x1xf32>
    %224 = vector.broadcast %223 : vector<4x1xf32> to vector<4x32xf32>
    %225 = arith.subf %217, %224 : vector<4x32xf32>
    %226 = arith.mulf %225, %225 : vector<4x32xf32>
    %cst_68 = arith.constant dense<0.000000e+00> : vector<4xf32>
    %227 = vector.multi_reduction <add>, %226, %cst_68 [1] : vector<4x32xf32> to vector<4xf32>
    %228 = vector.shape_cast %227 : vector<4xf32> to vector<4x1xf32>
    %cst_69 = arith.constant 3.200000e+01 : f32
    %229 = vector.broadcast %cst_69 : f32 to vector<4x1xf32>
    %230 = arith.divf %228, %229 : vector<4x1xf32>
    %cst_70 = arith.constant 9.99999974E-6 : f32
    %231 = vector.broadcast %cst_70 : f32 to vector<4x1xf32>
    %232 = arith.addf %230, %231 : vector<4x1xf32>
    %233 = math.rsqrt %232 : vector<4x1xf32>
    %234 = vector.broadcast %233 : vector<4x1xf32> to vector<4x32xf32>
    %235 = arith.mulf %225, %234 : vector<4x32xf32>
    %236 = vector.broadcast %218 : vector<1x32xf32> to vector<4x32xf32>
    %237 = arith.mulf %235, %236 : vector<4x32xf32>
    %238 = vector.broadcast %219 : vector<1x32xf32> to vector<4x32xf32>
    %239 = arith.addf %237, %238 : vector<4x32xf32>
    %240 = math.tanh %239 : vector<4x32xf32>
    %241 = vector.extract_strided_slice %160 {offsets = [0, 96], sizes = [4, 32], strides = [1, 1]} : vector<4x128xf32> to vector<4x32xf32>
    %242 = vector.extract_strided_slice %3 {offsets = [3, 0], sizes = [1, 32], strides = [1, 1]} : vector<5x32xf32> to vector<1x32xf32>
    %243 = vector.extract_strided_slice %4 {offsets = [3, 0], sizes = [1, 32], strides = [1, 1]} : vector<5x32xf32> to vector<1x32xf32>
    %cst_71 = arith.constant dense<0.000000e+00> : vector<4xf32>
    %244 = vector.multi_reduction <add>, %241, %cst_71 [1] : vector<4x32xf32> to vector<4xf32>
    %245 = vector.shape_cast %244 : vector<4xf32> to vector<4x1xf32>
    %cst_72 = arith.constant 3.200000e+01 : f32
    %246 = vector.broadcast %cst_72 : f32 to vector<4x1xf32>
    %247 = arith.divf %245, %246 : vector<4x1xf32>
    %248 = vector.broadcast %247 : vector<4x1xf32> to vector<4x32xf32>
    %249 = arith.subf %241, %248 : vector<4x32xf32>
    %250 = arith.mulf %249, %249 : vector<4x32xf32>
    %cst_73 = arith.constant dense<0.000000e+00> : vector<4xf32>
    %251 = vector.multi_reduction <add>, %250, %cst_73 [1] : vector<4x32xf32> to vector<4xf32>
    %252 = vector.shape_cast %251 : vector<4xf32> to vector<4x1xf32>
    %cst_74 = arith.constant 3.200000e+01 : f32
    %253 = vector.broadcast %cst_74 : f32 to vector<4x1xf32>
    %254 = arith.divf %252, %253 : vector<4x1xf32>
    %cst_75 = arith.constant 9.99999974E-6 : f32
    %255 = vector.broadcast %cst_75 : f32 to vector<4x1xf32>
    %256 = arith.addf %254, %255 : vector<4x1xf32>
    %257 = math.rsqrt %256 : vector<4x1xf32>
    %258 = vector.broadcast %257 : vector<4x1xf32> to vector<4x32xf32>
    %259 = arith.mulf %249, %258 : vector<4x32xf32>
    %260 = vector.broadcast %242 : vector<1x32xf32> to vector<4x32xf32>
    %261 = arith.mulf %259, %260 : vector<4x32xf32>
    %262 = vector.broadcast %243 : vector<1x32xf32> to vector<4x32xf32>
    %263 = arith.addf %261, %262 : vector<4x32xf32>
    %264 = arith.negf %263 : vector<4x32xf32>
    %265 = math.exp %264 : vector<4x32xf32>
    %cst_76 = arith.constant 1.000000e+00 : f32
    %266 = vector.broadcast %cst_76 : f32 to vector<4x32xf32>
    %267 = arith.addf %266, %265 : vector<4x32xf32>
    %268 = arith.divf %266, %267 : vector<4x32xf32>
    %c0_77 = arith.constant 0 : index
    %c0_78 = arith.constant 0 : index
    %269 = vector.load %arg12[%c0_77, %c0_78] : memref<4x32xf32, #tpu.memory_space<vmem>>, vector<4x32xf32>
    %270 = arith.mulf %216, %269 : vector<4x32xf32>
    %271 = arith.mulf %188, %240 : vector<4x32xf32>
    %272 = arith.addf %270, %271 : vector<4x32xf32>
    %273 = vector.extract_strided_slice %3 {offsets = [4, 0], sizes = [1, 32], strides = [1, 1]} : vector<5x32xf32> to vector<1x32xf32>
    %274 = vector.extract_strided_slice %4 {offsets = [4, 0], sizes = [1, 32], strides = [1, 1]} : vector<5x32xf32> to vector<1x32xf32>
    %cst_79 = arith.constant dense<0.000000e+00> : vector<4xf32>
    %275 = vector.multi_reduction <add>, %272, %cst_79 [1] : vector<4x32xf32> to vector<4xf32>
    %276 = vector.shape_cast %275 : vector<4xf32> to vector<4x1xf32>
    %cst_80 = arith.constant 3.200000e+01 : f32
    %277 = vector.broadcast %cst_80 : f32 to vector<4x1xf32>
    %278 = arith.divf %276, %277 : vector<4x1xf32>
    %279 = vector.broadcast %278 : vector<4x1xf32> to vector<4x32xf32>
    %280 = arith.subf %272, %279 : vector<4x32xf32>
    %281 = arith.mulf %280, %280 : vector<4x32xf32>
    %cst_81 = arith.constant dense<0.000000e+00> : vector<4xf32>
    %282 = vector.multi_reduction <add>, %281, %cst_81 [1] : vector<4x32xf32> to vector<4xf32>
    %283 = vector.shape_cast %282 : vector<4xf32> to vector<4x1xf32>
    %cst_82 = arith.constant 3.200000e+01 : f32
    %284 = vector.broadcast %cst_82 : f32 to vector<4x1xf32>
    %285 = arith.divf %283, %284 : vector<4x1xf32>
    %cst_83 = arith.constant 9.99999974E-6 : f32
    %286 = vector.broadcast %cst_83 : f32 to vector<4x1xf32>
    %287 = arith.addf %285, %286 : vector<4x1xf32>
    %288 = math.rsqrt %287 : vector<4x1xf32>
    %289 = vector.broadcast %288 : vector<4x1xf32> to vector<4x32xf32>
    %290 = arith.mulf %280, %289 : vector<4x32xf32>
    %291 = vector.broadcast %273 : vector<1x32xf32> to vector<4x32xf32>
    %292 = arith.mulf %290, %291 : vector<4x32xf32>
    %293 = vector.broadcast %274 : vector<1x32xf32> to vector<4x32xf32>
    %294 = arith.addf %292, %293 : vector<4x32xf32>
    %295 = math.tanh %294 : vector<4x32xf32>
    %296 = arith.mulf %268, %295 : vector<4x32xf32>
    %c0_84 = arith.constant 0 : index
    %c0_85 = arith.constant 0 : index
    %297 = vector.load %arg11[%c0_84, %c0_85] : memref<4x32xf32, #tpu.memory_space<vmem>>, vector<4x32xf32>
    tpu.vector_store %arg11[%c0_84, %c0_85], %296 {strides = array<i32>} : memref<4x32xf32, #tpu.memory_space<vmem>>, vector<4x32xf32>,
    %c0_86 = arith.constant 0 : index
    %c0_87 = arith.constant 0 : index
    %298 = vector.load %arg12[%c0_86, %c0_87] : memref<4x32xf32, #tpu.memory_space<vmem>>, vector<4x32xf32>
    tpu.vector_store %arg12[%c0_86, %c0_87], %294 {strides = array<i32>} : memref<4x32xf32, #tpu.memory_space<vmem>>, vector<4x32xf32>,
    %299 = arith.index_cast %c1_i32 : i32 to index
    %c0_88 = arith.constant 0 : index
    %c0_89 = arith.constant 0 : index
    %300 = vector.load %arg8[%299, %c0_88, %c0_89] : memref<8x4x32xf32, #tpu.memory_space<vmem>>, vector<1x4x32xf32>
    %301 = vector.shape_cast %300 : vector<1x4x32xf32> to vector<4x32xf32>
    %302 = vector.shape_cast %296 : vector<4x32xf32> to vector<1x4x32xf32>
    tpu.vector_store %arg8[%299, %c0_88, %c0_89], %302 {strides = array<i32>} : memref<8x4x32xf32, #tpu.memory_space<vmem>>, vector<1x4x32xf32>,
    %c2_i32 = arith.constant 2 : i32
    %c0_90 = arith.constant 0 : index
    %c0_91 = arith.constant 0 : index
    %303 = vector.load %arg11[%c0_90, %c0_91] : memref<4x32xf32, #tpu.memory_space<vmem>>, vector<4x32xf32>
    %304 = arith.index_cast %c2_i32 : i32 to index
    %c0_92 = arith.constant 0 : index
    %c0_93 = arith.constant 0 : index
    %305 = vector.load %arg2[%304, %c0_92, %c0_93] : memref<8x4x128xf32, #tpu.memory_space<vmem>>, vector<1x4x128xf32>
    %306 = vector.shape_cast %305 : vector<1x4x128xf32> to vector<4x128xf32>
    %c0_94 = arith.constant 0 : index
    %c0_95 = arith.constant 0 : index
    %307 = vector.load %arg5[%c0_94, %c0_95] : memref<32x128xf32, #tpu.memory_space<vmem>>, vector<32x128xf32>
    %cst_96 = arith.constant dense<0.000000e+00> : vector<4x128xf32>
    %308 = tpu.matmul %303, %307, %cst_96 {dimension_numbers = #tpu.dot_dimension_numbers<[1], [0], [0], [1], [0, 0, 1, 1], [], []>} : vector<4x32xf32>, vector<32x128xf32>, vector<4x128xf32> -> vector<4x128xf32>
    %309 = arith.addf %306, %308 : vector<4x128xf32>
    %310 = vector.extract_strided_slice %309 {offsets = [0, 0], sizes = [4, 32], strides = [1, 1]} : vector<4x128xf32> to vector<4x32xf32>
    %311 = vector.extract_strided_slice %3 {offsets = [0, 0], sizes = [1, 32], strides = [1, 1]} : vector<5x32xf32> to vector<1x32xf32>
    %312 = vector.extract_strided_slice %4 {offsets = [0, 0], sizes = [1, 32], strides = [1, 1]} : vector<5x32xf32> to vector<1x32xf32>
    %cst_97 = arith.constant dense<0.000000e+00> : vector<4xf32>
    %313 = vector.multi_reduction <add>, %310, %cst_97 [1] : vector<4x32xf32> to vector<4xf32>
    %314 = vector.shape_cast %313 : vector<4xf32> to vector<4x1xf32>
    %cst_98 = arith.constant 3.200000e+01 : f32
    %315 = vector.broadcast %cst_98 : f32 to vector<4x1xf32>
    %316 = arith.divf %314, %315 : vector<4x1xf32>
    %317 = vector.broadcast %316 : vector<4x1xf32> to vector<4x32xf32>
    %318 = arith.subf %310, %317 : vector<4x32xf32>
    %319 = arith.mulf %318, %318 : vector<4x32xf32>
    %cst_99 = arith.constant dense<0.000000e+00> : vector<4xf32>
    %320 = vector.multi_reduction <add>, %319, %cst_99 [1] : vector<4x32xf32> to vector<4xf32>
    %321 = vector.shape_cast %320 : vector<4xf32> to vector<4x1xf32>
    %cst_100 = arith.constant 3.200000e+01 : f32
    %322 = vector.broadcast %cst_100 : f32 to vector<4x1xf32>
    %323 = arith.divf %321, %322 : vector<4x1xf32>
    %cst_101 = arith.constant 9.99999974E-6 : f32
    %324 = vector.broadcast %cst_101 : f32 to vector<4x1xf32>
    %325 = arith.addf %323, %324 : vector<4x1xf32>
    %326 = math.rsqrt %325 : vector<4x1xf32>
    %327 = vector.broadcast %326 : vector<4x1xf32> to vector<4x32xf32>
    %328 = arith.mulf %318, %327 : vector<4x32xf32>
    %329 = vector.broadcast %311 : vector<1x32xf32> to vector<4x32xf32>
    %330 = arith.mulf %328, %329 : vector<4x32xf32>
    %331 = vector.broadcast %312 : vector<1x32xf32> to vector<4x32xf32>
    %332 = arith.addf %330, %331 : vector<4x32xf32>
    %333 = arith.negf %332 : vector<4x32xf32>
    %334 = math.exp %333 : vector<4x32xf32>
    %cst_102 = arith.constant 1.000000e+00 : f32
    %335 = vector.broadcast %cst_102 : f32 to vector<4x32xf32>
    %336 = arith.addf %335, %334 : vector<4x32xf32>
    %337 = arith.divf %335, %336 : vector<4x32xf32>
    %338 = vector.extract_strided_slice %309 {offsets = [0, 32], sizes = [4, 32], strides = [1, 1]} : vector<4x128xf32> to vector<4x32xf32>
    %339 = vector.extract_strided_slice %3 {offsets = [1, 0], sizes = [1, 32], strides = [1, 1]} : vector<5x32xf32> to vector<1x32xf32>
    %340 = vector.extract_strided_slice %4 {offsets = [1, 0], sizes = [1, 32], strides = [1, 1]} : vector<5x32xf32> to vector<1x32xf32>
    %cst_103 = arith.constant dense<0.000000e+00> : vector<4xf32>
    %341 = vector.multi_reduction <add>, %338, %cst_103 [1] : vector<4x32xf32> to vector<4xf32>
    %342 = vector.shape_cast %341 : vector<4xf32> to vector<4x1xf32>
    %cst_104 = arith.constant 3.200000e+01 : f32
    %343 = vector.broadcast %cst_104 : f32 to vector<4x1xf32>
    %344 = arith.divf %342, %343 : vector<4x1xf32>
    %345 = vector.broadcast %344 : vector<4x1xf32> to vector<4x32xf32>
    %346 = arith.subf %338, %345 : vector<4x32xf32>
    %347 = arith.mulf %346, %346 : vector<4x32xf32>
    %cst_105 = arith.constant dense<0.000000e+00> : vector<4xf32>
    %348 = vector.multi_reduction <add>, %347, %cst_105 [1] : vector<4x32xf32> to vector<4xf32>
    %349 = vector.shape_cast %348 : vector<4xf32> to vector<4x1xf32>
    %cst_106 = arith.constant 3.200000e+01 : f32
    %350 = vector.broadcast %cst_106 : f32 to vector<4x1xf32>
    %351 = arith.divf %349, %350 : vector<4x1xf32>
    %cst_107 = arith.constant 9.99999974E-6 : f32
    %352 = vector.broadcast %cst_107 : f32 to vector<4x1xf32>
    %353 = arith.addf %351, %352 : vector<4x1xf32>
    %354 = math.rsqrt %353 : vector<4x1xf32>
    %355 = vector.broadcast %354 : vector<4x1xf32> to vector<4x32xf32>
    %356 = arith.mulf %346, %355 : vector<4x32xf32>
    %357 = vector.broadcast %339 : vector<1x32xf32> to vector<4x32xf32>
    %358 = arith.mulf %356, %357 : vector<4x32xf32>
    %359 = vector.broadcast %340 : vector<1x32xf32> to vector<4x32xf32>
    %360 = arith.addf %358, %359 : vector<4x32xf32>
    %361 = arith.negf %360 : vector<4x32xf32>
    %362 = math.exp %361 : vector<4x32xf32>
    %cst_108 = arith.constant 1.000000e+00 : f32
    %363 = vector.broadcast %cst_108 : f32 to vector<4x32xf32>
    %364 = arith.addf %363, %362 : vector<4x32xf32>
    %365 = arith.divf %363, %364 : vector<4x32xf32>
    %366 = vector.extract_strided_slice %309 {offsets = [0, 64], sizes = [4, 32], strides = [1, 1]} : vector<4x128xf32> to vector<4x32xf32>
    %367 = vector.extract_strided_slice %3 {offsets = [2, 0], sizes = [1, 32], strides = [1, 1]} : vector<5x32xf32> to vector<1x32xf32>
    %368 = vector.extract_strided_slice %4 {offsets = [2, 0], sizes = [1, 32], strides = [1, 1]} : vector<5x32xf32> to vector<1x32xf32>
    %cst_109 = arith.constant dense<0.000000e+00> : vector<4xf32>
    %369 = vector.multi_reduction <add>, %366, %cst_109 [1] : vector<4x32xf32> to vector<4xf32>
    %370 = vector.shape_cast %369 : vector<4xf32> to vector<4x1xf32>
    %cst_110 = arith.constant 3.200000e+01 : f32
    %371 = vector.broadcast %cst_110 : f32 to vector<4x1xf32>
    %372 = arith.divf %370, %371 : vector<4x1xf32>
    %373 = vector.broadcast %372 : vector<4x1xf32> to vector<4x32xf32>
    %374 = arith.subf %366, %373 : vector<4x32xf32>
    %375 = arith.mulf %374, %374 : vector<4x32xf32>
    %cst_111 = arith.constant dense<0.000000e+00> : vector<4xf32>
    %376 = vector.multi_reduction <add>, %375, %cst_111 [1] : vector<4x32xf32> to vector<4xf32>
    %377 = vector.shape_cast %376 : vector<4xf32> to vector<4x1xf32>
    %cst_112 = arith.constant 3.200000e+01 : f32
    %378 = vector.broadcast %cst_112 : f32 to vector<4x1xf32>
    %379 = arith.divf %377, %378 : vector<4x1xf32>
    %cst_113 = arith.constant 9.99999974E-6 : f32
    %380 = vector.broadcast %cst_113 : f32 to vector<4x1xf32>
    %381 = arith.addf %379, %380 : vector<4x1xf32>
    %382 = math.rsqrt %381 : vector<4x1xf32>
    %383 = vector.broadcast %382 : vector<4x1xf32> to vector<4x32xf32>
    %384 = arith.mulf %374, %383 : vector<4x32xf32>
    %385 = vector.broadcast %367 : vector<1x32xf32> to vector<4x32xf32>
    %386 = arith.mulf %384, %385 : vector<4x32xf32>
    %387 = vector.broadcast %368 : vector<1x32xf32> to vector<4x32xf32>
    %388 = arith.addf %386, %387 : vector<4x32xf32>
    %389 = math.tanh %388 : vector<4x32xf32>
    %390 = vector.extract_strided_slice %309 {offsets = [0, 96], sizes = [4, 32], strides = [1, 1]} : vector<4x128xf32> to vector<4x32xf32>
    %391 = vector.extract_strided_slice %3 {offsets = [3, 0], sizes = [1, 32], strides = [1, 1]} : vector<5x32xf32> to vector<1x32xf32>
    %392 = vector.extract_strided_slice %4 {offsets = [3, 0], sizes = [1, 32], strides = [1, 1]} : vector<5x32xf32> to vector<1x32xf32>
    %cst_114 = arith.constant dense<0.000000e+00> : vector<4xf32>
    %393 = vector.multi_reduction <add>, %390, %cst_114 [1] : vector<4x32xf32> to vector<4xf32>
    %394 = vector.shape_cast %393 : vector<4xf32> to vector<4x1xf32>
    %cst_115 = arith.constant 3.200000e+01 : f32
    %395 = vector.broadcast %cst_115 : f32 to vector<4x1xf32>
    %396 = arith.divf %394, %395 : vector<4x1xf32>
    %397 = vector.broadcast %396 : vector<4x1xf32> to vector<4x32xf32>
    %398 = arith.subf %390, %397 : vector<4x32xf32>
    %399 = arith.mulf %398, %398 : vector<4x32xf32>
    %cst_116 = arith.constant dense<0.000000e+00> : vector<4xf32>
    %400 = vector.multi_reduction <add>, %399, %cst_116 [1] : vector<4x32xf32> to vector<4xf32>
    %401 = vector.shape_cast %400 : vector<4xf32> to vector<4x1xf32>
    %cst_117 = arith.constant 3.200000e+01 : f32
    %402 = vector.broadcast %cst_117 : f32 to vector<4x1xf32>
    %403 = arith.divf %401, %402 : vector<4x1xf32>
    %cst_118 = arith.constant 9.99999974E-6 : f32
    %404 = vector.broadcast %cst_118 : f32 to vector<4x1xf32>
    %405 = arith.addf %403, %404 : vector<4x1xf32>
    %406 = math.rsqrt %405 : vector<4x1xf32>
    %407 = vector.broadcast %406 : vector<4x1xf32> to vector<4x32xf32>
    %408 = arith.mulf %398, %407 : vector<4x32xf32>
    %409 = vector.broadcast %391 : vector<1x32xf32> to vector<4x32xf32>
    %410 = arith.mulf %408, %409 : vector<4x32xf32>
    %411 = vector.broadcast %392 : vector<1x32xf32> to vector<4x32xf32>
    %412 = arith.addf %410, %411 : vector<4x32xf32>
    %413 = arith.negf %412 : vector<4x32xf32>
    %414 = math.exp %413 : vector<4x32xf32>
    %cst_119 = arith.constant 1.000000e+00 : f32
    %415 = vector.broadcast %cst_119 : f32 to vector<4x32xf32>
    %416 = arith.addf %415, %414 : vector<4x32xf32>
    %417 = arith.divf %415, %416 : vector<4x32xf32>
    %c0_120 = arith.constant 0 : index
    %c0_121 = arith.constant 0 : index
    %418 = vector.load %arg12[%c0_120, %c0_121] : memref<4x32xf32, #tpu.memory_space<vmem>>, vector<4x32xf32>
    %419 = arith.mulf %365, %418 : vector<4x32xf32>
    %420 = arith.mulf %337, %389 : vector<4x32xf32>
    %421 = arith.addf %419, %420 : vector<4x32xf32>
    %422 = vector.extract_strided_slice %3 {offsets = [4, 0], sizes = [1, 32], strides = [1, 1]} : vector<5x32xf32> to vector<1x32xf32>
    %423 = vector.extract_strided_slice %4 {offsets = [4, 0], sizes = [1, 32], strides = [1, 1]} : vector<5x32xf32> to vector<1x32xf32>
    %cst_122 = arith.constant dense<0.000000e+00> : vector<4xf32>
    %424 = vector.multi_reduction <add>, %421, %cst_122 [1] : vector<4x32xf32> to vector<4xf32>
    %425 = vector.shape_cast %424 : vector<4xf32> to vector<4x1xf32>
    %cst_123 = arith.constant 3.200000e+01 : f32
    %426 = vector.broadcast %cst_123 : f32 to vector<4x1xf32>
    %427 = arith.divf %425, %426 : vector<4x1xf32>
    %428 = vector.broadcast %427 : vector<4x1xf32> to vector<4x32xf32>
    %429 = arith.subf %421, %428 : vector<4x32xf32>
    %430 = arith.mulf %429, %429 : vector<4x32xf32>
    %cst_124 = arith.constant dense<0.000000e+00> : vector<4xf32>
    %431 = vector.multi_reduction <add>, %430, %cst_124 [1] : vector<4x32xf32> to vector<4xf32>
    %432 = vector.shape_cast %431 : vector<4xf32> to vector<4x1xf32>
    %cst_125 = arith.constant 3.200000e+01 : f32
    %433 = vector.broadcast %cst_125 : f32 to vector<4x1xf32>
    %434 = arith.divf %432, %433 : vector<4x1xf32>
    %cst_126 = arith.constant 9.99999974E-6 : f32
    %435 = vector.broadcast %cst_126 : f32 to vector<4x1xf32>
    %436 = arith.addf %434, %435 : vector<4x1xf32>
    %437 = math.rsqrt %436 : vector<4x1xf32>
    %438 = vector.broadcast %437 : vector<4x1xf32> to vector<4x32xf32>
    %439 = arith.mulf %429, %438 : vector<4x32xf32>
    %440 = vector.broadcast %422 : vector<1x32xf32> to vector<4x32xf32>
    %441 = arith.mulf %439, %440 : vector<4x32xf32>
    %442 = vector.broadcast %423 : vector<1x32xf32> to vector<4x32xf32>
    %443 = arith.addf %441, %442 : vector<4x32xf32>
    %444 = math.tanh %443 : vector<4x32xf32>
    %445 = arith.mulf %417, %444 : vector<4x32xf32>
    %c0_127 = arith.constant 0 : index
    %c0_128 = arith.constant 0 : index
    %446 = vector.load %arg11[%c0_127, %c0_128] : memref<4x32xf32, #tpu.memory_space<vmem>>, vector<4x32xf32>
    tpu.vector_store %arg11[%c0_127, %c0_128], %445 {strides = array<i32>} : memref<4x32xf32, #tpu.memory_space<vmem>>, vector<4x32xf32>,
    %c0_129 = arith.constant 0 : index
    %c0_130 = arith.constant 0 : index
    %447 = vector.load %arg12[%c0_129, %c0_130] : memref<4x32xf32, #tpu.memory_space<vmem>>, vector<4x32xf32>
    tpu.vector_store %arg12[%c0_129, %c0_130], %443 {strides = array<i32>} : memref<4x32xf32, #tpu.memory_space<vmem>>, vector<4x32xf32>,
    %448 = arith.index_cast %c2_i32 : i32 to index
    %c0_131 = arith.constant 0 : index
    %c0_132 = arith.constant 0 : index
    %449 = vector.load %arg8[%448, %c0_131, %c0_132] : memref<8x4x32xf32, #tpu.memory_space<vmem>>, vector<1x4x32xf32>
    %450 = vector.shape_cast %449 : vector<1x4x32xf32> to vector<4x32xf32>
    %451 = vector.shape_cast %445 : vector<4x32xf32> to vector<1x4x32xf32>
    tpu.vector_store %arg8[%448, %c0_131, %c0_132], %451 {strides = array<i32>} : memref<8x4x32xf32, #tpu.memory_space<vmem>>, vector<1x4x32xf32>,
    %c3_i32 = arith.constant 3 : i32
    %c0_133 = arith.constant 0 : index
    %c0_134 = arith.constant 0 : index
    %452 = vector.load %arg11[%c0_133, %c0_134] : memref<4x32xf32, #tpu.memory_space<vmem>>, vector<4x32xf32>
    %453 = arith.index_cast %c3_i32 : i32 to index
    %c0_135 = arith.constant 0 : index
    %c0_136 = arith.constant 0 : index
    %454 = vector.load %arg2[%453, %c0_135, %c0_136] : memref<8x4x128xf32, #tpu.memory_space<vmem>>, vector<1x4x128xf32>
    %455 = vector.shape_cast %454 : vector<1x4x128xf32> to vector<4x128xf32>
    %c0_137 = arith.constant 0 : index
    %c0_138 = arith.constant 0 : index
    %456 = vector.load %arg5[%c0_137, %c0_138] : memref<32x128xf32, #tpu.memory_space<vmem>>, vector<32x128xf32>
    %cst_139 = arith.constant dense<0.000000e+00> : vector<4x128xf32>
    %457 = tpu.matmul %452, %456, %cst_139 {dimension_numbers = #tpu.dot_dimension_numbers<[1], [0], [0], [1], [0, 0, 1, 1], [], []>} : vector<4x32xf32>, vector<32x128xf32>, vector<4x128xf32> -> vector<4x128xf32>
    %458 = arith.addf %455, %457 : vector<4x128xf32>
    %459 = vector.extract_strided_slice %458 {offsets = [0, 0], sizes = [4, 32], strides = [1, 1]} : vector<4x128xf32> to vector<4x32xf32>
    %460 = vector.extract_strided_slice %3 {offsets = [0, 0], sizes = [1, 32], strides = [1, 1]} : vector<5x32xf32> to vector<1x32xf32>
    %461 = vector.extract_strided_slice %4 {offsets = [0, 0], sizes = [1, 32], strides = [1, 1]} : vector<5x32xf32> to vector<1x32xf32>
    %cst_140 = arith.constant dense<0.000000e+00> : vector<4xf32>
    %462 = vector.multi_reduction <add>, %459, %cst_140 [1] : vector<4x32xf32> to vector<4xf32>
    %463 = vector.shape_cast %462 : vector<4xf32> to vector<4x1xf32>
    %cst_141 = arith.constant 3.200000e+01 : f32
    %464 = vector.broadcast %cst_141 : f32 to vector<4x1xf32>
    %465 = arith.divf %463, %464 : vector<4x1xf32>
    %466 = vector.broadcast %465 : vector<4x1xf32> to vector<4x32xf32>
    %467 = arith.subf %459, %466 : vector<4x32xf32>
    %468 = arith.mulf %467, %467 : vector<4x32xf32>
    %cst_142 = arith.constant dense<0.000000e+00> : vector<4xf32>
    %469 = vector.multi_reduction <add>, %468, %cst_142 [1] : vector<4x32xf32> to vector<4xf32>
    %470 = vector.shape_cast %469 : vector<4xf32> to vector<4x1xf32>
    %cst_143 = arith.constant 3.200000e+01 : f32
    %471 = vector.broadcast %cst_143 : f32 to vector<4x1xf32>
    %472 = arith.divf %470, %471 : vector<4x1xf32>
    %cst_144 = arith.constant 9.99999974E-6 : f32
    %473 = vector.broadcast %cst_144 : f32 to vector<4x1xf32>
    %474 = arith.addf %472, %473 : vector<4x1xf32>
    %475 = math.rsqrt %474 : vector<4x1xf32>
    %476 = vector.broadcast %475 : vector<4x1xf32> to vector<4x32xf32>
    %477 = arith.mulf %467, %476 : vector<4x32xf32>
    %478 = vector.broadcast %460 : vector<1x32xf32> to vector<4x32xf32>
    %479 = arith.mulf %477, %478 : vector<4x32xf32>
    %480 = vector.broadcast %461 : vector<1x32xf32> to vector<4x32xf32>
    %481 = arith.addf %479, %480 : vector<4x32xf32>
    %482 = arith.negf %481 : vector<4x32xf32>
    %483 = math.exp %482 : vector<4x32xf32>
    %cst_145 = arith.constant 1.000000e+00 : f32
    %484 = vector.broadcast %cst_145 : f32 to vector<4x32xf32>
    %485 = arith.addf %484, %483 : vector<4x32xf32>
    %486 = arith.divf %484, %485 : vector<4x32xf32>
    %487 = vector.extract_strided_slice %458 {offsets = [0, 32], sizes = [4, 32], strides = [1, 1]} : vector<4x128xf32> to vector<4x32xf32>
    %488 = vector.extract_strided_slice %3 {offsets = [1, 0], sizes = [1, 32], strides = [1, 1]} : vector<5x32xf32> to vector<1x32xf32>
    %489 = vector.extract_strided_slice %4 {offsets = [1, 0], sizes = [1, 32], strides = [1, 1]} : vector<5x32xf32> to vector<1x32xf32>
    %cst_146 = arith.constant dense<0.000000e+00> : vector<4xf32>
    %490 = vector.multi_reduction <add>, %487, %cst_146 [1] : vector<4x32xf32> to vector<4xf32>
    %491 = vector.shape_cast %490 : vector<4xf32> to vector<4x1xf32>
    %cst_147 = arith.constant 3.200000e+01 : f32
    %492 = vector.broadcast %cst_147 : f32 to vector<4x1xf32>
    %493 = arith.divf %491, %492 : vector<4x1xf32>
    %494 = vector.broadcast %493 : vector<4x1xf32> to vector<4x32xf32>
    %495 = arith.subf %487, %494 : vector<4x32xf32>
    %496 = arith.mulf %495, %495 : vector<4x32xf32>
    %cst_148 = arith.constant dense<0.000000e+00> : vector<4xf32>
    %497 = vector.multi_reduction <add>, %496, %cst_148 [1] : vector<4x32xf32> to vector<4xf32>
    %498 = vector.shape_cast %497 : vector<4xf32> to vector<4x1xf32>
    %cst_149 = arith.constant 3.200000e+01 : f32
    %499 = vector.broadcast %cst_149 : f32 to vector<4x1xf32>
    %500 = arith.divf %498, %499 : vector<4x1xf32>
    %cst_150 = arith.constant 9.99999974E-6 : f32
    %501 = vector.broadcast %cst_150 : f32 to vector<4x1xf32>
    %502 = arith.addf %500, %501 : vector<4x1xf32>
    %503 = math.rsqrt %502 : vector<4x1xf32>
    %504 = vector.broadcast %503 : vector<4x1xf32> to vector<4x32xf32>
    %505 = arith.mulf %495, %504 : vector<4x32xf32>
    %506 = vector.broadcast %488 : vector<1x32xf32> to vector<4x32xf32>
    %507 = arith.mulf %505, %506 : vector<4x32xf32>
    %508 = vector.broadcast %489 : vector<1x32xf32> to vector<4x32xf32>
    %509 = arith.addf %507, %508 : vector<4x32xf32>
    %510 = arith.negf %509 : vector<4x32xf32>
    %511 = math.exp %510 : vector<4x32xf32>
    %cst_151 = arith.constant 1.000000e+00 : f32
    %512 = vector.broadcast %cst_151 : f32 to vector<4x32xf32>
    %513 = arith.addf %512, %511 : vector<4x32xf32>
    %514 = arith.divf %512, %513 : vector<4x32xf32>
    %515 = vector.extract_strided_slice %458 {offsets = [0, 64], sizes = [4, 32], strides = [1, 1]} : vector<4x128xf32> to vector<4x32xf32>
    %516 = vector.extract_strided_slice %3 {offsets = [2, 0], sizes = [1, 32], strides = [1, 1]} : vector<5x32xf32> to vector<1x32xf32>
    %517 = vector.extract_strided_slice %4 {offsets = [2, 0], sizes = [1, 32], strides = [1, 1]} : vector<5x32xf32> to vector<1x32xf32>
    %cst_152 = arith.constant dense<0.000000e+00> : vector<4xf32>
    %518 = vector.multi_reduction <add>, %515, %cst_152 [1] : vector<4x32xf32> to vector<4xf32>
    %519 = vector.shape_cast %518 : vector<4xf32> to vector<4x1xf32>
    %cst_153 = arith.constant 3.200000e+01 : f32
    %520 = vector.broadcast %cst_153 : f32 to vector<4x1xf32>
    %521 = arith.divf %519, %520 : vector<4x1xf32>
    %522 = vector.broadcast %521 : vector<4x1xf32> to vector<4x32xf32>
    %523 = arith.subf %515, %522 : vector<4x32xf32>
    %524 = arith.mulf %523, %523 : vector<4x32xf32>
    %cst_154 = arith.constant dense<0.000000e+00> : vector<4xf32>
    %525 = vector.multi_reduction <add>, %524, %cst_154 [1] : vector<4x32xf32> to vector<4xf32>
    %526 = vector.shape_cast %525 : vector<4xf32> to vector<4x1xf32>
    %cst_155 = arith.constant 3.200000e+01 : f32
    %527 = vector.broadcast %cst_155 : f32 to vector<4x1xf32>
    %528 = arith.divf %526, %527 : vector<4x1xf32>
    %cst_156 = arith.constant 9.99999974E-6 : f32
    %529 = vector.broadcast %cst_156 : f32 to vector<4x1xf32>
    %530 = arith.addf %528, %529 : vector<4x1xf32>
    %531 = math.rsqrt %530 : vector<4x1xf32>
    %532 = vector.broadcast %531 : vector<4x1xf32> to vector<4x32xf32>
    %533 = arith.mulf %523, %532 : vector<4x32xf32>
    %534 = vector.broadcast %516 : vector<1x32xf32> to vector<4x32xf32>
    %535 = arith.mulf %533, %534 : vector<4x32xf32>
    %536 = vector.broadcast %517 : vector<1x32xf32> to vector<4x32xf32>
    %537 = arith.addf %535, %536 : vector<4x32xf32>
    %538 = math.tanh %537 : vector<4x32xf32>
    %539 = vector.extract_strided_slice %458 {offsets = [0, 96], sizes = [4, 32], strides = [1, 1]} : vector<4x128xf32> to vector<4x32xf32>
    %540 = vector.extract_strided_slice %3 {offsets = [3, 0], sizes = [1, 32], strides = [1, 1]} : vector<5x32xf32> to vector<1x32xf32>
    %541 = vector.extract_strided_slice %4 {offsets = [3, 0], sizes = [1, 32], strides = [1, 1]} : vector<5x32xf32> to vector<1x32xf32>
    %cst_157 = arith.constant dense<0.000000e+00> : vector<4xf32>
    %542 = vector.multi_reduction <add>, %539, %cst_157 [1] : vector<4x32xf32> to vector<4xf32>
    %543 = vector.shape_cast %542 : vector<4xf32> to vector<4x1xf32>
    %cst_158 = arith.constant 3.200000e+01 : f32
    %544 = vector.broadcast %cst_158 : f32 to vector<4x1xf32>
    %545 = arith.divf %543, %544 : vector<4x1xf32>
    %546 = vector.broadcast %545 : vector<4x1xf32> to vector<4x32xf32>
    %547 = arith.subf %539, %546 : vector<4x32xf32>
    %548 = arith.mulf %547, %547 : vector<4x32xf32>
    %cst_159 = arith.constant dense<0.000000e+00> : vector<4xf32>
    %549 = vector.multi_reduction <add>, %548, %cst_159 [1] : vector<4x32xf32> to vector<4xf32>
    %550 = vector.shape_cast %549 : vector<4xf32> to vector<4x1xf32>
    %cst_160 = arith.constant 3.200000e+01 : f32
    %551 = vector.broadcast %cst_160 : f32 to vector<4x1xf32>
    %552 = arith.divf %550, %551 : vector<4x1xf32>
    %cst_161 = arith.constant 9.99999974E-6 : f32
    %553 = vector.broadcast %cst_161 : f32 to vector<4x1xf32>
    %554 = arith.addf %552, %553 : vector<4x1xf32>
    %555 = math.rsqrt %554 : vector<4x1xf32>
    %556 = vector.broadcast %555 : vector<4x1xf32> to vector<4x32xf32>
    %557 = arith.mulf %547, %556 : vector<4x32xf32>
    %558 = vector.broadcast %540 : vector<1x32xf32> to vector<4x32xf32>
    %559 = arith.mulf %557, %558 : vector<4x32xf32>
    %560 = vector.broadcast %541 : vector<1x32xf32> to vector<4x32xf32>
    %561 = arith.addf %559, %560 : vector<4x32xf32>
    %562 = arith.negf %561 : vector<4x32xf32>
    %563 = math.exp %562 : vector<4x32xf32>
    %cst_162 = arith.constant 1.000000e+00 : f32
    %564 = vector.broadcast %cst_162 : f32 to vector<4x32xf32>
    %565 = arith.addf %564, %563 : vector<4x32xf32>
    %566 = arith.divf %564, %565 : vector<4x32xf32>
    %c0_163 = arith.constant 0 : index
    %c0_164 = arith.constant 0 : index
    %567 = vector.load %arg12[%c0_163, %c0_164] : memref<4x32xf32, #tpu.memory_space<vmem>>, vector<4x32xf32>
    %568 = arith.mulf %514, %567 : vector<4x32xf32>
    %569 = arith.mulf %486, %538 : vector<4x32xf32>
    %570 = arith.addf %568, %569 : vector<4x32xf32>
    %571 = vector.extract_strided_slice %3 {offsets = [4, 0], sizes = [1, 32], strides = [1, 1]} : vector<5x32xf32> to vector<1x32xf32>
    %572 = vector.extract_strided_slice %4 {offsets = [4, 0], sizes = [1, 32], strides = [1, 1]} : vector<5x32xf32> to vector<1x32xf32>
    %cst_165 = arith.constant dense<0.000000e+00> : vector<4xf32>
    %573 = vector.multi_reduction <add>, %570, %cst_165 [1] : vector<4x32xf32> to vector<4xf32>
    %574 = vector.shape_cast %573 : vector<4xf32> to vector<4x1xf32>
    %cst_166 = arith.constant 3.200000e+01 : f32
    %575 = vector.broadcast %cst_166 : f32 to vector<4x1xf32>
    %576 = arith.divf %574, %575 : vector<4x1xf32>
    %577 = vector.broadcast %576 : vector<4x1xf32> to vector<4x32xf32>
    %578 = arith.subf %570, %577 : vector<4x32xf32>
    %579 = arith.mulf %578, %578 : vector<4x32xf32>
    %cst_167 = arith.constant dense<0.000000e+00> : vector<4xf32>
    %580 = vector.multi_reduction <add>, %579, %cst_167 [1] : vector<4x32xf32> to vector<4xf32>
    %581 = vector.shape_cast %580 : vector<4xf32> to vector<4x1xf32>
    %cst_168 = arith.constant 3.200000e+01 : f32
    %582 = vector.broadcast %cst_168 : f32 to vector<4x1xf32>
    %583 = arith.divf %581, %582 : vector<4x1xf32>
    %cst_169 = arith.constant 9.99999974E-6 : f32
    %584 = vector.broadcast %cst_169 : f32 to vector<4x1xf32>
    %585 = arith.addf %583, %584 : vector<4x1xf32>
    %586 = math.rsqrt %585 : vector<4x1xf32>
    %587 = vector.broadcast %586 : vector<4x1xf32> to vector<4x32xf32>
    %588 = arith.mulf %578, %587 : vector<4x32xf32>
    %589 = vector.broadcast %571 : vector<1x32xf32> to vector<4x32xf32>
    %590 = arith.mulf %588, %589 : vector<4x32xf32>
    %591 = vector.broadcast %572 : vector<1x32xf32> to vector<4x32xf32>
    %592 = arith.addf %590, %591 : vector<4x32xf32>
    %593 = math.tanh %592 : vector<4x32xf32>
    %594 = arith.mulf %566, %593 : vector<4x32xf32>
    %c0_170 = arith.constant 0 : index
    %c0_171 = arith.constant 0 : index
    %595 = vector.load %arg11[%c0_170, %c0_171] : memref<4x32xf32, #tpu.memory_space<vmem>>, vector<4x32xf32>
    tpu.vector_store %arg11[%c0_170, %c0_171], %594 {strides = array<i32>} : memref<4x32xf32, #tpu.memory_space<vmem>>, vector<4x32xf32>,
    %c0_172 = arith.constant 0 : index
    %c0_173 = arith.constant 0 : index
    %596 = vector.load %arg12[%c0_172, %c0_173] : memref<4x32xf32, #tpu.memory_space<vmem>>, vector<4x32xf32>
    tpu.vector_store %arg12[%c0_172, %c0_173], %592 {strides = array<i32>} : memref<4x32xf32, #tpu.memory_space<vmem>>, vector<4x32xf32>,
    %597 = arith.index_cast %c3_i32 : i32 to index
    %c0_174 = arith.constant 0 : index
    %c0_175 = arith.constant 0 : index
    %598 = vector.load %arg8[%597, %c0_174, %c0_175] : memref<8x4x32xf32, #tpu.memory_space<vmem>>, vector<1x4x32xf32>
    %599 = vector.shape_cast %598 : vector<1x4x32xf32> to vector<4x32xf32>
    %600 = vector.shape_cast %594 : vector<4x32xf32> to vector<1x4x32xf32>
    tpu.vector_store %arg8[%597, %c0_174, %c0_175], %600 {strides = array<i32>} : memref<8x4x32xf32, #tpu.memory_space<vmem>>, vector<1x4x32xf32>,
    %c4_i32 = arith.constant 4 : i32
    %c0_176 = arith.constant 0 : index
    %c0_177 = arith.constant 0 : index
    %601 = vector.load %arg11[%c0_176, %c0_177] : memref<4x32xf32, #tpu.memory_space<vmem>>, vector<4x32xf32>
    %602 = arith.index_cast %c4_i32 : i32 to index
    %c0_178 = arith.constant 0 : index
    %c0_179 = arith.constant 0 : index
    %603 = vector.load %arg2[%602, %c0_178, %c0_179] : memref<8x4x128xf32, #tpu.memory_space<vmem>>, vector<1x4x128xf32>
    %604 = vector.shape_cast %603 : vector<1x4x128xf32> to vector<4x128xf32>
    %c0_180 = arith.constant 0 : index
    %c0_181 = arith.constant 0 : index
    %605 = vector.load %arg5[%c0_180, %c0_181] : memref<32x128xf32, #tpu.memory_space<vmem>>, vector<32x128xf32>
    %cst_182 = arith.constant dense<0.000000e+00> : vector<4x128xf32>
    %606 = tpu.matmul %601, %605, %cst_182 {dimension_numbers = #tpu.dot_dimension_numbers<[1], [0], [0], [1], [0, 0, 1, 1], [], []>} : vector<4x32xf32>, vector<32x128xf32>, vector<4x128xf32> -> vector<4x128xf32>
    %607 = arith.addf %604, %606 : vector<4x128xf32>
    %608 = vector.extract_strided_slice %607 {offsets = [0, 0], sizes = [4, 32], strides = [1, 1]} : vector<4x128xf32> to vector<4x32xf32>
    %609 = vector.extract_strided_slice %3 {offsets = [0, 0], sizes = [1, 32], strides = [1, 1]} : vector<5x32xf32> to vector<1x32xf32>
    %610 = vector.extract_strided_slice %4 {offsets = [0, 0], sizes = [1, 32], strides = [1, 1]} : vector<5x32xf32> to vector<1x32xf32>
    %cst_183 = arith.constant dense<0.000000e+00> : vector<4xf32>
    %611 = vector.multi_reduction <add>, %608, %cst_183 [1] : vector<4x32xf32> to vector<4xf32>
    %612 = vector.shape_cast %611 : vector<4xf32> to vector<4x1xf32>
    %cst_184 = arith.constant 3.200000e+01 : f32
    %613 = vector.broadcast %cst_184 : f32 to vector<4x1xf32>
    %614 = arith.divf %612, %613 : vector<4x1xf32>
    %615 = vector.broadcast %614 : vector<4x1xf32> to vector<4x32xf32>
    %616 = arith.subf %608, %615 : vector<4x32xf32>
    %617 = arith.mulf %616, %616 : vector<4x32xf32>
    %cst_185 = arith.constant dense<0.000000e+00> : vector<4xf32>
    %618 = vector.multi_reduction <add>, %617, %cst_185 [1] : vector<4x32xf32> to vector<4xf32>
    %619 = vector.shape_cast %618 : vector<4xf32> to vector<4x1xf32>
    %cst_186 = arith.constant 3.200000e+01 : f32
    %620 = vector.broadcast %cst_186 : f32 to vector<4x1xf32>
    %621 = arith.divf %619, %620 : vector<4x1xf32>
    %cst_187 = arith.constant 9.99999974E-6 : f32
    %622 = vector.broadcast %cst_187 : f32 to vector<4x1xf32>
    %623 = arith.addf %621, %622 : vector<4x1xf32>
    %624 = math.rsqrt %623 : vector<4x1xf32>
    %625 = vector.broadcast %624 : vector<4x1xf32> to vector<4x32xf32>
    %626 = arith.mulf %616, %625 : vector<4x32xf32>
    %627 = vector.broadcast %609 : vector<1x32xf32> to vector<4x32xf32>
    %628 = arith.mulf %626, %627 : vector<4x32xf32>
    %629 = vector.broadcast %610 : vector<1x32xf32> to vector<4x32xf32>
    %630 = arith.addf %628, %629 : vector<4x32xf32>
    %631 = arith.negf %630 : vector<4x32xf32>
    %632 = math.exp %631 : vector<4x32xf32>
    %cst_188 = arith.constant 1.000000e+00 : f32
    %633 = vector.broadcast %cst_188 : f32 to vector<4x32xf32>
    %634 = arith.addf %633, %632 : vector<4x32xf32>
    %635 = arith.divf %633, %634 : vector<4x32xf32>
    %636 = vector.extract_strided_slice %607 {offsets = [0, 32], sizes = [4, 32], strides = [1, 1]} : vector<4x128xf32> to vector<4x32xf32>
    %637 = vector.extract_strided_slice %3 {offsets = [1, 0], sizes = [1, 32], strides = [1, 1]} : vector<5x32xf32> to vector<1x32xf32>
    %638 = vector.extract_strided_slice %4 {offsets = [1, 0], sizes = [1, 32], strides = [1, 1]} : vector<5x32xf32> to vector<1x32xf32>
    %cst_189 = arith.constant dense<0.000000e+00> : vector<4xf32>
    %639 = vector.multi_reduction <add>, %636, %cst_189 [1] : vector<4x32xf32> to vector<4xf32>
    %640 = vector.shape_cast %639 : vector<4xf32> to vector<4x1xf32>
    %cst_190 = arith.constant 3.200000e+01 : f32
    %641 = vector.broadcast %cst_190 : f32 to vector<4x1xf32>
    %642 = arith.divf %640, %641 : vector<4x1xf32>
    %643 = vector.broadcast %642 : vector<4x1xf32> to vector<4x32xf32>
    %644 = arith.subf %636, %643 : vector<4x32xf32>
    %645 = arith.mulf %644, %644 : vector<4x32xf32>
    %cst_191 = arith.constant dense<0.000000e+00> : vector<4xf32>
    %646 = vector.multi_reduction <add>, %645, %cst_191 [1] : vector<4x32xf32> to vector<4xf32>
    %647 = vector.shape_cast %646 : vector<4xf32> to vector<4x1xf32>
    %cst_192 = arith.constant 3.200000e+01 : f32
    %648 = vector.broadcast %cst_192 : f32 to vector<4x1xf32>
    %649 = arith.divf %647, %648 : vector<4x1xf32>
    %cst_193 = arith.constant 9.99999974E-6 : f32
    %650 = vector.broadcast %cst_193 : f32 to vector<4x1xf32>
    %651 = arith.addf %649, %650 : vector<4x1xf32>
    %652 = math.rsqrt %651 : vector<4x1xf32>
    %653 = vector.broadcast %652 : vector<4x1xf32> to vector<4x32xf32>
    %654 = arith.mulf %644, %653 : vector<4x32xf32>
    %655 = vector.broadcast %637 : vector<1x32xf32> to vector<4x32xf32>
    %656 = arith.mulf %654, %655 : vector<4x32xf32>
    %657 = vector.broadcast %638 : vector<1x32xf32> to vector<4x32xf32>
    %658 = arith.addf %656, %657 : vector<4x32xf32>
    %659 = arith.negf %658 : vector<4x32xf32>
    %660 = math.exp %659 : vector<4x32xf32>
    %cst_194 = arith.constant 1.000000e+00 : f32
    %661 = vector.broadcast %cst_194 : f32 to vector<4x32xf32>
    %662 = arith.addf %661, %660 : vector<4x32xf32>
    %663 = arith.divf %661, %662 : vector<4x32xf32>
    %664 = vector.extract_strided_slice %607 {offsets = [0, 64], sizes = [4, 32], strides = [1, 1]} : vector<4x128xf32> to vector<4x32xf32>
    %665 = vector.extract_strided_slice %3 {offsets = [2, 0], sizes = [1, 32], strides = [1, 1]} : vector<5x32xf32> to vector<1x32xf32>
    %666 = vector.extract_strided_slice %4 {offsets = [2, 0], sizes = [1, 32], strides = [1, 1]} : vector<5x32xf32> to vector<1x32xf32>
    %cst_195 = arith.constant dense<0.000000e+00> : vector<4xf32>
    %667 = vector.multi_reduction <add>, %664, %cst_195 [1] : vector<4x32xf32> to vector<4xf32>
    %668 = vector.shape_cast %667 : vector<4xf32> to vector<4x1xf32>
    %cst_196 = arith.constant 3.200000e+01 : f32
    %669 = vector.broadcast %cst_196 : f32 to vector<4x1xf32>
    %670 = arith.divf %668, %669 : vector<4x1xf32>
    %671 = vector.broadcast %670 : vector<4x1xf32> to vector<4x32xf32>
    %672 = arith.subf %664, %671 : vector<4x32xf32>
    %673 = arith.mulf %672, %672 : vector<4x32xf32>
    %cst_197 = arith.constant dense<0.000000e+00> : vector<4xf32>
    %674 = vector.multi_reduction <add>, %673, %cst_197 [1] : vector<4x32xf32> to vector<4xf32>
    %675 = vector.shape_cast %674 : vector<4xf32> to vector<4x1xf32>
    %cst_198 = arith.constant 3.200000e+01 : f32
    %676 = vector.broadcast %cst_198 : f32 to vector<4x1xf32>
    %677 = arith.divf %675, %676 : vector<4x1xf32>
    %cst_199 = arith.constant 9.99999974E-6 : f32
    %678 = vector.broadcast %cst_199 : f32 to vector<4x1xf32>
    %679 = arith.addf %677, %678 : vector<4x1xf32>
    %680 = math.rsqrt %679 : vector<4x1xf32>
    %681 = vector.broadcast %680 : vector<4x1xf32> to vector<4x32xf32>
    %682 = arith.mulf %672, %681 : vector<4x32xf32>
    %683 = vector.broadcast %665 : vector<1x32xf32> to vector<4x32xf32>
    %684 = arith.mulf %682, %683 : vector<4x32xf32>
    %685 = vector.broadcast %666 : vector<1x32xf32> to vector<4x32xf32>
    %686 = arith.addf %684, %685 : vector<4x32xf32>
    %687 = math.tanh %686 : vector<4x32xf32>
    %688 = vector.extract_strided_slice %607 {offsets = [0, 96], sizes = [4, 32], strides = [1, 1]} : vector<4x128xf32> to vector<4x32xf32>
    %689 = vector.extract_strided_slice %3 {offsets = [3, 0], sizes = [1, 32], strides = [1, 1]} : vector<5x32xf32> to vector<1x32xf32>
    %690 = vector.extract_strided_slice %4 {offsets = [3, 0], sizes = [1, 32], strides = [1, 1]} : vector<5x32xf32> to vector<1x32xf32>
    %cst_200 = arith.constant dense<0.000000e+00> : vector<4xf32>
    %691 = vector.multi_reduction <add>, %688, %cst_200 [1] : vector<4x32xf32> to vector<4xf32>
    %692 = vector.shape_cast %691 : vector<4xf32> to vector<4x1xf32>
    %cst_201 = arith.constant 3.200000e+01 : f32
    %693 = vector.broadcast %cst_201 : f32 to vector<4x1xf32>
    %694 = arith.divf %692, %693 : vector<4x1xf32>
    %695 = vector.broadcast %694 : vector<4x1xf32> to vector<4x32xf32>
    %696 = arith.subf %688, %695 : vector<4x32xf32>
    %697 = arith.mulf %696, %696 : vector<4x32xf32>
    %cst_202 = arith.constant dense<0.000000e+00> : vector<4xf32>
    %698 = vector.multi_reduction <add>, %697, %cst_202 [1] : vector<4x32xf32> to vector<4xf32>
    %699 = vector.shape_cast %698 : vector<4xf32> to vector<4x1xf32>
    %cst_203 = arith.constant 3.200000e+01 : f32
    %700 = vector.broadcast %cst_203 : f32 to vector<4x1xf32>
    %701 = arith.divf %699, %700 : vector<4x1xf32>
    %cst_204 = arith.constant 9.99999974E-6 : f32
    %702 = vector.broadcast %cst_204 : f32 to vector<4x1xf32>
    %703 = arith.addf %701, %702 : vector<4x1xf32>
    %704 = math.rsqrt %703 : vector<4x1xf32>
    %705 = vector.broadcast %704 : vector<4x1xf32> to vector<4x32xf32>
    %706 = arith.mulf %696, %705 : vector<4x32xf32>
    %707 = vector.broadcast %689 : vector<1x32xf32> to vector<4x32xf32>
    %708 = arith.mulf %706, %707 : vector<4x32xf32>
    %709 = vector.broadcast %690 : vector<1x32xf32> to vector<4x32xf32>
    %710 = arith.addf %708, %709 : vector<4x32xf32>
    %711 = arith.negf %710 : vector<4x32xf32>
    %712 = math.exp %711 : vector<4x32xf32>
    %cst_205 = arith.constant 1.000000e+00 : f32
    %713 = vector.broadcast %cst_205 : f32 to vector<4x32xf32>
    %714 = arith.addf %713, %712 : vector<4x32xf32>
    %715 = arith.divf %713, %714 : vector<4x32xf32>
    %c0_206 = arith.constant 0 : index
    %c0_207 = arith.constant 0 : index
    %716 = vector.load %arg12[%c0_206, %c0_207] : memref<4x32xf32, #tpu.memory_space<vmem>>, vector<4x32xf32>
    %717 = arith.mulf %663, %716 : vector<4x32xf32>
    %718 = arith.mulf %635, %687 : vector<4x32xf32>
    %719 = arith.addf %717, %718 : vector<4x32xf32>
    %720 = vector.extract_strided_slice %3 {offsets = [4, 0], sizes = [1, 32], strides = [1, 1]} : vector<5x32xf32> to vector<1x32xf32>
    %721 = vector.extract_strided_slice %4 {offsets = [4, 0], sizes = [1, 32], strides = [1, 1]} : vector<5x32xf32> to vector<1x32xf32>
    %cst_208 = arith.constant dense<0.000000e+00> : vector<4xf32>
    %722 = vector.multi_reduction <add>, %719, %cst_208 [1] : vector<4x32xf32> to vector<4xf32>
    %723 = vector.shape_cast %722 : vector<4xf32> to vector<4x1xf32>
    %cst_209 = arith.constant 3.200000e+01 : f32
    %724 = vector.broadcast %cst_209 : f32 to vector<4x1xf32>
    %725 = arith.divf %723, %724 : vector<4x1xf32>
    %726 = vector.broadcast %725 : vector<4x1xf32> to vector<4x32xf32>
    %727 = arith.subf %719, %726 : vector<4x32xf32>
    %728 = arith.mulf %727, %727 : vector<4x32xf32>
    %cst_210 = arith.constant dense<0.000000e+00> : vector<4xf32>
    %729 = vector.multi_reduction <add>, %728, %cst_210 [1] : vector<4x32xf32> to vector<4xf32>
    %730 = vector.shape_cast %729 : vector<4xf32> to vector<4x1xf32>
    %cst_211 = arith.constant 3.200000e+01 : f32
    %731 = vector.broadcast %cst_211 : f32 to vector<4x1xf32>
    %732 = arith.divf %730, %731 : vector<4x1xf32>
    %cst_212 = arith.constant 9.99999974E-6 : f32
    %733 = vector.broadcast %cst_212 : f32 to vector<4x1xf32>
    %734 = arith.addf %732, %733 : vector<4x1xf32>
    %735 = math.rsqrt %734 : vector<4x1xf32>
    %736 = vector.broadcast %735 : vector<4x1xf32> to vector<4x32xf32>
    %737 = arith.mulf %727, %736 : vector<4x32xf32>
    %738 = vector.broadcast %720 : vector<1x32xf32> to vector<4x32xf32>
    %739 = arith.mulf %737, %738 : vector<4x32xf32>
    %740 = vector.broadcast %721 : vector<1x32xf32> to vector<4x32xf32>
    %741 = arith.addf %739, %740 : vector<4x32xf32>
    %742 = math.tanh %741 : vector<4x32xf32>
    %743 = arith.mulf %715, %742 : vector<4x32xf32>
    %c0_213 = arith.constant 0 : index
    %c0_214 = arith.constant 0 : index
    %744 = vector.load %arg11[%c0_213, %c0_214] : memref<4x32xf32, #tpu.memory_space<vmem>>, vector<4x32xf32>
    tpu.vector_store %arg11[%c0_213, %c0_214], %743 {strides = array<i32>} : memref<4x32xf32, #tpu.memory_space<vmem>>, vector<4x32xf32>,
    %c0_215 = arith.constant 0 : index
    %c0_216 = arith.constant 0 : index
    %745 = vector.load %arg12[%c0_215, %c0_216] : memref<4x32xf32, #tpu.memory_space<vmem>>, vector<4x32xf32>
    tpu.vector_store %arg12[%c0_215, %c0_216], %741 {strides = array<i32>} : memref<4x32xf32, #tpu.memory_space<vmem>>, vector<4x32xf32>,
    %746 = arith.index_cast %c4_i32 : i32 to index
    %c0_217 = arith.constant 0 : index
    %c0_218 = arith.constant 0 : index
    %747 = vector.load %arg8[%746, %c0_217, %c0_218] : memref<8x4x32xf32, #tpu.memory_space<vmem>>, vector<1x4x32xf32>
    %748 = vector.shape_cast %747 : vector<1x4x32xf32> to vector<4x32xf32>
    %749 = vector.shape_cast %743 : vector<4x32xf32> to vector<1x4x32xf32>
    tpu.vector_store %arg8[%746, %c0_217, %c0_218], %749 {strides = array<i32>} : memref<8x4x32xf32, #tpu.memory_space<vmem>>, vector<1x4x32xf32>,
    %c5_i32 = arith.constant 5 : i32
    %c0_219 = arith.constant 0 : index
    %c0_220 = arith.constant 0 : index
    %750 = vector.load %arg11[%c0_219, %c0_220] : memref<4x32xf32, #tpu.memory_space<vmem>>, vector<4x32xf32>
    %751 = arith.index_cast %c5_i32 : i32 to index
    %c0_221 = arith.constant 0 : index
    %c0_222 = arith.constant 0 : index
    %752 = vector.load %arg2[%751, %c0_221, %c0_222] : memref<8x4x128xf32, #tpu.memory_space<vmem>>, vector<1x4x128xf32>
    %753 = vector.shape_cast %752 : vector<1x4x128xf32> to vector<4x128xf32>
    %c0_223 = arith.constant 0 : index
    %c0_224 = arith.constant 0 : index
    %754 = vector.load %arg5[%c0_223, %c0_224] : memref<32x128xf32, #tpu.memory_space<vmem>>, vector<32x128xf32>
    %cst_225 = arith.constant dense<0.000000e+00> : vector<4x128xf32>
    %755 = tpu.matmul %750, %754, %cst_225 {dimension_numbers = #tpu.dot_dimension_numbers<[1], [0], [0], [1], [0, 0, 1, 1], [], []>} : vector<4x32xf32>, vector<32x128xf32>, vector<4x128xf32> -> vector<4x128xf32>
    %756 = arith.addf %753, %755 : vector<4x128xf32>
    %757 = vector.extract_strided_slice %756 {offsets = [0, 0], sizes = [4, 32], strides = [1, 1]} : vector<4x128xf32> to vector<4x32xf32>
    %758 = vector.extract_strided_slice %3 {offsets = [0, 0], sizes = [1, 32], strides = [1, 1]} : vector<5x32xf32> to vector<1x32xf32>
    %759 = vector.extract_strided_slice %4 {offsets = [0, 0], sizes = [1, 32], strides = [1, 1]} : vector<5x32xf32> to vector<1x32xf32>
    %cst_226 = arith.constant dense<0.000000e+00> : vector<4xf32>
    %760 = vector.multi_reduction <add>, %757, %cst_226 [1] : vector<4x32xf32> to vector<4xf32>
    %761 = vector.shape_cast %760 : vector<4xf32> to vector<4x1xf32>
    %cst_227 = arith.constant 3.200000e+01 : f32
    %762 = vector.broadcast %cst_227 : f32 to vector<4x1xf32>
    %763 = arith.divf %761, %762 : vector<4x1xf32>
    %764 = vector.broadcast %763 : vector<4x1xf32> to vector<4x32xf32>
    %765 = arith.subf %757, %764 : vector<4x32xf32>
    %766 = arith.mulf %765, %765 : vector<4x32xf32>
    %cst_228 = arith.constant dense<0.000000e+00> : vector<4xf32>
    %767 = vector.multi_reduction <add>, %766, %cst_228 [1] : vector<4x32xf32> to vector<4xf32>
    %768 = vector.shape_cast %767 : vector<4xf32> to vector<4x1xf32>
    %cst_229 = arith.constant 3.200000e+01 : f32
    %769 = vector.broadcast %cst_229 : f32 to vector<4x1xf32>
    %770 = arith.divf %768, %769 : vector<4x1xf32>
    %cst_230 = arith.constant 9.99999974E-6 : f32
    %771 = vector.broadcast %cst_230 : f32 to vector<4x1xf32>
    %772 = arith.addf %770, %771 : vector<4x1xf32>
    %773 = math.rsqrt %772 : vector<4x1xf32>
    %774 = vector.broadcast %773 : vector<4x1xf32> to vector<4x32xf32>
    %775 = arith.mulf %765, %774 : vector<4x32xf32>
    %776 = vector.broadcast %758 : vector<1x32xf32> to vector<4x32xf32>
    %777 = arith.mulf %775, %776 : vector<4x32xf32>
    %778 = vector.broadcast %759 : vector<1x32xf32> to vector<4x32xf32>
    %779 = arith.addf %777, %778 : vector<4x32xf32>
    %780 = arith.negf %779 : vector<4x32xf32>
    %781 = math.exp %780 : vector<4x32xf32>
    %cst_231 = arith.constant 1.000000e+00 : f32
    %782 = vector.broadcast %cst_231 : f32 to vector<4x32xf32>
    %783 = arith.addf %782, %781 : vector<4x32xf32>
    %784 = arith.divf %782, %783 : vector<4x32xf32>
    %785 = vector.extract_strided_slice %756 {offsets = [0, 32], sizes = [4, 32], strides = [1, 1]} : vector<4x128xf32> to vector<4x32xf32>
    %786 = vector.extract_strided_slice %3 {offsets = [1, 0], sizes = [1, 32], strides = [1, 1]} : vector<5x32xf32> to vector<1x32xf32>
    %787 = vector.extract_strided_slice %4 {offsets = [1, 0], sizes = [1, 32], strides = [1, 1]} : vector<5x32xf32> to vector<1x32xf32>
    %cst_232 = arith.constant dense<0.000000e+00> : vector<4xf32>
    %788 = vector.multi_reduction <add>, %785, %cst_232 [1] : vector<4x32xf32> to vector<4xf32>
    %789 = vector.shape_cast %788 : vector<4xf32> to vector<4x1xf32>
    %cst_233 = arith.constant 3.200000e+01 : f32
    %790 = vector.broadcast %cst_233 : f32 to vector<4x1xf32>
    %791 = arith.divf %789, %790 : vector<4x1xf32>
    %792 = vector.broadcast %791 : vector<4x1xf32> to vector<4x32xf32>
    %793 = arith.subf %785, %792 : vector<4x32xf32>
    %794 = arith.mulf %793, %793 : vector<4x32xf32>
    %cst_234 = arith.constant dense<0.000000e+00> : vector<4xf32>
    %795 = vector.multi_reduction <add>, %794, %cst_234 [1] : vector<4x32xf32> to vector<4xf32>
    %796 = vector.shape_cast %795 : vector<4xf32> to vector<4x1xf32>
    %cst_235 = arith.constant 3.200000e+01 : f32
    %797 = vector.broadcast %cst_235 : f32 to vector<4x1xf32>
    %798 = arith.divf %796, %797 : vector<4x1xf32>
    %cst_236 = arith.constant 9.99999974E-6 : f32
    %799 = vector.broadcast %cst_236 : f32 to vector<4x1xf32>
    %800 = arith.addf %798, %799 : vector<4x1xf32>
    %801 = math.rsqrt %800 : vector<4x1xf32>
    %802 = vector.broadcast %801 : vector<4x1xf32> to vector<4x32xf32>
    %803 = arith.mulf %793, %802 : vector<4x32xf32>
    %804 = vector.broadcast %786 : vector<1x32xf32> to vector<4x32xf32>
    %805 = arith.mulf %803, %804 : vector<4x32xf32>
    %806 = vector.broadcast %787 : vector<1x32xf32> to vector<4x32xf32>
    %807 = arith.addf %805, %806 : vector<4x32xf32>
    %808 = arith.negf %807 : vector<4x32xf32>
    %809 = math.exp %808 : vector<4x32xf32>
    %cst_237 = arith.constant 1.000000e+00 : f32
    %810 = vector.broadcast %cst_237 : f32 to vector<4x32xf32>
    %811 = arith.addf %810, %809 : vector<4x32xf32>
    %812 = arith.divf %810, %811 : vector<4x32xf32>
    %813 = vector.extract_strided_slice %756 {offsets = [0, 64], sizes = [4, 32], strides = [1, 1]} : vector<4x128xf32> to vector<4x32xf32>
    %814 = vector.extract_strided_slice %3 {offsets = [2, 0], sizes = [1, 32], strides = [1, 1]} : vector<5x32xf32> to vector<1x32xf32>
    %815 = vector.extract_strided_slice %4 {offsets = [2, 0], sizes = [1, 32], strides = [1, 1]} : vector<5x32xf32> to vector<1x32xf32>
    %cst_238 = arith.constant dense<0.000000e+00> : vector<4xf32>
    %816 = vector.multi_reduction <add>, %813, %cst_238 [1] : vector<4x32xf32> to vector<4xf32>
    %817 = vector.shape_cast %816 : vector<4xf32> to vector<4x1xf32>
    %cst_239 = arith.constant 3.200000e+01 : f32
    %818 = vector.broadcast %cst_239 : f32 to vector<4x1xf32>
    %819 = arith.divf %817, %818 : vector<4x1xf32>
    %820 = vector.broadcast %819 : vector<4x1xf32> to vector<4x32xf32>
    %821 = arith.subf %813, %820 : vector<4x32xf32>
    %822 = arith.mulf %821, %821 : vector<4x32xf32>
    %cst_240 = arith.constant dense<0.000000e+00> : vector<4xf32>
    %823 = vector.multi_reduction <add>, %822, %cst_240 [1] : vector<4x32xf32> to vector<4xf32>
    %824 = vector.shape_cast %823 : vector<4xf32> to vector<4x1xf32>
    %cst_241 = arith.constant 3.200000e+01 : f32
    %825 = vector.broadcast %cst_241 : f32 to vector<4x1xf32>
    %826 = arith.divf %824, %825 : vector<4x1xf32>
    %cst_242 = arith.constant 9.99999974E-6 : f32
    %827 = vector.broadcast %cst_242 : f32 to vector<4x1xf32>
    %828 = arith.addf %826, %827 : vector<4x1xf32>
    %829 = math.rsqrt %828 : vector<4x1xf32>
    %830 = vector.broadcast %829 : vector<4x1xf32> to vector<4x32xf32>
    %831 = arith.mulf %821, %830 : vector<4x32xf32>
    %832 = vector.broadcast %814 : vector<1x32xf32> to vector<4x32xf32>
    %833 = arith.mulf %831, %832 : vector<4x32xf32>
    %834 = vector.broadcast %815 : vector<1x32xf32> to vector<4x32xf32>
    %835 = arith.addf %833, %834 : vector<4x32xf32>
    %836 = math.tanh %835 : vector<4x32xf32>
    %837 = vector.extract_strided_slice %756 {offsets = [0, 96], sizes = [4, 32], strides = [1, 1]} : vector<4x128xf32> to vector<4x32xf32>
    %838 = vector.extract_strided_slice %3 {offsets = [3, 0], sizes = [1, 32], strides = [1, 1]} : vector<5x32xf32> to vector<1x32xf32>
    %839 = vector.extract_strided_slice %4 {offsets = [3, 0], sizes = [1, 32], strides = [1, 1]} : vector<5x32xf32> to vector<1x32xf32>
    %cst_243 = arith.constant dense<0.000000e+00> : vector<4xf32>
    %840 = vector.multi_reduction <add>, %837, %cst_243 [1] : vector<4x32xf32> to vector<4xf32>
    %841 = vector.shape_cast %840 : vector<4xf32> to vector<4x1xf32>
    %cst_244 = arith.constant 3.200000e+01 : f32
    %842 = vector.broadcast %cst_244 : f32 to vector<4x1xf32>
    %843 = arith.divf %841, %842 : vector<4x1xf32>
    %844 = vector.broadcast %843 : vector<4x1xf32> to vector<4x32xf32>
    %845 = arith.subf %837, %844 : vector<4x32xf32>
    %846 = arith.mulf %845, %845 : vector<4x32xf32>
    %cst_245 = arith.constant dense<0.000000e+00> : vector<4xf32>
    %847 = vector.multi_reduction <add>, %846, %cst_245 [1] : vector<4x32xf32> to vector<4xf32>
    %848 = vector.shape_cast %847 : vector<4xf32> to vector<4x1xf32>
    %cst_246 = arith.constant 3.200000e+01 : f32
    %849 = vector.broadcast %cst_246 : f32 to vector<4x1xf32>
    %850 = arith.divf %848, %849 : vector<4x1xf32>
    %cst_247 = arith.constant 9.99999974E-6 : f32
    %851 = vector.broadcast %cst_247 : f32 to vector<4x1xf32>
    %852 = arith.addf %850, %851 : vector<4x1xf32>
    %853 = math.rsqrt %852 : vector<4x1xf32>
    %854 = vector.broadcast %853 : vector<4x1xf32> to vector<4x32xf32>
    %855 = arith.mulf %845, %854 : vector<4x32xf32>
    %856 = vector.broadcast %838 : vector<1x32xf32> to vector<4x32xf32>
    %857 = arith.mulf %855, %856 : vector<4x32xf32>
    %858 = vector.broadcast %839 : vector<1x32xf32> to vector<4x32xf32>
    %859 = arith.addf %857, %858 : vector<4x32xf32>
    %860 = arith.negf %859 : vector<4x32xf32>
    %861 = math.exp %860 : vector<4x32xf32>
    %cst_248 = arith.constant 1.000000e+00 : f32
    %862 = vector.broadcast %cst_248 : f32 to vector<4x32xf32>
    %863 = arith.addf %862, %861 : vector<4x32xf32>
    %864 = arith.divf %862, %863 : vector<4x32xf32>
    %c0_249 = arith.constant 0 : index
    %c0_250 = arith.constant 0 : index
    %865 = vector.load %arg12[%c0_249, %c0_250] : memref<4x32xf32, #tpu.memory_space<vmem>>, vector<4x32xf32>
    %866 = arith.mulf %812, %865 : vector<4x32xf32>
    %867 = arith.mulf %784, %836 : vector<4x32xf32>
    %868 = arith.addf %866, %867 : vector<4x32xf32>
    %869 = vector.extract_strided_slice %3 {offsets = [4, 0], sizes = [1, 32], strides = [1, 1]} : vector<5x32xf32> to vector<1x32xf32>
    %870 = vector.extract_strided_slice %4 {offsets = [4, 0], sizes = [1, 32], strides = [1, 1]} : vector<5x32xf32> to vector<1x32xf32>
    %cst_251 = arith.constant dense<0.000000e+00> : vector<4xf32>
    %871 = vector.multi_reduction <add>, %868, %cst_251 [1] : vector<4x32xf32> to vector<4xf32>
    %872 = vector.shape_cast %871 : vector<4xf32> to vector<4x1xf32>
    %cst_252 = arith.constant 3.200000e+01 : f32
    %873 = vector.broadcast %cst_252 : f32 to vector<4x1xf32>
    %874 = arith.divf %872, %873 : vector<4x1xf32>
    %875 = vector.broadcast %874 : vector<4x1xf32> to vector<4x32xf32>
    %876 = arith.subf %868, %875 : vector<4x32xf32>
    %877 = arith.mulf %876, %876 : vector<4x32xf32>
    %cst_253 = arith.constant dense<0.000000e+00> : vector<4xf32>
    %878 = vector.multi_reduction <add>, %877, %cst_253 [1] : vector<4x32xf32> to vector<4xf32>
    %879 = vector.shape_cast %878 : vector<4xf32> to vector<4x1xf32>
    %cst_254 = arith.constant 3.200000e+01 : f32
    %880 = vector.broadcast %cst_254 : f32 to vector<4x1xf32>
    %881 = arith.divf %879, %880 : vector<4x1xf32>
    %cst_255 = arith.constant 9.99999974E-6 : f32
    %882 = vector.broadcast %cst_255 : f32 to vector<4x1xf32>
    %883 = arith.addf %881, %882 : vector<4x1xf32>
    %884 = math.rsqrt %883 : vector<4x1xf32>
    %885 = vector.broadcast %884 : vector<4x1xf32> to vector<4x32xf32>
    %886 = arith.mulf %876, %885 : vector<4x32xf32>
    %887 = vector.broadcast %869 : vector<1x32xf32> to vector<4x32xf32>
    %888 = arith.mulf %886, %887 : vector<4x32xf32>
    %889 = vector.broadcast %870 : vector<1x32xf32> to vector<4x32xf32>
    %890 = arith.addf %888, %889 : vector<4x32xf32>
    %891 = math.tanh %890 : vector<4x32xf32>
    %892 = arith.mulf %864, %891 : vector<4x32xf32>
    %c0_256 = arith.constant 0 : index
    %c0_257 = arith.constant 0 : index
    %893 = vector.load %arg11[%c0_256, %c0_257] : memref<4x32xf32, #tpu.memory_space<vmem>>, vector<4x32xf32>
    tpu.vector_store %arg11[%c0_256, %c0_257], %892 {strides = array<i32>} : memref<4x32xf32, #tpu.memory_space<vmem>>, vector<4x32xf32>,
    %c0_258 = arith.constant 0 : index
    %c0_259 = arith.constant 0 : index
    %894 = vector.load %arg12[%c0_258, %c0_259] : memref<4x32xf32, #tpu.memory_space<vmem>>, vector<4x32xf32>
    tpu.vector_store %arg12[%c0_258, %c0_259], %890 {strides = array<i32>} : memref<4x32xf32, #tpu.memory_space<vmem>>, vector<4x32xf32>,
    %895 = arith.index_cast %c5_i32 : i32 to index
    %c0_260 = arith.constant 0 : index
    %c0_261 = arith.constant 0 : index
    %896 = vector.load %arg8[%895, %c0_260, %c0_261] : memref<8x4x32xf32, #tpu.memory_space<vmem>>, vector<1x4x32xf32>
    %897 = vector.shape_cast %896 : vector<1x4x32xf32> to vector<4x32xf32>
    %898 = vector.shape_cast %892 : vector<4x32xf32> to vector<1x4x32xf32>
    tpu.vector_store %arg8[%895, %c0_260, %c0_261], %898 {strides = array<i32>} : memref<8x4x32xf32, #tpu.memory_space<vmem>>, vector<1x4x32xf32>,
    %c6_i32 = arith.constant 6 : i32
    %c0_262 = arith.constant 0 : index
    %c0_263 = arith.constant 0 : index
    %899 = vector.load %arg11[%c0_262, %c0_263] : memref<4x32xf32, #tpu.memory_space<vmem>>, vector<4x32xf32>
    %900 = arith.index_cast %c6_i32 : i32 to index
    %c0_264 = arith.constant 0 : index
    %c0_265 = arith.constant 0 : index
    %901 = vector.load %arg2[%900, %c0_264, %c0_265] : memref<8x4x128xf32, #tpu.memory_space<vmem>>, vector<1x4x128xf32>
    %902 = vector.shape_cast %901 : vector<1x4x128xf32> to vector<4x128xf32>
    %c0_266 = arith.constant 0 : index
    %c0_267 = arith.constant 0 : index
    %903 = vector.load %arg5[%c0_266, %c0_267] : memref<32x128xf32, #tpu.memory_space<vmem>>, vector<32x128xf32>
    %cst_268 = arith.constant dense<0.000000e+00> : vector<4x128xf32>
    %904 = tpu.matmul %899, %903, %cst_268 {dimension_numbers = #tpu.dot_dimension_numbers<[1], [0], [0], [1], [0, 0, 1, 1], [], []>} : vector<4x32xf32>, vector<32x128xf32>, vector<4x128xf32> -> vector<4x128xf32>
    %905 = arith.addf %902, %904 : vector<4x128xf32>
    %906 = vector.extract_strided_slice %905 {offsets = [0, 0], sizes = [4, 32], strides = [1, 1]} : vector<4x128xf32> to vector<4x32xf32>
    %907 = vector.extract_strided_slice %3 {offsets = [0, 0], sizes = [1, 32], strides = [1, 1]} : vector<5x32xf32> to vector<1x32xf32>
    %908 = vector.extract_strided_slice %4 {offsets = [0, 0], sizes = [1, 32], strides = [1, 1]} : vector<5x32xf32> to vector<1x32xf32>
    %cst_269 = arith.constant dense<0.000000e+00> : vector<4xf32>
    %909 = vector.multi_reduction <add>, %906, %cst_269 [1] : vector<4x32xf32> to vector<4xf32>
    %910 = vector.shape_cast %909 : vector<4xf32> to vector<4x1xf32>
    %cst_270 = arith.constant 3.200000e+01 : f32
    %911 = vector.broadcast %cst_270 : f32 to vector<4x1xf32>
    %912 = arith.divf %910, %911 : vector<4x1xf32>
    %913 = vector.broadcast %912 : vector<4x1xf32> to vector<4x32xf32>
    %914 = arith.subf %906, %913 : vector<4x32xf32>
    %915 = arith.mulf %914, %914 : vector<4x32xf32>
    %cst_271 = arith.constant dense<0.000000e+00> : vector<4xf32>
    %916 = vector.multi_reduction <add>, %915, %cst_271 [1] : vector<4x32xf32> to vector<4xf32>
    %917 = vector.shape_cast %916 : vector<4xf32> to vector<4x1xf32>
    %cst_272 = arith.constant 3.200000e+01 : f32
    %918 = vector.broadcast %cst_272 : f32 to vector<4x1xf32>
    %919 = arith.divf %917, %918 : vector<4x1xf32>
    %cst_273 = arith.constant 9.99999974E-6 : f32
    %920 = vector.broadcast %cst_273 : f32 to vector<4x1xf32>
    %921 = arith.addf %919, %920 : vector<4x1xf32>
    %922 = math.rsqrt %921 : vector<4x1xf32>
    %923 = vector.broadcast %922 : vector<4x1xf32> to vector<4x32xf32>
    %924 = arith.mulf %914, %923 : vector<4x32xf32>
    %925 = vector.broadcast %907 : vector<1x32xf32> to vector<4x32xf32>
    %926 = arith.mulf %924, %925 : vector<4x32xf32>
    %927 = vector.broadcast %908 : vector<1x32xf32> to vector<4x32xf32>
    %928 = arith.addf %926, %927 : vector<4x32xf32>
    %929 = arith.negf %928 : vector<4x32xf32>
    %930 = math.exp %929 : vector<4x32xf32>
    %cst_274 = arith.constant 1.000000e+00 : f32
    %931 = vector.broadcast %cst_274 : f32 to vector<4x32xf32>
    %932 = arith.addf %931, %930 : vector<4x32xf32>
    %933 = arith.divf %931, %932 : vector<4x32xf32>
    %934 = vector.extract_strided_slice %905 {offsets = [0, 32], sizes = [4, 32], strides = [1, 1]} : vector<4x128xf32> to vector<4x32xf32>
    %935 = vector.extract_strided_slice %3 {offsets = [1, 0], sizes = [1, 32], strides = [1, 1]} : vector<5x32xf32> to vector<1x32xf32>
    %936 = vector.extract_strided_slice %4 {offsets = [1, 0], sizes = [1, 32], strides = [1, 1]} : vector<5x32xf32> to vector<1x32xf32>
    %cst_275 = arith.constant dense<0.000000e+00> : vector<4xf32>
    %937 = vector.multi_reduction <add>, %934, %cst_275 [1] : vector<4x32xf32> to vector<4xf32>
    %938 = vector.shape_cast %937 : vector<4xf32> to vector<4x1xf32>
    %cst_276 = arith.constant 3.200000e+01 : f32
    %939 = vector.broadcast %cst_276 : f32 to vector<4x1xf32>
    %940 = arith.divf %938, %939 : vector<4x1xf32>
    %941 = vector.broadcast %940 : vector<4x1xf32> to vector<4x32xf32>
    %942 = arith.subf %934, %941 : vector<4x32xf32>
    %943 = arith.mulf %942, %942 : vector<4x32xf32>
    %cst_277 = arith.constant dense<0.000000e+00> : vector<4xf32>
    %944 = vector.multi_reduction <add>, %943, %cst_277 [1] : vector<4x32xf32> to vector<4xf32>
    %945 = vector.shape_cast %944 : vector<4xf32> to vector<4x1xf32>
    %cst_278 = arith.constant 3.200000e+01 : f32
    %946 = vector.broadcast %cst_278 : f32 to vector<4x1xf32>
    %947 = arith.divf %945, %946 : vector<4x1xf32>
    %cst_279 = arith.constant 9.99999974E-6 : f32
    %948 = vector.broadcast %cst_279 : f32 to vector<4x1xf32>
    %949 = arith.addf %947, %948 : vector<4x1xf32>
    %950 = math.rsqrt %949 : vector<4x1xf32>
    %951 = vector.broadcast %950 : vector<4x1xf32> to vector<4x32xf32>
    %952 = arith.mulf %942, %951 : vector<4x32xf32>
    %953 = vector.broadcast %935 : vector<1x32xf32> to vector<4x32xf32>
    %954 = arith.mulf %952, %953 : vector<4x32xf32>
    %955 = vector.broadcast %936 : vector<1x32xf32> to vector<4x32xf32>
    %956 = arith.addf %954, %955 : vector<4x32xf32>
    %957 = arith.negf %956 : vector<4x32xf32>
    %958 = math.exp %957 : vector<4x32xf32>
    %cst_280 = arith.constant 1.000000e+00 : f32
    %959 = vector.broadcast %cst_280 : f32 to vector<4x32xf32>
    %960 = arith.addf %959, %958 : vector<4x32xf32>
    %961 = arith.divf %959, %960 : vector<4x32xf32>
    %962 = vector.extract_strided_slice %905 {offsets = [0, 64], sizes = [4, 32], strides = [1, 1]} : vector<4x128xf32> to vector<4x32xf32>
    %963 = vector.extract_strided_slice %3 {offsets = [2, 0], sizes = [1, 32], strides = [1, 1]} : vector<5x32xf32> to vector<1x32xf32>
    %964 = vector.extract_strided_slice %4 {offsets = [2, 0], sizes = [1, 32], strides = [1, 1]} : vector<5x32xf32> to vector<1x32xf32>
    %cst_281 = arith.constant dense<0.000000e+00> : vector<4xf32>
    %965 = vector.multi_reduction <add>, %962, %cst_281 [1] : vector<4x32xf32> to vector<4xf32>
    %966 = vector.shape_cast %965 : vector<4xf32> to vector<4x1xf32>
    %cst_282 = arith.constant 3.200000e+01 : f32
    %967 = vector.broadcast %cst_282 : f32 to vector<4x1xf32>
    %968 = arith.divf %966, %967 : vector<4x1xf32>
    %969 = vector.broadcast %968 : vector<4x1xf32> to vector<4x32xf32>
    %970 = arith.subf %962, %969 : vector<4x32xf32>
    %971 = arith.mulf %970, %970 : vector<4x32xf32>
    %cst_283 = arith.constant dense<0.000000e+00> : vector<4xf32>
    %972 = vector.multi_reduction <add>, %971, %cst_283 [1] : vector<4x32xf32> to vector<4xf32>
    %973 = vector.shape_cast %972 : vector<4xf32> to vector<4x1xf32>
    %cst_284 = arith.constant 3.200000e+01 : f32
    %974 = vector.broadcast %cst_284 : f32 to vector<4x1xf32>
    %975 = arith.divf %973, %974 : vector<4x1xf32>
    %cst_285 = arith.constant 9.99999974E-6 : f32
    %976 = vector.broadcast %cst_285 : f32 to vector<4x1xf32>
    %977 = arith.addf %975, %976 : vector<4x1xf32>
    %978 = math.rsqrt %977 : vector<4x1xf32>
    %979 = vector.broadcast %978 : vector<4x1xf32> to vector<4x32xf32>
    %980 = arith.mulf %970, %979 : vector<4x32xf32>
    %981 = vector.broadcast %963 : vector<1x32xf32> to vector<4x32xf32>
    %982 = arith.mulf %980, %981 : vector<4x32xf32>
    %983 = vector.broadcast %964 : vector<1x32xf32> to vector<4x32xf32>
    %984 = arith.addf %982, %983 : vector<4x32xf32>
    %985 = math.tanh %984 : vector<4x32xf32>
    %986 = vector.extract_strided_slice %905 {offsets = [0, 96], sizes = [4, 32], strides = [1, 1]} : vector<4x128xf32> to vector<4x32xf32>
    %987 = vector.extract_strided_slice %3 {offsets = [3, 0], sizes = [1, 32], strides = [1, 1]} : vector<5x32xf32> to vector<1x32xf32>
    %988 = vector.extract_strided_slice %4 {offsets = [3, 0], sizes = [1, 32], strides = [1, 1]} : vector<5x32xf32> to vector<1x32xf32>
    %cst_286 = arith.constant dense<0.000000e+00> : vector<4xf32>
    %989 = vector.multi_reduction <add>, %986, %cst_286 [1] : vector<4x32xf32> to vector<4xf32>
    %990 = vector.shape_cast %989 : vector<4xf32> to vector<4x1xf32>
    %cst_287 = arith.constant 3.200000e+01 : f32
    %991 = vector.broadcast %cst_287 : f32 to vector<4x1xf32>
    %992 = arith.divf %990, %991 : vector<4x1xf32>
    %993 = vector.broadcast %992 : vector<4x1xf32> to vector<4x32xf32>
    %994 = arith.subf %986, %993 : vector<4x32xf32>
    %995 = arith.mulf %994, %994 : vector<4x32xf32>
    %cst_288 = arith.constant dense<0.000000e+00> : vector<4xf32>
    %996 = vector.multi_reduction <add>, %995, %cst_288 [1] : vector<4x32xf32> to vector<4xf32>
    %997 = vector.shape_cast %996 : vector<4xf32> to vector<4x1xf32>
    %cst_289 = arith.constant 3.200000e+01 : f32
    %998 = vector.broadcast %cst_289 : f32 to vector<4x1xf32>
    %999 = arith.divf %997, %998 : vector<4x1xf32>
    %cst_290 = arith.constant 9.99999974E-6 : f32
    %1000 = vector.broadcast %cst_290 : f32 to vector<4x1xf32>
    %1001 = arith.addf %999, %1000 : vector<4x1xf32>
    %1002 = math.rsqrt %1001 : vector<4x1xf32>
    %1003 = vector.broadcast %1002 : vector<4x1xf32> to vector<4x32xf32>
    %1004 = arith.mulf %994, %1003 : vector<4x32xf32>
    %1005 = vector.broadcast %987 : vector<1x32xf32> to vector<4x32xf32>
    %1006 = arith.mulf %1004, %1005 : vector<4x32xf32>
    %1007 = vector.broadcast %988 : vector<1x32xf32> to vector<4x32xf32>
    %1008 = arith.addf %1006, %1007 : vector<4x32xf32>
    %1009 = arith.negf %1008 : vector<4x32xf32>
    %1010 = math.exp %1009 : vector<4x32xf32>
    %cst_291 = arith.constant 1.000000e+00 : f32
    %1011 = vector.broadcast %cst_291 : f32 to vector<4x32xf32>
    %1012 = arith.addf %1011, %1010 : vector<4x32xf32>
    %1013 = arith.divf %1011, %1012 : vector<4x32xf32>
    %c0_292 = arith.constant 0 : index
    %c0_293 = arith.constant 0 : index
    %1014 = vector.load %arg12[%c0_292, %c0_293] : memref<4x32xf32, #tpu.memory_space<vmem>>, vector<4x32xf32>
    %1015 = arith.mulf %961, %1014 : vector<4x32xf32>
    %1016 = arith.mulf %933, %985 : vector<4x32xf32>
    %1017 = arith.addf %1015, %1016 : vector<4x32xf32>
    %1018 = vector.extract_strided_slice %3 {offsets = [4, 0], sizes = [1, 32], strides = [1, 1]} : vector<5x32xf32> to vector<1x32xf32>
    %1019 = vector.extract_strided_slice %4 {offsets = [4, 0], sizes = [1, 32], strides = [1, 1]} : vector<5x32xf32> to vector<1x32xf32>
    %cst_294 = arith.constant dense<0.000000e+00> : vector<4xf32>
    %1020 = vector.multi_reduction <add>, %1017, %cst_294 [1] : vector<4x32xf32> to vector<4xf32>
    %1021 = vector.shape_cast %1020 : vector<4xf32> to vector<4x1xf32>
    %cst_295 = arith.constant 3.200000e+01 : f32
    %1022 = vector.broadcast %cst_295 : f32 to vector<4x1xf32>
    %1023 = arith.divf %1021, %1022 : vector<4x1xf32>
    %1024 = vector.broadcast %1023 : vector<4x1xf32> to vector<4x32xf32>
    %1025 = arith.subf %1017, %1024 : vector<4x32xf32>
    %1026 = arith.mulf %1025, %1025 : vector<4x32xf32>
    %cst_296 = arith.constant dense<0.000000e+00> : vector<4xf32>
    %1027 = vector.multi_reduction <add>, %1026, %cst_296 [1] : vector<4x32xf32> to vector<4xf32>
    %1028 = vector.shape_cast %1027 : vector<4xf32> to vector<4x1xf32>
    %cst_297 = arith.constant 3.200000e+01 : f32
    %1029 = vector.broadcast %cst_297 : f32 to vector<4x1xf32>
    %1030 = arith.divf %1028, %1029 : vector<4x1xf32>
    %cst_298 = arith.constant 9.99999974E-6 : f32
    %1031 = vector.broadcast %cst_298 : f32 to vector<4x1xf32>
    %1032 = arith.addf %1030, %1031 : vector<4x1xf32>
    %1033 = math.rsqrt %1032 : vector<4x1xf32>
    %1034 = vector.broadcast %1033 : vector<4x1xf32> to vector<4x32xf32>
    %1035 = arith.mulf %1025, %1034 : vector<4x32xf32>
    %1036 = vector.broadcast %1018 : vector<1x32xf32> to vector<4x32xf32>
    %1037 = arith.mulf %1035, %1036 : vector<4x32xf32>
    %1038 = vector.broadcast %1019 : vector<1x32xf32> to vector<4x32xf32>
    %1039 = arith.addf %1037, %1038 : vector<4x32xf32>
    %1040 = math.tanh %1039 : vector<4x32xf32>
    %1041 = arith.mulf %1013, %1040 : vector<4x32xf32>
    %c0_299 = arith.constant 0 : index
    %c0_300 = arith.constant 0 : index
    %1042 = vector.load %arg11[%c0_299, %c0_300] : memref<4x32xf32, #tpu.memory_space<vmem>>, vector<4x32xf32>
    tpu.vector_store %arg11[%c0_299, %c0_300], %1041 {strides = array<i32>} : memref<4x32xf32, #tpu.memory_space<vmem>>, vector<4x32xf32>,
    %c0_301 = arith.constant 0 : index
    %c0_302 = arith.constant 0 : index
    %1043 = vector.load %arg12[%c0_301, %c0_302] : memref<4x32xf32, #tpu.memory_space<vmem>>, vector<4x32xf32>
    tpu.vector_store %arg12[%c0_301, %c0_302], %1039 {strides = array<i32>} : memref<4x32xf32, #tpu.memory_space<vmem>>, vector<4x32xf32>,
    %1044 = arith.index_cast %c6_i32 : i32 to index
    %c0_303 = arith.constant 0 : index
    %c0_304 = arith.constant 0 : index
    %1045 = vector.load %arg8[%1044, %c0_303, %c0_304] : memref<8x4x32xf32, #tpu.memory_space<vmem>>, vector<1x4x32xf32>
    %1046 = vector.shape_cast %1045 : vector<1x4x32xf32> to vector<4x32xf32>
    %1047 = vector.shape_cast %1041 : vector<4x32xf32> to vector<1x4x32xf32>
    tpu.vector_store %arg8[%1044, %c0_303, %c0_304], %1047 {strides = array<i32>} : memref<8x4x32xf32, #tpu.memory_space<vmem>>, vector<1x4x32xf32>,
    %c7_i32 = arith.constant 7 : i32
    %c0_305 = arith.constant 0 : index
    %c0_306 = arith.constant 0 : index
    %1048 = vector.load %arg11[%c0_305, %c0_306] : memref<4x32xf32, #tpu.memory_space<vmem>>, vector<4x32xf32>
    %1049 = arith.index_cast %c7_i32 : i32 to index
    %c0_307 = arith.constant 0 : index
    %c0_308 = arith.constant 0 : index
    %1050 = vector.load %arg2[%1049, %c0_307, %c0_308] : memref<8x4x128xf32, #tpu.memory_space<vmem>>, vector<1x4x128xf32>
    %1051 = vector.shape_cast %1050 : vector<1x4x128xf32> to vector<4x128xf32>
    %c0_309 = arith.constant 0 : index
    %c0_310 = arith.constant 0 : index
    %1052 = vector.load %arg5[%c0_309, %c0_310] : memref<32x128xf32, #tpu.memory_space<vmem>>, vector<32x128xf32>
    %cst_311 = arith.constant dense<0.000000e+00> : vector<4x128xf32>
    %1053 = tpu.matmul %1048, %1052, %cst_311 {dimension_numbers = #tpu.dot_dimension_numbers<[1], [0], [0], [1], [0, 0, 1, 1], [], []>} : vector<4x32xf32>, vector<32x128xf32>, vector<4x128xf32> -> vector<4x128xf32>
    %1054 = arith.addf %1051, %1053 : vector<4x128xf32>
    %1055 = vector.extract_strided_slice %1054 {offsets = [0, 0], sizes = [4, 32], strides = [1, 1]} : vector<4x128xf32> to vector<4x32xf32>
    %1056 = vector.extract_strided_slice %3 {offsets = [0, 0], sizes = [1, 32], strides = [1, 1]} : vector<5x32xf32> to vector<1x32xf32>
    %1057 = vector.extract_strided_slice %4 {offsets = [0, 0], sizes = [1, 32], strides = [1, 1]} : vector<5x32xf32> to vector<1x32xf32>
    %cst_312 = arith.constant dense<0.000000e+00> : vector<4xf32>
    %1058 = vector.multi_reduction <add>, %1055, %cst_312 [1] : vector<4x32xf32> to vector<4xf32>
    %1059 = vector.shape_cast %1058 : vector<4xf32> to vector<4x1xf32>
    %cst_313 = arith.constant 3.200000e+01 : f32
    %1060 = vector.broadcast %cst_313 : f32 to vector<4x1xf32>
    %1061 = arith.divf %1059, %1060 : vector<4x1xf32>
    %1062 = vector.broadcast %1061 : vector<4x1xf32> to vector<4x32xf32>
    %1063 = arith.subf %1055, %1062 : vector<4x32xf32>
    %1064 = arith.mulf %1063, %1063 : vector<4x32xf32>
    %cst_314 = arith.constant dense<0.000000e+00> : vector<4xf32>
    %1065 = vector.multi_reduction <add>, %1064, %cst_314 [1] : vector<4x32xf32> to vector<4xf32>
    %1066 = vector.shape_cast %1065 : vector<4xf32> to vector<4x1xf32>
    %cst_315 = arith.constant 3.200000e+01 : f32
    %1067 = vector.broadcast %cst_315 : f32 to vector<4x1xf32>
    %1068 = arith.divf %1066, %1067 : vector<4x1xf32>
    %cst_316 = arith.constant 9.99999974E-6 : f32
    %1069 = vector.broadcast %cst_316 : f32 to vector<4x1xf32>
    %1070 = arith.addf %1068, %1069 : vector<4x1xf32>
    %1071 = math.rsqrt %1070 : vector<4x1xf32>
    %1072 = vector.broadcast %1071 : vector<4x1xf32> to vector<4x32xf32>
    %1073 = arith.mulf %1063, %1072 : vector<4x32xf32>
    %1074 = vector.broadcast %1056 : vector<1x32xf32> to vector<4x32xf32>
    %1075 = arith.mulf %1073, %1074 : vector<4x32xf32>
    %1076 = vector.broadcast %1057 : vector<1x32xf32> to vector<4x32xf32>
    %1077 = arith.addf %1075, %1076 : vector<4x32xf32>
    %1078 = arith.negf %1077 : vector<4x32xf32>
    %1079 = math.exp %1078 : vector<4x32xf32>
    %cst_317 = arith.constant 1.000000e+00 : f32
    %1080 = vector.broadcast %cst_317 : f32 to vector<4x32xf32>
    %1081 = arith.addf %1080, %1079 : vector<4x32xf32>
    %1082 = arith.divf %1080, %1081 : vector<4x32xf32>
    %1083 = vector.extract_strided_slice %1054 {offsets = [0, 32], sizes = [4, 32], strides = [1, 1]} : vector<4x128xf32> to vector<4x32xf32>
    %1084 = vector.extract_strided_slice %3 {offsets = [1, 0], sizes = [1, 32], strides = [1, 1]} : vector<5x32xf32> to vector<1x32xf32>
    %1085 = vector.extract_strided_slice %4 {offsets = [1, 0], sizes = [1, 32], strides = [1, 1]} : vector<5x32xf32> to vector<1x32xf32>
    %cst_318 = arith.constant dense<0.000000e+00> : vector<4xf32>
    %1086 = vector.multi_reduction <add>, %1083, %cst_318 [1] : vector<4x32xf32> to vector<4xf32>
    %1087 = vector.shape_cast %1086 : vector<4xf32> to vector<4x1xf32>
    %cst_319 = arith.constant 3.200000e+01 : f32
    %1088 = vector.broadcast %cst_319 : f32 to vector<4x1xf32>
    %1089 = arith.divf %1087, %1088 : vector<4x1xf32>
    %1090 = vector.broadcast %1089 : vector<4x1xf32> to vector<4x32xf32>
    %1091 = arith.subf %1083, %1090 : vector<4x32xf32>
    %1092 = arith.mulf %1091, %1091 : vector<4x32xf32>
    %cst_320 = arith.constant dense<0.000000e+00> : vector<4xf32>
    %1093 = vector.multi_reduction <add>, %1092, %cst_320 [1] : vector<4x32xf32> to vector<4xf32>
    %1094 = vector.shape_cast %1093 : vector<4xf32> to vector<4x1xf32>
    %cst_321 = arith.constant 3.200000e+01 : f32
    %1095 = vector.broadcast %cst_321 : f32 to vector<4x1xf32>
    %1096 = arith.divf %1094, %1095 : vector<4x1xf32>
    %cst_322 = arith.constant 9.99999974E-6 : f32
    %1097 = vector.broadcast %cst_322 : f32 to vector<4x1xf32>
    %1098 = arith.addf %1096, %1097 : vector<4x1xf32>
    %1099 = math.rsqrt %1098 : vector<4x1xf32>
    %1100 = vector.broadcast %1099 : vector<4x1xf32> to vector<4x32xf32>
    %1101 = arith.mulf %1091, %1100 : vector<4x32xf32>
    %1102 = vector.broadcast %1084 : vector<1x32xf32> to vector<4x32xf32>
    %1103 = arith.mulf %1101, %1102 : vector<4x32xf32>
    %1104 = vector.broadcast %1085 : vector<1x32xf32> to vector<4x32xf32>
    %1105 = arith.addf %1103, %1104 : vector<4x32xf32>
    %1106 = arith.negf %1105 : vector<4x32xf32>
    %1107 = math.exp %1106 : vector<4x32xf32>
    %cst_323 = arith.constant 1.000000e+00 : f32
    %1108 = vector.broadcast %cst_323 : f32 to vector<4x32xf32>
    %1109 = arith.addf %1108, %1107 : vector<4x32xf32>
    %1110 = arith.divf %1108, %1109 : vector<4x32xf32>
    %1111 = vector.extract_strided_slice %1054 {offsets = [0, 64], sizes = [4, 32], strides = [1, 1]} : vector<4x128xf32> to vector<4x32xf32>
    %1112 = vector.extract_strided_slice %3 {offsets = [2, 0], sizes = [1, 32], strides = [1, 1]} : vector<5x32xf32> to vector<1x32xf32>
    %1113 = vector.extract_strided_slice %4 {offsets = [2, 0], sizes = [1, 32], strides = [1, 1]} : vector<5x32xf32> to vector<1x32xf32>
    %cst_324 = arith.constant dense<0.000000e+00> : vector<4xf32>
    %1114 = vector.multi_reduction <add>, %1111, %cst_324 [1] : vector<4x32xf32> to vector<4xf32>
    %1115 = vector.shape_cast %1114 : vector<4xf32> to vector<4x1xf32>
    %cst_325 = arith.constant 3.200000e+01 : f32
    %1116 = vector.broadcast %cst_325 : f32 to vector<4x1xf32>
    %1117 = arith.divf %1115, %1116 : vector<4x1xf32>
    %1118 = vector.broadcast %1117 : vector<4x1xf32> to vector<4x32xf32>
    %1119 = arith.subf %1111, %1118 : vector<4x32xf32>
    %1120 = arith.mulf %1119, %1119 : vector<4x32xf32>
    %cst_326 = arith.constant dense<0.000000e+00> : vector<4xf32>
    %1121 = vector.multi_reduction <add>, %1120, %cst_326 [1] : vector<4x32xf32> to vector<4xf32>
    %1122 = vector.shape_cast %1121 : vector<4xf32> to vector<4x1xf32>
    %cst_327 = arith.constant 3.200000e+01 : f32
    %1123 = vector.broadcast %cst_327 : f32 to vector<4x1xf32>
    %1124 = arith.divf %1122, %1123 : vector<4x1xf32>
    %cst_328 = arith.constant 9.99999974E-6 : f32
    %1125 = vector.broadcast %cst_328 : f32 to vector<4x1xf32>
    %1126 = arith.addf %1124, %1125 : vector<4x1xf32>
    %1127 = math.rsqrt %1126 : vector<4x1xf32>
    %1128 = vector.broadcast %1127 : vector<4x1xf32> to vector<4x32xf32>
    %1129 = arith.mulf %1119, %1128 : vector<4x32xf32>
    %1130 = vector.broadcast %1112 : vector<1x32xf32> to vector<4x32xf32>
    %1131 = arith.mulf %1129, %1130 : vector<4x32xf32>
    %1132 = vector.broadcast %1113 : vector<1x32xf32> to vector<4x32xf32>
    %1133 = arith.addf %1131, %1132 : vector<4x32xf32>
    %1134 = math.tanh %1133 : vector<4x32xf32>
    %1135 = vector.extract_strided_slice %1054 {offsets = [0, 96], sizes = [4, 32], strides = [1, 1]} : vector<4x128xf32> to vector<4x32xf32>
    %1136 = vector.extract_strided_slice %3 {offsets = [3, 0], sizes = [1, 32], strides = [1, 1]} : vector<5x32xf32> to vector<1x32xf32>
    %1137 = vector.extract_strided_slice %4 {offsets = [3, 0], sizes = [1, 32], strides = [1, 1]} : vector<5x32xf32> to vector<1x32xf32>
    %cst_329 = arith.constant dense<0.000000e+00> : vector<4xf32>
    %1138 = vector.multi_reduction <add>, %1135, %cst_329 [1] : vector<4x32xf32> to vector<4xf32>
    %1139 = vector.shape_cast %1138 : vector<4xf32> to vector<4x1xf32>
    %cst_330 = arith.constant 3.200000e+01 : f32
    %1140 = vector.broadcast %cst_330 : f32 to vector<4x1xf32>
    %1141 = arith.divf %1139, %1140 : vector<4x1xf32>
    %1142 = vector.broadcast %1141 : vector<4x1xf32> to vector<4x32xf32>
    %1143 = arith.subf %1135, %1142 : vector<4x32xf32>
    %1144 = arith.mulf %1143, %1143 : vector<4x32xf32>
    %cst_331 = arith.constant dense<0.000000e+00> : vector<4xf32>
    %1145 = vector.multi_reduction <add>, %1144, %cst_331 [1] : vector<4x32xf32> to vector<4xf32>
    %1146 = vector.shape_cast %1145 : vector<4xf32> to vector<4x1xf32>
    %cst_332 = arith.constant 3.200000e+01 : f32
    %1147 = vector.broadcast %cst_332 : f32 to vector<4x1xf32>
    %1148 = arith.divf %1146, %1147 : vector<4x1xf32>
    %cst_333 = arith.constant 9.99999974E-6 : f32
    %1149 = vector.broadcast %cst_333 : f32 to vector<4x1xf32>
    %1150 = arith.addf %1148, %1149 : vector<4x1xf32>
    %1151 = math.rsqrt %1150 : vector<4x1xf32>
    %1152 = vector.broadcast %1151 : vector<4x1xf32> to vector<4x32xf32>
    %1153 = arith.mulf %1143, %1152 : vector<4x32xf32>
    %1154 = vector.broadcast %1136 : vector<1x32xf32> to vector<4x32xf32>
    %1155 = arith.mulf %1153, %1154 : vector<4x32xf32>
    %1156 = vector.broadcast %1137 : vector<1x32xf32> to vector<4x32xf32>
    %1157 = arith.addf %1155, %1156 : vector<4x32xf32>
    %1158 = arith.negf %1157 : vector<4x32xf32>
    %1159 = math.exp %1158 : vector<4x32xf32>
    %cst_334 = arith.constant 1.000000e+00 : f32
    %1160 = vector.broadcast %cst_334 : f32 to vector<4x32xf32>
    %1161 = arith.addf %1160, %1159 : vector<4x32xf32>
    %1162 = arith.divf %1160, %1161 : vector<4x32xf32>
    %c0_335 = arith.constant 0 : index
    %c0_336 = arith.constant 0 : index
    %1163 = vector.load %arg12[%c0_335, %c0_336] : memref<4x32xf32, #tpu.memory_space<vmem>>, vector<4x32xf32>
    %1164 = arith.mulf %1110, %1163 : vector<4x32xf32>
    %1165 = arith.mulf %1082, %1134 : vector<4x32xf32>
    %1166 = arith.addf %1164, %1165 : vector<4x32xf32>
    %1167 = vector.extract_strided_slice %3 {offsets = [4, 0], sizes = [1, 32], strides = [1, 1]} : vector<5x32xf32> to vector<1x32xf32>
    %1168 = vector.extract_strided_slice %4 {offsets = [4, 0], sizes = [1, 32], strides = [1, 1]} : vector<5x32xf32> to vector<1x32xf32>
    %cst_337 = arith.constant dense<0.000000e+00> : vector<4xf32>
    %1169 = vector.multi_reduction <add>, %1166, %cst_337 [1] : vector<4x32xf32> to vector<4xf32>
    %1170 = vector.shape_cast %1169 : vector<4xf32> to vector<4x1xf32>
    %cst_338 = arith.constant 3.200000e+01 : f32
    %1171 = vector.broadcast %cst_338 : f32 to vector<4x1xf32>
    %1172 = arith.divf %1170, %1171 : vector<4x1xf32>
    %1173 = vector.broadcast %1172 : vector<4x1xf32> to vector<4x32xf32>
    %1174 = arith.subf %1166, %1173 : vector<4x32xf32>
    %1175 = arith.mulf %1174, %1174 : vector<4x32xf32>
    %cst_339 = arith.constant dense<0.000000e+00> : vector<4xf32>
    %1176 = vector.multi_reduction <add>, %1175, %cst_339 [1] : vector<4x32xf32> to vector<4xf32>
    %1177 = vector.shape_cast %1176 : vector<4xf32> to vector<4x1xf32>
    %cst_340 = arith.constant 3.200000e+01 : f32
    %1178 = vector.broadcast %cst_340 : f32 to vector<4x1xf32>
    %1179 = arith.divf %1177, %1178 : vector<4x1xf32>
    %cst_341 = arith.constant 9.99999974E-6 : f32
    %1180 = vector.broadcast %cst_341 : f32 to vector<4x1xf32>
    %1181 = arith.addf %1179, %1180 : vector<4x1xf32>
    %1182 = math.rsqrt %1181 : vector<4x1xf32>
    %1183 = vector.broadcast %1182 : vector<4x1xf32> to vector<4x32xf32>
    %1184 = arith.mulf %1174, %1183 : vector<4x32xf32>
    %1185 = vector.broadcast %1167 : vector<1x32xf32> to vector<4x32xf32>
    %1186 = arith.mulf %1184, %1185 : vector<4x32xf32>
    %1187 = vector.broadcast %1168 : vector<1x32xf32> to vector<4x32xf32>
    %1188 = arith.addf %1186, %1187 : vector<4x32xf32>
    %1189 = math.tanh %1188 : vector<4x32xf32>
    %1190 = arith.mulf %1162, %1189 : vector<4x32xf32>
    %c0_342 = arith.constant 0 : index
    %c0_343 = arith.constant 0 : index
    %1191 = vector.load %arg11[%c0_342, %c0_343] : memref<4x32xf32, #tpu.memory_space<vmem>>, vector<4x32xf32>
    tpu.vector_store %arg11[%c0_342, %c0_343], %1190 {strides = array<i32>} : memref<4x32xf32, #tpu.memory_space<vmem>>, vector<4x32xf32>,
    %c0_344 = arith.constant 0 : index
    %c0_345 = arith.constant 0 : index
    %1192 = vector.load %arg12[%c0_344, %c0_345] : memref<4x32xf32, #tpu.memory_space<vmem>>, vector<4x32xf32>
    tpu.vector_store %arg12[%c0_344, %c0_345], %1188 {strides = array<i32>} : memref<4x32xf32, #tpu.memory_space<vmem>>, vector<4x32xf32>,
    %1193 = arith.index_cast %c7_i32 : i32 to index
    %c0_346 = arith.constant 0 : index
    %c0_347 = arith.constant 0 : index
    %1194 = vector.load %arg8[%1193, %c0_346, %c0_347] : memref<8x4x32xf32, #tpu.memory_space<vmem>>, vector<1x4x32xf32>
    %1195 = vector.shape_cast %1194 : vector<1x4x32xf32> to vector<4x32xf32>
    %1196 = vector.shape_cast %1190 : vector<4x32xf32> to vector<1x4x32xf32>
    tpu.vector_store %arg8[%1193, %c0_346, %c0_347], %1196 {strides = array<i32>} : memref<8x4x32xf32, #tpu.memory_space<vmem>>, vector<1x4x32xf32>,
    %c8_i32 = arith.constant 8 : i32
    %c0_i32_348 = arith.constant 0 : i32
    %1197 = arith.cmpi eq, %arg1, %c0_i32_348 : i32
    %1198 = arith.extui %1197 : i1 to i32
    %c0_i32_349 = arith.constant 0 : i32
    %1199 = arith.cmpi ne, %1198, %c0_i32_349 : i32
    scf.if %1199 {
      %c0_350 = arith.constant 0 : index
      %c0_351 = arith.constant 0 : index
      %1200 = vector.load %arg11[%c0_350, %c0_351] : memref<4x32xf32, #tpu.memory_space<vmem>>, vector<4x32xf32>
      %c0_352 = arith.constant 0 : index
      %c0_353 = arith.constant 0 : index
      %1201 = vector.load %arg9[%c0_352, %c0_353] : memref<4x32xf32, #tpu.memory_space<vmem>>, vector<4x32xf32>
      tpu.vector_store %arg9[%c0_352, %c0_353], %1200 {strides = array<i32>} : memref<4x32xf32, #tpu.memory_space<vmem>>, vector<4x32xf32>,
      %c0_354 = arith.constant 0 : index
      %c0_355 = arith.constant 0 : index
      %1202 = vector.load %arg12[%c0_354, %c0_355] : memref<4x32xf32, #tpu.memory_space<vmem>>, vector<4x32xf32>
      %c0_356 = arith.constant 0 : index
      %c0_357 = arith.constant 0 : index
      %1203 = vector.load %arg10[%c0_356, %c0_357] : memref<4x32xf32, #tpu.memory_space<vmem>>, vector<4x32xf32>
      tpu.vector_store %arg10[%c0_356, %c0_357], %1202 {strides = array<i32>} : memref<4x32xf32, #tpu.memory_space<vmem>>, vector<4x32xf32>,
    } else {
    }
    return
  }
  func.func @transform_0(%arg0: i32, %arg1: i32) -> (i32, i32, i32) {
    %c0_i32 = arith.constant 0 : i32
    %c0_i32_0 = arith.constant 0 : i32
    return %arg1, %arg0, %c0_i32 : i32, i32, i32
  }
  func.func @transform_1(%arg0: i32, %arg1: i32) -> (i32, i32) {
    %c0_i32 = arith.constant 0 : i32
    %c0_i32_0 = arith.constant 0 : i32
    return %arg0, %c0_i32 : i32, i32
  }
  func.func @transform_2(%arg0: i32, %arg1: i32) -> (i32, i32) {
    %c0_i32 = arith.constant 0 : i32
    %c0_i32_0 = arith.constant 0 : i32
    return %arg0, %c0_i32 : i32, i32
  }
  func.func @transform_3(%arg0: i32, %arg1: i32) -> (i32, i32) {
    %c0_i32 = arith.constant 0 : i32
    %c0_i32_0 = arith.constant 0 : i32
    %c0_i32_1 = arith.constant 0 : i32
    return %c0_i32, %c0_i32_0 : i32, i32
  }
  func.func @transform_4(%arg0: i32, %arg1: i32) -> (i32, i32) {
    %c0_i32 = arith.constant 0 : i32
    %c0_i32_0 = arith.constant 0 : i32
    %c0_i32_1 = arith.constant 0 : i32
    return %c0_i32, %c0_i32_0 : i32, i32
  }
  func.func @transform_5(%arg0: i32, %arg1: i32) -> (i32, i32) {
    %c0_i32 = arith.constant 0 : i32
    %c0_i32_0 = arith.constant 0 : i32
    %c0_i32_1 = arith.constant 0 : i32
    return %c0_i32, %c0_i32_0 : i32, i32
  }
  func.func @transform_6(%arg0: i32, %arg1: i32) -> (i32, i32, i32) {
    %c0_i32 = arith.constant 0 : i32
    %c0_i32_0 = arith.constant 0 : i32
    return %arg1, %arg0, %c0_i32 : i32, i32, i32
  }
  func.func @transform_7(%arg0: i32, %arg1: i32) -> (i32, i32) {
    %c0_i32 = arith.constant 0 : i32
    %c0_i32_0 = arith.constant 0 : i32
    return %arg0, %c0_i32 : i32, i32
  }
  func.func @transform_8(%arg0: i32, %arg1: i32) -> (i32, i32) {
    %c0_i32 = arith.constant 0 : i32
    %c0_i32_0 = arith.constant 0 : i32
    return %arg0, %c0_i32 : i32, i32
  }
}

module attributes {stable_mosaic.version = 11 : i64} {
  func.func @_lstm_seq_kernel(%arg0: i32, %arg1: i32, %arg2: memref<8x4x128xf32, #tpu.memory_space<vmem>>, %arg3: memref<4x32xf32, #tpu.memory_space<vmem>>, %arg4: memref<4x32xf32, #tpu.memory_space<vmem>>, %arg5: memref<32x128xf32, #tpu.memory_space<vmem>>, %arg6: memref<5x32xf32, #tpu.memory_space<vmem>>, %arg7: memref<5x32xf32, #tpu.memory_space<vmem>>, %arg8: memref<8x4x32xf32, #tpu.memory_space<vmem>>, %arg9: memref<4x32xf32, #tpu.memory_space<vmem>>, %arg10: memref<4x32xf32, #tpu.memory_space<vmem>>, %arg11: memref<4x32xf32, #tpu.memory_space<vmem>>, %arg12: memref<4x32xf32, #tpu.memory_space<vmem>>) attributes {dimension_semantics = [#tpu.dimension_semantics<parallel>, #tpu.dimension_semantics<arbitrary>], iteration_bounds = array<i64: 1, 1>, scalar_prefetch = 0 : i64, scratch_operands = 2 : i64, tpu.core_type = #tpu.core_type<tc>, window_params = [{transform_indices = @transform_0, window_bounds = array<i64: 8, 4, 128>}, {transform_indices = @transform_1, window_bounds = array<i64: 4, 32>}, {transform_indices = @transform_2, window_bounds = array<i64: 4, 32>}, {pipeline_mode = #tpu.pipeline_mode<synchronous>, transform_indices = @transform_3, window_bounds = array<i64: 32, 128>}, {pipeline_mode = #tpu.pipeline_mode<synchronous>, transform_indices = @transform_4, window_bounds = array<i64: 5, 32>}, {pipeline_mode = #tpu.pipeline_mode<synchronous>, transform_indices = @transform_5, window_bounds = array<i64: 5, 32>}, {transform_indices = @transform_6, window_bounds = array<i64: 8, 4, 32>}, {transform_indices = @transform_7, window_bounds = array<i64: 4, 32>}, {transform_indices = @transform_8, window_bounds = array<i64: 4, 32>}]} {
    %c0_i32 = arith.constant 0 : i32
    %0 = arith.cmpi eq, %arg1, %c0_i32 : i32
    %1 = arith.extui %0 : i1 to i32
    %c0_i32_0 = arith.constant 0 : i32
    %2 = arith.cmpi ne, %1, %c0_i32_0 : i32
    scf.if %2 {
      %c0_350 = arith.constant 0 : index
      %c0_351 = arith.constant 0 : index
      %1200 = vector.load %arg3[%c0_350, %c0_351] : memref<4x32xf32, #tpu.memory_space<vmem>>, vector<4x32xf32>
      %c0_352 = arith.constant 0 : index
      %c0_353 = arith.constant 0 : index
      %1201 = vector.load %arg11[%c0_352, %c0_353] : memref<4x32xf32, #tpu.memory_space<vmem>>, vector<4x32xf32>
      tpu.vector_store %arg11[%c0_352, %c0_353], %1200 {strides = array<i32>} : memref<4x32xf32, #tpu.memory_space<vmem>>, vector<4x32xf32>,
      %c0_354 = arith.constant 0 : index
      %c0_355 = arith.constant 0 : index
      %1202 = vector.load %arg4[%c0_354, %c0_355] : memref<4x32xf32, #tpu.memory_space<vmem>>, vector<4x32xf32>
      %c0_356 = arith.constant 0 : index
      %c0_357 = arith.constant 0 : index
      %1203 = vector.load %arg12[%c0_356, %c0_357] : memref<4x32xf32, #tpu.memory_space<vmem>>, vector<4x32xf32>
      tpu.vector_store %arg12[%c0_356, %c0_357], %1202 {strides = array<i32>} : memref<4x32xf32, #tpu.memory_space<vmem>>, vector<4x32xf32>,
    } else {
    }
    %c0 = arith.constant 0 : index
    %c0_1 = arith.constant 0 : index
    %3 = vector.load %arg6[%c0, %c0_1] : memref<5x32xf32, #tpu.memory_space<vmem>>, vector<5x32xf32>
    %c0_2 = arith.constant 0 : index
    %c0_3 = arith.constant 0 : index
    %4 = vector.load %arg7[%c0_2, %c0_3] : memref<5x32xf32, #tpu.memory_space<vmem>>, vector<5x32xf32>
    %c0_i32_4 = arith.constant 0 : i32
    %c0_5 = arith.constant 0 : index
    %c0_6 = arith.constant 0 : index
    %5 = vector.load %arg11[%c0_5, %c0_6] : memref<4x32xf32, #tpu.memory_space<vmem>>, vector<4x32xf32>
    %6 = arith.index_cast %c0_i32_4 : i32 to index
    %c0_7 = arith.constant 0 : index
    %c0_8 = arith.constant 0 : index
    %7 = vector.load %arg2[%6, %c0_7, %c0_8] : memref<8x4x128xf32, #tpu.memory_space<vmem>>, vector<1x4x128xf32>
    %8 = vector.shape_cast %7 : vector<1x4x128xf32> to vector<4x128xf32>
    %c0_9 = arith.constant 0 : index
    %c0_10 = arith.constant 0 : index
    %9 = vector.load %arg5[%c0_9, %c0_10] : memref<32x128xf32, #tpu.memory_space<vmem>>, vector<32x128xf32>
    %cst = arith.constant dense<0.000000e+00> : vector<4x128xf32>
    %10 = tpu.matmul %5, %9, %cst {dimension_numbers = #tpu.dot_dimension_numbers<[1], [0], [0], [1], [0, 0, 1, 1], [], []>} : vector<4x32xf32>, vector<32x128xf32>, vector<4x128xf32> -> vector<4x128xf32>
    %11 = arith.addf %8, %10 : vector<4x128xf32>
    %12 = vector.extract_strided_slice %11 {offsets = [0, 0], sizes = [4, 32], strides = [1, 1]} : vector<4x128xf32> to vector<4x32xf32>
    %13 = vector.extract_strided_slice %3 {offsets = [0, 0], sizes = [1, 32], strides = [1, 1]} : vector<5x32xf32> to vector<1x32xf32>
    %14 = vector.extract_strided_slice %4 {offsets = [0, 0], sizes = [1, 32], strides = [1, 1]} : vector<5x32xf32> to vector<1x32xf32>
    %cst_11 = arith.constant dense<0.000000e+00> : vector<4xf32>
    %15 = vector.multi_reduction <add>, %12, %cst_11 [1] : vector<4x32xf32> to vector<4xf32>
    %16 = vector.shape_cast %15 : vector<4xf32> to vector<4x1xf32>
    %cst_12 = arith.constant 3.200000e+01 : f32
    %17 = vector.broadcast %cst_12 : f32 to vector<4x1xf32>
    %18 = arith.divf %16, %17 : vector<4x1xf32>
    %19 = vector.broadcast %18 : vector<4x1xf32> to vector<4x32xf32>
    %20 = arith.subf %12, %19 : vector<4x32xf32>
    %21 = arith.mulf %20, %20 : vector<4x32xf32>
    %cst_13 = arith.constant dense<0.000000e+00> : vector<4xf32>
    %22 = vector.multi_reduction <add>, %21, %cst_13 [1] : vector<4x32xf32> to vector<4xf32>
    %23 = vector.shape_cast %22 : vector<4xf32> to vector<4x1xf32>
    %cst_14 = arith.constant 3.200000e+01 : f32
    %24 = vector.broadcast %cst_14 : f32 to vector<4x1xf32>
    %25 = arith.divf %23, %24 : vector<4x1xf32>
    %cst_15 = arith.constant 9.99999974E-6 : f32
    %26 = vector.broadcast %cst_15 : f32 to vector<4x1xf32>
    %27 = arith.addf %25, %26 : vector<4x1xf32>
    %28 = math.rsqrt %27 : vector<4x1xf32>
    %29 = vector.broadcast %28 : vector<4x1xf32> to vector<4x32xf32>
    %30 = arith.mulf %20, %29 : vector<4x32xf32>
    %31 = vector.broadcast %13 : vector<1x32xf32> to vector<4x32xf32>
    %32 = arith.mulf %30, %31 : vector<4x32xf32>
    %33 = vector.broadcast %14 : vector<1x32xf32> to vector<4x32xf32>
    %34 = arith.addf %32, %33 : vector<4x32xf32>
    %35 = arith.negf %34 : vector<4x32xf32>
    %36 = math.exp %35 : vector<4x32xf32>
    %cst_16 = arith.constant 1.000000e+00 : f32
    %37 = vector.broadcast %cst_16 : f32 to vector<4x32xf32>
    %38 = arith.addf %37, %36 : vector<4x32xf32>
    %39 = arith.divf %37, %38 : vector<4x32xf32>
    %40 = vector.extract_strided_slice %11 {offsets = [0, 32], sizes = [4, 32], strides = [1, 1]} : vector<4x128xf32> to vector<4x32xf32>
    %41 = vector.extract_strided_slice %3 {offsets = [1, 0], sizes = [1, 32], strides = [1, 1]} : vector<5x32xf32> to vector<1x32xf32>
    %42 = vector.extract_strided_slice %4 {offsets = [1, 0], sizes = [1, 32], strides = [1, 1]} : vector<5x32xf32> to vector<1x32xf32>
    %cst_17 = arith.constant dense<0.000000e+00> : vector<4xf32>
    %43 = vector.multi_reduction <add>, %40, %cst_17 [1] : vector<4x32xf32> to vector<4xf32>
    %44 = vector.shape_cast %43 : vector<4xf32> to vector<4x1xf32>
    %cst_18 = arith.constant 3.200000e+01 : f32
    %45 = vector.broadcast %cst_18 : f32 to vector<4x1xf32>
    %46 = arith.divf %44, %45 : vector<4x1xf32>
    %47 = vector.broadcast %46 : vector<4x1xf32> to vector<4x32xf32>
    %48 = arith.subf %40, %47 : vector<4x32xf32>
    %49 = arith.mulf %48, %48 : vector<4x32xf32>
    %cst_19 = arith.constant dense<0.000000e+00> : vector<4xf32>
    %50 = vector.multi_reduction <add>, %49, %cst_19 [1] : vector<4x32xf32> to vector<4xf32>
    %51 = vector.shape_cast %50 : vector<4xf32> to vector<4x1xf32>
    %cst_20 = arith.constant 3.200000e+01 : f32
    %52 = vector.broadcast %cst_20 : f32 to vector<4x1xf32>
    %53 = arith.divf %51, %52 : vector<4x1xf32>
    %cst_21 = arith.constant 9.99999974E-6 : f32
    %54 = vector.broadcast %cst_21 : f32 to vector<4x1xf32>
    %55 = arith.addf %53, %54 : vector<4x1xf32>
    %56 = math.rsqrt %55 : vector<4x1xf32>
    %57 = vector.broadcast %56 : vector<4x1xf32> to vector<4x32xf32>
    %58 = arith.mulf %48, %57 : vector<4x32xf32>
    %59 = vector.broadcast %41 : vector<1x32xf32> to vector<4x32xf32>
    %60 = arith.mulf %58, %59 : vector<4x32xf32>
    %61 = vector.broadcast %42 : vector<1x32xf32> to vector<4x32xf32>
    %62 = arith.addf %60, %61 : vector<4x32xf32>
    %63 = arith.negf %62 : vector<4x32xf32>
    %64 = math.exp %63 : vector<4x32xf32>
    %cst_22 = arith.constant 1.000000e+00 : f32
    %65 = vector.broadcast %cst_22 : f32 to vector<4x32xf32>
    %66 = arith.addf %65, %64 : vector<4x32xf32>
    %67 = arith.divf %65, %66 : vector<4x32xf32>
    %68 = vector.extract_strided_slice %11 {offsets = [0, 64], sizes = [4, 32], strides = [1, 1]} : vector<4x128xf32> to vector<4x32xf32>
    %69 = vector.extract_strided_slice %3 {offsets = [2, 0], sizes = [1, 32], strides = [1, 1]} : vector<5x32xf32> to vector<1x32xf32>
    %70 = vector.extract_strided_slice %4 {offsets = [2, 0], sizes = [1, 32], strides = [1, 1]} : vector<5x32xf32> to vector<1x32xf32>
    %cst_23 = arith.constant dense<0.000000e+00> : vector<4xf32>
    %71 = vector.multi_reduction <add>, %68, %cst_23 [1] : vector<4x32xf32> to vector<4xf32>
    %72 = vector.shape_cast %71 : vector<4xf32> to vector<4x1xf32>
    %cst_24 = arith.constant 3.200000e+01 : f32
    %73 = vector.broadcast %cst_24 : f32 to vector<4x1xf32>
    %74 = arith.divf %72, %73 : vector<4x1xf32>
    %75 = vector.broadcast %74 : vector<4x1xf32> to vector<4x32xf32>
    %76 = arith.subf %68, %75 : vector<4x32xf32>
    %77 = arith.mulf %76, %76 : vector<4x32xf32>
    %cst_25 = arith.constant dense<0.000000e+00> : vector<4xf32>
    %78 = vector.multi_reduction <add>, %77, %cst_25 [1] : vector<4x32xf32> to vector<4xf32>
    %79 = vector.shape_cast %78 : vector<4xf32> to vector<4x1xf32>
    %cst_26 = arith.constant 3.200000e+01 : f32
    %80 = vector.broadcast %cst_26 : f32 to vector<4x1xf32>
    %81 = arith.divf %79, %80 : vector<4x1xf32>
    %cst_27 = arith.constant 9.99999974E-6 : f32
    %82 = vector.broadcast %cst_27 : f32 to vector<4x1xf32>
    %83 = arith.addf %81, %82 : vector<4x1xf32>
    %84 = math.rsqrt %83 : vector<4x1xf32>
    %85 = vector.broadcast %84 : vector<4x1xf32> to vector<4x32xf32>
    %86 = arith.mulf %76, %85 : vector<4x32xf32>
    %87 = vector.broadcast %69 : vector<1x32xf32> to vector<4x32xf32>
    %88 = arith.mulf %86, %87 : vector<4x32xf32>
    %89 = vector.broadcast %70 : vector<1x32xf32> to vector<4x32xf32>
    %90 = arith.addf %88, %89 : vector<4x32xf32>
    %91 = math.tanh %90 : vector<4x32xf32>
    %92 = vector.extract_strided_slice %11 {offsets = [0, 96], sizes = [4, 32], strides = [1, 1]} : vector<4x128xf32> to vector<4x32xf32>
    %93 = vector.extract_strided_slice %3 {offsets = [3, 0], sizes = [1, 32], strides = [1, 1]} : vector<5x32xf32> to vector<1x32xf32>
    %94 = vector.extract_strided_slice %4 {offsets = [3, 0], sizes = [1, 32], strides = [1, 1]} : vector<5x32xf32> to vector<1x32xf32>
    %cst_28 = arith.constant dense<0.000000e+00> : vector<4xf32>
    %95 = vector.multi_reduction <add>, %92, %cst_28 [1] : vector<4x32xf32> to vector<4xf32>
    %96 = vector.shape_cast %95 : vector<4xf32> to vector<4x1xf32>
    %cst_29 = arith.constant 3.200000e+01 : f32
    %97 = vector.broadcast %cst_29 : f32 to vector<4x1xf32>
    %98 = arith.divf %96, %97 : vector<4x1xf32>
    %99 = vector.broadcast %98 : vector<4x1xf32> to vector<4x32xf32>
    %100 = arith.subf %92, %99 : vector<4x32xf32>
    %101 = arith.mulf %100, %100 : vector<4x32xf32>
    %cst_30 = arith.constant dense<0.000000e+00> : vector<4xf32>
    %102 = vector.multi_reduction <add>, %101, %cst_30 [1] : vector<4x32xf32> to vector<4xf32>
    %103 = vector.shape_cast %102 : vector<4xf32> to vector<4x1xf32>
    %cst_31 = arith.constant 3.200000e+01 : f32
    %104 = vector.broadcast %cst_31 : f32 to vector<4x1xf32>
    %105 = arith.divf %103, %104 : vector<4x1xf32>
    %cst_32 = arith.constant 9.99999974E-6 : f32
    %106 = vector.broadcast %cst_32 : f32 to vector<4x1xf32>
    %107 = arith.addf %105, %106 : vector<4x1xf32>
    %108 = math.rsqrt %107 : vector<4x1xf32>
    %109 = vector.broadcast %108 : vector<4x1xf32> to vector<4x32xf32>
    %110 = arith.mulf %100, %109 : vector<4x32xf32>
    %111 = vector.broadcast %93 : vector<1x32xf32> to vector<4x32xf32>
    %112 = arith.mulf %110, %111 : vector<4x32xf32>
    %113 = vector.broadcast %94 : vector<1x32xf32> to vector<4x32xf32>
    %114 = arith.addf %112, %113 : vector<4x32xf32>
    %115 = arith.negf %114 : vector<4x32xf32>
    %116 = math.exp %115 : vector<4x32xf32>
    %cst_33 = arith.constant 1.000000e+00 : f32
    %117 = vector.broadcast %cst_33 : f32 to vector<4x32xf32>
    %118 = arith.addf %117, %116 : vector<4x32xf32>
    %119 = arith.divf %117, %118 : vector<4x32xf32>
    %c0_34 = arith.constant 0 : index
    %c0_35 = arith.constant 0 : index
    %120 = vector.load %arg12[%c0_34, %c0_35] : memref<4x32xf32, #tpu.memory_space<vmem>>, vector<4x32xf32>
    %121 = arith.mulf %67, %120 : vector<4x32xf32>
    %122 = arith.mulf %39, %91 : vector<4x32xf32>
    %123 = arith.addf %121, %122 : vector<4x32xf32>
    %124 = vector.extract_strided_slice %3 {offsets = [4, 0], sizes = [1, 32], strides = [1, 1]} : vector<5x32xf32> to vector<1x32xf32>
    %125 = vector.extract_strided_slice %4 {offsets = [4, 0], sizes = [1, 32], strides = [1, 1]} : vector<5x32xf32> to vector<1x32xf32>
    %cst_36 = arith.constant dense<0.000000e+00> : vector<4xf32>
    %126 = vector.multi_reduction <add>, %123, %cst_36 [1] : vector<4x32xf32> to vector<4xf32>
    %127 = vector.shape_cast %126 : vector<4xf32> to vector<4x1xf32>
    %cst_37 = arith.constant 3.200000e+01 : f32
    %128 = vector.broadcast %cst_37 : f32 to vector<4x1xf32>
    %129 = arith.divf %127, %128 : vector<4x1xf32>
    %130 = vector.broadcast %129 : vector<4x1xf32> to vector<4x32xf32>
    %131 = arith.subf %123, %130 : vector<4x32xf32>
    %132 = arith.mulf %131, %131 : vector<4x32xf32>
    %cst_38 = arith.constant dense<0.000000e+00> : vector<4xf32>
    %133 = vector.multi_reduction <add>, %132, %cst_38 [1] : vector<4x32xf32> to vector<4xf32>
    %134 = vector.shape_cast %133 : vector<4xf32> to vector<4x1xf32>
    %cst_39 = arith.constant 3.200000e+01 : f32
    %135 = vector.broadcast %cst_39 : f32 to vector<4x1xf32>
    %136 = arith.divf %134, %135 : vector<4x1xf32>
    %cst_40 = arith.constant 9.99999974E-6 : f32
    %137 = vector.broadcast %cst_40 : f32 to vector<4x1xf32>
    %138 = arith.addf %136, %137 : vector<4x1xf32>
    %139 = math.rsqrt %138 : vector<4x1xf32>
    %140 = vector.broadcast %139 : vector<4x1xf32> to vector<4x32xf32>
    %141 = arith.mulf %131, %140 : vector<4x32xf32>
    %142 = vector.broadcast %124 : vector<1x32xf32> to vector<4x32xf32>
    %143 = arith.mulf %141, %142 : vector<4x32xf32>
    %144 = vector.broadcast %125 : vector<1x32xf32> to vector<4x32xf32>
    %145 = arith.addf %143, %144 : vector<4x32xf32>
    %146 = math.tanh %145 : vector<4x32xf32>
    %147 = arith.mulf %119, %146 : vector<4x32xf32>
    %c0_41 = arith.constant 0 : index
    %c0_42 = arith.constant 0 : index
    %148 = vector.load %arg11[%c0_41, %c0_42] : memref<4x32xf32, #tpu.memory_space<vmem>>, vector<4x32xf32>
    tpu.vector_store %arg11[%c0_41, %c0_42], %147 {strides = array<i32>} : memref<4x32xf32, #tpu.memory_space<vmem>>, vector<4x32xf32>,
    %c0_43 = arith.constant 0 : index
    %c0_44 = arith.constant 0 : index
    %149 = vector.load %arg12[%c0_43, %c0_44] : memref<4x32xf32, #tpu.memory_space<vmem>>, vector<4x32xf32>
    tpu.vector_store %arg12[%c0_43, %c0_44], %145 {strides = array<i32>} : memref<4x32xf32, #tpu.memory_space<vmem>>, vector<4x32xf32>,
    %150 = arith.index_cast %c0_i32_4 : i32 to index
    %c0_45 = arith.constant 0 : index
    %c0_46 = arith.constant 0 : index
    %151 = vector.load %arg8[%150, %c0_45, %c0_46] : memref<8x4x32xf32, #tpu.memory_space<vmem>>, vector<1x4x32xf32>
    %152 = vector.shape_cast %151 : vector<1x4x32xf32> to vector<4x32xf32>
    %153 = vector.shape_cast %147 : vector<4x32xf32> to vector<1x4x32xf32>
    tpu.vector_store %arg8[%150, %c0_45, %c0_46], %153 {strides = array<i32>} : memref<8x4x32xf32, #tpu.memory_space<vmem>>, vector<1x4x32xf32>,
    %c1_i32 = arith.constant 1 : i32
    %c0_47 = arith.constant 0 : index
    %c0_48 = arith.constant 0 : index
    %154 = vector.load %arg11[%c0_47, %c0_48] : memref<4x32xf32, #tpu.memory_space<vmem>>, vector<4x32xf32>
    %155 = arith.index_cast %c1_i32 : i32 to index
    %c0_49 = arith.constant 0 : index
    %c0_50 = arith.constant 0 : index
    %156 = vector.load %arg2[%155, %c0_49, %c0_50] : memref<8x4x128xf32, #tpu.memory_space<vmem>>, vector<1x4x128xf32>
    %157 = vector.shape_cast %156 : vector<1x4x128xf32> to vector<4x128xf32>
    %c0_51 = arith.constant 0 : index
    %c0_52 = arith.constant 0 : index
    %158 = vector.load %arg5[%c0_51, %c0_52] : memref<32x128xf32, #tpu.memory_space<vmem>>, vector<32x128xf32>
    %cst_53 = arith.constant dense<0.000000e+00> : vector<4x128xf32>
    %159 = tpu.matmul %154, %158, %cst_53 {dimension_numbers = #tpu.dot_dimension_numbers<[1], [0], [0], [1], [0, 0, 1, 1], [], []>} : vector<4x32xf32>, vector<32x128xf32>, vector<4x128xf32> -> vector<4x128xf32>
    %160 = arith.addf %157, %159 : vector<4x128xf32>
    %161 = vector.extract_strided_slice %160 {offsets = [0, 0], sizes = [4, 32], strides = [1, 1]} : vector<4x128xf32> to vector<4x32xf32>
    %162 = vector.extract_strided_slice %3 {offsets = [0, 0], sizes = [1, 32], strides = [1, 1]} : vector<5x32xf32> to vector<1x32xf32>
    %163 = vector.extract_strided_slice %4 {offsets = [0, 0], sizes = [1, 32], strides = [1, 1]} : vector<5x32xf32> to vector<1x32xf32>
    %cst_54 = arith.constant dense<0.000000e+00> : vector<4xf32>
    %164 = vector.multi_reduction <add>, %161, %cst_54 [1] : vector<4x32xf32> to vector<4xf32>
    %165 = vector.shape_cast %164 : vector<4xf32> to vector<4x1xf32>
    %cst_55 = arith.constant 3.200000e+01 : f32
    %166 = vector.broadcast %cst_55 : f32 to vector<4x1xf32>
    %167 = arith.divf %165, %166 : vector<4x1xf32>
    %168 = vector.broadcast %167 : vector<4x1xf32> to vector<4x32xf32>
    %169 = arith.subf %161, %168 : vector<4x32xf32>
    %170 = arith.mulf %169, %169 : vector<4x32xf32>
    %cst_56 = arith.constant dense<0.000000e+00> : vector<4xf32>
    %171 = vector.multi_reduction <add>, %170, %cst_56 [1] : vector<4x32xf32> to vector<4xf32>
    %172 = vector.shape_cast %171 : vector<4xf32> to vector<4x1xf32>
    %cst_57 = arith.constant 3.200000e+01 : f32
    %173 = vector.broadcast %cst_57 : f32 to vector<4x1xf32>
    %174 = arith.divf %172, %173 : vector<4x1xf32>
    %cst_58 = arith.constant 9.99999974E-6 : f32
    %175 = vector.broadcast %cst_58 : f32 to vector<4x1xf32>
    %176 = arith.addf %174, %175 : vector<4x1xf32>
    %177 = math.rsqrt %176 : vector<4x1xf32>
    %178 = vector.broadcast %177 : vector<4x1xf32> to vector<4x32xf32>
    %179 = arith.mulf %169, %178 : vector<4x32xf32>
    %180 = vector.broadcast %162 : vector<1x32xf32> to vector<4x32xf32>
    %181 = arith.mulf %179, %180 : vector<4x32xf32>
    %182 = vector.broadcast %163 : vector<1x32xf32> to vector<4x32xf32>
    %183 = arith.addf %181, %182 : vector<4x32xf32>
    %184 = arith.negf %183 : vector<4x32xf32>
    %185 = math.exp %184 : vector<4x32xf32>
    %cst_59 = arith.constant 1.000000e+00 : f32
    %186 = vector.broadcast %cst_59 : f32 to vector<4x32xf32>
    %187 = arith.addf %186, %185 : vector<4x32xf32>
    %188 = arith.divf %186, %187 : vector<4x32xf32>
    %189 = vector.extract_strided_slice %160 {offsets = [0, 32], sizes = [4, 32], strides = [1, 1]} : vector<4x128xf32> to vector<4x32xf32>
    %190 = vector.extract_strided_slice %3 {offsets = [1, 0], sizes = [1, 32], strides = [1, 1]} : vector<5x32xf32> to vector<1x32xf32>
    %191 = vector.extract_strided_slice %4 {offsets = [1, 0], sizes = [1, 32], strides = [1, 1]} : vector<5x32xf32> to vector<1x32xf32>
    %cst_60 = arith.constant dense<0.000000e+00> : vector<4xf32>
    %192 = vector.multi_reduction <add>, %189, %cst_60 [1] : vector<4x32xf32> to vector<4xf32>
    %193 = vector.shape_cast %192 : vector<4xf32> to vector<4x1xf32>
    %cst_61 = arith.constant 3.200000e+01 : f32
    %194 = vector.broadcast %cst_61 : f32 to vector<4x1xf32>
    %195 = arith.divf %193, %194 : vector<4x1xf32>
    %196 = vector.broadcast %195 : vector<4x1xf32> to vector<4x32xf32>
    %197 = arith.subf %189, %196 : vector<4x32xf32>
    %198 = arith.mulf %197, %197 : vector<4x32xf32>
    %cst_62 = arith.constant dense<0.000000e+00> : vector<4xf32>
    %199 = vector.multi_reduction <add>, %198, %cst_62 [1] : vector<4x32xf32> to vector<4xf32>
    %200 = vector.shape_cast %199 : vector<4xf32> to vector<4x1xf32>
    %cst_63 = arith.constant 3.200000e+01 : f32
    %201 = vector.broadcast %cst_63 : f32 to vector<4x1xf32>
    %202 = arith.divf %200, %201 : vector<4x1xf32>
    %cst_64 = arith.constant 9.99999974E-6 : f32
    %203 = vector.broadcast %cst_64 : f32 to vector<4x1xf32>
    %204 = arith.addf %202, %203 : vector<4x1xf32>
    %205 = math.rsqrt %204 : vector<4x1xf32>
    %206 = vector.broadcast %205 : vector<4x1xf32> to vector<4x32xf32>
    %207 = arith.mulf %197, %206 : vector<4x32xf32>
    %208 = vector.broadcast %190 : vector<1x32xf32> to vector<4x32xf32>
    %209 = arith.mulf %207, %208 : vector<4x32xf32>
    %210 = vector.broadcast %191 : vector<1x32xf32> to vector<4x32xf32>
    %211 = arith.addf %209, %210 : vector<4x32xf32>
    %212 = arith.negf %211 : vector<4x32xf32>
    %213 = math.exp %212 : vector<4x32xf32>
    %cst_65 = arith.constant 1.000000e+00 : f32
    %214 = vector.broadcast %cst_65 : f32 to vector<4x32xf32>
    %215 = arith.addf %214, %213 : vector<4x32xf32>
    %216 = arith.divf %214, %215 : vector<4x32xf32>
    %217 = vector.extract_strided_slice %160 {offsets = [0, 64], sizes = [4, 32], strides = [1, 1]} : vector<4x128xf32> to vector<4x32xf32>
    %218 = vector.extract_strided_slice %3 {offsets = [2, 0], sizes = [1, 32], strides = [1, 1]} : vector<5x32xf32> to vector<1x32xf32>
    %219 = vector.extract_strided_slice %4 {offsets = [2, 0], sizes = [1, 32], strides = [1, 1]} : vector<5x32xf32> to vector<1x32xf32>
    %cst_66 = arith.constant dense<0.000000e+00> : vector<4xf32>
    %220 = vector.multi_reduction <add>, %217, %cst_66 [1] : vector<4x32xf32> to vector<4xf32>
    %221 = vector.shape_cast %220 : vector<4xf32> to vector<4x1xf32>
    %cst_67 = arith.constant 3.200000e+01 : f32
    %222 = vector.broadcast %cst_67 : f32 to vector<4x1xf32>
    %223 = arith.divf %221, %222 : vector<4x1xf32>
    %224 = vector.broadcast %223 : vector<4x1xf32> to vector<4x32xf32>
    %225 = arith.subf %217, %224 : vector<4x32xf32>
    %226 = arith.mulf %225, %225 : vector<4x32xf32>
    %cst_68 = arith.constant dense<0.000000e+00> : vector<4xf32>
    %227 = vector.multi_reduction <add>, %226, %cst_68 [1] : vector<4x32xf32> to vector<4xf32>
    %228 = vector.shape_cast %227 : vector<4xf32> to vector<4x1xf32>
    %cst_69 = arith.constant 3.200000e+01 : f32
    %229 = vector.broadcast %cst_69 : f32 to vector<4x1xf32>
    %230 = arith.divf %228, %229 : vector<4x1xf32>
    %cst_70 = arith.constant 9.99999974E-6 : f32
    %231 = vector.broadcast %cst_70 : f32 to vector<4x1xf32>
    %232 = arith.addf %230, %231 : vector<4x1xf32>
    %233 = math.rsqrt %232 : vector<4x1xf32>
    %234 = vector.broadcast %233 : vector<4x1xf32> to vector<4x32xf32>
    %235 = arith.mulf %225, %234 : vector<4x32xf32>
    %236 = vector.broadcast %218 : vector<1x32xf32> to vector<4x32xf32>
    %237 = arith.mulf %235, %236 : vector<4x32xf32>
    %238 = vector.broadcast %219 : vector<1x32xf32> to vector<4x32xf32>
    %239 = arith.addf %237, %238 : vector<4x32xf32>
    %240 = math.tanh %239 : vector<4x32xf32>
    %241 = vector.extract_strided_slice %160 {offsets = [0, 96], sizes = [4, 32], strides = [1, 1]} : vector<4x128xf32> to vector<4x32xf32>
    %242 = vector.extract_strided_slice %3 {offsets = [3, 0], sizes = [1, 32], strides = [1, 1]} : vector<5x32xf32> to vector<1x32xf32>
    %243 = vector.extract_strided_slice %4 {offsets = [3, 0], sizes = [1, 32], strides = [1, 1]} : vector<5x32xf32> to vector<1x32xf32>
    %cst_71 = arith.constant dense<0.000000e+00> : vector<4xf32>
    %244 = vector.multi_reduction <add>, %241, %cst_71 [1] : vector<4x32xf32> to vector<4xf32>
    %245 = vector.shape_cast %244 : vector<4xf32> to vector<4x1xf32>
    %cst_72 = arith.constant 3.200000e+01 : f32
    %246 = vector.broadcast %cst_72 : f32 to vector<4x1xf32>
    %247 = arith.divf %245, %246 : vector<4x1xf32>
    %248 = vector.broadcast %247 : vector<4x1xf32> to vector<4x32xf32>
    %249 = arith.subf %241, %248 : vector<4x32xf32>
    %250 = arith.mulf %249, %249 : vector<4x32xf32>
    %cst_73 = arith.constant dense<0.000000e+00> : vector<4xf32>
    %251 = vector.multi_reduction <add>, %250, %cst_73 [1] : vector<4x32xf32> to vector<4xf32>
    %252 = vector.shape_cast %251 : vector<4xf32> to vector<4x1xf32>
    %cst_74 = arith.constant 3.200000e+01 : f32
    %253 = vector.broadcast %cst_74 : f32 to vector<4x1xf32>
    %254 = arith.divf %252, %253 : vector<4x1xf32>
    %cst_75 = arith.constant 9.99999974E-6 : f32
    %255 = vector.broadcast %cst_75 : f32 to vector<4x1xf32>
    %256 = arith.addf %254, %255 : vector<4x1xf32>
    %257 = math.rsqrt %256 : vector<4x1xf32>
    %258 = vector.broadcast %257 : vector<4x1xf32> to vector<4x32xf32>
    %259 = arith.mulf %249, %258 : vector<4x32xf32>
    %260 = vector.broadcast %242 : vector<1x32xf32> to vector<4x32xf32>
    %261 = arith.mulf %259, %260 : vector<4x32xf32>
    %262 = vector.broadcast %243 : vector<1x32xf32> to vector<4x32xf32>
    %263 = arith.addf %261, %262 : vector<4x32xf32>
    %264 = arith.negf %263 : vector<4x32xf32>
    %265 = math.exp %264 : vector<4x32xf32>
    %cst_76 = arith.constant 1.000000e+00 : f32
    %266 = vector.broadcast %cst_76 : f32 to vector<4x32xf32>
    %267 = arith.addf %266, %265 : vector<4x32xf32>
    %268 = arith.divf %266, %267 : vector<4x32xf32>
    %c0_77 = arith.constant 0 : index
    %c0_78 = arith.constant 0 : index
    %269 = vector.load %arg12[%c0_77, %c0_78] : memref<4x32xf32, #tpu.memory_space<vmem>>, vector<4x32xf32>
    %270 = arith.mulf %216, %269 : vector<4x32xf32>
    %271 = arith.mulf %188, %240 : vector<4x32xf32>
    %272 = arith.addf %270, %271 : vector<4x32xf32>
    %273 = vector.extract_strided_slice %3 {offsets = [4, 0], sizes = [1, 32], strides = [1, 1]} : vector<5x32xf32> to vector<1x32xf32>
    %274 = vector.extract_strided_slice %4 {offsets = [4, 0], sizes = [1, 32], strides = [1, 1]} : vector<5x32xf32> to vector<1x32xf32>
    %cst_79 = arith.constant dense<0.000000e+00> : vector<4xf32>
    %275 = vector.multi_reduction <add>, %272, %cst_79 [1] : vector<4x32xf32> to vector<4xf32>
    %276 = vector.shape_cast %275 : vector<4xf32> to vector<4x1xf32>
    %cst_80 = arith.constant 3.200000e+01 : f32
    %277 = vector.broadcast %cst_80 : f32 to vector<4x1xf32>
    %278 = arith.divf %276, %277 : vector<4x1xf32>
    %279 = vector.broadcast %278 : vector<4x1xf32> to vector<4x32xf32>
    %280 = arith.subf %272, %279 : vector<4x32xf32>
    %281 = arith.mulf %280, %280 : vector<4x32xf32>
    %cst_81 = arith.constant dense<0.000000e+00> : vector<4xf32>
    %282 = vector.multi_reduction <add>, %281, %cst_81 [1] : vector<4x32xf32> to vector<4xf32>
    %283 = vector.shape_cast %282 : vector<4xf32> to vector<4x1xf32>
    %cst_82 = arith.constant 3.200000e+01 : f32
    %284 = vector.broadcast %cst_82 : f32 to vector<4x1xf32>
    %285 = arith.divf %283, %284 : vector<4x1xf32>
    %cst_83 = arith.constant 9.99999974E-6 : f32
    %286 = vector.broadcast %cst_83 : f32 to vector<4x1xf32>
    %287 = arith.addf %285, %286 : vector<4x1xf32>
    %288 = math.rsqrt %287 : vector<4x1xf32>
    %289 = vector.broadcast %288 : vector<4x1xf32> to vector<4x32xf32>
    %290 = arith.mulf %280, %289 : vector<4x32xf32>
    %291 = vector.broadcast %273 : vector<1x32xf32> to vector<4x32xf32>
    %292 = arith.mulf %290, %291 : vector<4x32xf32>
    %293 = vector.broadcast %274 : vector<1x32xf32> to vector<4x32xf32>
    %294 = arith.addf %292, %293 : vector<4x32xf32>
    %295 = math.tanh %294 : vector<4x32xf32>
    %296 = arith.mulf %268, %295 : vector<4x32xf32>
    %c0_84 = arith.constant 0 : index
    %c0_85 = arith.constant 0 : index
    %297 = vector.load %arg11[%c0_84, %c0_85] : memref<4x32xf32, #tpu.memory_space<vmem>>, vector<4x32xf32>
    tpu.vector_store %arg11[%c0_84, %c0_85], %296 {strides = array<i32>} : memref<4x32xf32, #tpu.memory_space<vmem>>, vector<4x32xf32>,
    %c0_86 = arith.constant 0 : index
    %c0_87 = arith.constant 0 : index
    %298 = vector.load %arg12[%c0_86, %c0_87] : memref<4x32xf32, #tpu.memory_space<vmem>>, vector<4x32xf32>
    tpu.vector_store %arg12[%c0_86, %c0_87], %294 {strides = array<i32>} : memref<4x32xf32, #tpu.memory_space<vmem>>, vector<4x32xf32>,
    %299 = arith.index_cast %c1_i32 : i32 to index
    %c0_88 = arith.constant 0 : index
    %c0_89 = arith.constant 0 : index
    %300 = vector.load %arg8[%299, %c0_88, %c0_89] : memref<8x4x32xf32, #tpu.memory_space<vmem>>, vector<1x4x32xf32>
    %301 = vector.shape_cast %300 : vector<1x4x32xf32> to vector<4x32xf32>
    %302 = vector.shape_cast %296 : vector<4x32xf32> to vector<1x4x32xf32>
    tpu.vector_store %arg8[%299, %c0_88, %c0_89], %302 {strides = array<i32>} : memref<8x4x32xf32, #tpu.memory_space<vmem>>, vector<1x4x32xf32>,
    %c2_i32 = arith.constant 2 : i32
    %c0_90 = arith.constant 0 : index
    %c0_91 = arith.constant 0 : index
    %303 = vector.load %arg11[%c0_90, %c0_91] : memref<4x32xf32, #tpu.memory_space<vmem>>, vector<4x32xf32>
    %304 = arith.index_cast %c2_i32 : i32 to index
    %c0_92 = arith.constant 0 : index
    %c0_93 = arith.constant 0 : index
    %305 = vector.load %arg2[%304, %c0_92, %c0_93] : memref<8x4x128xf32, #tpu.memory_space<vmem>>, vector<1x4x128xf32>
    %306 = vector.shape_cast %305 : vector<1x4x128xf32> to vector<4x128xf32>
    %c0_94 = arith.constant 0 : index
    %c0_95 = arith.constant 0 : index
    %307 = vector.load %arg5[%c0_94, %c0_95] : memref<32x128xf32, #tpu.memory_space<vmem>>, vector<32x128xf32>
    %cst_96 = arith.constant dense<0.000000e+00> : vector<4x128xf32>
    %308 = tpu.matmul %303, %307, %cst_96 {dimension_numbers = #tpu.dot_dimension_numbers<[1], [0], [0], [1], [0, 0, 1, 1], [], []>} : vector<4x32xf32>, vector<32x128xf32>, vector<4x128xf32> -> vector<4x128xf32>
    %309 = arith.addf %306, %308 : vector<4x128xf32>
    %310 = vector.extract_strided_slice %309 {offsets = [0, 0], sizes = [4, 32], strides = [1, 1]} : vector<4x128xf32> to vector<4x32xf32>
    %311 = vector.extract_strided_slice %3 {offsets = [0, 0], sizes = [1, 32], strides = [1, 1]} : vector<5x32xf32> to vector<1x32xf32>
    %312 = vector.extract_strided_slice %4 {offsets = [0, 0], sizes = [1, 32], strides = [1, 1]} : vector<5x32xf32> to vector<1x32xf32>
    %cst_97 = arith.constant dense<0.000000e+00> : vector<4xf32>
    %313 = vector.multi_reduction <add>, %310, %cst_97 [1] : vector<4x32xf32> to vector<4xf32>
    %314 = vector.shape_cast %313 : vector<4xf32> to vector<4x1xf32>
    %cst_98 = arith.constant 3.200000e+01 : f32
    %315 = vector.broadcast %cst_98 : f32 to vector<4x1xf32>
    %316 = arith.divf %314, %315 : vector<4x1xf32>
    %317 = vector.broadcast %316 : vector<4x1xf32> to vector<4x32xf32>
    %318 = arith.subf %310, %317 : vector<4x32xf32>
    %319 = arith.mulf %318, %318 : vector<4x32xf32>
    %cst_99 = arith.constant dense<0.000000e+00> : vector<4xf32>
    %320 = vector.multi_reduction <add>, %319, %cst_99 [1] : vector<4x32xf32> to vector<4xf32>
    %321 = vector.shape_cast %320 : vector<4xf32> to vector<4x1xf32>
    %cst_100 = arith.constant 3.200000e+01 : f32
    %322 = vector.broadcast %cst_100 : f32 to vector<4x1xf32>
    %323 = arith.divf %321, %322 : vector<4x1xf32>
    %cst_101 = arith.constant 9.99999974E-6 : f32
    %324 = vector.broadcast %cst_101 : f32 to vector<4x1xf32>
    %325 = arith.addf %323, %324 : vector<4x1xf32>
    %326 = math.rsqrt %325 : vector<4x1xf32>
    %327 = vector.broadcast %326 : vector<4x1xf32> to vector<4x32xf32>
    %328 = arith.mulf %318, %327 : vector<4x32xf32>
    %329 = vector.broadcast %311 : vector<1x32xf32> to vector<4x32xf32>
    %330 = arith.mulf %328, %329 : vector<4x32xf32>
    %331 = vector.broadcast %312 : vector<1x32xf32> to vector<4x32xf32>
    %332 = arith.addf %330, %331 : vector<4x32xf32>
    %333 = arith.negf %332 : vector<4x32xf32>
    %334 = math.exp %333 : vector<4x32xf32>
    %cst_102 = arith.constant 1.000000e+00 : f32
    %335 = vector.broadcast %cst_102 : f32 to vector<4x32xf32>
    %336 = arith.addf %335, %334 : vector<4x32xf32>
    %337 = arith.divf %335, %336 : vector<4x32xf32>
    %338 = vector.extract_strided_slice %309 {offsets = [0, 32], sizes = [4, 32], strides = [1, 1]} : vector<4x128xf32> to vector<4x32xf32>
    %339 = vector.extract_strided_slice %3 {offsets = [1, 0], sizes = [1, 32], strides = [1, 1]} : vector<5x32xf32> to vector<1x32xf32>
    %340 = vector.extract_strided_slice %4 {offsets = [1, 0], sizes = [1, 32], strides = [1, 1]} : vector<5x32xf32> to vector<1x32xf32>
    %cst_103 = arith.constant dense<0.000000e+00> : vector<4xf32>
    %341 = vector.multi_reduction <add>, %338, %cst_103 [1] : vector<4x32xf32> to vector<4xf32>
    %342 = vector.shape_cast %341 : vector<4xf32> to vector<4x1xf32>
    %cst_104 = arith.constant 3.200000e+01 : f32
    %343 = vector.broadcast %cst_104 : f32 to vector<4x1xf32>
    %344 = arith.divf %342, %343 : vector<4x1xf32>
    %345 = vector.broadcast %344 : vector<4x1xf32> to vector<4x32xf32>
    %346 = arith.subf %338, %345 : vector<4x32xf32>
    %347 = arith.mulf %346, %346 : vector<4x32xf32>
    %cst_105 = arith.constant dense<0.000000e+00> : vector<4xf32>
    %348 = vector.multi_reduction <add>, %347, %cst_105 [1] : vector<4x32xf32> to vector<4xf32>
    %349 = vector.shape_cast %348 : vector<4xf32> to vector<4x1xf32>
    %cst_106 = arith.constant 3.200000e+01 : f32
    %350 = vector.broadcast %cst_106 : f32 to vector<4x1xf32>
    %351 = arith.divf %349, %350 : vector<4x1xf32>
    %cst_107 = arith.constant 9.99999974E-6 : f32
    %352 = vector.broadcast %cst_107 : f32 to vector<4x1xf32>
    %353 = arith.addf %351, %352 : vector<4x1xf32>
    %354 = math.rsqrt %353 : vector<4x1xf32>
    %355 = vector.broadcast %354 : vector<4x1xf32> to vector<4x32xf32>
    %356 = arith.mulf %346, %355 : vector<4x32xf32>
    %357 = vector.broadcast %339 : vector<1x32xf32> to vector<4x32xf32>
    %358 = arith.mulf %356, %357 : vector<4x32xf32>
    %359 = vector.broadcast %340 : vector<1x32xf32> to vector<4x32xf32>
    %360 = arith.addf %358, %359 : vector<4x32xf32>
    %361 = arith.negf %360 : vector<4x32xf32>
    %362 = math.exp %361 : vector<4x32xf32>
    %cst_108 = arith.constant 1.000000e+00 : f32
    %363 = vector.broadcast %cst_108 : f32 to vector<4x32xf32>
    %364 = arith.addf %363, %362 : vector<4x32xf32>
    %365 = arith.divf %363, %364 : vector<4x32xf32>
    %366 = vector.extract_strided_slice %309 {offsets = [0, 64], sizes = [4, 32], strides = [1, 1]} : vector<4x128xf32> to vector<4x32xf32>
    %367 = vector.extract_strided_slice %3 {offsets = [2, 0], sizes = [1, 32], strides = [1, 1]} : vector<5x32xf32> to vector<1x32xf32>
    %368 = vector.extract_strided_slice %4 {offsets = [2, 0], sizes = [1, 32], strides = [1, 1]} : vector<5x32xf32> to vector<1x32xf32>
    %cst_109 = arith.constant dense<0.000000e+00> : vector<4xf32>
    %369 = vector.multi_reduction <add>, %366, %cst_109 [1] : vector<4x32xf32> to vector<4xf32>
    %370 = vector.shape_cast %369 : vector<4xf32> to vector<4x1xf32>
    %cst_110 = arith.constant 3.200000e+01 : f32
    %371 = vector.broadcast %cst_110 : f32 to vector<4x1xf32>
    %372 = arith.divf %370, %371 : vector<4x1xf32>
    %373 = vector.broadcast %372 : vector<4x1xf32> to vector<4x32xf32>
    %374 = arith.subf %366, %373 : vector<4x32xf32>
    %375 = arith.mulf %374, %374 : vector<4x32xf32>
    %cst_111 = arith.constant dense<0.000000e+00> : vector<4xf32>
    %376 = vector.multi_reduction <add>, %375, %cst_111 [1] : vector<4x32xf32> to vector<4xf32>
    %377 = vector.shape_cast %376 : vector<4xf32> to vector<4x1xf32>
    %cst_112 = arith.constant 3.200000e+01 : f32
    %378 = vector.broadcast %cst_112 : f32 to vector<4x1xf32>
    %379 = arith.divf %377, %378 : vector<4x1xf32>
    %cst_113 = arith.constant 9.99999974E-6 : f32
    %380 = vector.broadcast %cst_113 : f32 to vector<4x1xf32>
    %381 = arith.addf %379, %380 : vector<4x1xf32>
    %382 = math.rsqrt %381 : vector<4x1xf32>
    %383 = vector.broadcast %382 : vector<4x1xf32> to vector<4x32xf32>
    %384 = arith.mulf %374, %383 : vector<4x32xf32>
    %385 = vector.broadcast %367 : vector<1x32xf32> to vector<4x32xf32>
    %386 = arith.mulf %384, %385 : vector<4x32xf32>
    %387 = vector.broadcast %368 : vector<1x32xf32> to vector<4x32xf32>
    %388 = arith.addf %386, %387 : vector<4x32xf32>
    %389 = math.tanh %388 : vector<4x32xf32>
    %390 = vector.extract_strided_slice %309 {offsets = [0, 96], sizes = [4, 32], strides = [1, 1]} : vector<4x128xf32> to vector<4x32xf32>
    %391 = vector.extract_strided_slice %3 {offsets = [3, 0], sizes = [1, 32], strides = [1, 1]} : vector<5x32xf32> to vector<1x32xf32>
    %392 = vector.extract_strided_slice %4 {offsets = [3, 0], sizes = [1, 32], strides = [1, 1]} : vector<5x32xf32> to vector<1x32xf32>
    %cst_114 = arith.constant dense<0.000000e+00> : vector<4xf32>
    %393 = vector.multi_reduction <add>, %390, %cst_114 [1] : vector<4x32xf32> to vector<4xf32>
    %394 = vector.shape_cast %393 : vector<4xf32> to vector<4x1xf32>
    %cst_115 = arith.constant 3.200000e+01 : f32
    %395 = vector.broadcast %cst_115 : f32 to vector<4x1xf32>
    %396 = arith.divf %394, %395 : vector<4x1xf32>
    %397 = vector.broadcast %396 : vector<4x1xf32> to vector<4x32xf32>
    %398 = arith.subf %390, %397 : vector<4x32xf32>
    %399 = arith.mulf %398, %398 : vector<4x32xf32>
    %cst_116 = arith.constant dense<0.000000e+00> : vector<4xf32>
    %400 = vector.multi_reduction <add>, %399, %cst_116 [1] : vector<4x32xf32> to vector<4xf32>
    %401 = vector.shape_cast %400 : vector<4xf32> to vector<4x1xf32>
    %cst_117 = arith.constant 3.200000e+01 : f32
    %402 = vector.broadcast %cst_117 : f32 to vector<4x1xf32>
    %403 = arith.divf %401, %402 : vector<4x1xf32>
    %cst_118 = arith.constant 9.99999974E-6 : f32
    %404 = vector.broadcast %cst_118 : f32 to vector<4x1xf32>
    %405 = arith.addf %403, %404 : vector<4x1xf32>
    %406 = math.rsqrt %405 : vector<4x1xf32>
    %407 = vector.broadcast %406 : vector<4x1xf32> to vector<4x32xf32>
    %408 = arith.mulf %398, %407 : vector<4x32xf32>
    %409 = vector.broadcast %391 : vector<1x32xf32> to vector<4x32xf32>
    %410 = arith.mulf %408, %409 : vector<4x32xf32>
    %411 = vector.broadcast %392 : vector<1x32xf32> to vector<4x32xf32>
    %412 = arith.addf %410, %411 : vector<4x32xf32>
    %413 = arith.negf %412 : vector<4x32xf32>
    %414 = math.exp %413 : vector<4x32xf32>
    %cst_119 = arith.constant 1.000000e+00 : f32
    %415 = vector.broadcast %cst_119 : f32 to vector<4x32xf32>
    %416 = arith.addf %415, %414 : vector<4x32xf32>
    %417 = arith.divf %415, %416 : vector<4x32xf32>
    %c0_120 = arith.constant 0 : index
    %c0_121 = arith.constant 0 : index
    %418 = vector.load %arg12[%c0_120, %c0_121] : memref<4x32xf32, #tpu.memory_space<vmem>>, vector<4x32xf32>
    %419 = arith.mulf %365, %418 : vector<4x32xf32>
    %420 = arith.mulf %337, %389 : vector<4x32xf32>
    %421 = arith.addf %419, %420 : vector<4x32xf32>
    %422 = vector.extract_strided_slice %3 {offsets = [4, 0], sizes = [1, 32], strides = [1, 1]} : vector<5x32xf32> to vector<1x32xf32>
    %423 = vector.extract_strided_slice %4 {offsets = [4, 0], sizes = [1, 32], strides = [1, 1]} : vector<5x32xf32> to vector<1x32xf32>
    %cst_122 = arith.constant dense<0.000000e+00> : vector<4xf32>
    %424 = vector.multi_reduction <add>, %421, %cst_122 [1] : vector<4x32xf32> to vector<4xf32>
    %425 = vector.shape_cast %424 : vector<4xf32> to vector<4x1xf32>
    %cst_123 = arith.constant 3.200000e+01 : f32
    %426 = vector.broadcast %cst_123 : f32 to vector<4x1xf32>
    %427 = arith.divf %425, %426 : vector<4x1xf32>
    %428 = vector.broadcast %427 : vector<4x1xf32> to vector<4x32xf32>
    %429 = arith.subf %421, %428 : vector<4x32xf32>
    %430 = arith.mulf %429, %429 : vector<4x32xf32>
    %cst_124 = arith.constant dense<0.000000e+00> : vector<4xf32>
    %431 = vector.multi_reduction <add>, %430, %cst_124 [1] : vector<4x32xf32> to vector<4xf32>
    %432 = vector.shape_cast %431 : vector<4xf32> to vector<4x1xf32>
    %cst_125 = arith.constant 3.200000e+01 : f32
    %433 = vector.broadcast %cst_125 : f32 to vector<4x1xf32>
    %434 = arith.divf %432, %433 : vector<4x1xf32>
    %cst_126 = arith.constant 9.99999974E-6 : f32
    %435 = vector.broadcast %cst_126 : f32 to vector<4x1xf32>
    %436 = arith.addf %434, %435 : vector<4x1xf32>
    %437 = math.rsqrt %436 : vector<4x1xf32>
    %438 = vector.broadcast %437 : vector<4x1xf32> to vector<4x32xf32>
    %439 = arith.mulf %429, %438 : vector<4x32xf32>
    %440 = vector.broadcast %422 : vector<1x32xf32> to vector<4x32xf32>
    %441 = arith.mulf %439, %440 : vector<4x32xf32>
    %442 = vector.broadcast %423 : vector<1x32xf32> to vector<4x32xf32>
    %443 = arith.addf %441, %442 : vector<4x32xf32>
    %444 = math.tanh %443 : vector<4x32xf32>
    %445 = arith.mulf %417, %444 : vector<4x32xf32>
    %c0_127 = arith.constant 0 : index
    %c0_128 = arith.constant 0 : index
    %446 = vector.load %arg11[%c0_127, %c0_128] : memref<4x32xf32, #tpu.memory_space<vmem>>, vector<4x32xf32>
    tpu.vector_store %arg11[%c0_127, %c0_128], %445 {strides = array<i32>} : memref<4x32xf32, #tpu.memory_space<vmem>>, vector<4x32xf32>,
    %c0_129 = arith.constant 0 : index
    %c0_130 = arith.constant 0 : index
    %447 = vector.load %arg12[%c0_129, %c0_130] : memref<4x32xf32, #tpu.memory_space<vmem>>, vector<4x32xf32>
    tpu.vector_store %arg12[%c0_129, %c0_130], %443 {strides = array<i32>} : memref<4x32xf32, #tpu.memory_space<vmem>>, vector<4x32xf32>,
    %448 = arith.index_cast %c2_i32 : i32 to index
    %c0_131 = arith.constant 0 : index
    %c0_132 = arith.constant 0 : index
    %449 = vector.load %arg8[%448, %c0_131, %c0_132] : memref<8x4x32xf32, #tpu.memory_space<vmem>>, vector<1x4x32xf32>
    %450 = vector.shape_cast %449 : vector<1x4x32xf32> to vector<4x32xf32>
    %451 = vector.shape_cast %445 : vector<4x32xf32> to vector<1x4x32xf32>
    tpu.vector_store %arg8[%448, %c0_131, %c0_132], %451 {strides = array<i32>} : memref<8x4x32xf32, #tpu.memory_space<vmem>>, vector<1x4x32xf32>,
    %c3_i32 = arith.constant 3 : i32
    %c0_133 = arith.constant 0 : index
    %c0_134 = arith.constant 0 : index
    %452 = vector.load %arg11[%c0_133, %c0_134] : memref<4x32xf32, #tpu.memory_space<vmem>>, vector<4x32xf32>
    %453 = arith.index_cast %c3_i32 : i32 to index
    %c0_135 = arith.constant 0 : index
    %c0_136 = arith.constant 0 : index
    %454 = vector.load %arg2[%453, %c0_135, %c0_136] : memref<8x4x128xf32, #tpu.memory_space<vmem>>, vector<1x4x128xf32>
    %455 = vector.shape_cast %454 : vector<1x4x128xf32> to vector<4x128xf32>
    %c0_137 = arith.constant 0 : index
    %c0_138 = arith.constant 0 : index
    %456 = vector.load %arg5[%c0_137, %c0_138] : memref<32x128xf32, #tpu.memory_space<vmem>>, vector<32x128xf32>
    %cst_139 = arith.constant dense<0.000000e+00> : vector<4x128xf32>
    %457 = tpu.matmul %452, %456, %cst_139 {dimension_numbers = #tpu.dot_dimension_numbers<[1], [0], [0], [1], [0, 0, 1, 1], [], []>} : vector<4x32xf32>, vector<32x128xf32>, vector<4x128xf32> -> vector<4x128xf32>
    %458 = arith.addf %455, %457 : vector<4x128xf32>
    %459 = vector.extract_strided_slice %458 {offsets = [0, 0], sizes = [4, 32], strides = [1, 1]} : vector<4x128xf32> to vector<4x32xf32>
    %460 = vector.extract_strided_slice %3 {offsets = [0, 0], sizes = [1, 32], strides = [1, 1]} : vector<5x32xf32> to vector<1x32xf32>
    %461 = vector.extract_strided_slice %4 {offsets = [0, 0], sizes = [1, 32], strides = [1, 1]} : vector<5x32xf32> to vector<1x32xf32>
    %cst_140 = arith.constant dense<0.000000e+00> : vector<4xf32>
    %462 = vector.multi_reduction <add>, %459, %cst_140 [1] : vector<4x32xf32> to vector<4xf32>
    %463 = vector.shape_cast %462 : vector<4xf32> to vector<4x1xf32>
    %cst_141 = arith.constant 3.200000e+01 : f32
    %464 = vector.broadcast %cst_141 : f32 to vector<4x1xf32>
    %465 = arith.divf %463, %464 : vector<4x1xf32>
    %466 = vector.broadcast %465 : vector<4x1xf32> to vector<4x32xf32>
    %467 = arith.subf %459, %466 : vector<4x32xf32>
    %468 = arith.mulf %467, %467 : vector<4x32xf32>
    %cst_142 = arith.constant dense<0.000000e+00> : vector<4xf32>
    %469 = vector.multi_reduction <add>, %468, %cst_142 [1] : vector<4x32xf32> to vector<4xf32>
    %470 = vector.shape_cast %469 : vector<4xf32> to vector<4x1xf32>
    %cst_143 = arith.constant 3.200000e+01 : f32
    %471 = vector.broadcast %cst_143 : f32 to vector<4x1xf32>
    %472 = arith.divf %470, %471 : vector<4x1xf32>
    %cst_144 = arith.constant 9.99999974E-6 : f32
    %473 = vector.broadcast %cst_144 : f32 to vector<4x1xf32>
    %474 = arith.addf %472, %473 : vector<4x1xf32>
    %475 = math.rsqrt %474 : vector<4x1xf32>
    %476 = vector.broadcast %475 : vector<4x1xf32> to vector<4x32xf32>
    %477 = arith.mulf %467, %476 : vector<4x32xf32>
    %478 = vector.broadcast %460 : vector<1x32xf32> to vector<4x32xf32>
    %479 = arith.mulf %477, %478 : vector<4x32xf32>
    %480 = vector.broadcast %461 : vector<1x32xf32> to vector<4x32xf32>
    %481 = arith.addf %479, %480 : vector<4x32xf32>
    %482 = arith.negf %481 : vector<4x32xf32>
    %483 = math.exp %482 : vector<4x32xf32>
    %cst_145 = arith.constant 1.000000e+00 : f32
    %484 = vector.broadcast %cst_145 : f32 to vector<4x32xf32>
    %485 = arith.addf %484, %483 : vector<4x32xf32>
    %486 = arith.divf %484, %485 : vector<4x32xf32>
    %487 = vector.extract_strided_slice %458 {offsets = [0, 32], sizes = [4, 32], strides = [1, 1]} : vector<4x128xf32> to vector<4x32xf32>
    %488 = vector.extract_strided_slice %3 {offsets = [1, 0], sizes = [1, 32], strides = [1, 1]} : vector<5x32xf32> to vector<1x32xf32>
    %489 = vector.extract_strided_slice %4 {offsets = [1, 0], sizes = [1, 32], strides = [1, 1]} : vector<5x32xf32> to vector<1x32xf32>
    %cst_146 = arith.constant dense<0.000000e+00> : vector<4xf32>
    %490 = vector.multi_reduction <add>, %487, %cst_146 [1] : vector<4x32xf32> to vector<4xf32>
    %491 = vector.shape_cast %490 : vector<4xf32> to vector<4x1xf32>
    %cst_147 = arith.constant 3.200000e+01 : f32
    %492 = vector.broadcast %cst_147 : f32 to vector<4x1xf32>
    %493 = arith.divf %491, %492 : vector<4x1xf32>
    %494 = vector.broadcast %493 : vector<4x1xf32> to vector<4x32xf32>
    %495 = arith.subf %487, %494 : vector<4x32xf32>
    %496 = arith.mulf %495, %495 : vector<4x32xf32>
    %cst_148 = arith.constant dense<0.000000e+00> : vector<4xf32>
    %497 = vector.multi_reduction <add>, %496, %cst_148 [1] : vector<4x32xf32> to vector<4xf32>
    %498 = vector.shape_cast %497 : vector<4xf32> to vector<4x1xf32>
    %cst_149 = arith.constant 3.200000e+01 : f32
    %499 = vector.broadcast %cst_149 : f32 to vector<4x1xf32>
    %500 = arith.divf %498, %499 : vector<4x1xf32>
    %cst_150 = arith.constant 9.99999974E-6 : f32
    %501 = vector.broadcast %cst_150 : f32 to vector<4x1xf32>
    %502 = arith.addf %500, %501 : vector<4x1xf32>
    %503 = math.rsqrt %502 : vector<4x1xf32>
    %504 = vector.broadcast %503 : vector<4x1xf32> to vector<4x32xf32>
    %505 = arith.mulf %495, %504 : vector<4x32xf32>
    %506 = vector.broadcast %488 : vector<1x32xf32> to vector<4x32xf32>
    %507 = arith.mulf %505, %506 : vector<4x32xf32>
    %508 = vector.broadcast %489 : vector<1x32xf32> to vector<4x32xf32>
    %509 = arith.addf %507, %508 : vector<4x32xf32>
    %510 = arith.negf %509 : vector<4x32xf32>
    %511 = math.exp %510 : vector<4x32xf32>
    %cst_151 = arith.constant 1.000000e+00 : f32
    %512 = vector.broadcast %cst_151 : f32 to vector<4x32xf32>
    %513 = arith.addf %512, %511 : vector<4x32xf32>
    %514 = arith.divf %512, %513 : vector<4x32xf32>
    %515 = vector.extract_strided_slice %458 {offsets = [0, 64], sizes = [4, 32], strides = [1, 1]} : vector<4x128xf32> to vector<4x32xf32>
    %516 = vector.extract_strided_slice %3 {offsets = [2, 0], sizes = [1, 32], strides = [1, 1]} : vector<5x32xf32> to vector<1x32xf32>
    %517 = vector.extract_strided_slice %4 {offsets = [2, 0], sizes = [1, 32], strides = [1, 1]} : vector<5x32xf32> to vector<1x32xf32>
    %cst_152 = arith.constant dense<0.000000e+00> : vector<4xf32>
    %518 = vector.multi_reduction <add>, %515, %cst_152 [1] : vector<4x32xf32> to vector<4xf32>
    %519 = vector.shape_cast %518 : vector<4xf32> to vector<4x1xf32>
    %cst_153 = arith.constant 3.200000e+01 : f32
    %520 = vector.broadcast %cst_153 : f32 to vector<4x1xf32>
    %521 = arith.divf %519, %520 : vector<4x1xf32>
    %522 = vector.broadcast %521 : vector<4x1xf32> to vector<4x32xf32>
    %523 = arith.subf %515, %522 : vector<4x32xf32>
    %524 = arith.mulf %523, %523 : vector<4x32xf32>
    %cst_154 = arith.constant dense<0.000000e+00> : vector<4xf32>
    %525 = vector.multi_reduction <add>, %524, %cst_154 [1] : vector<4x32xf32> to vector<4xf32>
    %526 = vector.shape_cast %525 : vector<4xf32> to vector<4x1xf32>
    %cst_155 = arith.constant 3.200000e+01 : f32
    %527 = vector.broadcast %cst_155 : f32 to vector<4x1xf32>
    %528 = arith.divf %526, %527 : vector<4x1xf32>
    %cst_156 = arith.constant 9.99999974E-6 : f32
    %529 = vector.broadcast %cst_156 : f32 to vector<4x1xf32>
    %530 = arith.addf %528, %529 : vector<4x1xf32>
    %531 = math.rsqrt %530 : vector<4x1xf32>
    %532 = vector.broadcast %531 : vector<4x1xf32> to vector<4x32xf32>
    %533 = arith.mulf %523, %532 : vector<4x32xf32>
    %534 = vector.broadcast %516 : vector<1x32xf32> to vector<4x32xf32>
    %535 = arith.mulf %533, %534 : vector<4x32xf32>
    %536 = vector.broadcast %517 : vector<1x32xf32> to vector<4x32xf32>
    %537 = arith.addf %535, %536 : vector<4x32xf32>
    %538 = math.tanh %537 : vector<4x32xf32>
    %539 = vector.extract_strided_slice %458 {offsets = [0, 96], sizes = [4, 32], strides = [1, 1]} : vector<4x128xf32> to vector<4x32xf32>
    %540 = vector.extract_strided_slice %3 {offsets = [3, 0], sizes = [1, 32], strides = [1, 1]} : vector<5x32xf32> to vector<1x32xf32>
    %541 = vector.extract_strided_slice %4 {offsets = [3, 0], sizes = [1, 32], strides = [1, 1]} : vector<5x32xf32> to vector<1x32xf32>
    %cst_157 = arith.constant dense<0.000000e+00> : vector<4xf32>
    %542 = vector.multi_reduction <add>, %539, %cst_157 [1] : vector<4x32xf32> to vector<4xf32>
    %543 = vector.shape_cast %542 : vector<4xf32> to vector<4x1xf32>
    %cst_158 = arith.constant 3.200000e+01 : f32
    %544 = vector.broadcast %cst_158 : f32 to vector<4x1xf32>
    %545 = arith.divf %543, %544 : vector<4x1xf32>
    %546 = vector.broadcast %545 : vector<4x1xf32> to vector<4x32xf32>
    %547 = arith.subf %539, %546 : vector<4x32xf32>
    %548 = arith.mulf %547, %547 : vector<4x32xf32>
    %cst_159 = arith.constant dense<0.000000e+00> : vector<4xf32>
    %549 = vector.multi_reduction <add>, %548, %cst_159 [1] : vector<4x32xf32> to vector<4xf32>
    %550 = vector.shape_cast %549 : vector<4xf32> to vector<4x1xf32>
    %cst_160 = arith.constant 3.200000e+01 : f32
    %551 = vector.broadcast %cst_160 : f32 to vector<4x1xf32>
    %552 = arith.divf %550, %551 : vector<4x1xf32>
    %cst_161 = arith.constant 9.99999974E-6 : f32
    %553 = vector.broadcast %cst_161 : f32 to vector<4x1xf32>
    %554 = arith.addf %552, %553 : vector<4x1xf32>
    %555 = math.rsqrt %554 : vector<4x1xf32>
    %556 = vector.broadcast %555 : vector<4x1xf32> to vector<4x32xf32>
    %557 = arith.mulf %547, %556 : vector<4x32xf32>
    %558 = vector.broadcast %540 : vector<1x32xf32> to vector<4x32xf32>
    %559 = arith.mulf %557, %558 : vector<4x32xf32>
    %560 = vector.broadcast %541 : vector<1x32xf32> to vector<4x32xf32>
    %561 = arith.addf %559, %560 : vector<4x32xf32>
    %562 = arith.negf %561 : vector<4x32xf32>
    %563 = math.exp %562 : vector<4x32xf32>
    %cst_162 = arith.constant 1.000000e+00 : f32
    %564 = vector.broadcast %cst_162 : f32 to vector<4x32xf32>
    %565 = arith.addf %564, %563 : vector<4x32xf32>
    %566 = arith.divf %564, %565 : vector<4x32xf32>
    %c0_163 = arith.constant 0 : index
    %c0_164 = arith.constant 0 : index
    %567 = vector.load %arg12[%c0_163, %c0_164] : memref<4x32xf32, #tpu.memory_space<vmem>>, vector<4x32xf32>
    %568 = arith.mulf %514, %567 : vector<4x32xf32>
    %569 = arith.mulf %486, %538 : vector<4x32xf32>
    %570 = arith.addf %568, %569 : vector<4x32xf32>
    %571 = vector.extract_strided_slice %3 {offsets = [4, 0], sizes = [1, 32], strides = [1, 1]} : vector<5x32xf32> to vector<1x32xf32>
    %572 = vector.extract_strided_slice %4 {offsets = [4, 0], sizes = [1, 32], strides = [1, 1]} : vector<5x32xf32> to vector<1x32xf32>
    %cst_165 = arith.constant dense<0.000000e+00> : vector<4xf32>
    %573 = vector.multi_reduction <add>, %570, %cst_165 [1] : vector<4x32xf32> to vector<4xf32>
    %574 = vector.shape_cast %573 : vector<4xf32> to vector<4x1xf32>
    %cst_166 = arith.constant 3.200000e+01 : f32
    %575 = vector.broadcast %cst_166 : f32 to vector<4x1xf32>
    %576 = arith.divf %574, %575 : vector<4x1xf32>
    %577 = vector.broadcast %576 : vector<4x1xf32> to vector<4x32xf32>
    %578 = arith.subf %570, %577 : vector<4x32xf32>
    %579 = arith.mulf %578, %578 : vector<4x32xf32>
    %cst_167 = arith.constant dense<0.000000e+00> : vector<4xf32>
    %580 = vector.multi_reduction <add>, %579, %cst_167 [1] : vector<4x32xf32> to vector<4xf32>
    %581 = vector.shape_cast %580 : vector<4xf32> to vector<4x1xf32>
    %cst_168 = arith.constant 3.200000e+01 : f32
    %582 = vector.broadcast %cst_168 : f32 to vector<4x1xf32>
    %583 = arith.divf %581, %582 : vector<4x1xf32>
    %cst_169 = arith.constant 9.99999974E-6 : f32
    %584 = vector.broadcast %cst_169 : f32 to vector<4x1xf32>
    %585 = arith.addf %583, %584 : vector<4x1xf32>
    %586 = math.rsqrt %585 : vector<4x1xf32>
    %587 = vector.broadcast %586 : vector<4x1xf32> to vector<4x32xf32>
    %588 = arith.mulf %578, %587 : vector<4x32xf32>
    %589 = vector.broadcast %571 : vector<1x32xf32> to vector<4x32xf32>
    %590 = arith.mulf %588, %589 : vector<4x32xf32>
    %591 = vector.broadcast %572 : vector<1x32xf32> to vector<4x32xf32>
    %592 = arith.addf %590, %591 : vector<4x32xf32>
    %593 = math.tanh %592 : vector<4x32xf32>
    %594 = arith.mulf %566, %593 : vector<4x32xf32>
    %c0_170 = arith.constant 0 : index
    %c0_171 = arith.constant 0 : index
    %595 = vector.load %arg11[%c0_170, %c0_171] : memref<4x32xf32, #tpu.memory_space<vmem>>, vector<4x32xf32>
    tpu.vector_store %arg11[%c0_170, %c0_171], %594 {strides = array<i32>} : memref<4x32xf32, #tpu.memory_space<vmem>>, vector<4x32xf32>,
    %c0_172 = arith.constant 0 : index
    %c0_173 = arith.constant 0 : index
    %596 = vector.load %arg12[%c0_172, %c0_173] : memref<4x32xf32, #tpu.memory_space<vmem>>, vector<4x32xf32>
    tpu.vector_store %arg12[%c0_172, %c0_173], %592 {strides = array<i32>} : memref<4x32xf32, #tpu.memory_space<vmem>>, vector<4x32xf32>,
    %597 = arith.index_cast %c3_i32 : i32 to index
    %c0_174 = arith.constant 0 : index
    %c0_175 = arith.constant 0 : index
    %598 = vector.load %arg8[%597, %c0_174, %c0_175] : memref<8x4x32xf32, #tpu.memory_space<vmem>>, vector<1x4x32xf32>
    %599 = vector.shape_cast %598 : vector<1x4x32xf32> to vector<4x32xf32>
    %600 = vector.shape_cast %594 : vector<4x32xf32> to vector<1x4x32xf32>
    tpu.vector_store %arg8[%597, %c0_174, %c0_175], %600 {strides = array<i32>} : memref<8x4x32xf32, #tpu.memory_space<vmem>>, vector<1x4x32xf32>,
    %c4_i32 = arith.constant 4 : i32
    %c0_176 = arith.constant 0 : index
    %c0_177 = arith.constant 0 : index
    %601 = vector.load %arg11[%c0_176, %c0_177] : memref<4x32xf32, #tpu.memory_space<vmem>>, vector<4x32xf32>
    %602 = arith.index_cast %c4_i32 : i32 to index
    %c0_178 = arith.constant 0 : index
    %c0_179 = arith.constant 0 : index
    %603 = vector.load %arg2[%602, %c0_178, %c0_179] : memref<8x4x128xf32, #tpu.memory_space<vmem>>, vector<1x4x128xf32>
    %604 = vector.shape_cast %603 : vector<1x4x128xf32> to vector<4x128xf32>
    %c0_180 = arith.constant 0 : index
    %c0_181 = arith.constant 0 : index
    %605 = vector.load %arg5[%c0_180, %c0_181] : memref<32x128xf32, #tpu.memory_space<vmem>>, vector<32x128xf32>
    %cst_182 = arith.constant dense<0.000000e+00> : vector<4x128xf32>
    %606 = tpu.matmul %601, %605, %cst_182 {dimension_numbers = #tpu.dot_dimension_numbers<[1], [0], [0], [1], [0, 0, 1, 1], [], []>} : vector<4x32xf32>, vector<32x128xf32>, vector<4x128xf32> -> vector<4x128xf32>
    %607 = arith.addf %604, %606 : vector<4x128xf32>
    %608 = vector.extract_strided_slice %607 {offsets = [0, 0], sizes = [4, 32], strides = [1, 1]} : vector<4x128xf32> to vector<4x32xf32>
    %609 = vector.extract_strided_slice %3 {offsets = [0, 0], sizes = [1, 32], strides = [1, 1]} : vector<5x32xf32> to vector<1x32xf32>
    %610 = vector.extract_strided_slice %4 {offsets = [0, 0], sizes = [1, 32], strides = [1, 1]} : vector<5x32xf32> to vector<1x32xf32>
    %cst_183 = arith.constant dense<0.000000e+00> : vector<4xf32>
    %611 = vector.multi_reduction <add>, %608, %cst_183 [1] : vector<4x32xf32> to vector<4xf32>
    %612 = vector.shape_cast %611 : vector<4xf32> to vector<4x1xf32>
    %cst_184 = arith.constant 3.200000e+01 : f32
    %613 = vector.broadcast %cst_184 : f32 to vector<4x1xf32>
    %614 = arith.divf %612, %613 : vector<4x1xf32>
    %615 = vector.broadcast %614 : vector<4x1xf32> to vector<4x32xf32>
    %616 = arith.subf %608, %615 : vector<4x32xf32>
    %617 = arith.mulf %616, %616 : vector<4x32xf32>
    %cst_185 = arith.constant dense<0.000000e+00> : vector<4xf32>
    %618 = vector.multi_reduction <add>, %617, %cst_185 [1] : vector<4x32xf32> to vector<4xf32>
    %619 = vector.shape_cast %618 : vector<4xf32> to vector<4x1xf32>
    %cst_186 = arith.constant 3.200000e+01 : f32
    %620 = vector.broadcast %cst_186 : f32 to vector<4x1xf32>
    %621 = arith.divf %619, %620 : vector<4x1xf32>
    %cst_187 = arith.constant 9.99999974E-6 : f32
    %622 = vector.broadcast %cst_187 : f32 to vector<4x1xf32>
    %623 = arith.addf %621, %622 : vector<4x1xf32>
    %624 = math.rsqrt %623 : vector<4x1xf32>
    %625 = vector.broadcast %624 : vector<4x1xf32> to vector<4x32xf32>
    %626 = arith.mulf %616, %625 : vector<4x32xf32>
    %627 = vector.broadcast %609 : vector<1x32xf32> to vector<4x32xf32>
    %628 = arith.mulf %626, %627 : vector<4x32xf32>
    %629 = vector.broadcast %610 : vector<1x32xf32> to vector<4x32xf32>
    %630 = arith.addf %628, %629 : vector<4x32xf32>
    %631 = arith.negf %630 : vector<4x32xf32>
    %632 = math.exp %631 : vector<4x32xf32>
    %cst_188 = arith.constant 1.000000e+00 : f32
    %633 = vector.broadcast %cst_188 : f32 to vector<4x32xf32>
    %634 = arith.addf %633, %632 : vector<4x32xf32>
    %635 = arith.divf %633, %634 : vector<4x32xf32>
    %636 = vector.extract_strided_slice %607 {offsets = [0, 32], sizes = [4, 32], strides = [1, 1]} : vector<4x128xf32> to vector<4x32xf32>
    %637 = vector.extract_strided_slice %3 {offsets = [1, 0], sizes = [1, 32], strides = [1, 1]} : vector<5x32xf32> to vector<1x32xf32>
    %638 = vector.extract_strided_slice %4 {offsets = [1, 0], sizes = [1, 32], strides = [1, 1]} : vector<5x32xf32> to vector<1x32xf32>
    %cst_189 = arith.constant dense<0.000000e+00> : vector<4xf32>
    %639 = vector.multi_reduction <add>, %636, %cst_189 [1] : vector<4x32xf32> to vector<4xf32>
    %640 = vector.shape_cast %639 : vector<4xf32> to vector<4x1xf32>
    %cst_190 = arith.constant 3.200000e+01 : f32
    %641 = vector.broadcast %cst_190 : f32 to vector<4x1xf32>
    %642 = arith.divf %640, %641 : vector<4x1xf32>
    %643 = vector.broadcast %642 : vector<4x1xf32> to vector<4x32xf32>
    %644 = arith.subf %636, %643 : vector<4x32xf32>
    %645 = arith.mulf %644, %644 : vector<4x32xf32>
    %cst_191 = arith.constant dense<0.000000e+00> : vector<4xf32>
    %646 = vector.multi_reduction <add>, %645, %cst_191 [1] : vector<4x32xf32> to vector<4xf32>
    %647 = vector.shape_cast %646 : vector<4xf32> to vector<4x1xf32>
    %cst_192 = arith.constant 3.200000e+01 : f32
    %648 = vector.broadcast %cst_192 : f32 to vector<4x1xf32>
    %649 = arith.divf %647, %648 : vector<4x1xf32>
    %cst_193 = arith.constant 9.99999974E-6 : f32
    %650 = vector.broadcast %cst_193 : f32 to vector<4x1xf32>
    %651 = arith.addf %649, %650 : vector<4x1xf32>
    %652 = math.rsqrt %651 : vector<4x1xf32>
    %653 = vector.broadcast %652 : vector<4x1xf32> to vector<4x32xf32>
    %654 = arith.mulf %644, %653 : vector<4x32xf32>
    %655 = vector.broadcast %637 : vector<1x32xf32> to vector<4x32xf32>
    %656 = arith.mulf %654, %655 : vector<4x32xf32>
    %657 = vector.broadcast %638 : vector<1x32xf32> to vector<4x32xf32>
    %658 = arith.addf %656, %657 : vector<4x32xf32>
    %659 = arith.negf %658 : vector<4x32xf32>
    %660 = math.exp %659 : vector<4x32xf32>
    %cst_194 = arith.constant 1.000000e+00 : f32
    %661 = vector.broadcast %cst_194 : f32 to vector<4x32xf32>
    %662 = arith.addf %661, %660 : vector<4x32xf32>
    %663 = arith.divf %661, %662 : vector<4x32xf32>
    %664 = vector.extract_strided_slice %607 {offsets = [0, 64], sizes = [4, 32], strides = [1, 1]} : vector<4x128xf32> to vector<4x32xf32>
    %665 = vector.extract_strided_slice %3 {offsets = [2, 0], sizes = [1, 32], strides = [1, 1]} : vector<5x32xf32> to vector<1x32xf32>
    %666 = vector.extract_strided_slice %4 {offsets = [2, 0], sizes = [1, 32], strides = [1, 1]} : vector<5x32xf32> to vector<1x32xf32>
    %cst_195 = arith.constant dense<0.000000e+00> : vector<4xf32>
    %667 = vector.multi_reduction <add>, %664, %cst_195 [1] : vector<4x32xf32> to vector<4xf32>
    %668 = vector.shape_cast %667 : vector<4xf32> to vector<4x1xf32>
    %cst_196 = arith.constant 3.200000e+01 : f32
    %669 = vector.broadcast %cst_196 : f32 to vector<4x1xf32>
    %670 = arith.divf %668, %669 : vector<4x1xf32>
    %671 = vector.broadcast %670 : vector<4x1xf32> to vector<4x32xf32>
    %672 = arith.subf %664, %671 : vector<4x32xf32>
    %673 = arith.mulf %672, %672 : vector<4x32xf32>
    %cst_197 = arith.constant dense<0.000000e+00> : vector<4xf32>
    %674 = vector.multi_reduction <add>, %673, %cst_197 [1] : vector<4x32xf32> to vector<4xf32>
    %675 = vector.shape_cast %674 : vector<4xf32> to vector<4x1xf32>
    %cst_198 = arith.constant 3.200000e+01 : f32
    %676 = vector.broadcast %cst_198 : f32 to vector<4x1xf32>
    %677 = arith.divf %675, %676 : vector<4x1xf32>
    %cst_199 = arith.constant 9.99999974E-6 : f32
    %678 = vector.broadcast %cst_199 : f32 to vector<4x1xf32>
    %679 = arith.addf %677, %678 : vector<4x1xf32>
    %680 = math.rsqrt %679 : vector<4x1xf32>
    %681 = vector.broadcast %680 : vector<4x1xf32> to vector<4x32xf32>
    %682 = arith.mulf %672, %681 : vector<4x32xf32>
    %683 = vector.broadcast %665 : vector<1x32xf32> to vector<4x32xf32>
    %684 = arith.mulf %682, %683 : vector<4x32xf32>
    %685 = vector.broadcast %666 : vector<1x32xf32> to vector<4x32xf32>
    %686 = arith.addf %684, %685 : vector<4x32xf32>
    %687 = math.tanh %686 : vector<4x32xf32>
    %688 = vector.extract_strided_slice %607 {offsets = [0, 96], sizes = [4, 32], strides = [1, 1]} : vector<4x128xf32> to vector<4x32xf32>
    %689 = vector.extract_strided_slice %3 {offsets = [3, 0], sizes = [1, 32], strides = [1, 1]} : vector<5x32xf32> to vector<1x32xf32>
    %690 = vector.extract_strided_slice %4 {offsets = [3, 0], sizes = [1, 32], strides = [1, 1]} : vector<5x32xf32> to vector<1x32xf32>
    %cst_200 = arith.constant dense<0.000000e+00> : vector<4xf32>
    %691 = vector.multi_reduction <add>, %688, %cst_200 [1] : vector<4x32xf32> to vector<4xf32>
    %692 = vector.shape_cast %691 : vector<4xf32> to vector<4x1xf32>
    %cst_201 = arith.constant 3.200000e+01 : f32
    %693 = vector.broadcast %cst_201 : f32 to vector<4x1xf32>
    %694 = arith.divf %692, %693 : vector<4x1xf32>
    %695 = vector.broadcast %694 : vector<4x1xf32> to vector<4x32xf32>
    %696 = arith.subf %688, %695 : vector<4x32xf32>
    %697 = arith.mulf %696, %696 : vector<4x32xf32>
    %cst_202 = arith.constant dense<0.000000e+00> : vector<4xf32>
    %698 = vector.multi_reduction <add>, %697, %cst_202 [1] : vector<4x32xf32> to vector<4xf32>
    %699 = vector.shape_cast %698 : vector<4xf32> to vector<4x1xf32>
    %cst_203 = arith.constant 3.200000e+01 : f32
    %700 = vector.broadcast %cst_203 : f32 to vector<4x1xf32>
    %701 = arith.divf %699, %700 : vector<4x1xf32>
    %cst_204 = arith.constant 9.99999974E-6 : f32
    %702 = vector.broadcast %cst_204 : f32 to vector<4x1xf32>
    %703 = arith.addf %701, %702 : vector<4x1xf32>
    %704 = math.rsqrt %703 : vector<4x1xf32>
    %705 = vector.broadcast %704 : vector<4x1xf32> to vector<4x32xf32>
    %706 = arith.mulf %696, %705 : vector<4x32xf32>
    %707 = vector.broadcast %689 : vector<1x32xf32> to vector<4x32xf32>
    %708 = arith.mulf %706, %707 : vector<4x32xf32>
    %709 = vector.broadcast %690 : vector<1x32xf32> to vector<4x32xf32>
    %710 = arith.addf %708, %709 : vector<4x32xf32>
    %711 = arith.negf %710 : vector<4x32xf32>
    %712 = math.exp %711 : vector<4x32xf32>
    %cst_205 = arith.constant 1.000000e+00 : f32
    %713 = vector.broadcast %cst_205 : f32 to vector<4x32xf32>
    %714 = arith.addf %713, %712 : vector<4x32xf32>
    %715 = arith.divf %713, %714 : vector<4x32xf32>
    %c0_206 = arith.constant 0 : index
    %c0_207 = arith.constant 0 : index
    %716 = vector.load %arg12[%c0_206, %c0_207] : memref<4x32xf32, #tpu.memory_space<vmem>>, vector<4x32xf32>
    %717 = arith.mulf %663, %716 : vector<4x32xf32>
    %718 = arith.mulf %635, %687 : vector<4x32xf32>
    %719 = arith.addf %717, %718 : vector<4x32xf32>
    %720 = vector.extract_strided_slice %3 {offsets = [4, 0], sizes = [1, 32], strides = [1, 1]} : vector<5x32xf32> to vector<1x32xf32>
    %721 = vector.extract_strided_slice %4 {offsets = [4, 0], sizes = [1, 32], strides = [1, 1]} : vector<5x32xf32> to vector<1x32xf32>
    %cst_208 = arith.constant dense<0.000000e+00> : vector<4xf32>
    %722 = vector.multi_reduction <add>, %719, %cst_208 [1] : vector<4x32xf32> to vector<4xf32>
    %723 = vector.shape_cast %722 : vector<4xf32> to vector<4x1xf32>
    %cst_209 = arith.constant 3.200000e+01 : f32
    %724 = vector.broadcast %cst_209 : f32 to vector<4x1xf32>
    %725 = arith.divf %723, %724 : vector<4x1xf32>
    %726 = vector.broadcast %725 : vector<4x1xf32> to vector<4x32xf32>
    %727 = arith.subf %719, %726 : vector<4x32xf32>
    %728 = arith.mulf %727, %727 : vector<4x32xf32>
    %cst_210 = arith.constant dense<0.000000e+00> : vector<4xf32>
    %729 = vector.multi_reduction <add>, %728, %cst_210 [1] : vector<4x32xf32> to vector<4xf32>
    %730 = vector.shape_cast %729 : vector<4xf32> to vector<4x1xf32>
    %cst_211 = arith.constant 3.200000e+01 : f32
    %731 = vector.broadcast %cst_211 : f32 to vector<4x1xf32>
    %732 = arith.divf %730, %731 : vector<4x1xf32>
    %cst_212 = arith.constant 9.99999974E-6 : f32
    %733 = vector.broadcast %cst_212 : f32 to vector<4x1xf32>
    %734 = arith.addf %732, %733 : vector<4x1xf32>
    %735 = math.rsqrt %734 : vector<4x1xf32>
    %736 = vector.broadcast %735 : vector<4x1xf32> to vector<4x32xf32>
    %737 = arith.mulf %727, %736 : vector<4x32xf32>
    %738 = vector.broadcast %720 : vector<1x32xf32> to vector<4x32xf32>
    %739 = arith.mulf %737, %738 : vector<4x32xf32>
    %740 = vector.broadcast %721 : vector<1x32xf32> to vector<4x32xf32>
    %741 = arith.addf %739, %740 : vector<4x32xf32>
    %742 = math.tanh %741 : vector<4x32xf32>
    %743 = arith.mulf %715, %742 : vector<4x32xf32>
    %c0_213 = arith.constant 0 : index
    %c0_214 = arith.constant 0 : index
    %744 = vector.load %arg11[%c0_213, %c0_214] : memref<4x32xf32, #tpu.memory_space<vmem>>, vector<4x32xf32>
    tpu.vector_store %arg11[%c0_213, %c0_214], %743 {strides = array<i32>} : memref<4x32xf32, #tpu.memory_space<vmem>>, vector<4x32xf32>,
    %c0_215 = arith.constant 0 : index
    %c0_216 = arith.constant 0 : index
    %745 = vector.load %arg12[%c0_215, %c0_216] : memref<4x32xf32, #tpu.memory_space<vmem>>, vector<4x32xf32>
    tpu.vector_store %arg12[%c0_215, %c0_216], %741 {strides = array<i32>} : memref<4x32xf32, #tpu.memory_space<vmem>>, vector<4x32xf32>,
    %746 = arith.index_cast %c4_i32 : i32 to index
    %c0_217 = arith.constant 0 : index
    %c0_218 = arith.constant 0 : index
    %747 = vector.load %arg8[%746, %c0_217, %c0_218] : memref<8x4x32xf32, #tpu.memory_space<vmem>>, vector<1x4x32xf32>
    %748 = vector.shape_cast %747 : vector<1x4x32xf32> to vector<4x32xf32>
    %749 = vector.shape_cast %743 : vector<4x32xf32> to vector<1x4x32xf32>
    tpu.vector_store %arg8[%746, %c0_217, %c0_218], %749 {strides = array<i32>} : memref<8x4x32xf32, #tpu.memory_space<vmem>>, vector<1x4x32xf32>,
    %c5_i32 = arith.constant 5 : i32
    %c0_219 = arith.constant 0 : index
    %c0_220 = arith.constant 0 : index
    %750 = vector.load %arg11[%c0_219, %c0_220] : memref<4x32xf32, #tpu.memory_space<vmem>>, vector<4x32xf32>
    %751 = arith.index_cast %c5_i32 : i32 to index
    %c0_221 = arith.constant 0 : index
    %c0_222 = arith.constant 0 : index
    %752 = vector.load %arg2[%751, %c0_221, %c0_222] : memref<8x4x128xf32, #tpu.memory_space<vmem>>, vector<1x4x128xf32>
    %753 = vector.shape_cast %752 : vector<1x4x128xf32> to vector<4x128xf32>
    %c0_223 = arith.constant 0 : index
    %c0_224 = arith.constant 0 : index
    %754 = vector.load %arg5[%c0_223, %c0_224] : memref<32x128xf32, #tpu.memory_space<vmem>>, vector<32x128xf32>
    %cst_225 = arith.constant dense<0.000000e+00> : vector<4x128xf32>
    %755 = tpu.matmul %750, %754, %cst_225 {dimension_numbers = #tpu.dot_dimension_numbers<[1], [0], [0], [1], [0, 0, 1, 1], [], []>} : vector<4x32xf32>, vector<32x128xf32>, vector<4x128xf32> -> vector<4x128xf32>
    %756 = arith.addf %753, %755 : vector<4x128xf32>
    %757 = vector.extract_strided_slice %756 {offsets = [0, 0], sizes = [4, 32], strides = [1, 1]} : vector<4x128xf32> to vector<4x32xf32>
    %758 = vector.extract_strided_slice %3 {offsets = [0, 0], sizes = [1, 32], strides = [1, 1]} : vector<5x32xf32> to vector<1x32xf32>
    %759 = vector.extract_strided_slice %4 {offsets = [0, 0], sizes = [1, 32], strides = [1, 1]} : vector<5x32xf32> to vector<1x32xf32>
    %cst_226 = arith.constant dense<0.000000e+00> : vector<4xf32>
    %760 = vector.multi_reduction <add>, %757, %cst_226 [1] : vector<4x32xf32> to vector<4xf32>
    %761 = vector.shape_cast %760 : vector<4xf32> to vector<4x1xf32>
    %cst_227 = arith.constant 3.200000e+01 : f32
    %762 = vector.broadcast %cst_227 : f32 to vector<4x1xf32>
    %763 = arith.divf %761, %762 : vector<4x1xf32>
    %764 = vector.broadcast %763 : vector<4x1xf32> to vector<4x32xf32>
    %765 = arith.subf %757, %764 : vector<4x32xf32>
    %766 = arith.mulf %765, %765 : vector<4x32xf32>
    %cst_228 = arith.constant dense<0.000000e+00> : vector<4xf32>
    %767 = vector.multi_reduction <add>, %766, %cst_228 [1] : vector<4x32xf32> to vector<4xf32>
    %768 = vector.shape_cast %767 : vector<4xf32> to vector<4x1xf32>
    %cst_229 = arith.constant 3.200000e+01 : f32
    %769 = vector.broadcast %cst_229 : f32 to vector<4x1xf32>
    %770 = arith.divf %768, %769 : vector<4x1xf32>
    %cst_230 = arith.constant 9.99999974E-6 : f32
    %771 = vector.broadcast %cst_230 : f32 to vector<4x1xf32>
    %772 = arith.addf %770, %771 : vector<4x1xf32>
    %773 = math.rsqrt %772 : vector<4x1xf32>
    %774 = vector.broadcast %773 : vector<4x1xf32> to vector<4x32xf32>
    %775 = arith.mulf %765, %774 : vector<4x32xf32>
    %776 = vector.broadcast %758 : vector<1x32xf32> to vector<4x32xf32>
    %777 = arith.mulf %775, %776 : vector<4x32xf32>
    %778 = vector.broadcast %759 : vector<1x32xf32> to vector<4x32xf32>
    %779 = arith.addf %777, %778 : vector<4x32xf32>
    %780 = arith.negf %779 : vector<4x32xf32>
    %781 = math.exp %780 : vector<4x32xf32>
    %cst_231 = arith.constant 1.000000e+00 : f32
    %782 = vector.broadcast %cst_231 : f32 to vector<4x32xf32>
    %783 = arith.addf %782, %781 : vector<4x32xf32>
    %784 = arith.divf %782, %783 : vector<4x32xf32>
    %785 = vector.extract_strided_slice %756 {offsets = [0, 32], sizes = [4, 32], strides = [1, 1]} : vector<4x128xf32> to vector<4x32xf32>
    %786 = vector.extract_strided_slice %3 {offsets = [1, 0], sizes = [1, 32], strides = [1, 1]} : vector<5x32xf32> to vector<1x32xf32>
    %787 = vector.extract_strided_slice %4 {offsets = [1, 0], sizes = [1, 32], strides = [1, 1]} : vector<5x32xf32> to vector<1x32xf32>
    %cst_232 = arith.constant dense<0.000000e+00> : vector<4xf32>
    %788 = vector.multi_reduction <add>, %785, %cst_232 [1] : vector<4x32xf32> to vector<4xf32>
    %789 = vector.shape_cast %788 : vector<4xf32> to vector<4x1xf32>
    %cst_233 = arith.constant 3.200000e+01 : f32
    %790 = vector.broadcast %cst_233 : f32 to vector<4x1xf32>
    %791 = arith.divf %789, %790 : vector<4x1xf32>
    %792 = vector.broadcast %791 : vector<4x1xf32> to vector<4x32xf32>
    %793 = arith.subf %785, %792 : vector<4x32xf32>
    %794 = arith.mulf %793, %793 : vector<4x32xf32>
    %cst_234 = arith.constant dense<0.000000e+00> : vector<4xf32>
    %795 = vector.multi_reduction <add>, %794, %cst_234 [1] : vector<4x32xf32> to vector<4xf32>
    %796 = vector.shape_cast %795 : vector<4xf32> to vector<4x1xf32>
    %cst_235 = arith.constant 3.200000e+01 : f32
    %797 = vector.broadcast %cst_235 : f32 to vector<4x1xf32>
    %798 = arith.divf %796, %797 : vector<4x1xf32>
    %cst_236 = arith.constant 9.99999974E-6 : f32
    %799 = vector.broadcast %cst_236 : f32 to vector<4x1xf32>
    %800 = arith.addf %798, %799 : vector<4x1xf32>
    %801 = math.rsqrt %800 : vector<4x1xf32>
    %802 = vector.broadcast %801 : vector<4x1xf32> to vector<4x32xf32>
    %803 = arith.mulf %793, %802 : vector<4x32xf32>
    %804 = vector.broadcast %786 : vector<1x32xf32> to vector<4x32xf32>
    %805 = arith.mulf %803, %804 : vector<4x32xf32>
    %806 = vector.broadcast %787 : vector<1x32xf32> to vector<4x32xf32>
    %807 = arith.addf %805, %806 : vector<4x32xf32>
    %808 = arith.negf %807 : vector<4x32xf32>
    %809 = math.exp %808 : vector<4x32xf32>
    %cst_237 = arith.constant 1.000000e+00 : f32
    %810 = vector.broadcast %cst_237 : f32 to vector<4x32xf32>
    %811 = arith.addf %810, %809 : vector<4x32xf32>
    %812 = arith.divf %810, %811 : vector<4x32xf32>
    %813 = vector.extract_strided_slice %756 {offsets = [0, 64], sizes = [4, 32], strides = [1, 1]} : vector<4x128xf32> to vector<4x32xf32>
    %814 = vector.extract_strided_slice %3 {offsets = [2, 0], sizes = [1, 32], strides = [1, 1]} : vector<5x32xf32> to vector<1x32xf32>
    %815 = vector.extract_strided_slice %4 {offsets = [2, 0], sizes = [1, 32], strides = [1, 1]} : vector<5x32xf32> to vector<1x32xf32>
    %cst_238 = arith.constant dense<0.000000e+00> : vector<4xf32>
    %816 = vector.multi_reduction <add>, %813, %cst_238 [1] : vector<4x32xf32> to vector<4xf32>
    %817 = vector.shape_cast %816 : vector<4xf32> to vector<4x1xf32>
    %cst_239 = arith.constant 3.200000e+01 : f32
    %818 = vector.broadcast %cst_239 : f32 to vector<4x1xf32>
    %819 = arith.divf %817, %818 : vector<4x1xf32>
    %820 = vector.broadcast %819 : vector<4x1xf32> to vector<4x32xf32>
    %821 = arith.subf %813, %820 : vector<4x32xf32>
    %822 = arith.mulf %821, %821 : vector<4x32xf32>
    %cst_240 = arith.constant dense<0.000000e+00> : vector<4xf32>
    %823 = vector.multi_reduction <add>, %822, %cst_240 [1] : vector<4x32xf32> to vector<4xf32>
    %824 = vector.shape_cast %823 : vector<4xf32> to vector<4x1xf32>
    %cst_241 = arith.constant 3.200000e+01 : f32
    %825 = vector.broadcast %cst_241 : f32 to vector<4x1xf32>
    %826 = arith.divf %824, %825 : vector<4x1xf32>
    %cst_242 = arith.constant 9.99999974E-6 : f32
    %827 = vector.broadcast %cst_242 : f32 to vector<4x1xf32>
    %828 = arith.addf %826, %827 : vector<4x1xf32>
    %829 = math.rsqrt %828 : vector<4x1xf32>
    %830 = vector.broadcast %829 : vector<4x1xf32> to vector<4x32xf32>
    %831 = arith.mulf %821, %830 : vector<4x32xf32>
    %832 = vector.broadcast %814 : vector<1x32xf32> to vector<4x32xf32>
    %833 = arith.mulf %831, %832 : vector<4x32xf32>
    %834 = vector.broadcast %815 : vector<1x32xf32> to vector<4x32xf32>
    %835 = arith.addf %833, %834 : vector<4x32xf32>
    %836 = math.tanh %835 : vector<4x32xf32>
    %837 = vector.extract_strided_slice %756 {offsets = [0, 96], sizes = [4, 32], strides = [1, 1]} : vector<4x128xf32> to vector<4x32xf32>
    %838 = vector.extract_strided_slice %3 {offsets = [3, 0], sizes = [1, 32], strides = [1, 1]} : vector<5x32xf32> to vector<1x32xf32>
    %839 = vector.extract_strided_slice %4 {offsets = [3, 0], sizes = [1, 32], strides = [1, 1]} : vector<5x32xf32> to vector<1x32xf32>
    %cst_243 = arith.constant dense<0.000000e+00> : vector<4xf32>
    %840 = vector.multi_reduction <add>, %837, %cst_243 [1] : vector<4x32xf32> to vector<4xf32>
    %841 = vector.shape_cast %840 : vector<4xf32> to vector<4x1xf32>
    %cst_244 = arith.constant 3.200000e+01 : f32
    %842 = vector.broadcast %cst_244 : f32 to vector<4x1xf32>
    %843 = arith.divf %841, %842 : vector<4x1xf32>
    %844 = vector.broadcast %843 : vector<4x1xf32> to vector<4x32xf32>
    %845 = arith.subf %837, %844 : vector<4x32xf32>
    %846 = arith.mulf %845, %845 : vector<4x32xf32>
    %cst_245 = arith.constant dense<0.000000e+00> : vector<4xf32>
    %847 = vector.multi_reduction <add>, %846, %cst_245 [1] : vector<4x32xf32> to vector<4xf32>
    %848 = vector.shape_cast %847 : vector<4xf32> to vector<4x1xf32>
    %cst_246 = arith.constant 3.200000e+01 : f32
    %849 = vector.broadcast %cst_246 : f32 to vector<4x1xf32>
    %850 = arith.divf %848, %849 : vector<4x1xf32>
    %cst_247 = arith.constant 9.99999974E-6 : f32
    %851 = vector.broadcast %cst_247 : f32 to vector<4x1xf32>
    %852 = arith.addf %850, %851 : vector<4x1xf32>
    %853 = math.rsqrt %852 : vector<4x1xf32>
    %854 = vector.broadcast %853 : vector<4x1xf32> to vector<4x32xf32>
    %855 = arith.mulf %845, %854 : vector<4x32xf32>
    %856 = vector.broadcast %838 : vector<1x32xf32> to vector<4x32xf32>
    %857 = arith.mulf %855, %856 : vector<4x32xf32>
    %858 = vector.broadcast %839 : vector<1x32xf32> to vector<4x32xf32>
    %859 = arith.addf %857, %858 : vector<4x32xf32>
    %860 = arith.negf %859 : vector<4x32xf32>
    %861 = math.exp %860 : vector<4x32xf32>
    %cst_248 = arith.constant 1.000000e+00 : f32
    %862 = vector.broadcast %cst_248 : f32 to vector<4x32xf32>
    %863 = arith.addf %862, %861 : vector<4x32xf32>
    %864 = arith.divf %862, %863 : vector<4x32xf32>
    %c0_249 = arith.constant 0 : index
    %c0_250 = arith.constant 0 : index
    %865 = vector.load %arg12[%c0_249, %c0_250] : memref<4x32xf32, #tpu.memory_space<vmem>>, vector<4x32xf32>
    %866 = arith.mulf %812, %865 : vector<4x32xf32>
    %867 = arith.mulf %784, %836 : vector<4x32xf32>
    %868 = arith.addf %866, %867 : vector<4x32xf32>
    %869 = vector.extract_strided_slice %3 {offsets = [4, 0], sizes = [1, 32], strides = [1, 1]} : vector<5x32xf32> to vector<1x32xf32>
    %870 = vector.extract_strided_slice %4 {offsets = [4, 0], sizes = [1, 32], strides = [1, 1]} : vector<5x32xf32> to vector<1x32xf32>
    %cst_251 = arith.constant dense<0.000000e+00> : vector<4xf32>
    %871 = vector.multi_reduction <add>, %868, %cst_251 [1] : vector<4x32xf32> to vector<4xf32>
    %872 = vector.shape_cast %871 : vector<4xf32> to vector<4x1xf32>
    %cst_252 = arith.constant 3.200000e+01 : f32
    %873 = vector.broadcast %cst_252 : f32 to vector<4x1xf32>
    %874 = arith.divf %872, %873 : vector<4x1xf32>
    %875 = vector.broadcast %874 : vector<4x1xf32> to vector<4x32xf32>
    %876 = arith.subf %868, %875 : vector<4x32xf32>
    %877 = arith.mulf %876, %876 : vector<4x32xf32>
    %cst_253 = arith.constant dense<0.000000e+00> : vector<4xf32>
    %878 = vector.multi_reduction <add>, %877, %cst_253 [1] : vector<4x32xf32> to vector<4xf32>
    %879 = vector.shape_cast %878 : vector<4xf32> to vector<4x1xf32>
    %cst_254 = arith.constant 3.200000e+01 : f32
    %880 = vector.broadcast %cst_254 : f32 to vector<4x1xf32>
    %881 = arith.divf %879, %880 : vector<4x1xf32>
    %cst_255 = arith.constant 9.99999974E-6 : f32
    %882 = vector.broadcast %cst_255 : f32 to vector<4x1xf32>
    %883 = arith.addf %881, %882 : vector<4x1xf32>
    %884 = math.rsqrt %883 : vector<4x1xf32>
    %885 = vector.broadcast %884 : vector<4x1xf32> to vector<4x32xf32>
    %886 = arith.mulf %876, %885 : vector<4x32xf32>
    %887 = vector.broadcast %869 : vector<1x32xf32> to vector<4x32xf32>
    %888 = arith.mulf %886, %887 : vector<4x32xf32>
    %889 = vector.broadcast %870 : vector<1x32xf32> to vector<4x32xf32>
    %890 = arith.addf %888, %889 : vector<4x32xf32>
    %891 = math.tanh %890 : vector<4x32xf32>
    %892 = arith.mulf %864, %891 : vector<4x32xf32>
    %c0_256 = arith.constant 0 : index
    %c0_257 = arith.constant 0 : index
    %893 = vector.load %arg11[%c0_256, %c0_257] : memref<4x32xf32, #tpu.memory_space<vmem>>, vector<4x32xf32>
    tpu.vector_store %arg11[%c0_256, %c0_257], %892 {strides = array<i32>} : memref<4x32xf32, #tpu.memory_space<vmem>>, vector<4x32xf32>,
    %c0_258 = arith.constant 0 : index
    %c0_259 = arith.constant 0 : index
    %894 = vector.load %arg12[%c0_258, %c0_259] : memref<4x32xf32, #tpu.memory_space<vmem>>, vector<4x32xf32>
    tpu.vector_store %arg12[%c0_258, %c0_259], %890 {strides = array<i32>} : memref<4x32xf32, #tpu.memory_space<vmem>>, vector<4x32xf32>,
    %895 = arith.index_cast %c5_i32 : i32 to index
    %c0_260 = arith.constant 0 : index
    %c0_261 = arith.constant 0 : index
    %896 = vector.load %arg8[%895, %c0_260, %c0_261] : memref<8x4x32xf32, #tpu.memory_space<vmem>>, vector<1x4x32xf32>
    %897 = vector.shape_cast %896 : vector<1x4x32xf32> to vector<4x32xf32>
    %898 = vector.shape_cast %892 : vector<4x32xf32> to vector<1x4x32xf32>
    tpu.vector_store %arg8[%895, %c0_260, %c0_261], %898 {strides = array<i32>} : memref<8x4x32xf32, #tpu.memory_space<vmem>>, vector<1x4x32xf32>,
    %c6_i32 = arith.constant 6 : i32
    %c0_262 = arith.constant 0 : index
    %c0_263 = arith.constant 0 : index
    %899 = vector.load %arg11[%c0_262, %c0_263] : memref<4x32xf32, #tpu.memory_space<vmem>>, vector<4x32xf32>
    %900 = arith.index_cast %c6_i32 : i32 to index
    %c0_264 = arith.constant 0 : index
    %c0_265 = arith.constant 0 : index
    %901 = vector.load %arg2[%900, %c0_264, %c0_265] : memref<8x4x128xf32, #tpu.memory_space<vmem>>, vector<1x4x128xf32>
    %902 = vector.shape_cast %901 : vector<1x4x128xf32> to vector<4x128xf32>
    %c0_266 = arith.constant 0 : index
    %c0_267 = arith.constant 0 : index
    %903 = vector.load %arg5[%c0_266, %c0_267] : memref<32x128xf32, #tpu.memory_space<vmem>>, vector<32x128xf32>
    %cst_268 = arith.constant dense<0.000000e+00> : vector<4x128xf32>
    %904 = tpu.matmul %899, %903, %cst_268 {dimension_numbers = #tpu.dot_dimension_numbers<[1], [0], [0], [1], [0, 0, 1, 1], [], []>} : vector<4x32xf32>, vector<32x128xf32>, vector<4x128xf32> -> vector<4x128xf32>
    %905 = arith.addf %902, %904 : vector<4x128xf32>
    %906 = vector.extract_strided_slice %905 {offsets = [0, 0], sizes = [4, 32], strides = [1, 1]} : vector<4x128xf32> to vector<4x32xf32>
    %907 = vector.extract_strided_slice %3 {offsets = [0, 0], sizes = [1, 32], strides = [1, 1]} : vector<5x32xf32> to vector<1x32xf32>
    %908 = vector.extract_strided_slice %4 {offsets = [0, 0], sizes = [1, 32], strides = [1, 1]} : vector<5x32xf32> to vector<1x32xf32>
    %cst_269 = arith.constant dense<0.000000e+00> : vector<4xf32>
    %909 = vector.multi_reduction <add>, %906, %cst_269 [1] : vector<4x32xf32> to vector<4xf32>
    %910 = vector.shape_cast %909 : vector<4xf32> to vector<4x1xf32>
    %cst_270 = arith.constant 3.200000e+01 : f32
    %911 = vector.broadcast %cst_270 : f32 to vector<4x1xf32>
    %912 = arith.divf %910, %911 : vector<4x1xf32>
    %913 = vector.broadcast %912 : vector<4x1xf32> to vector<4x32xf32>
    %914 = arith.subf %906, %913 : vector<4x32xf32>
    %915 = arith.mulf %914, %914 : vector<4x32xf32>
    %cst_271 = arith.constant dense<0.000000e+00> : vector<4xf32>
    %916 = vector.multi_reduction <add>, %915, %cst_271 [1] : vector<4x32xf32> to vector<4xf32>
    %917 = vector.shape_cast %916 : vector<4xf32> to vector<4x1xf32>
    %cst_272 = arith.constant 3.200000e+01 : f32
    %918 = vector.broadcast %cst_272 : f32 to vector<4x1xf32>
    %919 = arith.divf %917, %918 : vector<4x1xf32>
    %cst_273 = arith.constant 9.99999974E-6 : f32
    %920 = vector.broadcast %cst_273 : f32 to vector<4x1xf32>
    %921 = arith.addf %919, %920 : vector<4x1xf32>
    %922 = math.rsqrt %921 : vector<4x1xf32>
    %923 = vector.broadcast %922 : vector<4x1xf32> to vector<4x32xf32>
    %924 = arith.mulf %914, %923 : vector<4x32xf32>
    %925 = vector.broadcast %907 : vector<1x32xf32> to vector<4x32xf32>
    %926 = arith.mulf %924, %925 : vector<4x32xf32>
    %927 = vector.broadcast %908 : vector<1x32xf32> to vector<4x32xf32>
    %928 = arith.addf %926, %927 : vector<4x32xf32>
    %929 = arith.negf %928 : vector<4x32xf32>
    %930 = math.exp %929 : vector<4x32xf32>
    %cst_274 = arith.constant 1.000000e+00 : f32
    %931 = vector.broadcast %cst_274 : f32 to vector<4x32xf32>
    %932 = arith.addf %931, %930 : vector<4x32xf32>
    %933 = arith.divf %931, %932 : vector<4x32xf32>
    %934 = vector.extract_strided_slice %905 {offsets = [0, 32], sizes = [4, 32], strides = [1, 1]} : vector<4x128xf32> to vector<4x32xf32>
    %935 = vector.extract_strided_slice %3 {offsets = [1, 0], sizes = [1, 32], strides = [1, 1]} : vector<5x32xf32> to vector<1x32xf32>
    %936 = vector.extract_strided_slice %4 {offsets = [1, 0], sizes = [1, 32], strides = [1, 1]} : vector<5x32xf32> to vector<1x32xf32>
    %cst_275 = arith.constant dense<0.000000e+00> : vector<4xf32>
    %937 = vector.multi_reduction <add>, %934, %cst_275 [1] : vector<4x32xf32> to vector<4xf32>
    %938 = vector.shape_cast %937 : vector<4xf32> to vector<4x1xf32>
    %cst_276 = arith.constant 3.200000e+01 : f32
    %939 = vector.broadcast %cst_276 : f32 to vector<4x1xf32>
    %940 = arith.divf %938, %939 : vector<4x1xf32>
    %941 = vector.broadcast %940 : vector<4x1xf32> to vector<4x32xf32>
    %942 = arith.subf %934, %941 : vector<4x32xf32>
    %943 = arith.mulf %942, %942 : vector<4x32xf32>
    %cst_277 = arith.constant dense<0.000000e+00> : vector<4xf32>
    %944 = vector.multi_reduction <add>, %943, %cst_277 [1] : vector<4x32xf32> to vector<4xf32>
    %945 = vector.shape_cast %944 : vector<4xf32> to vector<4x1xf32>
    %cst_278 = arith.constant 3.200000e+01 : f32
    %946 = vector.broadcast %cst_278 : f32 to vector<4x1xf32>
    %947 = arith.divf %945, %946 : vector<4x1xf32>
    %cst_279 = arith.constant 9.99999974E-6 : f32
    %948 = vector.broadcast %cst_279 : f32 to vector<4x1xf32>
    %949 = arith.addf %947, %948 : vector<4x1xf32>
    %950 = math.rsqrt %949 : vector<4x1xf32>
    %951 = vector.broadcast %950 : vector<4x1xf32> to vector<4x32xf32>
    %952 = arith.mulf %942, %951 : vector<4x32xf32>
    %953 = vector.broadcast %935 : vector<1x32xf32> to vector<4x32xf32>
    %954 = arith.mulf %952, %953 : vector<4x32xf32>
    %955 = vector.broadcast %936 : vector<1x32xf32> to vector<4x32xf32>
    %956 = arith.addf %954, %955 : vector<4x32xf32>
    %957 = arith.negf %956 : vector<4x32xf32>
    %958 = math.exp %957 : vector<4x32xf32>
    %cst_280 = arith.constant 1.000000e+00 : f32
    %959 = vector.broadcast %cst_280 : f32 to vector<4x32xf32>
    %960 = arith.addf %959, %958 : vector<4x32xf32>
    %961 = arith.divf %959, %960 : vector<4x32xf32>
    %962 = vector.extract_strided_slice %905 {offsets = [0, 64], sizes = [4, 32], strides = [1, 1]} : vector<4x128xf32> to vector<4x32xf32>
    %963 = vector.extract_strided_slice %3 {offsets = [2, 0], sizes = [1, 32], strides = [1, 1]} : vector<5x32xf32> to vector<1x32xf32>
    %964 = vector.extract_strided_slice %4 {offsets = [2, 0], sizes = [1, 32], strides = [1, 1]} : vector<5x32xf32> to vector<1x32xf32>
    %cst_281 = arith.constant dense<0.000000e+00> : vector<4xf32>
    %965 = vector.multi_reduction <add>, %962, %cst_281 [1] : vector<4x32xf32> to vector<4xf32>
    %966 = vector.shape_cast %965 : vector<4xf32> to vector<4x1xf32>
    %cst_282 = arith.constant 3.200000e+01 : f32
    %967 = vector.broadcast %cst_282 : f32 to vector<4x1xf32>
    %968 = arith.divf %966, %967 : vector<4x1xf32>
    %969 = vector.broadcast %968 : vector<4x1xf32> to vector<4x32xf32>
    %970 = arith.subf %962, %969 : vector<4x32xf32>
    %971 = arith.mulf %970, %970 : vector<4x32xf32>
    %cst_283 = arith.constant dense<0.000000e+00> : vector<4xf32>
    %972 = vector.multi_reduction <add>, %971, %cst_283 [1] : vector<4x32xf32> to vector<4xf32>
    %973 = vector.shape_cast %972 : vector<4xf32> to vector<4x1xf32>
    %cst_284 = arith.constant 3.200000e+01 : f32
    %974 = vector.broadcast %cst_284 : f32 to vector<4x1xf32>
    %975 = arith.divf %973, %974 : vector<4x1xf32>
    %cst_285 = arith.constant 9.99999974E-6 : f32
    %976 = vector.broadcast %cst_285 : f32 to vector<4x1xf32>
    %977 = arith.addf %975, %976 : vector<4x1xf32>
    %978 = math.rsqrt %977 : vector<4x1xf32>
    %979 = vector.broadcast %978 : vector<4x1xf32> to vector<4x32xf32>
    %980 = arith.mulf %970, %979 : vector<4x32xf32>
    %981 = vector.broadcast %963 : vector<1x32xf32> to vector<4x32xf32>
    %982 = arith.mulf %980, %981 : vector<4x32xf32>
    %983 = vector.broadcast %964 : vector<1x32xf32> to vector<4x32xf32>
    %984 = arith.addf %982, %983 : vector<4x32xf32>
    %985 = math.tanh %984 : vector<4x32xf32>
    %986 = vector.extract_strided_slice %905 {offsets = [0, 96], sizes = [4, 32], strides = [1, 1]} : vector<4x128xf32> to vector<4x32xf32>
    %987 = vector.extract_strided_slice %3 {offsets = [3, 0], sizes = [1, 32], strides = [1, 1]} : vector<5x32xf32> to vector<1x32xf32>
    %988 = vector.extract_strided_slice %4 {offsets = [3, 0], sizes = [1, 32], strides = [1, 1]} : vector<5x32xf32> to vector<1x32xf32>
    %cst_286 = arith.constant dense<0.000000e+00> : vector<4xf32>
    %989 = vector.multi_reduction <add>, %986, %cst_286 [1] : vector<4x32xf32> to vector<4xf32>
    %990 = vector.shape_cast %989 : vector<4xf32> to vector<4x1xf32>
    %cst_287 = arith.constant 3.200000e+01 : f32
    %991 = vector.broadcast %cst_287 : f32 to vector<4x1xf32>
    %992 = arith.divf %990, %991 : vector<4x1xf32>
    %993 = vector.broadcast %992 : vector<4x1xf32> to vector<4x32xf32>
    %994 = arith.subf %986, %993 : vector<4x32xf32>
    %995 = arith.mulf %994, %994 : vector<4x32xf32>
    %cst_288 = arith.constant dense<0.000000e+00> : vector<4xf32>
    %996 = vector.multi_reduction <add>, %995, %cst_288 [1] : vector<4x32xf32> to vector<4xf32>
    %997 = vector.shape_cast %996 : vector<4xf32> to vector<4x1xf32>
    %cst_289 = arith.constant 3.200000e+01 : f32
    %998 = vector.broadcast %cst_289 : f32 to vector<4x1xf32>
    %999 = arith.divf %997, %998 : vector<4x1xf32>
    %cst_290 = arith.constant 9.99999974E-6 : f32
    %1000 = vector.broadcast %cst_290 : f32 to vector<4x1xf32>
    %1001 = arith.addf %999, %1000 : vector<4x1xf32>
    %1002 = math.rsqrt %1001 : vector<4x1xf32>
    %1003 = vector.broadcast %1002 : vector<4x1xf32> to vector<4x32xf32>
    %1004 = arith.mulf %994, %1003 : vector<4x32xf32>
    %1005 = vector.broadcast %987 : vector<1x32xf32> to vector<4x32xf32>
    %1006 = arith.mulf %1004, %1005 : vector<4x32xf32>
    %1007 = vector.broadcast %988 : vector<1x32xf32> to vector<4x32xf32>
    %1008 = arith.addf %1006, %1007 : vector<4x32xf32>
    %1009 = arith.negf %1008 : vector<4x32xf32>
    %1010 = math.exp %1009 : vector<4x32xf32>
    %cst_291 = arith.constant 1.000000e+00 : f32
    %1011 = vector.broadcast %cst_291 : f32 to vector<4x32xf32>
    %1012 = arith.addf %1011, %1010 : vector<4x32xf32>
    %1013 = arith.divf %1011, %1012 : vector<4x32xf32>
    %c0_292 = arith.constant 0 : index
    %c0_293 = arith.constant 0 : index
    %1014 = vector.load %arg12[%c0_292, %c0_293] : memref<4x32xf32, #tpu.memory_space<vmem>>, vector<4x32xf32>
    %1015 = arith.mulf %961, %1014 : vector<4x32xf32>
    %1016 = arith.mulf %933, %985 : vector<4x32xf32>
    %1017 = arith.addf %1015, %1016 : vector<4x32xf32>
    %1018 = vector.extract_strided_slice %3 {offsets = [4, 0], sizes = [1, 32], strides = [1, 1]} : vector<5x32xf32> to vector<1x32xf32>
    %1019 = vector.extract_strided_slice %4 {offsets = [4, 0], sizes = [1, 32], strides = [1, 1]} : vector<5x32xf32> to vector<1x32xf32>
    %cst_294 = arith.constant dense<0.000000e+00> : vector<4xf32>
    %1020 = vector.multi_reduction <add>, %1017, %cst_294 [1] : vector<4x32xf32> to vector<4xf32>
    %1021 = vector.shape_cast %1020 : vector<4xf32> to vector<4x1xf32>
    %cst_295 = arith.constant 3.200000e+01 : f32
    %1022 = vector.broadcast %cst_295 : f32 to vector<4x1xf32>
    %1023 = arith.divf %1021, %1022 : vector<4x1xf32>
    %1024 = vector.broadcast %1023 : vector<4x1xf32> to vector<4x32xf32>
    %1025 = arith.subf %1017, %1024 : vector<4x32xf32>
    %1026 = arith.mulf %1025, %1025 : vector<4x32xf32>
    %cst_296 = arith.constant dense<0.000000e+00> : vector<4xf32>
    %1027 = vector.multi_reduction <add>, %1026, %cst_296 [1] : vector<4x32xf32> to vector<4xf32>
    %1028 = vector.shape_cast %1027 : vector<4xf32> to vector<4x1xf32>
    %cst_297 = arith.constant 3.200000e+01 : f32
    %1029 = vector.broadcast %cst_297 : f32 to vector<4x1xf32>
    %1030 = arith.divf %1028, %1029 : vector<4x1xf32>
    %cst_298 = arith.constant 9.99999974E-6 : f32
    %1031 = vector.broadcast %cst_298 : f32 to vector<4x1xf32>
    %1032 = arith.addf %1030, %1031 : vector<4x1xf32>
    %1033 = math.rsqrt %1032 : vector<4x1xf32>
    %1034 = vector.broadcast %1033 : vector<4x1xf32> to vector<4x32xf32>
    %1035 = arith.mulf %1025, %1034 : vector<4x32xf32>
    %1036 = vector.broadcast %1018 : vector<1x32xf32> to vector<4x32xf32>
    %1037 = arith.mulf %1035, %1036 : vector<4x32xf32>
    %1038 = vector.broadcast %1019 : vector<1x32xf32> to vector<4x32xf32>
    %1039 = arith.addf %1037, %1038 : vector<4x32xf32>
    %1040 = math.tanh %1039 : vector<4x32xf32>
    %1041 = arith.mulf %1013, %1040 : vector<4x32xf32>
    %c0_299 = arith.constant 0 : index
    %c0_300 = arith.constant 0 : index
    %1042 = vector.load %arg11[%c0_299, %c0_300] : memref<4x32xf32, #tpu.memory_space<vmem>>, vector<4x32xf32>
    tpu.vector_store %arg11[%c0_299, %c0_300], %1041 {strides = array<i32>} : memref<4x32xf32, #tpu.memory_space<vmem>>, vector<4x32xf32>,
    %c0_301 = arith.constant 0 : index
    %c0_302 = arith.constant 0 : index
    %1043 = vector.load %arg12[%c0_301, %c0_302] : memref<4x32xf32, #tpu.memory_space<vmem>>, vector<4x32xf32>
    tpu.vector_store %arg12[%c0_301, %c0_302], %1039 {strides = array<i32>} : memref<4x32xf32, #tpu.memory_space<vmem>>, vector<4x32xf32>,
    %1044 = arith.index_cast %c6_i32 : i32 to index
    %c0_303 = arith.constant 0 : index
    %c0_304 = arith.constant 0 : index
    %1045 = vector.load %arg8[%1044, %c0_303, %c0_304] : memref<8x4x32xf32, #tpu.memory_space<vmem>>, vector<1x4x32xf32>
    %1046 = vector.shape_cast %1045 : vector<1x4x32xf32> to vector<4x32xf32>
    %1047 = vector.shape_cast %1041 : vector<4x32xf32> to vector<1x4x32xf32>
    tpu.vector_store %arg8[%1044, %c0_303, %c0_304], %1047 {strides = array<i32>} : memref<8x4x32xf32, #tpu.memory_space<vmem>>, vector<1x4x32xf32>,
    %c7_i32 = arith.constant 7 : i32
    %c0_305 = arith.constant 0 : index
    %c0_306 = arith.constant 0 : index
    %1048 = vector.load %arg11[%c0_305, %c0_306] : memref<4x32xf32, #tpu.memory_space<vmem>>, vector<4x32xf32>
    %1049 = arith.index_cast %c7_i32 : i32 to index
    %c0_307 = arith.constant 0 : index
    %c0_308 = arith.constant 0 : index
    %1050 = vector.load %arg2[%1049, %c0_307, %c0_308] : memref<8x4x128xf32, #tpu.memory_space<vmem>>, vector<1x4x128xf32>
    %1051 = vector.shape_cast %1050 : vector<1x4x128xf32> to vector<4x128xf32>
    %c0_309 = arith.constant 0 : index
    %c0_310 = arith.constant 0 : index
    %1052 = vector.load %arg5[%c0_309, %c0_310] : memref<32x128xf32, #tpu.memory_space<vmem>>, vector<32x128xf32>
    %cst_311 = arith.constant dense<0.000000e+00> : vector<4x128xf32>
    %1053 = tpu.matmul %1048, %1052, %cst_311 {dimension_numbers = #tpu.dot_dimension_numbers<[1], [0], [0], [1], [0, 0, 1, 1], [], []>} : vector<4x32xf32>, vector<32x128xf32>, vector<4x128xf32> -> vector<4x128xf32>
    %1054 = arith.addf %1051, %1053 : vector<4x128xf32>
    %1055 = vector.extract_strided_slice %1054 {offsets = [0, 0], sizes = [4, 32], strides = [1, 1]} : vector<4x128xf32> to vector<4x32xf32>
    %1056 = vector.extract_strided_slice %3 {offsets = [0, 0], sizes = [1, 32], strides = [1, 1]} : vector<5x32xf32> to vector<1x32xf32>
    %1057 = vector.extract_strided_slice %4 {offsets = [0, 0], sizes = [1, 32], strides = [1, 1]} : vector<5x32xf32> to vector<1x32xf32>
    %cst_312 = arith.constant dense<0.000000e+00> : vector<4xf32>
    %1058 = vector.multi_reduction <add>, %1055, %cst_312 [1] : vector<4x32xf32> to vector<4xf32>
    %1059 = vector.shape_cast %1058 : vector<4xf32> to vector<4x1xf32>
    %cst_313 = arith.constant 3.200000e+01 : f32
    %1060 = vector.broadcast %cst_313 : f32 to vector<4x1xf32>
    %1061 = arith.divf %1059, %1060 : vector<4x1xf32>
    %1062 = vector.broadcast %1061 : vector<4x1xf32> to vector<4x32xf32>
    %1063 = arith.subf %1055, %1062 : vector<4x32xf32>
    %1064 = arith.mulf %1063, %1063 : vector<4x32xf32>
    %cst_314 = arith.constant dense<0.000000e+00> : vector<4xf32>
    %1065 = vector.multi_reduction <add>, %1064, %cst_314 [1] : vector<4x32xf32> to vector<4xf32>
    %1066 = vector.shape_cast %1065 : vector<4xf32> to vector<4x1xf32>
    %cst_315 = arith.constant 3.200000e+01 : f32
    %1067 = vector.broadcast %cst_315 : f32 to vector<4x1xf32>
    %1068 = arith.divf %1066, %1067 : vector<4x1xf32>
    %cst_316 = arith.constant 9.99999974E-6 : f32
    %1069 = vector.broadcast %cst_316 : f32 to vector<4x1xf32>
    %1070 = arith.addf %1068, %1069 : vector<4x1xf32>
    %1071 = math.rsqrt %1070 : vector<4x1xf32>
    %1072 = vector.broadcast %1071 : vector<4x1xf32> to vector<4x32xf32>
    %1073 = arith.mulf %1063, %1072 : vector<4x32xf32>
    %1074 = vector.broadcast %1056 : vector<1x32xf32> to vector<4x32xf32>
    %1075 = arith.mulf %1073, %1074 : vector<4x32xf32>
    %1076 = vector.broadcast %1057 : vector<1x32xf32> to vector<4x32xf32>
    %1077 = arith.addf %1075, %1076 : vector<4x32xf32>
    %1078 = arith.negf %1077 : vector<4x32xf32>
    %1079 = math.exp %1078 : vector<4x32xf32>
    %cst_317 = arith.constant 1.000000e+00 : f32
    %1080 = vector.broadcast %cst_317 : f32 to vector<4x32xf32>
    %1081 = arith.addf %1080, %1079 : vector<4x32xf32>
    %1082 = arith.divf %1080, %1081 : vector<4x32xf32>
    %1083 = vector.extract_strided_slice %1054 {offsets = [0, 32], sizes = [4, 32], strides = [1, 1]} : vector<4x128xf32> to vector<4x32xf32>
    %1084 = vector.extract_strided_slice %3 {offsets = [1, 0], sizes = [1, 32], strides = [1, 1]} : vector<5x32xf32> to vector<1x32xf32>
    %1085 = vector.extract_strided_slice %4 {offsets = [1, 0], sizes = [1, 32], strides = [1, 1]} : vector<5x32xf32> to vector<1x32xf32>
    %cst_318 = arith.constant dense<0.000000e+00> : vector<4xf32>
    %1086 = vector.multi_reduction <add>, %1083, %cst_318 [1] : vector<4x32xf32> to vector<4xf32>
    %1087 = vector.shape_cast %1086 : vector<4xf32> to vector<4x1xf32>
    %cst_319 = arith.constant 3.200000e+01 : f32
    %1088 = vector.broadcast %cst_319 : f32 to vector<4x1xf32>
    %1089 = arith.divf %1087, %1088 : vector<4x1xf32>
    %1090 = vector.broadcast %1089 : vector<4x1xf32> to vector<4x32xf32>
    %1091 = arith.subf %1083, %1090 : vector<4x32xf32>
    %1092 = arith.mulf %1091, %1091 : vector<4x32xf32>
    %cst_320 = arith.constant dense<0.000000e+00> : vector<4xf32>
    %1093 = vector.multi_reduction <add>, %1092, %cst_320 [1] : vector<4x32xf32> to vector<4xf32>
    %1094 = vector.shape_cast %1093 : vector<4xf32> to vector<4x1xf32>
    %cst_321 = arith.constant 3.200000e+01 : f32
    %1095 = vector.broadcast %cst_321 : f32 to vector<4x1xf32>
    %1096 = arith.divf %1094, %1095 : vector<4x1xf32>
    %cst_322 = arith.constant 9.99999974E-6 : f32
    %1097 = vector.broadcast %cst_322 : f32 to vector<4x1xf32>
    %1098 = arith.addf %1096, %1097 : vector<4x1xf32>
    %1099 = math.rsqrt %1098 : vector<4x1xf32>
    %1100 = vector.broadcast %1099 : vector<4x1xf32> to vector<4x32xf32>
    %1101 = arith.mulf %1091, %1100 : vector<4x32xf32>
    %1102 = vector.broadcast %1084 : vector<1x32xf32> to vector<4x32xf32>
    %1103 = arith.mulf %1101, %1102 : vector<4x32xf32>
    %1104 = vector.broadcast %1085 : vector<1x32xf32> to vector<4x32xf32>
    %1105 = arith.addf %1103, %1104 : vector<4x32xf32>
    %1106 = arith.negf %1105 : vector<4x32xf32>
    %1107 = math.exp %1106 : vector<4x32xf32>
    %cst_323 = arith.constant 1.000000e+00 : f32
    %1108 = vector.broadcast %cst_323 : f32 to vector<4x32xf32>
    %1109 = arith.addf %1108, %1107 : vector<4x32xf32>
    %1110 = arith.divf %1108, %1109 : vector<4x32xf32>
    %1111 = vector.extract_strided_slice %1054 {offsets = [0, 64], sizes = [4, 32], strides = [1, 1]} : vector<4x128xf32> to vector<4x32xf32>
    %1112 = vector.extract_strided_slice %3 {offsets = [2, 0], sizes = [1, 32], strides = [1, 1]} : vector<5x32xf32> to vector<1x32xf32>
    %1113 = vector.extract_strided_slice %4 {offsets = [2, 0], sizes = [1, 32], strides = [1, 1]} : vector<5x32xf32> to vector<1x32xf32>
    %cst_324 = arith.constant dense<0.000000e+00> : vector<4xf32>
    %1114 = vector.multi_reduction <add>, %1111, %cst_324 [1] : vector<4x32xf32> to vector<4xf32>
    %1115 = vector.shape_cast %1114 : vector<4xf32> to vector<4x1xf32>
    %cst_325 = arith.constant 3.200000e+01 : f32
    %1116 = vector.broadcast %cst_325 : f32 to vector<4x1xf32>
    %1117 = arith.divf %1115, %1116 : vector<4x1xf32>
    %1118 = vector.broadcast %1117 : vector<4x1xf32> to vector<4x32xf32>
    %1119 = arith.subf %1111, %1118 : vector<4x32xf32>
    %1120 = arith.mulf %1119, %1119 : vector<4x32xf32>
    %cst_326 = arith.constant dense<0.000000e+00> : vector<4xf32>
    %1121 = vector.multi_reduction <add>, %1120, %cst_326 [1] : vector<4x32xf32> to vector<4xf32>
    %1122 = vector.shape_cast %1121 : vector<4xf32> to vector<4x1xf32>
    %cst_327 = arith.constant 3.200000e+01 : f32
    %1123 = vector.broadcast %cst_327 : f32 to vector<4x1xf32>
    %1124 = arith.divf %1122, %1123 : vector<4x1xf32>
    %cst_328 = arith.constant 9.99999974E-6 : f32
    %1125 = vector.broadcast %cst_328 : f32 to vector<4x1xf32>
    %1126 = arith.addf %1124, %1125 : vector<4x1xf32>
    %1127 = math.rsqrt %1126 : vector<4x1xf32>
    %1128 = vector.broadcast %1127 : vector<4x1xf32> to vector<4x32xf32>
    %1129 = arith.mulf %1119, %1128 : vector<4x32xf32>
    %1130 = vector.broadcast %1112 : vector<1x32xf32> to vector<4x32xf32>
    %1131 = arith.mulf %1129, %1130 : vector<4x32xf32>
    %1132 = vector.broadcast %1113 : vector<1x32xf32> to vector<4x32xf32>
    %1133 = arith.addf %1131, %1132 : vector<4x32xf32>
    %1134 = math.tanh %1133 : vector<4x32xf32>
    %1135 = vector.extract_strided_slice %1054 {offsets = [0, 96], sizes = [4, 32], strides = [1, 1]} : vector<4x128xf32> to vector<4x32xf32>
    %1136 = vector.extract_strided_slice %3 {offsets = [3, 0], sizes = [1, 32], strides = [1, 1]} : vector<5x32xf32> to vector<1x32xf32>
    %1137 = vector.extract_strided_slice %4 {offsets = [3, 0], sizes = [1, 32], strides = [1, 1]} : vector<5x32xf32> to vector<1x32xf32>
    %cst_329 = arith.constant dense<0.000000e+00> : vector<4xf32>
    %1138 = vector.multi_reduction <add>, %1135, %cst_329 [1] : vector<4x32xf32> to vector<4xf32>
    %1139 = vector.shape_cast %1138 : vector<4xf32> to vector<4x1xf32>
    %cst_330 = arith.constant 3.200000e+01 : f32
    %1140 = vector.broadcast %cst_330 : f32 to vector<4x1xf32>
    %1141 = arith.divf %1139, %1140 : vector<4x1xf32>
    %1142 = vector.broadcast %1141 : vector<4x1xf32> to vector<4x32xf32>
    %1143 = arith.subf %1135, %1142 : vector<4x32xf32>
    %1144 = arith.mulf %1143, %1143 : vector<4x32xf32>
    %cst_331 = arith.constant dense<0.000000e+00> : vector<4xf32>
    %1145 = vector.multi_reduction <add>, %1144, %cst_331 [1] : vector<4x32xf32> to vector<4xf32>
    %1146 = vector.shape_cast %1145 : vector<4xf32> to vector<4x1xf32>
    %cst_332 = arith.constant 3.200000e+01 : f32
    %1147 = vector.broadcast %cst_332 : f32 to vector<4x1xf32>
    %1148 = arith.divf %1146, %1147 : vector<4x1xf32>
    %cst_333 = arith.constant 9.99999974E-6 : f32
    %1149 = vector.broadcast %cst_333 : f32 to vector<4x1xf32>
    %1150 = arith.addf %1148, %1149 : vector<4x1xf32>
    %1151 = math.rsqrt %1150 : vector<4x1xf32>
    %1152 = vector.broadcast %1151 : vector<4x1xf32> to vector<4x32xf32>
    %1153 = arith.mulf %1143, %1152 : vector<4x32xf32>
    %1154 = vector.broadcast %1136 : vector<1x32xf32> to vector<4x32xf32>
    %1155 = arith.mulf %1153, %1154 : vector<4x32xf32>
    %1156 = vector.broadcast %1137 : vector<1x32xf32> to vector<4x32xf32>
    %1157 = arith.addf %1155, %1156 : vector<4x32xf32>
    %1158 = arith.negf %1157 : vector<4x32xf32>
    %1159 = math.exp %1158 : vector<4x32xf32>
    %cst_334 = arith.constant 1.000000e+00 : f32
    %1160 = vector.broadcast %cst_334 : f32 to vector<4x32xf32>
    %1161 = arith.addf %1160, %1159 : vector<4x32xf32>
    %1162 = arith.divf %1160, %1161 : vector<4x32xf32>
    %c0_335 = arith.constant 0 : index
    %c0_336 = arith.constant 0 : index
    %1163 = vector.load %arg12[%c0_335, %c0_336] : memref<4x32xf32, #tpu.memory_space<vmem>>, vector<4x32xf32>
    %1164 = arith.mulf %1110, %1163 : vector<4x32xf32>
    %1165 = arith.mulf %1082, %1134 : vector<4x32xf32>
    %1166 = arith.addf %1164, %1165 : vector<4x32xf32>
    %1167 = vector.extract_strided_slice %3 {offsets = [4, 0], sizes = [1, 32], strides = [1, 1]} : vector<5x32xf32> to vector<1x32xf32>
    %1168 = vector.extract_strided_slice %4 {offsets = [4, 0], sizes = [1, 32], strides = [1, 1]} : vector<5x32xf32> to vector<1x32xf32>
    %cst_337 = arith.constant dense<0.000000e+00> : vector<4xf32>
    %1169 = vector.multi_reduction <add>, %1166, %cst_337 [1] : vector<4x32xf32> to vector<4xf32>
    %1170 = vector.shape_cast %1169 : vector<4xf32> to vector<4x1xf32>
    %cst_338 = arith.constant 3.200000e+01 : f32
    %1171 = vector.broadcast %cst_338 : f32 to vector<4x1xf32>
    %1172 = arith.divf %1170, %1171 : vector<4x1xf32>
    %1173 = vector.broadcast %1172 : vector<4x1xf32> to vector<4x32xf32>
    %1174 = arith.subf %1166, %1173 : vector<4x32xf32>
    %1175 = arith.mulf %1174, %1174 : vector<4x32xf32>
    %cst_339 = arith.constant dense<0.000000e+00> : vector<4xf32>
    %1176 = vector.multi_reduction <add>, %1175, %cst_339 [1] : vector<4x32xf32> to vector<4xf32>
    %1177 = vector.shape_cast %1176 : vector<4xf32> to vector<4x1xf32>
    %cst_340 = arith.constant 3.200000e+01 : f32
    %1178 = vector.broadcast %cst_340 : f32 to vector<4x1xf32>
    %1179 = arith.divf %1177, %1178 : vector<4x1xf32>
    %cst_341 = arith.constant 9.99999974E-6 : f32
    %1180 = vector.broadcast %cst_341 : f32 to vector<4x1xf32>
    %1181 = arith.addf %1179, %1180 : vector<4x1xf32>
    %1182 = math.rsqrt %1181 : vector<4x1xf32>
    %1183 = vector.broadcast %1182 : vector<4x1xf32> to vector<4x32xf32>
    %1184 = arith.mulf %1174, %1183 : vector<4x32xf32>
    %1185 = vector.broadcast %1167 : vector<1x32xf32> to vector<4x32xf32>
    %1186 = arith.mulf %1184, %1185 : vector<4x32xf32>
    %1187 = vector.broadcast %1168 : vector<1x32xf32> to vector<4x32xf32>
    %1188 = arith.addf %1186, %1187 : vector<4x32xf32>
    %1189 = math.tanh %1188 : vector<4x32xf32>
    %1190 = arith.mulf %1162, %1189 : vector<4x32xf32>
    %c0_342 = arith.constant 0 : index
    %c0_343 = arith.constant 0 : index
    %1191 = vector.load %arg11[%c0_342, %c0_343] : memref<4x32xf32, #tpu.memory_space<vmem>>, vector<4x32xf32>
    tpu.vector_store %arg11[%c0_342, %c0_343], %1190 {strides = array<i32>} : memref<4x32xf32, #tpu.memory_space<vmem>>, vector<4x32xf32>,
    %c0_344 = arith.constant 0 : index
    %c0_345 = arith.constant 0 : index
    %1192 = vector.load %arg12[%c0_344, %c0_345] : memref<4x32xf32, #tpu.memory_space<vmem>>, vector<4x32xf32>
    tpu.vector_store %arg12[%c0_344, %c0_345], %1188 {strides = array<i32>} : memref<4x32xf32, #tpu.memory_space<vmem>>, vector<4x32xf32>,
    %1193 = arith.index_cast %c7_i32 : i32 to index
    %c0_346 = arith.constant 0 : index
    %c0_347 = arith.constant 0 : index
    %1194 = vector.load %arg8[%1193, %c0_346, %c0_347] : memref<8x4x32xf32, #tpu.memory_space<vmem>>, vector<1x4x32xf32>
    %1195 = vector.shape_cast %1194 : vector<1x4x32xf32> to vector<4x32xf32>
    %1196 = vector.shape_cast %1190 : vector<4x32xf32> to vector<1x4x32xf32>
    tpu.vector_store %arg8[%1193, %c0_346, %c0_347], %1196 {strides = array<i32>} : memref<8x4x32xf32, #tpu.memory_space<vmem>>, vector<1x4x32xf32>,
    %c8_i32 = arith.constant 8 : i32
    %c0_i32_348 = arith.constant 0 : i32
    %1197 = arith.cmpi eq, %arg1, %c0_i32_348 : i32
    %1198 = arith.extui %1197 : i1 to i32
    %c0_i32_349 = arith.constant 0 : i32
    %1199 = arith.cmpi ne, %1198, %c0_i32_349 : i32
    scf.if %1199 {
      %c0_350 = arith.constant 0 : index
      %c0_351 = arith.constant 0 : index
      %1200 = vector.load %arg11[%c0_350, %c0_351] : memref<4x32xf32, #tpu.memory_space<vmem>>, vector<4x32xf32>
      %c0_352 = arith.constant 0 : index
      %c0_353 = arith.constant 0 : index
      %1201 = vector.load %arg9[%c0_352, %c0_353] : memref<4x32xf32, #tpu.memory_space<vmem>>, vector<4x32xf32>
      tpu.vector_store %arg9[%c0_352, %c0_353], %1200 {strides = array<i32>} : memref<4x32xf32, #tpu.memory_space<vmem>>, vector<4x32xf32>,
      %c0_354 = arith.constant 0 : index
      %c0_355 = arith.constant 0 : index
      %1202 = vector.load %arg12[%c0_354, %c0_355] : memref<4x32xf32, #tpu.memory_space<vmem>>, vector<4x32xf32>
      %c0_356 = arith.constant 0 : index
      %c0_357 = arith.constant 0 : index
      %1203 = vector.load %arg10[%c0_356, %c0_357] : memref<4x32xf32, #tpu.memory_space<vmem>>, vector<4x32xf32>
      tpu.vector_store %arg10[%c0_356, %c0_357], %1202 {strides = array<i32>} : memref<4x32xf32, #tpu.memory_space<vmem>>, vector<4x32xf32>,
    } else {
    }
    return
  }
  func.func @transform_0(%arg0: i32, %arg1: i32) -> (i32, i32, i32) {
    %c0_i32 = arith.constant 0 : i32
    %c0_i32_0 = arith.constant 0 : i32
    return %arg1, %arg0, %c0_i32 : i32, i32, i32
  }
  func.func @transform_1(%arg0: i32, %arg1: i32) -> (i32, i32) {
    %c0_i32 = arith.constant 0 : i32
    %c0_i32_0 = arith.constant 0 : i32
    return %arg0, %c0_i32 : i32, i32
  }
  func.func @transform_2(%arg0: i32, %arg1: i32) -> (i32, i32) {
    %c0_i32 = arith.constant 0 : i32
    %c0_i32_0 = arith.constant 0 : i32
    return %arg0, %c0_i32 : i32, i32
  }
  func.func @transform_3(%arg0: i32, %arg1: i32) -> (i32, i32) {
    %c0_i32 = arith.constant 0 : i32
    %c0_i32_0 = arith.constant 0 : i32
    %c0_i32_1 = arith.constant 0 : i32
    return %c0_i32, %c0_i32_0 : i32, i32
  }
  func.func @transform_4(%arg0: i32, %arg1: i32) -> (i32, i32) {
    %c0_i32 = arith.constant 0 : i32
    %c0_i32_0 = arith.constant 0 : i32
    %c0_i32_1 = arith.constant 0 : i32
    return %c0_i32, %c0_i32_0 : i32, i32
  }
  func.func @transform_5(%arg0: i32, %arg1: i32) -> (i32, i32) {
    %c0_i32 = arith.constant 0 : i32
    %c0_i32_0 = arith.constant 0 : i32
    %c0_i32_1 = arith.constant 0 : i32
    return %c0_i32, %c0_i32_0 : i32, i32
  }
  func.func @transform_6(%arg0: i32, %arg1: i32) -> (i32, i32, i32) {
    %c0_i32 = arith.constant 0 : i32
    %c0_i32_0 = arith.constant 0 : i32
    return %arg1, %arg0, %c0_i32 : i32, i32, i32
  }
  func.func @transform_7(%arg0: i32, %arg1: i32) -> (i32, i32) {
    %c0_i32 = arith.constant 0 : i32
    %c0_i32_0 = arith.constant 0 : i32
    return %arg0, %c0_i32 : i32, i32
  }
  func.func @transform_8(%arg0: i32, %arg1: i32) -> (i32, i32) {
    %c0_i32 = arith.constant 0 : i32
    %c0_i32_0 = arith.constant 0 : i32
    return %arg0, %c0_i32 : i32, i32
  }
}

</mosaic_0001>

<bundles_post_ra>
// kernel: tpu_custom_call.1
= control target key start
LH: loop header
LB: loop body
LE: loop exit
PB: predicated region body
PF: predicated region fallthrough
CT: control target
= control target key end

     0   :  { %14 = vsyncpa [#allocation5], 0  ;;  %s3401_s0 = inlined_call_operand.hbm [shape: f32[8,4,128], index: 0, kind: input, shape index: {}]   ;;  %s3402_s1 = inlined_call_operand.hbm [shape: f32[4,32], index: 1, kind: input, shape index: {}]   ;;  %s3403_s2 = inlined_call_operand.hbm [shape: f32[4,32], index: 2, kind: input, shape index: {}]   ;;  %s3404_s3 = inlined_call_operand.hbm [shape: f32[32,128], index: 3, kind: input, shape index: {}]   ;;  %s3405_s4 = inlined_call_operand.vmem [shape: f32[5,32], index: 4, kind: input, shape index: {}]   ;;  %s3406_s5 = inlined_call_operand.vmem [shape: f32[5,32], index: 5, kind: input, shape index: {}]   ;;  %s3407_s6 = inlined_call_operand.hbm [shape: f32[8,4,32], index: 6, kind: output, shape index: {0}]   ;;  %s3408_s7 = inlined_call_operand.hbm [shape: f32[4,32], index: 7, kind: output, shape index: {1}]   ;;  %s3409_s8 = inlined_call_operand.hbm [shape: f32[4,32], index: 8, kind: output, shape index: {2}]  }
   0x1   :  { %15 = vsyncpa [#allocation8], 0 }
   0x2   :  { %16 = vsyncpa [#allocation11], 0 }
   0x3   :  { %17 = vsyncpa [#allocation6], 0 }
   0x4   :  { %18 = vsyncpa [#allocation14], 0  ;;  %s2724_s27 = smov [#allocation7]   ;;  %s2725_s29 = smov [#allocation4]  }
   0x5   :  { %s37_s28 = sshll.u32 %s2724_s27, 4  ;;  %s24_s30 = sshll.u32 %s2725_s29, 4  ;;  %s38_s28 = int_to_ptr.vmem [resolvable:$true] %s37_s28  ;;  %s2785_s30 = int_to_ptr.vmem [resolvable:$true] %s24_s30 }
   0x6   :  { %s2560_s11 = scalar_lea.hbm %s3402_s1, 64 }
   0x7   :  { %p2561_p0 = scmp.ne.s32.totalorder %s3402_s1, %s2560_s11  ;;  %p2564_p1 = scmp.lt.u32.totalorder %s2560_s11, %s3402_s1 }
   0x9   :  { %p2566_p2 = pnand %p2564_p1, %p2561_p0 }
   0xb   :  { %2569 = shalt.err (!%p2566_p2)
}
   0xc   :  { %s2570_s16 = scalar_lea.vmem %s38_s28, 64  ;;  %p2575_p4 = scmp.lt.s32.totalorder %s38_s28, %s38_s28 }
   0xd   :  { %p2571_p3 = scmp.ne.s32.totalorder %s38_s28, %s2570_s16  ;;  %p2576_p5 = scmp.lt.s32.totalorder %s2570_s16, %s2570_s16 }
   0xf   :  { %p2577_p6 = por %p2576_p5, %p2575_p4 }
  0x11   :  { %p2578_p7 = pnand %p2577_p6, %p2571_p3 }
  0x13   :  { %2581 = shalt.err (!%p2578_p7)
}
  0x14   :  { %40 = dma.hbm_to_vmem [thread:$0]  %s3402_s1, 64, %s38_s28, [#allocation8]  }
  0x15   :  { %s2582_s21 = scalar_lea.hbm %s3401_s0, 512 }
  0x16   :  { %p2583_p8 = scmp.ne.s32.totalorder %s3401_s0, %s2582_s21  ;;  %p2586_p9 = scmp.lt.u32.totalorder %s2582_s21, %s3401_s0 }
  0x18   :  { %p2588_p10 = pnand %p2586_p9, %p2583_p8 }
  0x1a   :  { %2591 = shalt.err (!%p2588_p10)
}
  0x1b   :  { %s2592_s26 = scalar_lea.vmem %s2785_s30, 512  ;;  %p2597_p12 = scmp.lt.s32.totalorder %s2785_s30, %s2785_s30 }
  0x1c   :  { %p2593_p11 = scmp.ne.s32.totalorder %s2785_s30, %s2592_s26  ;;  %p2598_p13 = scmp.lt.s32.totalorder %s2592_s26, %s2592_s26 }
  0x1e   :  { %p2599_p0 = por %p2598_p13, %p2597_p12 }
  0x20   :  { %p2600_p1 = pnand %p2599_p0, %p2593_p11 }
  0x22   :  { %2603 = shalt.err (!%p2600_p1)
}
  0x23   :  { %s2726_s1 = smov 64   ;;  %s2727_s27 = smov 4  }
  0x24   :  { %30 = dma.hbm_to_vmem [thread:$0]  %s3401_s0, 512, %s2785_s30, [#allocation5], %s2726_s1, %s2726_s1, %s2727_s27  }
  0x25   :  { %s2728_s9 = smov [#allocation9]   ;;  %s2729_s11 = smov [#allocation10]  }
  0x26   :  { %s47_s10 = sshll.u32 %s2728_s9, 4  ;;  %s56_s12 = sshll.u32 %s2729_s11, 4  ;;  %s48_s10 = int_to_ptr.vmem [resolvable:$true] %s47_s10  ;;  %s2819_s12 = int_to_ptr.vmem [resolvable:$true] %s56_s12 }
  0x27   :  { %s2604_s15 = scalar_lea.hbm %s3403_s2, 64 }
  0x28   :  { %p2605_p2 = scmp.ne.s32.totalorder %s3403_s2, %s2604_s15  ;;  %p2608_p3 = scmp.lt.u32.totalorder %s2604_s15, %s3403_s2 }
  0x2a   :  { %p2610_p4 = pnand %p2608_p3, %p2605_p2 }
  0x2c   :  { %2613 = shalt.err (!%p2610_p4)
}
  0x2d   :  { %s2614_s0 = scalar_lea.vmem %s48_s10, 64  ;;  %p2619_p6 = scmp.lt.s32.totalorder %s48_s10, %s48_s10 }
  0x2e   :  { %p2615_p5 = scmp.ne.s32.totalorder %s48_s10, %s2614_s0  ;;  %p2620_p7 = scmp.lt.s32.totalorder %s2614_s0, %s2614_s0 }
  0x30   :  { %p2621_p8 = por %p2620_p7, %p2619_p6 }
  0x32   :  { %p2622_p9 = pnand %p2621_p8, %p2615_p5 }
  0x34   :  { %2625 = shalt.err (!%p2622_p9)
}
  0x35   :  { %50 = dma.hbm_to_vmem [thread:$0]  %s3403_s2, 64, %s48_s10, [#allocation8]  }
  0x36   :  { %s2626_s23 = scalar_lea.hbm %s3404_s3, 512 }
  0x37   :  { %p2627_p10 = scmp.ne.s32.totalorder %s3404_s3, %s2626_s23  ;;  %p2630_p11 = scmp.lt.u32.totalorder %s2626_s23, %s3404_s3 }
  0x39   :  { %p2632_p12 = pnand %p2630_p11, %p2627_p10 }
  0x3b   :  { %2635 = shalt.err (!%p2632_p12)
}
  0x3c   :  { %s2636_s29 = scalar_lea.vmem %s2819_s12, 512  ;;  %p2641_p0 = scmp.lt.s32.totalorder %s2819_s12, %s2819_s12 }
  0x3d   :  { %p2637_p13 = scmp.ne.s32.totalorder %s2819_s12, %s2636_s29  ;;  %p2642_p1 = scmp.lt.s32.totalorder %s2636_s29, %s2636_s29 }
  0x3f   :  { %p2643_p2 = por %p2642_p1, %p2641_p0 }
  0x41   :  { %p2644_p3 = pnand %p2643_p2, %p2637_p13 }
  0x43   :  { %2647 = shalt.err (!%p2644_p3)
}
  0x44   :  { %s2730_s2 = smov 128   ;;  %s2731_s9 = smov 8  }
  0x45   :  { %62 = dma.hbm_to_vmem [thread:$0]  %s3404_s3, 512, %s2819_s12, [#allocation11], %s2730_s2, %s2730_s2, %s2731_s9  }
  0x46   :  { %2714 = dma.done.wait [#allocation5], 512  }
  0x47   :  { %2715 = vsyncadd [#allocation5], 4294966784 }
  0x48   :  { %2716 = dma.done.wait [#allocation8], 128  }
  0x49   :  { %2717 = vsyncadd [#allocation8], 4294967168 }
  0x4a   :  { %2718 = dma.done.wait [#allocation11], 512  }
  0x4b   :  { %2719 = vsyncadd [#allocation11], 4294966784  ;;  %v2732_v0 = vmov 0.0|0.0   ;;  %vm2733_vm0 = vmmov 0   ;;  %v2734_v1 = vmov 0.0   ;;  %vm84_vm1 = vcmask 257024  }
  0x4c   :  { %2288 = vmatprep.subr.bf16.mxu0 %v2732_v0  ;;  %2208 = vmatprep.mubr.msk.f32.mxu0 %vm2733_vm0, %v2734_v1  ;;  %v92_v2 = vld [vmem:[#allocation10] sm:$0xff]  ;;  %v93_v3 = vld [vmem:[#allocation10 + $0x8] sm:$0xff]  ;;  %v94_v4 = vld [vmem:[#allocation10 + $0x10] sm:$0xff]  ;;  %vm96_vm2 = vcmask 261120   ;;  %s2735_s3 = smov 96   ;;  %v186_v23 = vlaneseq  ;;  %s2737_s15 = smov [#allocation12]  }
  0x4d   :  { %2294 = vmatprep.subr.bf16.mxu1 %v2732_v0  ;;  %2219 = vmatprep.mubr.msk.f32.mxu1 %vm2733_vm0, %v2734_v1  ;;  %v2856_v5 = vpack.c.bf16 %v93_v3, %v92_v2  ;;  %v95_v6 = vld [vmem:[#allocation10 + $0x18] sm:$0xff]  ;;  %v2894_v27 = vld [vmem:[%s3406_s5] sm:$0x1f]  ;;  %s2087_s16 = sshll.u32 %s2737_s15, 4  ;;  %s2088_s16 = int_to_ptr.vmem [resolvable:$true] %s2087_s16 }
  0x4e   :  { %v83_v7 = vld [vmem:[#allocation7] sm:$0xf]  ;;  %v2860_v8 = vpack.c.bf16 %v95_v6, %v94_v4  ;;  %v2888_v24 = vshrl.u32 %v186_v23, 7  ;;  %v2908_v34 = vld [vmem:[%s3405_s4] sm:$0x1f]  ;;  %s2736_s4 = smov 32   ;;  %p2653_p5 = scmp.lt.s32.totalorder %s2088_s16, %s2088_s16 }
  0x4f   :  { %85 = vst.msk [vmem:[#allocation2] sm:$0xf] %vm84_vm1, %v83_v7  ;;  %2290 = vmatpush3.bf16.msra.mxu0 %v2856_v5  ;;  %2296 = vmatpush3.bf16.msra.mxu1 %v2856_v5  ;;  %v91_v10 = vld [vmem:[#allocation4] sm:$0xf]  ;;  %v86_v36 = vld [vmem:[#allocation9] sm:$0xf] }
  0x50   :  { %2291 = vmatprep.subr.bf16.mxu0 %v2732_v0  ;;  %2297 = vmatprep.subr.bf16.mxu1 %v2732_v0  ;;  %v269_v26 = vsub.s32 2, %v2888_v24  ;;  %87 = vst.msk [vmem:[#allocation3] sm:$0xf] %vm84_vm1, %v86_v36  ;;  %v225_v45 = vsub.s32 1, %v2888_v24  ;;  %v188_v61 = vsub.s32 0, %v2888_v24  ;;  %s2648_s17 = scalar_lea.vmem %s2088_s16, 512 }
  0x51   :  { %p2649_p4 = scmp.ne.s32.totalorder %s2088_s16, %s2648_s17  ;;  %p2654_p6 = scmp.lt.s32.totalorder %s2648_s17, %s2648_s17 }
  0x52   :  { %v279_v29 = vrot.slane %v2894_v27, %v269_v26  ;;  %v270_v35 = vrot.slane %v2908_v34, %v269_v26  ;;  %v226_v46 = vrot.slane %v2908_v34, %v225_v45  ;;  %v235_v57 = vrot.slane %v2894_v27, %v225_v45 }
  0x53   :  { %2293 = vmatpush3.bf16.msra.mxu0 %v2860_v8  ;;  %2299 = vmatpush3.bf16.msra.mxu1 %v2860_v8  ;;  %v2931_v63 = vrot.slane %v2908_v34, %v188_v61  ;;  %v2934_v3 = vrot.slane %v2894_v27, %v188_v61  ;;  %p2655_p7 = por %p2654_p6, %p2653_p5 }
  0x54   :  { %2300 = vmatprep.subr.bf16.mxu0 %v2732_v0  ;;  %2306 = vmatprep.subr.bf16.mxu1 %v2732_v0 }
  0x55   :  { %p2656_p8 = pnand %p2655_p7, %p2649_p4 }
  0x56   :  { %v90_v9 = vld [vmem:[#allocation2] sm:$0xf] }
  0x57   :  { %2209 = vmatmul.mubr.msk.f32.vlgmr.msra.gmra.mrb[0].mxu0 %vm96_vm2, %v90_v9  ;;  %v330_v47 = vld [vmem:[#allocation3] sm:$0xf] }
  0x58   :  { %2302 = vmatpush3.bf16.msra.mxu0 %v2856_v5  ;;  %2230 = vmatprep.mubr.msk.f32.mxu0 %vm2733_vm0, %v2734_v1 }
  0x59   :  { %2303 = vmatprep.subr.bf16.mxu0 %v2732_v0 }
  0x5c   :  { %2305 = vmatpush3.bf16.msra.mxu0 %v2860_v8 }
  0x5d   :  { %2312 = vmatprep.subr.bf16.mxu0 %v2732_v0 }
 0x12a   :  { %v166_v11 = vpop.f32.mrb[0].mxu0 }
 0x12b   :  { %v2876_v12 = vadd.f32 %v166_v11, %v91_v10  ;;  %v2210_v13 = vpop.f32.mrb[1].mxu0 }
 0x12d   :  { %203 = vrot.lane.b32.xlu1 %v2876_v12, %s2735_s3  ;;  %247 = vrot.lane.b32.xlu0 %v2876_v12, %s2726_s1  ;;  %v172_v22 = vsel %vm84_vm1, %v2876_v12, 0.0 }
 0x19f   :  { %v248_v14 = vpop.permute.xlu0 %247  ;;  %v204_v16 = vpop.permute.xlu1 %203 }
 0x1a0   :  { %v250_v15 = vsel %vm84_vm1, %v248_v14, 0.0  ;;  %v206_v17 = vsel %vm84_vm1, %v204_v16, 0.0 }
 0x1a1   :  { %251 = vadd.xlane.f32.xlu0 %v250_v15 }
 0x1a5   :  { %207 = vadd.xlane.f32.xlu0 %v206_v17 }
 0x22e   :  { %v252_v18 = vpop.xlane.xlu0 %251 }
 0x22f   :  { %v253_v19 = vmul.f32 0.03125, %v252_v18 }
 0x231   :  { %v254_v20 = vsub.f32 %v2876_v12, %v253_v19 }
 0x232   :  { %v208_v25 = vpop.xlane.xlu0 %207 }
 0x233   :  { %v255_v21 = vmul.f32 %v254_v20, %v254_v20  ;;  %v209_v28 = vmul.f32 0.03125, %v208_v25 }
 0x235   :  { %257 = vrot.lane.b32.xlu1 %v255_v21, %s2726_s1  ;;  %v2898_v30 = vsub.f32 %v2876_v12, %v209_v28 }
 0x237   :  { %v211_v31 = vmul.f32 %v2898_v30, %v2898_v30 }
 0x259   :  { %173 = vadd.xlane.f32.xlu1 %v172_v22 }
 0x26a   :  { %281 = vrot.lane.b32.xlu1 %v279_v29, %s2726_s1 }
 0x26e   :  { %213 = vrot.lane.b32.xlu1 %v211_v31, %s2735_s3 }
 0x2a7   :  { %v258_v32 = vpop.permute.xlu1 %257 }
 0x2a8   :  { %v260_v33 = vsel %vm84_vm1, %v258_v32, 0.0 }
 0x2a9   :  { %261 = vadd.xlane.f32.xlu0 %v260_v33 }
 0x2bf   :  { %272 = vrot.lane.b32.xlu0 %v270_v35, %s2726_s1 }
 0x2e6   :  { %v174_v37 = vpop.xlane.xlu1 %173 }
 0x2e7   :  { %v176_v38 = vmul.f32 0.03125, %v174_v37 }
 0x2e9   :  { %v177_v39 = vsub.f32 %v2876_v12, %v176_v38 }
 0x2ea   :  { %v2914_v40 = vpop.permute.xlu1 %281 }
 0x2eb   :  { %v178_v41 = vmul.f32 %v177_v39, %v177_v39 }
 0x2ed   :  { %v179_v42 = vsel %vm84_vm1, %v178_v41, 0.0 }
 0x2ee   :  { %180 = vadd.xlane.f32.xlu0 %v179_v42  ;;  %v214_v43 = vpop.permute.xlu1 %213 }
 0x2ef   :  { %v216_v44 = vsel %vm84_vm1, %v214_v43, 0.0 }
 0x2f0   :  { %217 = vadd.xlane.f32.xlu1 %v216_v44 }
 0x301   :  { %228 = vrot.lane.b32.xlu1 %v226_v46, %s2736_s4 }
 0x305   :  { %332 = vrot.lane.b32.xlu1 %v330_v47, %s2736_s4  ;;  %v369_v47 = vsub.s32 4, %v2888_v24 }
 0x336   :  { %v262_v48 = vpop.xlane.xlu0 %261 }
 0x337   :  { %v263_v49 = vmul.f32 0.03125, %v262_v48 }
 0x339   :  { %v264_v50 = vadd.f32 1e-05, %v263_v49  ;;  %v370_v49 = vrot.slane %v2908_v34, %v369_v47 }
 0x33a   :  { %v2922_v52 = vpop.permute.xlu0 %272 }
 0x33b   :  { %2352 = vrsqrt.f32 %v264_v50  ;;  %v379_v50 = vrot.slane %v2894_v27, %v369_v47 }
 0x345   :  { %v2353_v51 = vpop.eup %2352 }
 0x346   :  { %v266_v53 = vmul.f32 %v2353_v51, %v254_v20 }
 0x348   :  { %v275_v54 = vmul.f32 %v2922_v52, %v266_v53  ;;  %v308_v53 = vsub.s32 3, %v2888_v24 }
 0x34a   :  { %v284_v55 = vadd.f32 %v2914_v40, %v275_v54  ;;  %v318_v54 = vrot.slane %v2894_v27, %v308_v53 }
 0x34c   :  { %2354 = vtanh.f32 %v284_v55 }
 0x356   :  { %v2355_v56 = vpop.eup %2354 }
 0x357   :  { %337 = vrot.lane.b32.xlu0 %v2355_v56, %s2726_s1 }
 0x35b   :  { %237 = vrot.lane.b32.xlu0 %v235_v57, %s2736_s4  ;;  %v309_v57 = vrot.slane %v2908_v34, %v308_v53 }
 0x37b   :  { %v181_v58 = vpop.xlane.xlu0 %180 }
 0x37c   :  { %v182_v59 = vmul.f32 0.03125, %v181_v58 }
 0x37d   :  { %v218_v15 = vpop.xlane.xlu1 %217 }
 0x37e   :  { %v183_v60 = vadd.f32 1e-05, %v182_v59  ;;  %v219_v16 = vmul.f32 0.03125, %v218_v15 }
 0x380   :  { %2356 = vrsqrt.f32 %v183_v60  ;;  %v220_v17 = vadd.f32 1e-05, %v219_v16 }
 0x381   :  { %v2942_v20 = vpop.permute.xlu1 %228 }
 0x385   :  { %v333_v31 = vpop.permute.xlu1 %332 }
 0x38a   :  { %v2357_v62 = vpop.eup %2356 }
 0x38b   :  { %v185_v2 = vmul.f32 %v2357_v62, %v177_v39 }
 0x38d   :  { %v190_v4 = vmul.f32 %v2931_v63, %v185_v2 }
 0x38f   :  { %v195_v6 = vadd.f32 %v2934_v3, %v190_v4 }
 0x391   :  { %v2129_v7 = vmul.f32 -1.442695, %v195_v6 }
 0x393   :  { %2358 = vpow2.f32 %v2129_v7 }
 0x39d   :  { %v2359_v9 = vpop.eup %2358 }
 0x39e   :  { %v199_v10 = vadd.f32 1.0, %v2359_v9 }
 0x3a0   :  { %2360 = vrcp.f32 %v199_v10 }
 0x3a1   :  { %2362 = vrsqrt.f32 %v220_v17 }
 0x3aa   :  { %v2361_v11 = vpop.eup %2360 }
 0x3ab   :  { %v2363_v18 = vpop.eup %2362 }
 0x3ac   :  { %v222_v19 = vmul.f32 %v2363_v18, %v2898_v30 }
 0x3ae   :  { %v231_v22 = vmul.f32 %v2942_v20, %v222_v19 }
 0x3c9   :  { %v338_v13 = vpop.permute.xlu0 %337 }
 0x3ca   :  { %v340_v14 = vmul.f32 %v2361_v11, %v338_v13 }
 0x3cc   :  { %342 = vrot.lane.b32.xlu0 %v340_v14, %s2736_s4 }
 0x3cd   :  { %v2944_v21 = vpop.permute.xlu0 %237 }
 0x3ce   :  { %v240_v23 = vadd.f32 %v2944_v21, %v231_v22 }
 0x3d0   :  { %286 = vrot.lane.b32.xlu0 %v2876_v12, %s2736_s4  ;;  %v2130_v25 = vmul.f32 -1.442695, %v240_v23 }
 0x3d2   :  { %2364 = vpow2.f32 %v2130_v25 }
 0x3dc   :  { %v2365_v26 = vpop.eup %2364 }
 0x3dd   :  { %v244_v28 = vadd.f32 1.0, %v2365_v26 }
 0x3df   :  { %2366 = vrcp.f32 %v244_v28 }
 0x3e9   :  { %v2367_v29 = vpop.eup %2366 }
 0x3ea   :  { %v335_v32 = vmul.f32 %v2367_v29, %v333_v31  ;;  %v404_v29 = vld [vmem:[#allocation4 + $0x4] sm:$0xf] }
 0x43e   :  { %v343_v33 = vpop.permute.xlu0 %342 }
 0x43f   :  { %v345_v35 = vadd.f32 %v343_v33, %v335_v32 }
 0x441   :  { %347 = vrot.lane.b32.xlu1 %v345_v35, %s2735_s3 }
 0x442   :  { %v287_v30 = vpop.permute.xlu0 %286 }
 0x443   :  { %v289_v36 = vsel %vm84_vm1, %v287_v30, 0.0 }
 0x444   :  { %290 = vadd.xlane.f32.xlu0 %v289_v36 }
 0x4b3   :  { %v348_v37 = vpop.permute.xlu1 %347 }
 0x4b4   :  { %v350_v38 = vsel %vm84_vm1, %v348_v37, 0.0 }
 0x4b5   :  { %351 = vadd.xlane.f32.xlu1 %v350_v38 }
 0x4d1   :  { %v291_v39 = vpop.xlane.xlu0 %290 }
 0x4d2   :  { %v292_v41 = vmul.f32 0.03125, %v291_v39 }
 0x4d4   :  { %v293_v42 = vsub.f32 %v2876_v12, %v292_v41 }
 0x4d6   :  { %v294_v43 = vmul.f32 %v293_v42, %v293_v42 }
 0x4d8   :  { %296 = vrot.lane.b32.xlu1 %v294_v43, %s2736_s4 }
 0x542   :  { %v352_v44 = vpop.xlane.xlu1 %351 }
 0x543   :  { %v353_v45 = vmul.f32 0.03125, %v352_v44 }
 0x545   :  { %v354_v46 = vsub.f32 %v345_v35, %v353_v45 }
 0x547   :  { %v355_v48 = vmul.f32 %v354_v46, %v354_v46 }
 0x549   :  { %357 = vrot.lane.b32.xlu0 %v355_v48, %s2735_s3 }
 0x54a   :  { %v297_v12 = vpop.permute.xlu1 %296 }
 0x54b   :  { %v299_v51 = vsel %vm84_vm1, %v297_v12, 0.0 }
 0x54d   :  { %372 = vrot.lane.b32.xlu0 %v370_v49, %s2736_s4 }
 0x551   :  { %381 = vrot.lane.b32.xlu0 %v379_v50, %s2736_s4 }
 0x570   :  { %300 = vadd.xlane.f32.xlu0 %v299_v51 }
 0x586   :  { %320 = vrot.lane.b32.xlu0 %v318_v54, %s2735_s3 }
 0x5bb   :  { %v358_v55 = vpop.permute.xlu0 %357 }
 0x5bc   :  { %v360_v56 = vsel %vm84_vm1, %v358_v55, 0.0 }
 0x5bd   :  { %361 = vadd.xlane.f32.xlu1 %v360_v56 }
 0x5bf   :  { %v2966_v61 = vpop.permute.xlu0 %372 }
 0x5c3   :  { %v2969_v2 = vpop.permute.xlu0 %381 }
 0x5ce   :  { %311 = vrot.lane.b32.xlu1 %v309_v57, %s2735_s3 }
 0x5fd   :  { %v301_v6 = vpop.xlane.xlu0 %300 }
 0x5fe   :  { %v302_v7 = vmul.f32 0.03125, %v301_v6 }
 0x600   :  { %v303_v9 = vadd.f32 1e-05, %v302_v7 }
 0x601   :  { %v2979_v15 = vpop.permute.xlu0 %320 }
 0x64a   :  { %v362_v58 = vpop.xlane.xlu1 %361 }
 0x64b   :  { %v363_v59 = vmul.f32 0.03125, %v362_v58 }
 0x64d   :  { %v364_v60 = vadd.f32 1e-05, %v363_v59 }
 0x64e   :  { %v2976_v11 = vpop.permute.xlu1 %311 }
 0x64f   :  { %2368 = vrsqrt.f32 %v364_v60 }
 0x659   :  { %v2369_v62 = vpop.eup %2368 }
 0x65a   :  { %v366_v24 = vmul.f32 %v2369_v62, %v354_v46 }
 0x65c   :  { %v375_v27 = vmul.f32 %v2966_v61, %v366_v24 }
 0x65e   :  { %v2972_v4 = vadd.f32 %v2969_v2, %v375_v27 }
 0x660   :  { %2370 = vtanh.f32 %v2972_v4 }
 0x661   :  { %2372 = vrsqrt.f32 %v303_v9 }
 0x66a   :  { %v2371_v34 = vpop.eup %2370 }
 0x66b   :  { %387 = vrot.lane.b32.xlu1 %v2371_v34, %s2726_s1  ;;  %v2373_v10 = vpop.eup %2372 }
 0x66c   :  { %v305_v13 = vmul.f32 %v2373_v10, %v293_v42 }
 0x66e   :  { %v314_v14 = vmul.f32 %v2976_v11, %v305_v13 }
 0x670   :  { %v323_v16 = vadd.f32 %v2979_v15, %v314_v14 }
 0x672   :  { %v2131_v17 = vmul.f32 -1.442695, %v323_v16 }
 0x674   :  { %2374 = vpow2.f32 %v2131_v17 }
 0x67e   :  { %v2375_v18 = vpop.eup %2374 }
 0x67f   :  { %v327_v19 = vadd.f32 1.0, %v2375_v18 }
 0x681   :  { %2376 = vrcp.f32 %v327_v19 }
 0x68b   :  { %v2377_v22 = vpop.eup %2376 }
 0x6dd   :  { %v388_v23 = vpop.permute.xlu1 %387 }
 0x6de   :  { %v390_v25 = vmul.f32 %v2377_v22, %v388_v23 }
 0x6e0   :  { %392 = vrot.lane.b32.xlu1 %v390_v25, %s2736_s4 }
 0x752   :  { %v393_v26 = vpop.permute.xlu1 %392 }
 0x753   :  { %395 = vst.msk [vmem:[#allocation2] sm:$0xf] %vm84_vm1, %v393_v26  ;;  %401 = vst.msk [vmem:[#allocation12] sm:$0xf] %vm84_vm1, %v393_v26 }
 0x75a   :  { %v402_v28 = vld [vmem:[#allocation2] sm:$0xf] }
 0x75b   :  { %2220 = vmatmul.mubr.msk.f32.vlgmr.msra.gmra.mrb[0].mxu1 %vm96_vm2, %v402_v28 }
 0x75c   :  { %2308 = vmatpush3.bf16.msra.mxu1 %v2856_v5  ;;  %2241 = vmatprep.mubr.msk.f32.mxu1 %vm2733_vm0, %v2734_v1 }
 0x75d   :  { %2309 = vmatprep.subr.bf16.mxu1 %v2732_v0 }
 0x760   :  { %2311 = vmatpush3.bf16.msra.mxu1 %v2860_v8 }
 0x761   :  { %2318 = vmatprep.subr.bf16.mxu1 %v2732_v0 }
 0x82e   :  { %v478_v31 = vpop.f32.mrb[0].mxu1 }
 0x82f   :  { %v2992_v32 = vadd.f32 %v478_v31, %v404_v29  ;;  %v2221_v33 = vpop.f32.mrb[1].mxu1 }
 0x831   :  { %533 = vrot.lane.b32.xlu1 %v2992_v32, %s2726_s1  ;;  %v483_v41 = vsel %vm84_vm1, %v2992_v32, 0.0 }
 0x835   :  { %505 = vrot.lane.b32.xlu1 %v2992_v32, %s2735_s3 }
 0x8a3   :  { %v534_v5 = vpop.permute.xlu1 %533 }
 0x8a4   :  { %v536_v35 = vsel %vm84_vm1, %v534_v5, 0.0 }
 0x8a5   :  { %537 = vadd.xlane.f32.xlu0 %v536_v35 }
 0x8a7   :  { %v506_v30 = vpop.permute.xlu1 %505 }
 0x8a8   :  { %v508_v8 = vsel %vm84_vm1, %v506_v30, 0.0 }
 0x8a9   :  { %509 = vadd.xlane.f32.xlu0 %v508_v8 }
 0x932   :  { %v538_v36 = vpop.xlane.xlu0 %537 }
 0x933   :  { %v539_v37 = vmul.f32 0.03125, %v538_v36 }
 0x935   :  { %v540_v38 = vsub.f32 %v2992_v32, %v539_v37 }
 0x936   :  { %v510_v44 = vpop.xlane.xlu0 %509 }
 0x937   :  { %v541_v39 = vmul.f32 %v540_v38, %v540_v38  ;;  %v511_v45 = vmul.f32 0.03125, %v510_v44 }
 0x939   :  { %543 = vrot.lane.b32.xlu1 %v541_v39, %s2726_s1  ;;  %v512_v46 = vsub.f32 %v2992_v32, %v511_v45 }
 0x93b   :  { %v513_v47 = vmul.f32 %v512_v46, %v512_v46 }
 0x95d   :  { %484 = vadd.xlane.f32.xlu1 %v483_v41 }
 0x9ab   :  { %v544_v42 = vpop.permute.xlu1 %543 }
 0x9ac   :  { %v546_v43 = vsel %vm84_vm1, %v544_v42, 0.0 }
 0x9ad   :  { %547 = vadd.xlane.f32.xlu0 %v546_v43 }
 0x9c3   :  { %515 = vrot.lane.b32.xlu0 %v513_v47, %s2735_s3 }
 0x9ea   :  { %v485_v48 = vpop.xlane.xlu1 %484 }
 0x9eb   :  { %v486_v49 = vmul.f32 0.03125, %v485_v48 }
 0x9ed   :  { %v487_v50 = vsub.f32 %v2992_v32, %v486_v49 }
 0x9ef   :  { %v488_v12 = vmul.f32 %v487_v50, %v487_v50 }
 0x9f1   :  { %v489_v51 = vsel %vm84_vm1, %v488_v12, 0.0 }
 0x9f2   :  { %490 = vadd.xlane.f32.xlu1 %v489_v51 }
 0xa03   :  { %397 = vrot.lane.b32.xlu1 %v2972_v4, %s2735_s3 }
 0xa3a   :  { %v548_v53 = vpop.xlane.xlu0 %547 }
 0xa3b   :  { %v549_v54 = vmul.f32 0.03125, %v548_v53 }
 0xa3d   :  { %v550_v55 = vadd.f32 1e-05, %v549_v54 }
 0xa3e   :  { %v516_v56 = vpop.permute.xlu0 %515 }
 0xa3f   :  { %2378 = vrsqrt.f32 %v550_v55  ;;  %v518_v57 = vsel %vm84_vm1, %v516_v56, 0.0 }
 0xa40   :  { %519 = vadd.xlane.f32.xlu0 %v518_v57 }
 0xa49   :  { %v2379_v58 = vpop.eup %2378 }
 0xa4a   :  { %v552_v59 = vmul.f32 %v2379_v58, %v540_v38 }
 0xa4c   :  { %v553_v60 = vmul.f32 %v552_v59, %v2922_v52 }
 0xa4e   :  { %v554_v62 = vadd.f32 %v553_v60, %v2914_v40 }
 0xa50   :  { %2380 = vtanh.f32 %v554_v62 }
 0xa5a   :  { %v2381_v24 = vpop.eup %2380 }
 0xa5b   :  { %591 = vrot.lane.b32.xlu1 %v2381_v24, %s2726_s1 }
 0xa7f   :  { %v491_v27 = vpop.xlane.xlu1 %490 }
 0xa80   :  { %v492_v6 = vmul.f32 0.03125, %v491_v27 }
 0xa82   :  { %v493_v7 = vadd.f32 1e-05, %v492_v6 }
 0xa83   :  { %v398_v4 = vpop.permute.xlu1 %397 }
 0xa84   :  { %400 = vst.msk [vmem:[#allocation3] sm:$0xf] %vm84_vm1, %v398_v4  ;;  %2382 = vrsqrt.f32 %v493_v7 }
 0xa8b   :  { %v584_v34 = vld [vmem:[#allocation3] sm:$0xf] }
 0xa8c   :  { %586 = vrot.lane.b32.xlu1 %v584_v34, %s2736_s4 }
 0xa8e   :  { %v2383_v9 = vpop.eup %2382 }
 0xa8f   :  { %v495_v10 = vmul.f32 %v2383_v9, %v487_v50 }
 0xa91   :  { %v496_v13 = vmul.f32 %v495_v10, %v2931_v63 }
 0xa93   :  { %v497_v14 = vadd.f32 %v496_v13, %v2934_v3 }
 0xa95   :  { %v2133_v16 = vmul.f32 -1.442695, %v497_v14 }
 0xa97   :  { %2384 = vpow2.f32 %v2133_v16 }
 0xaa1   :  { %v2385_v17 = vpop.eup %2384 }
 0xaa2   :  { %v501_v18 = vadd.f32 1.0, %v2385_v17 }
 0xaa4   :  { %2386 = vrcp.f32 %v501_v18 }
 0xaae   :  { %v2387_v19 = vpop.eup %2386 }
 0xacd   :  { %v592_v22 = vpop.permute.xlu1 %591  ;;  %v520_v25 = vpop.xlane.xlu0 %519 }
 0xace   :  { %v594_v23 = vmul.f32 %v2387_v19, %v592_v22  ;;  %v521_v26 = vmul.f32 0.03125, %v520_v25 }
 0xad0   :  { %596 = vrot.lane.b32.xlu1 %v594_v23, %s2736_s4  ;;  %v522_v28 = vadd.f32 1e-05, %v521_v26 }
 0xad2   :  { %2388 = vrsqrt.f32 %v522_v28  ;;  %v643_v28 = vld [vmem:[#allocation4 + $0x8] sm:$0xf] }
 0xadc   :  { %v2389_v29 = vpop.eup %2388 }
 0xadd   :  { %v524_v31 = vmul.f32 %v2389_v29, %v512_v46 }
 0xadf   :  { %v525_v33 = vmul.f32 %v524_v31, %v2942_v20 }
 0xae1   :  { %v526_v5 = vadd.f32 %v525_v33, %v2944_v21 }
 0xae3   :  { %v2134_v35 = vmul.f32 -1.442695, %v526_v5 }
 0xae5   :  { %2390 = vpow2.f32 %v2134_v35 }
 0xaef   :  { %v2391_v30 = vpop.eup %2390 }
 0xaf0   :  { %v530_v8 = vadd.f32 1.0, %v2391_v30 }
 0xaf2   :  { %2392 = vrcp.f32 %v530_v8 }
 0xafc   :  { %v2393_v37 = vpop.eup %2392 }
 0xafe   :  { %v587_v36 = vpop.permute.xlu1 %586 }
 0xaff   :  { %v589_v38 = vmul.f32 %v2393_v37, %v587_v36 }
 0xb42   :  { %v597_v39 = vpop.permute.xlu1 %596 }
 0xb43   :  { %v599_v41 = vadd.f32 %v597_v39, %v589_v38 }
 0xb45   :  { %601 = vrot.lane.b32.xlu1 %v599_v41, %s2735_s3 }
 0xb49   :  { %556 = vrot.lane.b32.xlu1 %v2992_v32, %s2736_s4 }
 0xbb7   :  { %v602_v42 = vpop.permute.xlu1 %601 }
 0xbb8   :  { %v604_v43 = vsel %vm84_vm1, %v602_v42, 0.0 }
 0xbb9   :  { %605 = vadd.xlane.f32.xlu1 %v604_v43 }
 0xbbb   :  { %v557_v44 = vpop.permute.xlu1 %556 }
 0xbbc   :  { %v559_v45 = vsel %vm84_vm1, %v557_v44, 0.0 }
 0xbbd   :  { %560 = vadd.xlane.f32.xlu0 %v559_v45 }
 0xc46   :  { %v606_v46 = vpop.xlane.xlu1 %605 }
 0xc47   :  { %v607_v47 = vmul.f32 0.03125, %v606_v46 }
 0xc49   :  { %v608_v48 = vsub.f32 %v599_v41, %v607_v47 }
 0xc4a   :  { %v561_v49 = vpop.xlane.xlu0 %560 }
 0xc4b   :  { %v562_v50 = vmul.f32 0.03125, %v561_v49  ;;  %v609_v12 = vmul.f32 %v608_v48, %v608_v48 }
 0xc4d   :  { %v563_v51 = vsub.f32 %v2992_v32, %v562_v50  ;;  %611 = vrot.lane.b32.xlu0 %v609_v12, %s2735_s3 }
 0xc4f   :  { %v564_v53 = vmul.f32 %v563_v51, %v563_v51 }
 0xc51   :  { %566 = vrot.lane.b32.xlu0 %v564_v53, %s2736_s4 }
 0xcbf   :  { %v612_v54 = vpop.permute.xlu0 %611 }
 0xcc0   :  { %v614_v55 = vsel %vm84_vm1, %v612_v54, 0.0 }
 0xcc1   :  { %615 = vadd.xlane.f32.xlu1 %v614_v55 }
 0xcc3   :  { %v567_v56 = vpop.permute.xlu0 %566 }
 0xcc4   :  { %v569_v57 = vsel %vm84_vm1, %v567_v56, 0.0 }
 0xcc5   :  { %570 = vadd.xlane.f32.xlu0 %v569_v57 }
 0xd4e   :  { %v616_v58 = vpop.xlane.xlu1 %615 }
 0xd4f   :  { %v617_v59 = vmul.f32 0.03125, %v616_v58 }
 0xd51   :  { %v618_v60 = vadd.f32 1e-05, %v617_v59 }
 0xd52   :  { %v571_v34 = vpop.xlane.xlu0 %570 }
 0xd53   :  { %2394 = vrsqrt.f32 %v618_v60  ;;  %v572_v6 = vmul.f32 0.03125, %v571_v34 }
 0xd55   :  { %v573_v7 = vadd.f32 1e-05, %v572_v6 }
 0xd5d   :  { %v2395_v62 = vpop.eup %2394 }
 0xd5e   :  { %v620_v24 = vmul.f32 %v2395_v62, %v608_v48 }
 0xd60   :  { %v621_v32 = vmul.f32 %v620_v24, %v2966_v61 }
 0xd62   :  { %v622_v27 = vadd.f32 %v621_v32, %v2969_v2 }
 0xd64   :  { %2396 = vtanh.f32 %v622_v27 }
 0xd65   :  { %2398 = vrsqrt.f32 %v573_v7 }
 0xd6e   :  { %v2397_v4 = vpop.eup %2396 }
 0xd6f   :  { %625 = vrot.lane.b32.xlu1 %v2397_v4, %s2726_s1  ;;  %v2399_v9 = vpop.eup %2398 }
 0xd70   :  { %v575_v10 = vmul.f32 %v2399_v9, %v563_v51 }
 0xd72   :  { %v576_v13 = vmul.f32 %v575_v10, %v2976_v11 }
 0xd74   :  { %v577_v14 = vadd.f32 %v576_v13, %v2979_v15 }
 0xd76   :  { %v2135_v16 = vmul.f32 -1.442695, %v577_v14 }
 0xd78   :  { %2400 = vpow2.f32 %v2135_v16 }
 0xd82   :  { %v2401_v17 = vpop.eup %2400 }
 0xd83   :  { %v581_v18 = vadd.f32 1.0, %v2401_v17 }
 0xd85   :  { %2402 = vrcp.f32 %v581_v18 }
 0xd8f   :  { %v2403_v19 = vpop.eup %2402 }
 0xde1   :  { %v626_v22 = vpop.permute.xlu1 %625 }
 0xde2   :  { %v628_v23 = vmul.f32 %v2403_v19, %v626_v22 }
 0xde4   :  { %630 = vrot.lane.b32.xlu1 %v628_v23, %s2736_s4 }
 0xe56   :  { %v631_v25 = vpop.permute.xlu1 %630 }
 0xe57   :  { %633 = vst.msk [vmem:[#allocation2] sm:$0xf] %vm84_vm1, %v631_v25  ;;  %640 = vst.msk [vmem:[#allocation12 + $0x4] sm:$0xf] %vm84_vm1, %v631_v25 }
 0xe5e   :  { %v641_v26 = vld [vmem:[#allocation2] sm:$0xf] }
 0xe5f   :  { %2231 = vmatmul.mubr.msk.f32.vlgmr.msra.gmra.mrb[2].mxu0 %vm96_vm2, %v641_v26 }
 0xe60   :  { %2252 = vmatprep.mubr.msk.f32.mxu0 %vm2733_vm0, %v2734_v1 }
 0xf32   :  { %v717_v29 = vpop.f32.mrb[2].mxu0 }
 0xf33   :  { %v3043_v31 = vadd.f32 %v717_v29, %v643_v28  ;;  %v2232_v33 = vpop.f32.mrb[3].mxu0 }
 0xf35   :  { %744 = vrot.lane.b32.xlu0 %v3043_v31, %s2735_s3  ;;  %772 = vrot.lane.b32.xlu1 %v3043_v31, %s2726_s1  ;;  %v722_v41 = vsel %vm84_vm1, %v3043_v31, 0.0 }
 0xfa7   :  { %v773_v5 = vpop.permute.xlu1 %772  ;;  %v745_v30 = vpop.permute.xlu0 %744 }
 0xfa8   :  { %v775_v35 = vsel %vm84_vm1, %v773_v5, 0.0  ;;  %v747_v8 = vsel %vm84_vm1, %v745_v30, 0.0 }
 0xfa9   :  { %776 = vadd.xlane.f32.xlu1 %v775_v35 }
 0xfad   :  { %748 = vadd.xlane.f32.xlu1 %v747_v8 }
0x1036   :  { %v777_v36 = vpop.xlane.xlu1 %776 }
0x1037   :  { %v778_v37 = vmul.f32 0.03125, %v777_v36 }
0x1039   :  { %v779_v38 = vsub.f32 %v3043_v31, %v778_v37 }
0x103a   :  { %v749_v44 = vpop.xlane.xlu1 %748 }
0x103b   :  { %v780_v39 = vmul.f32 %v779_v38, %v779_v38  ;;  %v750_v45 = vmul.f32 0.03125, %v749_v44 }
0x103d   :  { %782 = vrot.lane.b32.xlu0 %v780_v39, %s2726_s1  ;;  %v751_v46 = vsub.f32 %v3043_v31, %v750_v45 }
0x103f   :  { %v752_v47 = vmul.f32 %v751_v46, %v751_v46 }
0x105c   :  { %723 = vadd.xlane.f32.xlu0 %v722_v41 }
0x10af   :  { %v783_v42 = vpop.permute.xlu0 %782 }
0x10b0   :  { %v785_v43 = vsel %vm84_vm1, %v783_v42, 0.0 }
0x10b1   :  { %786 = vadd.xlane.f32.xlu1 %v785_v43 }
0x10c2   :  { %754 = vrot.lane.b32.xlu1 %v752_v47, %s2735_s3 }
0x10c6   :  { %635 = vrot.lane.b32.xlu1 %v622_v27, %s2735_s3 }
0x10e9   :  { %v724_v48 = vpop.xlane.xlu0 %723 }
0x10ea   :  { %v725_v49 = vmul.f32 0.03125, %v724_v48 }
0x10ec   :  { %v726_v50 = vsub.f32 %v3043_v31, %v725_v49 }
0x10ee   :  { %v727_v12 = vmul.f32 %v726_v50, %v726_v50 }
0x10f0   :  { %v728_v51 = vsel %vm84_vm1, %v727_v12, 0.0 }
0x10f1   :  { %729 = vadd.xlane.f32.xlu0 %v728_v51 }
0x113e   :  { %v787_v53 = vpop.xlane.xlu1 %786 }
0x113f   :  { %v788_v54 = vmul.f32 0.03125, %v787_v53 }
0x1141   :  { %v789_v55 = vadd.f32 1e-05, %v788_v54 }
0x1142   :  { %v755_v56 = vpop.permute.xlu1 %754 }
0x1143   :  { %2404 = vrsqrt.f32 %v789_v55  ;;  %v757_v57 = vsel %vm84_vm1, %v755_v56, 0.0 }
0x1144   :  { %758 = vadd.xlane.f32.xlu0 %v757_v57 }
0x1146   :  { %v636_v58 = vpop.permute.xlu1 %635 }
0x1147   :  { %638 = vst.msk [vmem:[#allocation3] sm:$0xf] %vm84_vm1, %v636_v58 }
0x114d   :  { %v2405_v59 = vpop.eup %2404 }
0x114e   :  { %v791_v60 = vmul.f32 %v2405_v59, %v779_v38  ;;  %v823_v32 = vld [vmem:[#allocation3] sm:$0xf] }
0x1150   :  { %v792_v62 = vmul.f32 %v791_v60, %v2922_v52 }
0x1152   :  { %v793_v24 = vadd.f32 %v792_v62, %v2914_v40 }
0x1154   :  { %2406 = vtanh.f32 %v793_v24 }
0x115a   :  { %825 = vrot.lane.b32.xlu0 %v823_v32, %s2736_s4 }
0x115e   :  { %v2407_v27 = vpop.eup %2406 }
0x115f   :  { %830 = vrot.lane.b32.xlu1 %v2407_v27, %s2726_s1 }
0x117e   :  { %v730_v4 = vpop.xlane.xlu0 %729 }
0x117f   :  { %v731_v34 = vmul.f32 0.03125, %v730_v4 }
0x1181   :  { %v732_v6 = vadd.f32 1e-05, %v731_v34 }
0x1183   :  { %2408 = vrsqrt.f32 %v732_v6 }
0x118d   :  { %v2409_v7 = vpop.eup %2408 }
0x118e   :  { %v734_v9 = vmul.f32 %v2409_v7, %v726_v50 }
0x1190   :  { %v735_v10 = vmul.f32 %v734_v9, %v2931_v63 }
0x1192   :  { %v736_v13 = vadd.f32 %v735_v10, %v2934_v3 }
0x1194   :  { %v2137_v14 = vmul.f32 -1.442695, %v736_v13 }
0x1196   :  { %2410 = vpow2.f32 %v2137_v14 }
0x11a0   :  { %v2411_v16 = vpop.eup %2410 }
0x11a1   :  { %v740_v17 = vadd.f32 1.0, %v2411_v16 }
0x11a3   :  { %2412 = vrcp.f32 %v740_v17 }
0x11ad   :  { %v2413_v18 = vpop.eup %2412 }
0x11d1   :  { %v831_v19 = vpop.permute.xlu1 %830  ;;  %v759_v23 = vpop.xlane.xlu0 %758 }
0x11d2   :  { %v833_v22 = vmul.f32 %v2413_v18, %v831_v19  ;;  %v760_v25 = vmul.f32 0.03125, %v759_v23 }
0x11d4   :  { %835 = vrot.lane.b32.xlu1 %v833_v22, %s2736_s4  ;;  %v761_v26 = vadd.f32 1e-05, %v760_v25 }
0x11d5   :  { %v826_v37 = vpop.permute.xlu0 %825 }
0x11d6   :  { %2414 = vrsqrt.f32 %v761_v26  ;;  %v882_v26 = vld [vmem:[#allocation4 + $0xc] sm:$0xf] }
0x11e0   :  { %v2415_v28 = vpop.eup %2414 }
0x11e1   :  { %v763_v29 = vmul.f32 %v2415_v28, %v751_v46 }
0x11e3   :  { %v764_v33 = vmul.f32 %v763_v29, %v2942_v20 }
0x11e5   :  { %v765_v5 = vadd.f32 %v764_v33, %v2944_v21 }
0x11e7   :  { %v2138_v35 = vmul.f32 -1.442695, %v765_v5 }
0x11e9   :  { %2416 = vpow2.f32 %v2138_v35 }
0x11f3   :  { %v2417_v30 = vpop.eup %2416 }
0x11f4   :  { %v769_v8 = vadd.f32 1.0, %v2417_v30 }
0x11f6   :  { %2418 = vrcp.f32 %v769_v8 }
0x1200   :  { %v2419_v36 = vpop.eup %2418 }
0x1201   :  { %v828_v38 = vmul.f32 %v2419_v36, %v826_v37 }
0x1246   :  { %v836_v39 = vpop.permute.xlu1 %835 }
0x1247   :  { %v838_v41 = vadd.f32 %v836_v39, %v828_v38 }
0x1249   :  { %840 = vrot.lane.b32.xlu1 %v838_v41, %s2735_s3 }
0x124d   :  { %795 = vrot.lane.b32.xlu1 %v3043_v31, %s2736_s4 }
0x12bb   :  { %v841_v42 = vpop.permute.xlu1 %840 }
0x12bc   :  { %v843_v43 = vsel %vm84_vm1, %v841_v42, 0.0 }
0x12bd   :  { %844 = vadd.xlane.f32.xlu1 %v843_v43 }
0x12bf   :  { %v796_v44 = vpop.permute.xlu1 %795 }
0x12c0   :  { %v798_v45 = vsel %vm84_vm1, %v796_v44, 0.0 }
0x12c1   :  { %799 = vadd.xlane.f32.xlu0 %v798_v45 }
0x134a   :  { %v845_v46 = vpop.xlane.xlu1 %844 }
0x134b   :  { %v846_v47 = vmul.f32 0.03125, %v845_v46 }
0x134d   :  { %v847_v48 = vsub.f32 %v838_v41, %v846_v47 }
0x134e   :  { %v800_v49 = vpop.xlane.xlu0 %799 }
0x134f   :  { %v801_v50 = vmul.f32 0.03125, %v800_v49  ;;  %v848_v12 = vmul.f32 %v847_v48, %v847_v48 }
0x1351   :  { %v802_v51 = vsub.f32 %v3043_v31, %v801_v50  ;;  %850 = vrot.lane.b32.xlu1 %v848_v12, %s2735_s3 }
0x1353   :  { %v803_v53 = vmul.f32 %v802_v51, %v802_v51 }
0x1355   :  { %805 = vrot.lane.b32.xlu0 %v803_v53, %s2736_s4 }
0x13c3   :  { %v851_v54 = vpop.permute.xlu1 %850 }
0x13c4   :  { %v853_v55 = vsel %vm84_vm1, %v851_v54, 0.0 }
0x13c5   :  { %854 = vadd.xlane.f32.xlu1 %v853_v55 }
0x13c7   :  { %v806_v56 = vpop.permute.xlu0 %805 }
0x13c8   :  { %v808_v57 = vsel %vm84_vm1, %v806_v56, 0.0 }
0x13c9   :  { %809 = vadd.xlane.f32.xlu0 %v808_v57 }
0x1452   :  { %v855_v58 = vpop.xlane.xlu1 %854 }
0x1453   :  { %v856_v59 = vmul.f32 0.03125, %v855_v58 }
0x1455   :  { %v857_v60 = vadd.f32 1e-05, %v856_v59 }
0x1456   :  { %v810_v4 = vpop.xlane.xlu0 %809 }
0x1457   :  { %2420 = vrsqrt.f32 %v857_v60  ;;  %v811_v34 = vmul.f32 0.03125, %v810_v4 }
0x1459   :  { %v812_v6 = vadd.f32 1e-05, %v811_v34 }
0x1461   :  { %v2421_v62 = vpop.eup %2420 }
0x1462   :  { %v859_v24 = vmul.f32 %v2421_v62, %v847_v48 }
0x1464   :  { %v860_v31 = vmul.f32 %v859_v24, %v2966_v61 }
0x1466   :  { %v861_v32 = vadd.f32 %v860_v31, %v2969_v2 }
0x1468   :  { %2422 = vtanh.f32 %v861_v32 }
0x1469   :  { %2424 = vrsqrt.f32 %v812_v6 }
0x1472   :  { %v2423_v27 = vpop.eup %2422 }
0x1473   :  { %864 = vrot.lane.b32.xlu1 %v2423_v27, %s2726_s1  ;;  %v2425_v7 = vpop.eup %2424 }
0x1474   :  { %v814_v9 = vmul.f32 %v2425_v7, %v802_v51 }
0x1476   :  { %v815_v10 = vmul.f32 %v814_v9, %v2976_v11 }
0x1478   :  { %v816_v13 = vadd.f32 %v815_v10, %v2979_v15 }
0x147a   :  { %v2139_v14 = vmul.f32 -1.442695, %v816_v13 }
0x147c   :  { %2426 = vpow2.f32 %v2139_v14 }
0x1486   :  { %v2427_v16 = vpop.eup %2426 }
0x1487   :  { %v820_v17 = vadd.f32 1.0, %v2427_v16 }
0x1489   :  { %2428 = vrcp.f32 %v820_v17 }
0x1493   :  { %v2429_v18 = vpop.eup %2428 }
0x14e5   :  { %v865_v19 = vpop.permute.xlu1 %864 }
0x14e6   :  { %v867_v22 = vmul.f32 %v2429_v18, %v865_v19 }
0x14e8   :  { %869 = vrot.lane.b32.xlu0 %v867_v22, %s2736_s4 }
0x155a   :  { %v870_v23 = vpop.permute.xlu0 %869 }
0x155b   :  { %872 = vst.msk [vmem:[#allocation2] sm:$0xf] %vm84_vm1, %v870_v23  ;;  %879 = vst.msk [vmem:[#allocation12 + $0x8] sm:$0xf] %vm84_vm1, %v870_v23 }
0x1562   :  { %v880_v25 = vld [vmem:[#allocation2] sm:$0xf] }
0x1563   :  { %2242 = vmatmul.mubr.msk.f32.vlgmr.msra.gmra.mrb[2].mxu1 %vm96_vm2, %v880_v25 }
0x1564   :  { %2263 = vmatprep.mubr.msk.f32.mxu1 %vm2733_vm0, %v2734_v1 }
0x1636   :  { %v956_v28 = vpop.f32.mrb[2].mxu1 }
0x1637   :  { %v3093_v29 = vadd.f32 %v956_v28, %v882_v26  ;;  %v2243_v33 = vpop.f32.mrb[3].mxu1 }
0x1639   :  { %983 = vrot.lane.b32.xlu0 %v3093_v29, %s2735_s3  ;;  %1011 = vrot.lane.b32.xlu1 %v3093_v29, %s2726_s1  ;;  %v961_v41 = vsel %vm84_vm1, %v3093_v29, 0.0 }
0x16ab   :  { %v1012_v5 = vpop.permute.xlu1 %1011  ;;  %v984_v30 = vpop.permute.xlu0 %983 }
0x16ac   :  { %v1014_v35 = vsel %vm84_vm1, %v1012_v5, 0.0  ;;  %v986_v8 = vsel %vm84_vm1, %v984_v30, 0.0 }
0x16ad   :  { %1015 = vadd.xlane.f32.xlu1 %v1014_v35 }
0x16b1   :  { %987 = vadd.xlane.f32.xlu1 %v986_v8 }
0x173a   :  { %v1016_v36 = vpop.xlane.xlu1 %1015 }
0x173b   :  { %v1017_v37 = vmul.f32 0.03125, %v1016_v36 }
0x173d   :  { %v1018_v38 = vsub.f32 %v3093_v29, %v1017_v37 }
0x173e   :  { %v988_v42 = vpop.xlane.xlu1 %987 }
0x173f   :  { %v1019_v39 = vmul.f32 %v1018_v38, %v1018_v38  ;;  %v989_v43 = vmul.f32 0.03125, %v988_v42 }
0x1741   :  { %1021 = vrot.lane.b32.xlu0 %v1019_v39, %s2726_s1  ;;  %v990_v44 = vsub.f32 %v3093_v29, %v989_v43 }
0x1743   :  { %v991_v45 = vmul.f32 %v990_v44, %v990_v44 }
0x1760   :  { %962 = vadd.xlane.f32.xlu0 %v961_v41 }
0x1776   :  { %993 = vrot.lane.b32.xlu0 %v991_v45, %s2735_s3 }
0x17b3   :  { %v1022_v46 = vpop.permute.xlu0 %1021 }
0x17b4   :  { %v1024_v47 = vsel %vm84_vm1, %v1022_v46, 0.0 }
0x17b5   :  { %1025 = vadd.xlane.f32.xlu1 %v1024_v47 }
0x17ed   :  { %v963_v48 = vpop.xlane.xlu0 %962 }
0x17ee   :  { %v964_v49 = vmul.f32 0.03125, %v963_v48 }
0x17f0   :  { %v965_v50 = vsub.f32 %v3093_v29, %v964_v49 }
0x17f1   :  { %v994_v53 = vpop.permute.xlu0 %993 }
0x17f2   :  { %v966_v12 = vmul.f32 %v965_v50, %v965_v50  ;;  %v996_v54 = vsel %vm84_vm1, %v994_v53, 0.0 }
0x17f4   :  { %v967_v51 = vsel %vm84_vm1, %v966_v12, 0.0 }
0x17f5   :  { %968 = vadd.xlane.f32.xlu1 %v967_v51 }
0x1806   :  { %874 = vrot.lane.b32.xlu1 %v861_v32, %s2735_s3 }
0x182a   :  { %997 = vadd.xlane.f32.xlu1 %v996_v54 }
0x1842   :  { %v1026_v55 = vpop.xlane.xlu1 %1025 }
0x1843   :  { %v1027_v56 = vmul.f32 0.03125, %v1026_v55 }
0x1845   :  { %v1028_v57 = vadd.f32 1e-05, %v1027_v56 }
0x1847   :  { %2430 = vrsqrt.f32 %v1028_v57 }
0x1851   :  { %v2431_v58 = vpop.eup %2430 }
0x1852   :  { %v1030_v59 = vmul.f32 %v2431_v58, %v1018_v38 }
0x1854   :  { %v1031_v60 = vmul.f32 %v1030_v59, %v2922_v52 }
0x1856   :  { %v1032_v62 = vadd.f32 %v1031_v60, %v2914_v40 }
0x1858   :  { %2432 = vtanh.f32 %v1032_v62 }
0x1862   :  { %v2433_v24 = vpop.eup %2432 }
0x1863   :  { %1069 = vrot.lane.b32.xlu0 %v2433_v24, %s2726_s1 }
0x1882   :  { %v969_v31 = vpop.xlane.xlu1 %968 }
0x1883   :  { %v970_v4 = vmul.f32 0.03125, %v969_v31 }
0x1885   :  { %v971_v34 = vadd.f32 1e-05, %v970_v4 }
0x1886   :  { %v875_v32 = vpop.permute.xlu1 %874 }
0x1887   :  { %877 = vst.msk [vmem:[#allocation3] sm:$0xf] %vm84_vm1, %v875_v32  ;;  %2434 = vrsqrt.f32 %v971_v34 }
0x188e   :  { %v1062_v27 = vld [vmem:[#allocation3] sm:$0xf] }
0x188f   :  { %1064 = vrot.lane.b32.xlu0 %v1062_v27, %s2736_s4 }
0x1891   :  { %v2435_v6 = vpop.eup %2434 }
0x1892   :  { %v973_v7 = vmul.f32 %v2435_v6, %v965_v50 }
0x1894   :  { %v974_v9 = vmul.f32 %v973_v7, %v2931_v63 }
0x1896   :  { %v975_v10 = vadd.f32 %v974_v9, %v2934_v3 }
0x1898   :  { %v2141_v13 = vmul.f32 -1.442695, %v975_v10 }
0x189a   :  { %2436 = vpow2.f32 %v2141_v13 }
0x18a4   :  { %v2437_v14 = vpop.eup %2436 }
0x18a5   :  { %v979_v16 = vadd.f32 1.0, %v2437_v14 }
0x18a7   :  { %2438 = vrcp.f32 %v979_v16 }
0x18b1   :  { %v2439_v17 = vpop.eup %2438 }
0x18b7   :  { %v998_v22 = vpop.xlane.xlu1 %997 }
0x18b8   :  { %v999_v23 = vmul.f32 0.03125, %v998_v22  ;;  %v1124_v22 = vld [vmem:[#allocation10 + $0x10] sm:$0xff] }
0x18ba   :  { %v1000_v25 = vadd.f32 1e-05, %v999_v23  ;;  %v1125_v23 = vld [vmem:[#allocation10 + $0x18] sm:$0xff] }
0x18bc   :  { %2440 = vrsqrt.f32 %v1000_v25  ;;  %v3143_v25 = vpack.c.bf16 %v1125_v23, %v1124_v22 }
0x18c6   :  { %v2441_v26 = vpop.eup %2440 }
0x18c7   :  { %v1002_v28 = vmul.f32 %v2441_v26, %v990_v44 }
0x18c9   :  { %v1003_v33 = vmul.f32 %v1002_v28, %v2942_v20 }
0x18cb   :  { %v1004_v5 = vadd.f32 %v1003_v33, %v2944_v21 }
0x18cd   :  { %v2142_v35 = vmul.f32 -1.442695, %v1004_v5 }
0x18cf   :  { %2442 = vpow2.f32 %v2142_v35 }
0x18d5   :  { %v1070_v18 = vpop.permute.xlu0 %1069 }
0x18d6   :  { %v1072_v19 = vmul.f32 %v2439_v17, %v1070_v18  ;;  %v1122_v17 = vld [vmem:[#allocation10] sm:$0xff]  ;;  %v1123_v18 = vld [vmem:[#allocation10 + $0x8] sm:$0xff] }
0x18d8   :  { %1074 = vrot.lane.b32.xlu0 %v1072_v19, %s2736_s4  ;;  %v3140_v19 = vpack.c.bf16 %v1123_v18, %v1122_v17 }
0x18d9   :  { %v2443_v30 = vpop.eup %2442 }
0x18da   :  { %v1008_v8 = vadd.f32 1.0, %v2443_v30  ;;  %2314 = vmatpush3.bf16.msra.mxu0 %v3140_v19  ;;  %2320 = vmatpush3.bf16.msra.mxu1 %v3140_v19  ;;  %v1121_v30 = vld [vmem:[#allocation4 + $0x10] sm:$0xf] }
0x18db   :  { %2315 = vmatprep.subr.bf16.mxu0 %v2732_v0  ;;  %2321 = vmatprep.subr.bf16.mxu1 %v2732_v0 }
0x18dc   :  { %2444 = vrcp.f32 %v1008_v8 }
0x18de   :  { %2317 = vmatpush3.bf16.msra.mxu0 %v3143_v25  ;;  %2323 = vmatpush3.bf16.msra.mxu1 %v3143_v25 }
0x18df   :  { %2324 = vmatprep.subr.bf16.mxu0 %v2732_v0  ;;  %2330 = vmatprep.subr.bf16.mxu1 %v2732_v0 }
0x18e6   :  { %v2445_v37 = vpop.eup %2444 }
0x1901   :  { %v1065_v36 = vpop.permute.xlu0 %1064 }
0x1902   :  { %v1067_v38 = vmul.f32 %v2445_v37, %v1065_v36 }
0x194a   :  { %v1075_v39 = vpop.permute.xlu0 %1074 }
0x194b   :  { %v1077_v41 = vadd.f32 %v1075_v39, %v1067_v38 }
0x194d   :  { %1079 = vrot.lane.b32.xlu0 %v1077_v41, %s2735_s3 }
0x1951   :  { %1034 = vrot.lane.b32.xlu0 %v3093_v29, %s2736_s4 }
0x19bf   :  { %v1080_v42 = vpop.permute.xlu0 %1079 }
0x19c0   :  { %v1082_v43 = vsel %vm84_vm1, %v1080_v42, 0.0 }
0x19c1   :  { %1083 = vadd.xlane.f32.xlu0 %v1082_v43 }
0x19c3   :  { %v1035_v44 = vpop.permute.xlu0 %1034 }
0x19c4   :  { %v1037_v45 = vsel %vm84_vm1, %v1035_v44, 0.0 }
0x19c5   :  { %1038 = vadd.xlane.f32.xlu1 %v1037_v45 }
0x1a4e   :  { %v1084_v46 = vpop.xlane.xlu0 %1083 }
0x1a4f   :  { %v1085_v47 = vmul.f32 0.03125, %v1084_v46 }
0x1a51   :  { %v1086_v48 = vsub.f32 %v1077_v41, %v1085_v47 }
0x1a52   :  { %v1039_v49 = vpop.xlane.xlu1 %1038 }
0x1a53   :  { %v1087_v50 = vmul.f32 %v1086_v48, %v1086_v48  ;;  %v1040_v12 = vmul.f32 0.03125, %v1039_v49 }
0x1a55   :  { %v1041_v51 = vsub.f32 %v3093_v29, %v1040_v12  ;;  %1089 = vrot.lane.b32.xlu1 %v1087_v50, %s2735_s3 }
0x1a57   :  { %v1042_v53 = vmul.f32 %v1041_v51, %v1041_v51 }
0x1a59   :  { %1044 = vrot.lane.b32.xlu0 %v1042_v53, %s2736_s4 }
0x1ac7   :  { %v1090_v54 = vpop.permute.xlu1 %1089 }
0x1ac8   :  { %v1092_v55 = vsel %vm84_vm1, %v1090_v54, 0.0 }
0x1ac9   :  { %1093 = vadd.xlane.f32.xlu1 %v1092_v55 }
0x1acb   :  { %v1045_v56 = vpop.permute.xlu0 %1044 }
0x1acc   :  { %v1047_v57 = vsel %vm84_vm1, %v1045_v56, 0.0 }
0x1acd   :  { %1048 = vadd.xlane.f32.xlu0 %v1047_v57 }
0x1b56   :  { %v1094_v58 = vpop.xlane.xlu1 %1093 }
0x1b57   :  { %v1095_v59 = vmul.f32 0.03125, %v1094_v58 }
0x1b59   :  { %v1096_v60 = vadd.f32 1e-05, %v1095_v59 }
0x1b5a   :  { %v1049_v27 = vpop.xlane.xlu0 %1048 }
0x1b5b   :  { %2446 = vrsqrt.f32 %v1096_v60  ;;  %v1050_v4 = vmul.f32 0.03125, %v1049_v27 }
0x1b5d   :  { %v1051_v34 = vadd.f32 1e-05, %v1050_v4 }
0x1b65   :  { %v2447_v62 = vpop.eup %2446 }
0x1b66   :  { %v1098_v24 = vmul.f32 %v2447_v62, %v1086_v48 }
0x1b68   :  { %v1099_v29 = vmul.f32 %v1098_v24, %v2966_v61 }
0x1b6a   :  { %v3134_v31 = vadd.f32 %v1099_v29, %v2969_v2 }
0x1b6c   :  { %2448 = vtanh.f32 %v3134_v31 }
0x1b6d   :  { %2450 = vrsqrt.f32 %v1051_v34 }
0x1b76   :  { %v2449_v32 = vpop.eup %2448 }
0x1b77   :  { %1103 = vrot.lane.b32.xlu1 %v2449_v32, %s2726_s1  ;;  %v2451_v6 = vpop.eup %2450 }
0x1b78   :  { %v1053_v7 = vmul.f32 %v2451_v6, %v1041_v51 }
0x1b7a   :  { %v1054_v9 = vmul.f32 %v1053_v7, %v2976_v11 }
0x1b7c   :  { %v1055_v10 = vadd.f32 %v1054_v9, %v2979_v15 }
0x1b7e   :  { %v2143_v13 = vmul.f32 -1.442695, %v1055_v10 }
0x1b80   :  { %2452 = vpow2.f32 %v2143_v13 }
0x1b8a   :  { %v2453_v14 = vpop.eup %2452 }
0x1b8b   :  { %v1059_v16 = vadd.f32 1.0, %v2453_v14 }
0x1b8d   :  { %2454 = vrcp.f32 %v1059_v16 }
0x1b97   :  { %v2455_v26 = vpop.eup %2454 }
0x1be9   :  { %v1104_v28 = vpop.permute.xlu1 %1103 }
0x1bea   :  { %v1106_v33 = vmul.f32 %v2455_v26, %v1104_v28 }
0x1bec   :  { %1108 = vrot.lane.b32.xlu0 %v1106_v33, %s2736_s4 }
0x1c5e   :  { %v1109_v5 = vpop.permute.xlu0 %1108 }
0x1c5f   :  { %1111 = vst.msk [vmem:[#allocation2] sm:$0xf] %vm84_vm1, %v1109_v5  ;;  %1118 = vst.msk [vmem:[#allocation12 + $0xc] sm:$0xf] %vm84_vm1, %v1109_v5 }
0x1c66   :  { %v1119_v35 = vld [vmem:[#allocation2] sm:$0xf] }
0x1c67   :  { %2253 = vmatmul.mubr.msk.f32.vlgmr.msra.gmra.mrb[4].mxu0 %vm96_vm2, %v1119_v35 }
0x1c68   :  { %2326 = vmatpush3.bf16.msra.mxu0 %v3140_v19  ;;  %2274 = vmatprep.mubr.msk.f32.mxu0 %vm2733_vm0, %v2734_v1 }
0x1c69   :  { %2327 = vmatprep.subr.bf16.mxu0 %v2732_v0 }
0x1c6c   :  { %2329 = vmatpush3.bf16.msra.mxu0 %v3143_v25 }
0x1d3a   :  { %v1195_v8 = vpop.f32.mrb[4].mxu0 }
0x1d3b   :  { %v3161_v36 = vadd.f32 %v1195_v8, %v1121_v30  ;;  %v2254_v37 = vpop.f32.mrb[5].mxu0 }
0x1d3d   :  { %1222 = vrot.lane.b32.xlu0 %v3161_v36, %s2735_s3  ;;  %1250 = vrot.lane.b32.xlu1 %v3161_v36, %s2726_s1  ;;  %v1200_v47 = vsel %vm84_vm1, %v3161_v36, 0.0 }
0x1daf   :  { %v1251_v38 = vpop.permute.xlu1 %1250  ;;  %v1223_v41 = vpop.permute.xlu0 %1222 }
0x1db0   :  { %v1253_v39 = vsel %vm84_vm1, %v1251_v38, 0.0  ;;  %v1225_v42 = vsel %vm84_vm1, %v1223_v41, 0.0 }
0x1db1   :  { %1254 = vadd.xlane.f32.xlu1 %v1253_v39 }
0x1db5   :  { %1226 = vadd.xlane.f32.xlu1 %v1225_v42 }
0x1e3e   :  { %v1255_v43 = vpop.xlane.xlu1 %1254 }
0x1e3f   :  { %v1256_v44 = vmul.f32 0.03125, %v1255_v43 }
0x1e41   :  { %v1257_v45 = vsub.f32 %v3161_v36, %v1256_v44 }
0x1e42   :  { %v1227_v50 = vpop.xlane.xlu1 %1226 }
0x1e43   :  { %v1258_v46 = vmul.f32 %v1257_v45, %v1257_v45  ;;  %v1228_v12 = vmul.f32 0.03125, %v1227_v50 }
0x1e45   :  { %1260 = vrot.lane.b32.xlu0 %v1258_v46, %s2726_s1  ;;  %v1229_v51 = vsub.f32 %v3161_v36, %v1228_v12 }
0x1e47   :  { %v1230_v53 = vmul.f32 %v1229_v51, %v1229_v51 }
0x1e64   :  { %1201 = vadd.xlane.f32.xlu0 %v1200_v47 }
0x1eb7   :  { %v1261_v48 = vpop.permute.xlu0 %1260 }
0x1eb8   :  { %v1263_v49 = vsel %vm84_vm1, %v1261_v48, 0.0 }
0x1eb9   :  { %1264 = vadd.xlane.f32.xlu1 %v1263_v49 }
0x1eca   :  { %1232 = vrot.lane.b32.xlu1 %v1230_v53, %s2735_s3 }
0x1ef1   :  { %v1202_v54 = vpop.xlane.xlu0 %1201 }
0x1ef2   :  { %v1203_v55 = vmul.f32 0.03125, %v1202_v54 }
0x1ef4   :  { %v1204_v56 = vsub.f32 %v3161_v36, %v1203_v55 }
0x1ef6   :  { %v1205_v57 = vmul.f32 %v1204_v56, %v1204_v56 }
0x1ef8   :  { %v1206_v58 = vsel %vm84_vm1, %v1205_v57, 0.0 }
0x1ef9   :  { %1207 = vadd.xlane.f32.xlu0 %v1206_v58 }
0x1f0f   :  { %1113 = vrot.lane.b32.xlu0 %v3134_v31, %s2735_s3 }
0x1f46   :  { %v1265_v59 = vpop.xlane.xlu1 %1264 }
0x1f47   :  { %v1266_v60 = vmul.f32 0.03125, %v1265_v59 }
0x1f49   :  { %v1267_v62 = vadd.f32 1e-05, %v1266_v60 }
0x1f4a   :  { %v1233_v24 = vpop.permute.xlu1 %1232 }
0x1f4b   :  { %2456 = vrsqrt.f32 %v1267_v62  ;;  %v1235_v29 = vsel %vm84_vm1, %v1233_v24, 0.0 }
0x1f4c   :  { %1236 = vadd.xlane.f32.xlu1 %v1235_v29 }
0x1f55   :  { %v2457_v32 = vpop.eup %2456 }
0x1f56   :  { %v1269_v27 = vmul.f32 %v2457_v32, %v1257_v45 }
0x1f58   :  { %v1270_v4 = vmul.f32 %v1269_v27, %v2922_v52 }
0x1f5a   :  { %v1271_v34 = vadd.f32 %v1270_v4, %v2914_v40 }
0x1f5c   :  { %2458 = vtanh.f32 %v1271_v34 }
0x1f66   :  { %v2459_v6 = vpop.eup %2458 }
0x1f67   :  { %1308 = vrot.lane.b32.xlu0 %v2459_v6, %s2726_s1 }
0x1f86   :  { %v1208_v7 = vpop.xlane.xlu0 %1207 }
0x1f87   :  { %v1209_v10 = vmul.f32 0.03125, %v1208_v7 }
0x1f89   :  { %v1210_v13 = vadd.f32 1e-05, %v1209_v10 }
0x1f8a   :  { %v1114_v31 = vpop.permute.xlu0 %1113 }
0x1f8b   :  { %1116 = vst.msk [vmem:[#allocation3] sm:$0xf] %vm84_vm1, %v1114_v31  ;;  %2460 = vrsqrt.f32 %v1210_v13 }
0x1f92   :  { %v1301_v9 = vld [vmem:[#allocation3] sm:$0xf] }
0x1f93   :  { %1303 = vrot.lane.b32.xlu0 %v1301_v9, %s2736_s4 }
0x1f95   :  { %v2461_v14 = vpop.eup %2460 }
0x1f96   :  { %v1212_v16 = vmul.f32 %v2461_v14, %v1204_v56 }
0x1f98   :  { %v1213_v17 = vmul.f32 %v1212_v16, %v2931_v63 }
0x1f9a   :  { %v1214_v18 = vadd.f32 %v1213_v17, %v2934_v3 }
0x1f9c   :  { %v2145_v22 = vmul.f32 -1.442695, %v1214_v18 }
0x1f9e   :  { %2462 = vpow2.f32 %v2145_v22 }
0x1fa8   :  { %v2463_v23 = vpop.eup %2462 }
0x1fa9   :  { %v1218_v26 = vadd.f32 1.0, %v2463_v23 }
0x1fab   :  { %2464 = vrcp.f32 %v1218_v26 }
0x1fb5   :  { %v2465_v28 = vpop.eup %2464 }
0x1fd9   :  { %v1309_v33 = vpop.permute.xlu0 %1308  ;;  %v1237_v35 = vpop.xlane.xlu1 %1236 }
0x1fda   :  { %v1311_v5 = vmul.f32 %v2465_v28, %v1309_v33  ;;  %v1238_v30 = vmul.f32 0.03125, %v1237_v35 }
0x1fdc   :  { %1313 = vrot.lane.b32.xlu0 %v1311_v5, %s2736_s4  ;;  %v1239_v8 = vadd.f32 1e-05, %v1238_v30 }
0x1fde   :  { %2466 = vrsqrt.f32 %v1239_v8 }
0x1fe8   :  { %v2467_v37 = vpop.eup %2466 }
0x1fe9   :  { %v1241_v38 = vmul.f32 %v2467_v37, %v1229_v51 }
0x1feb   :  { %v1242_v39 = vmul.f32 %v1241_v38, %v2942_v20  ;;  %v1360_v38 = vld [vmem:[#allocation4 + $0x14] sm:$0xf] }
0x1fed   :  { %v1243_v41 = vadd.f32 %v1242_v39, %v2944_v21 }
0x1fef   :  { %v2146_v42 = vmul.f32 -1.442695, %v1243_v41 }
0x1ff1   :  { %2468 = vpow2.f32 %v2146_v42 }
0x1ffb   :  { %v2469_v43 = vpop.eup %2468 }
0x1ffc   :  { %v1247_v44 = vadd.f32 1.0, %v2469_v43 }
0x1ffe   :  { %2470 = vrcp.f32 %v1247_v44 }
0x2005   :  { %v1304_v46 = vpop.permute.xlu0 %1303 }
0x2008   :  { %v2471_v45 = vpop.eup %2470 }
0x2009   :  { %v1306_v47 = vmul.f32 %v2471_v45, %v1304_v46 }
0x204e   :  { %v1314_v48 = vpop.permute.xlu0 %1313 }
0x204f   :  { %v1316_v49 = vadd.f32 %v1314_v48, %v1306_v47 }
0x2051   :  { %1318 = vrot.lane.b32.xlu0 %v1316_v49, %s2735_s3 }
0x2055   :  { %1273 = vrot.lane.b32.xlu0 %v3161_v36, %s2736_s4 }
0x20c3   :  { %v1319_v50 = vpop.permute.xlu0 %1318 }
0x20c4   :  { %v1321_v12 = vsel %vm84_vm1, %v1319_v50, 0.0 }
0x20c5   :  { %1322 = vadd.xlane.f32.xlu1 %v1321_v12 }
0x20c7   :  { %v1274_v51 = vpop.permute.xlu0 %1273 }
0x20c8   :  { %v1276_v53 = vsel %vm84_vm1, %v1274_v51, 0.0 }
0x20c9   :  { %1277 = vadd.xlane.f32.xlu0 %v1276_v53 }
0x2152   :  { %v1323_v54 = vpop.xlane.xlu1 %1322 }
0x2153   :  { %v1324_v55 = vmul.f32 0.03125, %v1323_v54 }
0x2155   :  { %v1325_v56 = vsub.f32 %v1316_v49, %v1324_v55 }
0x2156   :  { %v1278_v57 = vpop.xlane.xlu0 %1277 }
0x2157   :  { %v1326_v58 = vmul.f32 %v1325_v56, %v1325_v56  ;;  %v1279_v59 = vmul.f32 0.03125, %v1278_v57 }
0x2159   :  { %v1280_v60 = vsub.f32 %v3161_v36, %v1279_v59  ;;  %1328 = vrot.lane.b32.xlu1 %v1326_v58, %s2735_s3 }
0x215b   :  { %v1281_v62 = vmul.f32 %v1280_v60, %v1280_v60 }
0x215d   :  { %1283 = vrot.lane.b32.xlu1 %v1281_v62, %s2736_s4 }
0x21cb   :  { %v1329_v24 = vpop.permute.xlu1 %1328 }
0x21cc   :  { %v1331_v29 = vsel %vm84_vm1, %v1329_v24, 0.0 }
0x21cd   :  { %1332 = vadd.xlane.f32.xlu1 %v1331_v29 }
0x21cf   :  { %v1284_v32 = vpop.permute.xlu1 %1283 }
0x21d0   :  { %v1286_v27 = vsel %vm84_vm1, %v1284_v32, 0.0 }
0x21d1   :  { %1287 = vadd.xlane.f32.xlu0 %v1286_v27 }
0x225a   :  { %v1333_v4 = vpop.xlane.xlu1 %1332 }
0x225b   :  { %v1334_v34 = vmul.f32 0.03125, %v1333_v4 }
0x225d   :  { %v1335_v6 = vadd.f32 1e-05, %v1334_v34 }
0x225e   :  { %v1288_v13 = vpop.xlane.xlu0 %1287 }
0x225f   :  { %2472 = vrsqrt.f32 %v1335_v6  ;;  %v1289_v14 = vmul.f32 0.03125, %v1288_v13 }
0x2261   :  { %v1290_v16 = vadd.f32 1e-05, %v1289_v14 }
0x2269   :  { %v2473_v7 = vpop.eup %2472 }
0x226a   :  { %v1337_v31 = vmul.f32 %v2473_v7, %v1325_v56 }
0x226c   :  { %v1338_v36 = vmul.f32 %v1337_v31, %v2966_v61 }
0x226e   :  { %v1339_v9 = vadd.f32 %v1338_v36, %v2969_v2 }
0x2270   :  { %2474 = vtanh.f32 %v1339_v9 }
0x2271   :  { %2476 = vrsqrt.f32 %v1290_v16 }
0x227a   :  { %v2475_v10 = vpop.eup %2474 }
0x227b   :  { %1342 = vrot.lane.b32.xlu0 %v2475_v10, %s2726_s1  ;;  %v2477_v17 = vpop.eup %2476 }
0x227c   :  { %v1292_v18 = vmul.f32 %v2477_v17, %v1280_v60 }
0x227e   :  { %v1293_v22 = vmul.f32 %v1292_v18, %v2976_v11 }
0x2280   :  { %v1294_v23 = vadd.f32 %v1293_v22, %v2979_v15 }
0x2282   :  { %v2147_v26 = vmul.f32 -1.442695, %v1294_v23 }
0x2284   :  { %2478 = vpow2.f32 %v2147_v26 }
0x228e   :  { %v2479_v28 = vpop.eup %2478 }
0x228f   :  { %v1298_v33 = vadd.f32 1.0, %v2479_v28 }
0x2291   :  { %2480 = vrcp.f32 %v1298_v33 }
0x229b   :  { %v2481_v5 = vpop.eup %2480 }
0x22ed   :  { %v1343_v35 = vpop.permute.xlu0 %1342 }
0x22ee   :  { %v1345_v30 = vmul.f32 %v2481_v5, %v1343_v35 }
0x22f0   :  { %1347 = vrot.lane.b32.xlu0 %v1345_v30, %s2736_s4 }
0x2362   :  { %v1348_v8 = vpop.permute.xlu0 %1347 }
0x2363   :  { %1350 = vst.msk [vmem:[#allocation2] sm:$0xf] %vm84_vm1, %v1348_v8  ;;  %1357 = vst.msk [vmem:[#allocation12 + $0x10] sm:$0xf] %vm84_vm1, %v1348_v8 }
0x236a   :  { %v1358_v37 = vld [vmem:[#allocation2] sm:$0xf] }
0x236b   :  { %2264 = vmatmul.mubr.msk.f32.vlgmr.msra.gmra.mrb[4].mxu1 %vm96_vm2, %v1358_v37 }
0x236c   :  { %2332 = vmatpush3.bf16.msra.mxu1 %v3140_v19  ;;  %2285 = vmatprep.mubr.msk.f32.mxu1 %vm2733_vm0, %v2734_v1 }
0x236d   :  { %2333 = vmatprep.subr.bf16.mxu1 %v2732_v0 }
0x2370   :  { %2335 = vmatpush3.bf16.msra.mxu1 %v3143_v25 }
0x243e   :  { %v1434_v39 = vpop.f32.mrb[4].mxu1 }
0x243f   :  { %v3215_v41 = vadd.f32 %v1434_v39, %v1360_v38  ;;  %v2265_v42 = vpop.f32.mrb[5].mxu1 }
0x2441   :  { %1489 = vrot.lane.b32.xlu1 %v3215_v41, %s2726_s1  ;;  %v1439_v47 = vsel %vm84_vm1, %v3215_v41, 0.0 }
0x2445   :  { %1461 = vrot.lane.b32.xlu1 %v3215_v41, %s2735_s3 }
0x24b3   :  { %v1490_v43 = vpop.permute.xlu1 %1489 }
0x24b4   :  { %v1492_v19 = vsel %vm84_vm1, %v1490_v43, 0.0 }
0x24b5   :  { %1493 = vadd.xlane.f32.xlu0 %v1492_v19 }
0x24b7   :  { %v1462_v1 = vpop.permute.xlu1 %1461 }
0x24b8   :  { %v1464_v0 = vsel %vm84_vm1, %v1462_v1, 0.0 }
0x24b9   :  { %1465 = vadd.xlane.f32.xlu0 %v1464_v0 }
0x2542   :  { %v1494_v25 = vpop.xlane.xlu0 %1493 }
0x2543   :  { %v1495_v44 = vmul.f32 0.03125, %v1494_v25 }
0x2545   :  { %v1496_v45 = vsub.f32 %v3215_v41, %v1495_v44 }
0x2546   :  { %v1466_v50 = vpop.xlane.xlu0 %1465 }
0x2547   :  { %v1497_v46 = vmul.f32 %v1496_v45, %v1496_v45  ;;  %v1467_v12 = vmul.f32 0.03125, %v1466_v50 }
0x2549   :  { %1499 = vrot.lane.b32.xlu1 %v1497_v46, %s2726_s1  ;;  %v1468_v51 = vsub.f32 %v3215_v41, %v1467_v12 }
0x254b   :  { %v1469_v53 = vmul.f32 %v1468_v51, %v1468_v51 }
0x256d   :  { %1440 = vadd.xlane.f32.xlu1 %v1439_v47 }
0x25bb   :  { %v1500_v48 = vpop.permute.xlu1 %1499 }
0x25bc   :  { %v1502_v49 = vsel %vm84_vm1, %v1500_v48, 0.0 }
0x25bd   :  { %1503 = vadd.xlane.f32.xlu0 %v1502_v49 }
0x25d3   :  { %1471 = vrot.lane.b32.xlu0 %v1469_v53, %s2735_s3 }
0x25d7   :  { %1352 = vrot.lane.b32.xlu0 %v1339_v9, %s2735_s3 }
0x25fa   :  { %v1441_v54 = vpop.xlane.xlu1 %1440 }
0x25fb   :  { %v1442_v55 = vmul.f32 0.03125, %v1441_v54 }
0x25fd   :  { %v1443_v56 = vsub.f32 %v3215_v41, %v1442_v55 }
0x25ff   :  { %v1444_v57 = vmul.f32 %v1443_v56, %v1443_v56 }
0x2601   :  { %v1445_v58 = vsel %vm84_vm1, %v1444_v57, 0.0 }
0x2602   :  { %1446 = vadd.xlane.f32.xlu1 %v1445_v58 }
0x264a   :  { %v1504_v59 = vpop.xlane.xlu0 %1503 }
0x264b   :  { %v1505_v60 = vmul.f32 0.03125, %v1504_v59 }
0x264d   :  { %v1506_v62 = vadd.f32 1e-05, %v1505_v60 }
0x264e   :  { %v1472_v24 = vpop.permute.xlu0 %1471 }
0x264f   :  { %2482 = vrsqrt.f32 %v1506_v62  ;;  %v1474_v29 = vsel %vm84_vm1, %v1472_v24, 0.0 }
0x2650   :  { %1475 = vadd.xlane.f32.xlu1 %v1474_v29 }
0x2652   :  { %v1353_v32 = vpop.permute.xlu0 %1352 }
0x2653   :  { %1355 = vst.msk [vmem:[#allocation3] sm:$0xf] %vm84_vm1, %v1353_v32 }
0x2659   :  { %v2483_v27 = vpop.eup %2482 }
0x265a   :  { %v1508_v4 = vmul.f32 %v2483_v27, %v1496_v45  ;;  %v1540_v7 = vld [vmem:[#allocation3] sm:$0xf] }
0x265c   :  { %v1509_v34 = vmul.f32 %v1508_v4, %v2922_v52 }
0x265e   :  { %v1510_v6 = vadd.f32 %v1509_v34, %v2914_v40 }
0x2660   :  { %2484 = vtanh.f32 %v1510_v6 }
0x2661   :  { %1542 = vrot.lane.b32.xlu1 %v1540_v7, %s2736_s4 }
0x266a   :  { %v2485_v31 = vpop.eup %2484 }
0x266b   :  { %1547 = vrot.lane.b32.xlu0 %v2485_v31, %s2726_s1 }
0x268f   :  { %v1447_v36 = vpop.xlane.xlu1 %1446 }
0x2690   :  { %v1448_v9 = vmul.f32 0.03125, %v1447_v36 }
0x2692   :  { %v1449_v10 = vadd.f32 1e-05, %v1448_v9 }
0x2694   :  { %2486 = vrsqrt.f32 %v1449_v10 }
0x269e   :  { %v2487_v13 = vpop.eup %2486 }
0x269f   :  { %v1451_v14 = vmul.f32 %v2487_v13, %v1443_v56 }
0x26a1   :  { %v1452_v16 = vmul.f32 %v1451_v14, %v2931_v63 }
0x26a3   :  { %v1453_v17 = vadd.f32 %v1452_v16, %v2934_v3 }
0x26a5   :  { %v2149_v18 = vmul.f32 -1.442695, %v1453_v17 }
0x26a7   :  { %2488 = vpow2.f32 %v2149_v18 }
0x26b1   :  { %v2489_v22 = vpop.eup %2488 }
0x26b2   :  { %v1457_v23 = vadd.f32 1.0, %v2489_v22 }
0x26b4   :  { %2490 = vrcp.f32 %v1457_v23 }
0x26be   :  { %v2491_v26 = vpop.eup %2490 }
0x26dd   :  { %v1548_v28 = vpop.permute.xlu0 %1547  ;;  %v1476_v5 = vpop.xlane.xlu1 %1475 }
0x26de   :  { %v1550_v33 = vmul.f32 %v2491_v26, %v1548_v28  ;;  %v1477_v35 = vmul.f32 0.03125, %v1476_v5  ;;  %v1599_v5 = vld [vmem:[#allocation4 + $0x18] sm:$0xf] }
0x26e0   :  { %1552 = vrot.lane.b32.xlu0 %v1550_v33, %s2736_s4  ;;  %v1478_v30 = vadd.f32 1e-05, %v1477_v35 }
0x26e1   :  { %v1543_v0 = vpop.permute.xlu1 %1542 }
0x26e2   :  { %2492 = vrsqrt.f32 %v1478_v30 }
0x26ec   :  { %v2493_v8 = vpop.eup %2492 }
0x26ed   :  { %v1480_v37 = vmul.f32 %v2493_v8, %v1468_v51 }
0x26ef   :  { %v1481_v38 = vmul.f32 %v1480_v37, %v2942_v20 }
0x26f1   :  { %v1482_v39 = vadd.f32 %v1481_v38, %v2944_v21 }
0x26f3   :  { %v2150_v42 = vmul.f32 -1.442695, %v1482_v39 }
0x26f5   :  { %2494 = vpow2.f32 %v2150_v42 }
0x26ff   :  { %v2495_v43 = vpop.eup %2494 }
0x2700   :  { %v1486_v19 = vadd.f32 1.0, %v2495_v43 }
0x2702   :  { %2496 = vrcp.f32 %v1486_v19 }
0x270c   :  { %v2497_v1 = vpop.eup %2496 }
0x270d   :  { %v1545_v25 = vmul.f32 %v2497_v1, %v1543_v0 }
0x2752   :  { %v1553_v44 = vpop.permute.xlu0 %1552 }
0x2753   :  { %v1555_v45 = vadd.f32 %v1553_v44, %v1545_v25 }
0x2755   :  { %1557 = vrot.lane.b32.xlu0 %v1555_v45, %s2735_s3 }
0x2759   :  { %1512 = vrot.lane.b32.xlu0 %v3215_v41, %s2736_s4 }
0x27c7   :  { %v1558_v46 = vpop.permute.xlu0 %1557 }
0x27c8   :  { %v1560_v47 = vsel %vm84_vm1, %v1558_v46, 0.0 }
0x27c9   :  { %1561 = vadd.xlane.f32.xlu0 %v1560_v47 }
0x27cb   :  { %v1513_v48 = vpop.permute.xlu0 %1512 }
0x27cc   :  { %v1515_v49 = vsel %vm84_vm1, %v1513_v48, 0.0 }
0x27cd   :  { %1516 = vadd.xlane.f32.xlu1 %v1515_v49 }
0x2856   :  { %v1562_v50 = vpop.xlane.xlu0 %1561 }
0x2857   :  { %v1563_v12 = vmul.f32 0.03125, %v1562_v50 }
0x2859   :  { %v1564_v51 = vsub.f32 %v1555_v45, %v1563_v12 }
0x285a   :  { %v1517_v53 = vpop.xlane.xlu1 %1516 }
0x285b   :  { %v1565_v54 = vmul.f32 %v1564_v51, %v1564_v51  ;;  %v1518_v55 = vmul.f32 0.03125, %v1517_v53 }
0x285d   :  { %v1519_v56 = vsub.f32 %v3215_v41, %v1518_v55  ;;  %1567 = vrot.lane.b32.xlu0 %v1565_v54, %s2735_s3 }
0x285f   :  { %v1520_v57 = vmul.f32 %v1519_v56, %v1519_v56 }
0x2861   :  { %1522 = vrot.lane.b32.xlu1 %v1520_v57, %s2736_s4 }
0x28cf   :  { %v1568_v58 = vpop.permute.xlu0 %1567 }
0x28d0   :  { %v1570_v59 = vsel %vm84_vm1, %v1568_v58, 0.0 }
0x28d1   :  { %1571 = vadd.xlane.f32.xlu0 %v1570_v59 }
0x28d3   :  { %v1523_v60 = vpop.permute.xlu1 %1522 }
0x28d4   :  { %v1525_v62 = vsel %vm84_vm1, %v1523_v60, 0.0 }
0x28d5   :  { %1526 = vadd.xlane.f32.xlu1 %v1525_v62 }
0x295e   :  { %v1572_v24 = vpop.xlane.xlu0 %1571 }
0x295f   :  { %v1573_v29 = vmul.f32 0.03125, %v1572_v24 }
0x2961   :  { %v1574_v32 = vadd.f32 1e-05, %v1573_v29 }
0x2962   :  { %v1527_v7 = vpop.xlane.xlu1 %1526 }
0x2963   :  { %2498 = vrsqrt.f32 %v1574_v32  ;;  %v1528_v31 = vmul.f32 0.03125, %v1527_v7 }
0x2965   :  { %v1529_v36 = vadd.f32 1e-05, %v1528_v31 }
0x296d   :  { %v2499_v27 = vpop.eup %2498 }
0x296e   :  { %v1576_v4 = vmul.f32 %v2499_v27, %v1564_v51 }
0x2970   :  { %v1577_v41 = vmul.f32 %v1576_v4, %v2966_v61 }
0x2972   :  { %v1578_v34 = vadd.f32 %v1577_v41, %v2969_v2 }
0x2974   :  { %2500 = vtanh.f32 %v1578_v34 }
0x2975   :  { %2502 = vrsqrt.f32 %v1529_v36 }
0x297e   :  { %v2501_v6 = vpop.eup %2500 }
0x297f   :  { %1581 = vrot.lane.b32.xlu0 %v2501_v6, %s2726_s1  ;;  %v2503_v9 = vpop.eup %2502 }
0x2980   :  { %v1531_v10 = vmul.f32 %v2503_v9, %v1519_v56 }
0x2982   :  { %v1532_v13 = vmul.f32 %v1531_v10, %v2976_v11 }
0x2984   :  { %v1533_v14 = vadd.f32 %v1532_v13, %v2979_v15 }
0x2986   :  { %v2151_v16 = vmul.f32 -1.442695, %v1533_v14 }
0x2988   :  { %2504 = vpow2.f32 %v2151_v16 }
0x2992   :  { %v2505_v17 = vpop.eup %2504 }
0x2993   :  { %v1537_v18 = vadd.f32 1.0, %v2505_v17 }
0x2995   :  { %2506 = vrcp.f32 %v1537_v18 }
0x299f   :  { %v2507_v22 = vpop.eup %2506 }
0x29f1   :  { %v1582_v23 = vpop.permute.xlu0 %1581 }
0x29f2   :  { %v1584_v26 = vmul.f32 %v2507_v22, %v1582_v23 }
0x29f4   :  { %1586 = vrot.lane.b32.xlu1 %v1584_v26, %s2736_s4 }
0x2a66   :  { %v1587_v28 = vpop.permute.xlu1 %1586 }
0x2a67   :  { %1589 = vst.msk [vmem:[#allocation2] sm:$0xf] %vm84_vm1, %v1587_v28  ;;  %1596 = vst.msk [vmem:[#allocation12 + $0x14] sm:$0xf] %vm84_vm1, %v1587_v28 }
0x2a6e   :  { %v1597_v33 = vld [vmem:[#allocation2] sm:$0xf] }
0x2a6f   :  { %2275 = vmatmul.mubr.msk.f32.vlgmr.msra.gmra.mrb[6].mxu0 %vm96_vm2, %v1597_v33 }
0x2b42   :  { %v1673_v35 = vpop.f32.mrb[6].mxu0 }
0x2b43   :  { %v3263_v30 = vadd.f32 %v1673_v35, %v1599_v5  ;;  %v2276_v8 = vpop.f32.mrb[7].mxu0 }
0x2b45   :  { %1700 = vrot.lane.b32.xlu1 %v3263_v30, %s2735_s3  ;;  %1728 = vrot.lane.b32.xlu0 %v3263_v30, %s2726_s1  ;;  %v1678_v25 = vsel %vm84_vm1, %v3263_v30, 0.0 }
0x2bb7   :  { %v1729_v37 = vpop.permute.xlu0 %1728  ;;  %v1701_v39 = vpop.permute.xlu1 %1700 }
0x2bb8   :  { %v1731_v38 = vsel %vm84_vm1, %v1729_v37, 0.0  ;;  %v1703_v42 = vsel %vm84_vm1, %v1701_v39, 0.0 }
0x2bb9   :  { %1732 = vadd.xlane.f32.xlu0 %v1731_v38 }
0x2bbd   :  { %1704 = vadd.xlane.f32.xlu0 %v1703_v42 }
0x2c46   :  { %v1733_v43 = vpop.xlane.xlu0 %1732 }
0x2c47   :  { %v1734_v19 = vmul.f32 0.03125, %v1733_v43 }
0x2c49   :  { %v1735_v1 = vsub.f32 %v3263_v30, %v1734_v19 }
0x2c4a   :  { %v1705_v46 = vpop.xlane.xlu0 %1704 }
0x2c4b   :  { %v1736_v0 = vmul.f32 %v1735_v1, %v1735_v1  ;;  %v1706_v47 = vmul.f32 0.03125, %v1705_v46 }
0x2c4d   :  { %1738 = vrot.lane.b32.xlu1 %v1736_v0, %s2726_s1  ;;  %v1707_v48 = vsub.f32 %v3263_v30, %v1706_v47 }
0x2c4f   :  { %v1708_v49 = vmul.f32 %v1707_v48, %v1707_v48 }
0x2c71   :  { %1679 = vadd.xlane.f32.xlu1 %v1678_v25 }
0x2cbf   :  { %v1739_v44 = vpop.permute.xlu1 %1738 }
0x2cc0   :  { %v1741_v45 = vsel %vm84_vm1, %v1739_v44, 0.0 }
0x2cc1   :  { %1742 = vadd.xlane.f32.xlu0 %v1741_v45 }
0x2cd7   :  { %1710 = vrot.lane.b32.xlu0 %v1708_v49, %s2735_s3 }
0x2cfe   :  { %v1680_v50 = vpop.xlane.xlu1 %1679 }
0x2cff   :  { %v1681_v12 = vmul.f32 0.03125, %v1680_v50 }
0x2d01   :  { %v1682_v51 = vsub.f32 %v3263_v30, %v1681_v12 }
0x2d03   :  { %v1683_v53 = vmul.f32 %v1682_v51, %v1682_v51 }
0x2d05   :  { %v1684_v54 = vsel %vm84_vm1, %v1683_v53, 0.0 }
0x2d06   :  { %1685 = vadd.xlane.f32.xlu1 %v1684_v54 }
0x2d17   :  { %1591 = vrot.lane.b32.xlu1 %v1578_v34, %s2735_s3 }
0x2d4e   :  { %v1743_v55 = vpop.xlane.xlu0 %1742 }
0x2d4f   :  { %v1744_v56 = vmul.f32 0.03125, %v1743_v55 }
0x2d51   :  { %v1745_v57 = vadd.f32 1e-05, %v1744_v56 }
0x2d52   :  { %v1711_v58 = vpop.permute.xlu0 %1710 }
0x2d53   :  { %2508 = vrsqrt.f32 %v1745_v57  ;;  %v1713_v59 = vsel %vm84_vm1, %v1711_v58, 0.0 }
0x2d54   :  { %1714 = vadd.xlane.f32.xlu0 %v1713_v59 }
0x2d5d   :  { %v2509_v60 = vpop.eup %2508 }
0x2d5e   :  { %v1747_v62 = vmul.f32 %v2509_v60, %v1735_v1 }
0x2d60   :  { %v1748_v24 = vmul.f32 %v1747_v62, %v2922_v52 }
0x2d62   :  { %v1749_v29 = vadd.f32 %v1748_v24, %v2914_v40 }
0x2d64   :  { %2510 = vtanh.f32 %v1749_v29 }
0x2d6e   :  { %v2511_v32 = vpop.eup %2510 }
0x2d6f   :  { %1786 = vrot.lane.b32.xlu1 %v2511_v32, %s2726_s1 }
0x2d93   :  { %v1686_v27 = vpop.xlane.xlu1 %1685 }
0x2d94   :  { %v1687_v34 = vmul.f32 0.03125, %v1686_v27 }
0x2d96   :  { %v1688_v6 = vadd.f32 1e-05, %v1687_v34 }
0x2d97   :  { %v1592_v4 = vpop.permute.xlu1 %1591 }
0x2d98   :  { %1594 = vst.msk [vmem:[#allocation3] sm:$0xf] %vm84_vm1, %v1592_v4  ;;  %2512 = vrsqrt.f32 %v1688_v6 }
0x2d9f   :  { %v1779_v41 = vld [vmem:[#allocation3] sm:$0xf] }
0x2da0   :  { %1781 = vrot.lane.b32.xlu1 %v1779_v41, %s2736_s4 }
0x2da2   :  { %v2513_v7 = vpop.eup %2512 }
0x2da3   :  { %v1690_v31 = vmul.f32 %v2513_v7, %v1682_v51 }
0x2da5   :  { %v1691_v36 = vmul.f32 %v1690_v31, %v2931_v63 }
0x2da7   :  { %v1692_v9 = vadd.f32 %v1691_v36, %v2934_v3 }
0x2da9   :  { %v2153_v10 = vmul.f32 -1.442695, %v1692_v9 }
0x2dab   :  { %2514 = vpow2.f32 %v2153_v10 }
0x2db5   :  { %v2515_v13 = vpop.eup %2514 }
0x2db6   :  { %v1696_v14 = vadd.f32 1.0, %v2515_v13 }
0x2db8   :  { %2516 = vrcp.f32 %v1696_v14 }
0x2dc2   :  { %v2517_v16 = vpop.eup %2516 }
0x2de1   :  { %v1787_v17 = vpop.permute.xlu1 %1786  ;;  %v1715_v22 = vpop.xlane.xlu0 %1714 }
0x2de2   :  { %v1789_v18 = vmul.f32 %v2517_v16, %v1787_v17  ;;  %v1716_v23 = vmul.f32 0.03125, %v1715_v22  ;;  %v1838_v22 = vld [vmem:[#allocation4 + $0x1c] sm:$0xf] }
0x2de4   :  { %1791 = vrot.lane.b32.xlu1 %v1789_v18, %s2736_s4  ;;  %v1717_v26 = vadd.f32 1e-05, %v1716_v23 }
0x2de6   :  { %2518 = vrsqrt.f32 %v1717_v26 }
0x2df0   :  { %v2519_v28 = vpop.eup %2518 }
0x2df1   :  { %v1719_v33 = vmul.f32 %v2519_v28, %v1707_v48 }
0x2df3   :  { %v1720_v5 = vmul.f32 %v1719_v33, %v2942_v20 }
0x2df5   :  { %v1721_v35 = vadd.f32 %v1720_v5, %v2944_v21 }
0x2df7   :  { %v2154_v8 = vmul.f32 -1.442695, %v1721_v35 }
0x2df9   :  { %2520 = vpow2.f32 %v2154_v8 }
0x2e03   :  { %v2521_v37 = vpop.eup %2520 }
0x2e04   :  { %v1725_v38 = vadd.f32 1.0, %v2521_v37 }
0x2e06   :  { %2522 = vrcp.f32 %v1725_v38 }
0x2e10   :  { %v2523_v42 = vpop.eup %2522 }
0x2e12   :  { %v1782_v39 = vpop.permute.xlu1 %1781 }
0x2e13   :  { %v1784_v43 = vmul.f32 %v2523_v42, %v1782_v39 }
0x2e56   :  { %v1792_v19 = vpop.permute.xlu1 %1791 }
0x2e57   :  { %v1794_v1 = vadd.f32 %v1792_v19, %v1784_v43 }
0x2e59   :  { %1796 = vrot.lane.b32.xlu1 %v1794_v1, %s2735_s3 }
0x2e5d   :  { %1751 = vrot.lane.b32.xlu1 %v3263_v30, %s2736_s4 }
0x2ecb   :  { %v1797_v0 = vpop.permute.xlu1 %1796 }
0x2ecc   :  { %v1799_v25 = vsel %vm84_vm1, %v1797_v0, 0.0 }
0x2ecd   :  { %1800 = vadd.xlane.f32.xlu1 %v1799_v25 }
0x2ecf   :  { %v1752_v44 = vpop.permute.xlu1 %1751 }
0x2ed0   :  { %v1754_v45 = vsel %vm84_vm1, %v1752_v44, 0.0 }
0x2ed1   :  { %1755 = vadd.xlane.f32.xlu0 %v1754_v45 }
0x2f5a   :  { %v1801_v46 = vpop.xlane.xlu1 %1800 }
0x2f5b   :  { %v1802_v47 = vmul.f32 0.03125, %v1801_v46 }
0x2f5d   :  { %v1803_v48 = vsub.f32 %v1794_v1, %v1802_v47 }
0x2f5e   :  { %v1756_v49 = vpop.xlane.xlu0 %1755 }
0x2f5f   :  { %v1804_v50 = vmul.f32 %v1803_v48, %v1803_v48  ;;  %v1757_v12 = vmul.f32 0.03125, %v1756_v49 }
0x2f61   :  { %v1758_v51 = vsub.f32 %v3263_v30, %v1757_v12  ;;  %1806 = vrot.lane.b32.xlu0 %v1804_v50, %s2735_s3 }
0x2f63   :  { %v1759_v53 = vmul.f32 %v1758_v51, %v1758_v51 }
0x2f65   :  { %1761 = vrot.lane.b32.xlu0 %v1759_v53, %s2736_s4 }
0x2fd3   :  { %v1807_v54 = vpop.permute.xlu0 %1806 }
0x2fd4   :  { %v1809_v55 = vsel %vm84_vm1, %v1807_v54, 0.0 }
0x2fd5   :  { %1810 = vadd.xlane.f32.xlu1 %v1809_v55 }
0x2fd7   :  { %v1762_v56 = vpop.permute.xlu0 %1761 }
0x2fd8   :  { %v1764_v57 = vsel %vm84_vm1, %v1762_v56, 0.0 }
0x2fd9   :  { %1765 = vadd.xlane.f32.xlu0 %v1764_v57 }
0x3062   :  { %v1811_v58 = vpop.xlane.xlu1 %1810 }
0x3063   :  { %v1812_v59 = vmul.f32 0.03125, %v1811_v58 }
0x3065   :  { %v1813_v60 = vadd.f32 1e-05, %v1812_v59 }
0x3066   :  { %v1766_v27 = vpop.xlane.xlu0 %1765 }
0x3067   :  { %2524 = vrsqrt.f32 %v1813_v60  ;;  %v1767_v4 = vmul.f32 0.03125, %v1766_v27 }
0x3069   :  { %v1768_v41 = vadd.f32 1e-05, %v1767_v4 }
0x3071   :  { %v2525_v62 = vpop.eup %2524 }
0x3072   :  { %v1815_v24 = vmul.f32 %v2525_v62, %v1803_v48 }
0x3074   :  { %v1816_v30 = vmul.f32 %v1815_v24, %v2966_v61 }
0x3076   :  { %v1817_v29 = vadd.f32 %v1816_v30, %v2969_v2 }
0x3078   :  { %2526 = vtanh.f32 %v1817_v29 }
0x3079   :  { %2528 = vrsqrt.f32 %v1768_v41 }
0x3082   :  { %v2527_v32 = vpop.eup %2526 }
0x3083   :  { %1820 = vrot.lane.b32.xlu1 %v2527_v32, %s2726_s1  ;;  %v2529_v34 = vpop.eup %2528 }
0x3084   :  { %v1770_v6 = vmul.f32 %v2529_v34, %v1758_v51 }
0x3086   :  { %v1771_v7 = vmul.f32 %v1770_v6, %v2976_v11 }
0x3088   :  { %v1772_v31 = vadd.f32 %v1771_v7, %v2979_v15 }
0x308a   :  { %v2155_v36 = vmul.f32 -1.442695, %v1772_v31 }
0x308c   :  { %2530 = vpow2.f32 %v2155_v36 }
0x3096   :  { %v2531_v9 = vpop.eup %2530 }
0x3097   :  { %v1776_v10 = vadd.f32 1.0, %v2531_v9 }
0x3099   :  { %2532 = vrcp.f32 %v1776_v10 }
0x30a3   :  { %v2533_v13 = vpop.eup %2532 }
0x30f5   :  { %v1821_v14 = vpop.permute.xlu1 %1820 }
0x30f6   :  { %v1823_v16 = vmul.f32 %v2533_v13, %v1821_v14 }
0x30f8   :  { %1825 = vrot.lane.b32.xlu1 %v1823_v16, %s2736_s4 }
0x316a   :  { %v1826_v17 = vpop.permute.xlu1 %1825 }
0x316b   :  { %1828 = vst.msk [vmem:[#allocation2] sm:$0xf] %vm84_vm1, %v1826_v17  ;;  %1835 = vst.msk [vmem:[#allocation12 + $0x18] sm:$0xf] %vm84_vm1, %v1826_v17 }
0x3172   :  { %v1836_v18 = vld [vmem:[#allocation2] sm:$0xf] }
0x3173   :  { %2286 = vmatmul.mubr.msk.f32.vlgmr.msra.gmra.mrb[6].mxu1 %vm96_vm2, %v1836_v18 }
0x3246   :  { %v1912_v23 = vpop.f32.mrb[6].mxu1 }
0x3247   :  { %v3311_v26 = vadd.f32 %v1912_v23, %v1838_v22  ;;  %v2287_v28 = vpop.f32.mrb[7].mxu1 }
0x3249   :  { %1939 = vrot.lane.b32.xlu0 %v3311_v26, %s2735_s3  ;;  %1967 = vrot.lane.b32.xlu1 %v3311_v26, %s2726_s1  ;;  %v1917_v43 = vsel %vm84_vm1, %v3311_v26, 0.0 }
0x32bb   :  { %v1968_v33 = vpop.permute.xlu1 %1967  ;;  %v1940_v35 = vpop.permute.xlu0 %1939 }
0x32bc   :  { %v1970_v5 = vsel %vm84_vm1, %v1968_v33, 0.0  ;;  %v1942_v8 = vsel %vm84_vm1, %v1940_v35, 0.0 }
0x32bd   :  { %1971 = vadd.xlane.f32.xlu1 %v1970_v5 }
0x32c1   :  { %1943 = vadd.xlane.f32.xlu1 %v1942_v8 }
0x334a   :  { %v1972_v37 = vpop.xlane.xlu1 %1971 }
0x334b   :  { %v1973_v38 = vmul.f32 0.03125, %v1972_v37 }
0x334d   :  { %v1974_v39 = vsub.f32 %v3311_v26, %v1973_v38 }
0x334e   :  { %v1944_v48 = vpop.xlane.xlu1 %1943 }
0x334f   :  { %v1975_v42 = vmul.f32 %v1974_v39, %v1974_v39  ;;  %v1945_v49 = vmul.f32 0.03125, %v1944_v48 }
0x3351   :  { %1977 = vrot.lane.b32.xlu0 %v1975_v42, %s2726_s1  ;;  %v1946_v50 = vsub.f32 %v3311_v26, %v1945_v49 }
0x3353   :  { %v1947_v12 = vmul.f32 %v1946_v50, %v1946_v50 }
0x3355   :  { %1830 = vrot.lane.b32.xlu0 %v1817_v29, %s2735_s3 }
0x3374   :  { %1918 = vadd.xlane.f32.xlu0 %v1917_v43 }
0x33c3   :  { %v1978_v19 = vpop.permute.xlu0 %1977 }
0x33c4   :  { %v1980_v1 = vsel %vm84_vm1, %v1978_v19, 0.0 }
0x33c5   :  { %1981 = vadd.xlane.f32.xlu0 %v1980_v1 }
0x33c7   :  { %v1831_v0 = vpop.permute.xlu0 %1830 }
0x33c8   :  { %1833 = vst.msk [vmem:[#allocation3] sm:$0xf] %vm84_vm1, %v1831_v0 }
0x33cf   :  { %v2018_v62 = vld [vmem:[#allocation3] sm:$0xf] }
0x33db   :  { %1990 = vrot.lane.b32.xlu0 %v3311_v26, %s2736_s4 }
0x3401   :  { %v1919_v25 = vpop.xlane.xlu0 %1918 }
0x3402   :  { %v1920_v44 = vmul.f32 0.03125, %v1919_v25 }
0x3404   :  { %v1921_v45 = vsub.f32 %v3311_v26, %v1920_v44 }
0x3406   :  { %v1922_v46 = vmul.f32 %v1921_v45, %v1921_v45 }
0x3408   :  { %v1923_v47 = vsel %vm84_vm1, %v1922_v46, 0.0 }
0x3409   :  { %1924 = vadd.xlane.f32.xlu1 %v1923_v47 }
0x341a   :  { %1949 = vrot.lane.b32.xlu1 %v1947_v12, %s2735_s3 }
0x3452   :  { %v1982_v51 = vpop.xlane.xlu0 %1981 }
0x3453   :  { %v1983_v53 = vmul.f32 0.03125, %v1982_v51 }
0x3455   :  { %v1984_v54 = vadd.f32 1e-05, %v1983_v53 }
0x3456   :  { %v1991_v55 = vpop.permute.xlu0 %1990 }
0x3457   :  { %2534 = vrsqrt.f32 %v1984_v54  ;;  %v1993_v56 = vsel %vm84_vm1, %v1991_v55, 0.0 }
0x3458   :  { %1994 = vadd.xlane.f32.xlu0 %v1993_v56 }
0x3461   :  { %v2535_v57 = vpop.eup %2534 }
0x3462   :  { %v1986_v58 = vmul.f32 %v2535_v57, %v1974_v39 }
0x3464   :  { %v1987_v59 = vmul.f32 %v1986_v58, %v2922_v52 }
0x3466   :  { %v1988_v60 = vadd.f32 %v1987_v59, %v2914_v40 }
0x3468   :  { %2536 = vtanh.f32 %v1988_v60 }
0x346e   :  { %2020 = vrot.lane.b32.xlu0 %v2018_v62, %s2736_s4 }
0x3472   :  { %v2537_v24 = vpop.eup %2536 }
0x3473   :  { %2025 = vrot.lane.b32.xlu0 %v2537_v24, %s2726_s1 }
0x3496   :  { %v1925_v30 = vpop.xlane.xlu1 %1924 }
0x3497   :  { %v1926_v27 = vmul.f32 0.03125, %v1925_v30 }
0x3499   :  { %v1927_v4 = vadd.f32 1e-05, %v1926_v27 }
0x349a   :  { %v1950_v29 = vpop.permute.xlu1 %1949 }
0x349b   :  { %v1952_v32 = vsel %vm84_vm1, %v1950_v29, 0.0  ;;  %2538 = vrsqrt.f32 %v1927_v4 }
0x349c   :  { %1953 = vadd.xlane.f32.xlu1 %v1952_v32 }
0x34a5   :  { %v2539_v41 = vpop.eup %2538 }
0x34a6   :  { %v1929_v34 = vmul.f32 %v2539_v41, %v1921_v45 }
0x34a8   :  { %v1930_v52 = vmul.f32 %v1929_v34, %v2931_v63 }
0x34aa   :  { %v1931_v40 = vadd.f32 %v1930_v52, %v2934_v3 }
0x34ac   :  { %v2157_v6 = vmul.f32 -1.442695, %v1931_v40 }
0x34ae   :  { %2540 = vpow2.f32 %v2157_v6 }
0x34b8   :  { %v2541_v7 = vpop.eup %2540 }
0x34b9   :  { %v1935_v31 = vadd.f32 1.0, %v2541_v7 }
0x34bb   :  { %2542 = vrcp.f32 %v1935_v31 }
0x34c5   :  { %v2543_v16 = vpop.eup %2542 }
0x34e5   :  { %v1995_v36 = vpop.xlane.xlu0 %1994 }
0x34e6   :  { %v1996_v9 = vmul.f32 0.03125, %v1995_v36 }
0x34e8   :  { %v1997_v10 = vsub.f32 %v3311_v26, %v1996_v9 }
0x34e9   :  { %v2021_v13 = vpop.permute.xlu0 %2020 }
0x34ea   :  { %v1998_v14 = vmul.f32 %v1997_v10, %v1997_v10 }
0x34ec   :  { %2000 = vrot.lane.b32.xlu1 %v1998_v14, %s2736_s4 }
0x34ed   :  { %v2026_v17 = vpop.permute.xlu0 %2025 }
0x34ee   :  { %v2028_v18 = vmul.f32 %v2543_v16, %v2026_v17 }
0x34f0   :  { %2030 = vrot.lane.b32.xlu0 %v2028_v18, %s2736_s4 }
0x3529   :  { %v1954_v63 = vpop.xlane.xlu1 %1953 }
0x352a   :  { %v1955_v3 = vmul.f32 0.03125, %v1954_v63 }
0x352c   :  { %v1956_v22 = vadd.f32 1e-05, %v1955_v3 }
0x352e   :  { %2544 = vrsqrt.f32 %v1956_v22 }
0x3538   :  { %v2545_v23 = vpop.eup %2544 }
0x3539   :  { %v1958_v28 = vmul.f32 %v2545_v23, %v1946_v50 }
0x353b   :  { %v1959_v33 = vmul.f32 %v1958_v28, %v2942_v20 }
0x353d   :  { %v1960_v5 = vadd.f32 %v1959_v33, %v2944_v21 }
0x353f   :  { %v2158_v26 = vmul.f32 -1.442695, %v1960_v5 }
0x3541   :  { %2546 = vpow2.f32 %v2158_v26 }
0x354b   :  { %v2547_v35 = vpop.eup %2546 }
0x354c   :  { %v1964_v8 = vadd.f32 1.0, %v2547_v35 }
0x354e   :  { %2548 = vrcp.f32 %v1964_v8 }
0x3558   :  { %v2549_v39 = vpop.eup %2548 }
0x3559   :  { %v2023_v43 = vmul.f32 %v2549_v39, %v2021_v13 }
0x355e   :  { %v2001_v37 = vpop.permute.xlu1 %2000 }
0x355f   :  { %v2003_v38 = vsel %vm84_vm1, %v2001_v37, 0.0 }
0x3560   :  { %2004 = vadd.xlane.f32.xlu1 %v2003_v38 }
0x3562   :  { %v2031_v42 = vpop.permute.xlu0 %2030 }
0x3563   :  { %v2033_v19 = vadd.f32 %v2031_v42, %v2023_v43 }
0x3571   :  { %2035 = vrot.lane.b32.xlu1 %v2033_v19, %s2735_s3 }
0x35ed   :  { %v2005_v1 = vpop.xlane.xlu1 %2004 }
0x35ee   :  { %v2006_v56 = vmul.f32 0.03125, %v2005_v1 }
0x35f0   :  { %v2007_v57 = vadd.f32 1e-05, %v2006_v56 }
0x35f1   :  { %v2036_v0 = vpop.permute.xlu1 %2035 }
0x35f2   :  { %v2038_v20 = vsel %vm84_vm1, %v2036_v0, 0.0 }
0x35f3   :  { %2039 = vadd.xlane.f32.xlu0 %v2038_v20 }
0x3680   :  { %v2040_v21 = vpop.xlane.xlu0 %2039 }
0x3681   :  { %v2041_v25 = vmul.f32 0.03125, %v2040_v21 }
0x3683   :  { %v2042_v44 = vsub.f32 %v2033_v19, %v2041_v25 }
0x3685   :  { %v2043_v45 = vmul.f32 %v2042_v44, %v2042_v44 }
0x3687   :  { %2045 = vrot.lane.b32.xlu1 %v2043_v45, %s2735_s3 }
0x36f9   :  { %v2046_v46 = vpop.permute.xlu1 %2045 }
0x36fa   :  { %v2048_v47 = vsel %vm84_vm1, %v2046_v46, 0.0 }
0x36fb   :  { %2049 = vadd.xlane.f32.xlu1 %v2048_v47 }
0x3788   :  { %v2050_v48 = vpop.xlane.xlu1 %2049 }
0x3789   :  { %v2051_v49 = vmul.f32 0.03125, %v2050_v48 }
0x378b   :  { %v2052_v50 = vadd.f32 1e-05, %v2051_v49 }
0x378d   :  { %2550 = vrsqrt.f32 %v2052_v50 }
0x3797   :  { %v2551_v12 = vpop.eup %2550 }
0x3798   :  { %v2054_v51 = vmul.f32 %v2551_v12, %v2042_v44 }
0x379a   :  { %v2055_v53 = vmul.f32 %v2054_v51, %v2966_v61 }
0x379c   :  { %v2056_v54 = vadd.f32 %v2055_v53, %v2969_v2 }
0x379e   :  { %2069 = vrot.lane.b32.xlu1 %v2056_v54, %s2735_s3  ;;  %2552 = vtanh.f32 %v2056_v54 }
0x379f   :  { %2554 = vrsqrt.f32 %v2007_v57 }
0x37a8   :  { %v2553_v55 = vpop.eup %2552 }
0x37a9   :  { %2059 = vrot.lane.b32.xlu0 %v2553_v55, %s2726_s1  ;;  %v2555_v58 = vpop.eup %2554 }
0x37aa   :  { %v2009_v59 = vmul.f32 %v2555_v58, %v1997_v10 }
0x37ac   :  { %v2010_v60 = vmul.f32 %v2009_v59, %v2976_v11 }
0x37ae   :  { %v2011_v62 = vadd.f32 %v2010_v60, %v2979_v15 }
0x37b0   :  { %v2159_v24 = vmul.f32 -1.442695, %v2011_v62 }
0x37b2   :  { %2556 = vpow2.f32 %v2159_v24 }
0x37bc   :  { %v2557_v61 = vpop.eup %2556 }
0x37bd   :  { %v2015_v30 = vadd.f32 1.0, %v2557_v61 }
0x37bf   :  { %2558 = vrcp.f32 %v2015_v30 }
0x37c9   :  { %v2559_v32 = vpop.eup %2558 }
0x3810   :  { %v2070_v2 = vpop.permute.xlu1 %2069 }
0x3811   :  { %2072 = vst.msk [vmem:[#allocation3] sm:$0xf] %vm84_vm1, %v2070_v2 }
0x3818   :  { %v2080_v29 = vld [vmem:[#allocation3] sm:$0xf] }
0x3819   :  { %2081 = vst.msk [vmem:[#allocation15] sm:$0xf] %vm84_vm1, %v2080_v29 }
0x381b   :  { %v2060_v27 = vpop.permute.xlu0 %2059 }
0x381c   :  { %v2062_v4 = vmul.f32 %v2559_v32, %v2060_v27 }
0x381e   :  { %2064 = vrot.lane.b32.xlu0 %v2062_v4, %s2736_s4 }
0x3890   :  { %v2065_v11 = vpop.permute.xlu0 %2064 }
0x3891   :  { %2067 = vst.msk [vmem:[#allocation2] sm:$0xf] %vm84_vm1, %v2065_v11  ;;  %2074 = vst.msk [vmem:[#allocation12 + $0x1c] sm:$0xf] %vm84_vm1, %v2065_v11 }
0x3892   :  { %2659 = shalt.err (!%p2656_p8)
}
0x3893   :  { %s2660_s0 = scalar_lea.hbm %s3407_s6, 512 }
0x3894   :  { %p2661_p9 = scmp.ne.s32.totalorder %s3407_s6, %s2660_s0  ;;  %p2664_p10 = scmp.lt.u32.totalorder %s2660_s0, %s3407_s6 }
0x3896   :  { %p2666_p11 = pnand %p2664_p10, %p2661_p9 }
0x3898   :  { %2669 = shalt.err (!%p2666_p11)
}
0x3899   :  { %2093 = dma.vmem_to_hbm [thread:$0]  %s2088_s16, 512, %s3407_s6, [#allocation6], %s2726_s1, %s2726_s1, %s2727_s27   ;;  %v2078_v15 = vld [vmem:[#allocation2] sm:$0xf] }
0x389a   :  { %s2738_s25 = smov [#allocation13]   ;;  %s2739_s28 = smov [#allocation15]   ;;  %2079 = vst.msk [vmem:[#allocation13] sm:$0xf] %vm84_vm1, %v2078_v15 }
0x389b   :  { %s2100_s26 = sshll.u32 %s2738_s25, 4  ;;  %s2110_s29 = sshll.u32 %s2739_s28, 4  ;;  %s2101_s26 = int_to_ptr.vmem [resolvable:$true] %s2100_s26  ;;  %s2111_s29 = int_to_ptr.vmem [resolvable:$true] %s2110_s29 }
0x389c   :  { %s2670_s2 = scalar_lea.vmem %s2101_s26, 64  ;;  %p2675_p13 = scmp.lt.s32.totalorder %s2101_s26, %s2101_s26 }
0x389d   :  { %p2671_p12 = scmp.ne.s32.totalorder %s2101_s26, %s2670_s2  ;;  %p2676_p0 = scmp.lt.s32.totalorder %s2670_s2, %s2670_s2 }
0x389f   :  { %p2677_p1 = por %p2676_p0, %p2675_p13 }
0x38a1   :  { %p2678_p2 = pnand %p2677_p1, %p2671_p12 }
0x38a3   :  { %2681 = shalt.err (!%p2678_p2)
}
0x38a4   :  { %s2682_s6 = scalar_lea.hbm %s3408_s7, 64 }
0x38a5   :  { %p2683_p3 = scmp.ne.s32.totalorder %s3408_s7, %s2682_s6  ;;  %p2686_p4 = scmp.lt.u32.totalorder %s2682_s6, %s3408_s7 }
0x38a7   :  { %p2688_p5 = pnand %p2686_p4, %p2683_p3 }
0x38a9   :  { %2691 = shalt.err (!%p2688_p5)
}
0x38aa   :  { %2103 = dma.vmem_to_hbm [thread:$0]  %s2101_s26, 64, %s3408_s7, [#allocation14]  }
0x38ab   :  { %s2692_s14 = scalar_lea.vmem %s2111_s29, 64  ;;  %p2697_p7 = scmp.lt.s32.totalorder %s2111_s29, %s2111_s29 }
0x38ac   :  { %p2693_p6 = scmp.ne.s32.totalorder %s2111_s29, %s2692_s14  ;;  %p2698_p8 = scmp.lt.s32.totalorder %s2692_s14, %s2692_s14 }
0x38ae   :  { %p2699_p9 = por %p2698_p8, %p2697_p7 }
0x38b0   :  { %p2700_p10 = pnand %p2699_p9, %p2693_p6 }
0x38b2   :  { %2703 = shalt.err (!%p2700_p10)
}
0x38b3   :  { %s2704_s15 = scalar_lea.hbm %s3409_s8, 64 }
0x38b4   :  { %p2705_p11 = scmp.ne.s32.totalorder %s3409_s8, %s2704_s15  ;;  %p2708_p12 = scmp.lt.u32.totalorder %s2704_s15, %s3409_s8 }
0x38b6   :  { %p2710_p13 = pnand %p2708_p12, %p2705_p11 }
0x38b8   :  { %2713 = shalt.err (!%p2710_p13)
}
0x38b9   :  { %2113 = dma.vmem_to_hbm [thread:$0]  %s2111_s29, 64, %s3409_s8, [#allocation14]  }
0x38ba   :  { %2720 = dma.done.wait [#allocation6], 512  }
0x38bb   :  { %2721 = vsyncadd [#allocation6], 4294966784 }
0x38bc   :  { %2722 = dma.done.wait [#allocation14], 128  }
0x38bd   :  { %2723 = vsyncadd [#allocation14], 4294967168 }
0x38be   :  { %2123 = vsyncpa [#allocation5], 1 }
0x38bf   :  { %2124 = vsyncpa [#allocation8], 1 }
0x38c0   :  { %2125 = vsyncpa [#allocation11], 1 }
0x38c1   :  { %2126 = vsyncpa [#allocation6], 1 }
0x38c2   :  { %2127 = vsyncpa [#allocation14], 1 }

// kernel: tpu_custom_call.1
= control target key start
LH: loop header
LB: loop body
LE: loop exit
PB: predicated region body
PF: predicated region fallthrough
CT: control target
= control target key end

     0   :  { %14 = vsyncpa [#allocation5], 0  ;;  %s3401_s0 = inlined_call_operand.hbm [shape: f32[8,4,128], index: 0, kind: input, shape index: {}]   ;;  %s3402_s1 = inlined_call_operand.hbm [shape: f32[4,32], index: 1, kind: input, shape index: {}]   ;;  %s3403_s2 = inlined_call_operand.hbm [shape: f32[4,32], index: 2, kind: input, shape index: {}]   ;;  %s3404_s3 = inlined_call_operand.hbm [shape: f32[32,128], index: 3, kind: input, shape index: {}]   ;;  %s3405_s4 = inlined_call_operand.vmem [shape: f32[5,32], index: 4, kind: input, shape index: {}]   ;;  %s3406_s5 = inlined_call_operand.vmem [shape: f32[5,32], index: 5, kind: input, shape index: {}]   ;;  %s3407_s6 = inlined_call_operand.hbm [shape: f32[8,4,32], index: 6, kind: output, shape index: {0}]   ;;  %s3408_s7 = inlined_call_operand.hbm [shape: f32[4,32], index: 7, kind: output, shape index: {1}]   ;;  %s3409_s8 = inlined_call_operand.hbm [shape: f32[4,32], index: 8, kind: output, shape index: {2}]  }
   0x1   :  { %15 = vsyncpa [#allocation8], 0 }
   0x2   :  { %16 = vsyncpa [#allocation11], 0 }
   0x3   :  { %17 = vsyncpa [#allocation6], 0 }
   0x4   :  { %18 = vsyncpa [#allocation14], 0  ;;  %s2724_s27 = smov [#allocation7]   ;;  %s2725_s29 = smov [#allocation4]  }
   0x5   :  { %s37_s28 = sshll.u32 %s2724_s27, 4  ;;  %s24_s30 = sshll.u32 %s2725_s29, 4  ;;  %s38_s28 = int_to_ptr.vmem [resolvable:$true] %s37_s28  ;;  %s2785_s30 = int_to_ptr.vmem [resolvable:$true] %s24_s30 }
   0x6   :  { %s2560_s11 = scalar_lea.hbm %s3402_s1, 64 }
   0x7   :  { %p2561_p0 = scmp.ne.s32.totalorder %s3402_s1, %s2560_s11  ;;  %p2564_p1 = scmp.lt.u32.totalorder %s2560_s11, %s3402_s1 }
   0x9   :  { %p2566_p2 = pnand %p2564_p1, %p2561_p0 }
   0xb   :  { %2569 = shalt.err (!%p2566_p2)
}
   0xc   :  { %s2570_s16 = scalar_lea.vmem %s38_s28, 64  ;;  %p2575_p4 = scmp.lt.s32.totalorder %s38_s28, %s38_s28 }
   0xd   :  { %p2571_p3 = scmp.ne.s32.totalorder %s38_s28, %s2570_s16  ;;  %p2576_p5 = scmp.lt.s32.totalorder %s2570_s16, %s2570_s16 }
   0xf   :  { %p2577_p6 = por %p2576_p5, %p2575_p4 }
  0x11   :  { %p2578_p7 = pnand %p2577_p6, %p2571_p3 }
  0x13   :  { %2581 = shalt.err (!%p2578_p7)
}
  0x14   :  { %40 = dma.hbm_to_vmem [thread:$0]  %s3402_s1, 64, %s38_s28, [#allocation8]  }
  0x15   :  { %s2582_s21 = scalar_lea.hbm %s3401_s0, 512 }
  0x16   :  { %p2583_p8 = scmp.ne.s32.totalorder %s3401_s0, %s2582_s21  ;;  %p2586_p9 = scmp.lt.u32.totalorder %s2582_s21, %s3401_s0 }
  0x18   :  { %p2588_p10 = pnand %p2586_p9, %p2583_p8 }
  0x1a   :  { %2591 = shalt.err (!%p2588_p10)
}
  0x1b   :  { %s2592_s26 = scalar_lea.vmem %s2785_s30, 512  ;;  %p2597_p12 = scmp.lt.s32.totalorder %s2785_s30, %s2785_s30 }
  0x1c   :  { %p2593_p11 = scmp.ne.s32.totalorder %s2785_s30, %s2592_s26  ;;  %p2598_p13 = scmp.lt.s32.totalorder %s2592_s26, %s2592_s26 }
  0x1e   :  { %p2599_p0 = por %p2598_p13, %p2597_p12 }
  0x20   :  { %p2600_p1 = pnand %p2599_p0, %p2593_p11 }
  0x22   :  { %2603 = shalt.err (!%p2600_p1)
}
  0x23   :  { %s2726_s1 = smov 64   ;;  %s2727_s27 = smov 4  }
  0x24   :  { %30 = dma.hbm_to_vmem [thread:$0]  %s3401_s0, 512, %s2785_s30, [#allocation5], %s2726_s1, %s2726_s1, %s2727_s27  }
  0x25   :  { %s2728_s9 = smov [#allocation9]   ;;  %s2729_s11 = smov [#allocation10]  }
  0x26   :  { %s47_s10 = sshll.u32 %s2728_s9, 4  ;;  %s56_s12 = sshll.u32 %s2729_s11, 4  ;;  %s48_s10 = int_to_ptr.vmem [resolvable:$true] %s47_s10  ;;  %s2819_s12 = int_to_ptr.vmem [resolvable:$true] %s56_s12 }
  0x27   :  { %s2604_s15 = scalar_lea.hbm %s3403_s2, 64 }
  0x28   :  { %p2605_p2 = scmp.ne.s32.totalorder %s3403_s2, %s2604_s15  ;;  %p2608_p3 = scmp.lt.u32.totalorder %s2604_s15, %s3403_s2 }
  0x2a   :  { %p2610_p4 = pnand %p2608_p3, %p2605_p2 }
  0x2c   :  { %2613 = shalt.err (!%p2610_p4)
}
  0x2d   :  { %s2614_s0 = scalar_lea.vmem %s48_s10, 64  ;;  %p2619_p6 = scmp.lt.s32.totalorder %s48_s10, %s48_s10 }
  0x2e   :  { %p2615_p5 = scmp.ne.s32.totalorder %s48_s10, %s2614_s0  ;;  %p2620_p7 = scmp.lt.s32.totalorder %s2614_s0, %s2614_s0 }
  0x30   :  { %p2621_p8 = por %p2620_p7, %p2619_p6 }
  0x32   :  { %p2622_p9 = pnand %p2621_p8, %p2615_p5 }
  0x34   :  { %2625 = shalt.err (!%p2622_p9)
}
  0x35   :  { %50 = dma.hbm_to_vmem [thread:$0]  %s3403_s2, 64, %s48_s10, [#allocation8]  }
  0x36   :  { %s2626_s23 = scalar_lea.hbm %s3404_s3, 512 }
  0x37   :  { %p2627_p10 = scmp.ne.s32.totalorder %s3404_s3, %s2626_s23  ;;  %p2630_p11 = scmp.lt.u32.totalorder %s2626_s23, %s3404_s3 }
  0x39   :  { %p2632_p12 = pnand %p2630_p11, %p2627_p10 }
  0x3b   :  { %2635 = shalt.err (!%p2632_p12)
}
  0x3c   :  { %s2636_s29 = scalar_lea.vmem %s2819_s12, 512  ;;  %p2641_p0 = scmp.lt.s32.totalorder %s2819_s12, %s2819_s12 }
  0x3d   :  { %p2637_p13 = scmp.ne.s32.totalorder %s2819_s12, %s2636_s29  ;;  %p2642_p1 = scmp.lt.s32.totalorder %s2636_s29, %s2636_s29 }
  0x3f   :  { %p2643_p2 = por %p2642_p1, %p2641_p0 }
  0x41   :  { %p2644_p3 = pnand %p2643_p2, %p2637_p13 }
  0x43   :  { %2647 = shalt.err (!%p2644_p3)
}
  0x44   :  { %s2730_s2 = smov 128   ;;  %s2731_s9 = smov 8  }
  0x45   :  { %62 = dma.hbm_to_vmem [thread:$0]  %s3404_s3, 512, %s2819_s12, [#allocation11], %s2730_s2, %s2730_s2, %s2731_s9  }
  0x46   :  { %2714 = dma.done.wait [#allocation5], 512  }
  0x47   :  { %2715 = vsyncadd [#allocation5], 4294966784 }
  0x48   :  { %2716 = dma.done.wait [#allocation8], 128  }
  0x49   :  { %2717 = vsyncadd [#allocation8], 4294967168 }
  0x4a   :  { %2718 = dma.done.wait [#allocation11], 512  }
  0x4b   :  { %2719 = vsyncadd [#allocation11], 4294966784  ;;  %v2732_v0 = vmov 0.0|0.0   ;;  %vm2733_vm0 = vmmov 0   ;;  %v2734_v1 = vmov 0.0   ;;  %vm84_vm1 = vcmask 257024  }
  0x4c   :  { %2288 = vmatprep.subr.bf16.mxu0 %v2732_v0  ;;  %2208 = vmatprep.mubr.msk.f32.mxu0 %vm2733_vm0, %v2734_v1  ;;  %v92_v2 = vld [vmem:[#allocation10] sm:$0xff]  ;;  %v93_v3 = vld [vmem:[#allocation10 + $0x8] sm:$0xff]  ;;  %v94_v4 = vld [vmem:[#allocation10 + $0x10] sm:$0xff]  ;;  %vm96_vm2 = vcmask 261120   ;;  %s2735_s3 = smov 96   ;;  %v186_v23 = vlaneseq  ;;  %s2737_s15 = smov [#allocation12]  }
  0x4d   :  { %2294 = vmatprep.subr.bf16.mxu1 %v2732_v0  ;;  %2219 = vmatprep.mubr.msk.f32.mxu1 %vm2733_vm0, %v2734_v1  ;;  %v2856_v5 = vpack.c.bf16 %v93_v3, %v92_v2  ;;  %v95_v6 = vld [vmem:[#allocation10 + $0x18] sm:$0xff]  ;;  %v2894_v27 = vld [vmem:[%s3406_s5] sm:$0x1f]  ;;  %s2087_s16 = sshll.u32 %s2737_s15, 4  ;;  %s2088_s16 = int_to_ptr.vmem [resolvable:$true] %s2087_s16 }
  0x4e   :  { %v83_v7 = vld [vmem:[#allocation7] sm:$0xf]  ;;  %v2860_v8 = vpack.c.bf16 %v95_v6, %v94_v4  ;;  %v2888_v24 = vshrl.u32 %v186_v23, 7  ;;  %v2908_v34 = vld [vmem:[%s3405_s4] sm:$0x1f]  ;;  %s2736_s4 = smov 32   ;;  %p2653_p5 = scmp.lt.s32.totalorder %s2088_s16, %s2088_s16 }
  0x4f   :  { %85 = vst.msk [vmem:[#allocation2] sm:$0xf] %vm84_vm1, %v83_v7  ;;  %2290 = vmatpush3.bf16.msra.mxu0 %v2856_v5  ;;  %2296 = vmatpush3.bf16.msra.mxu1 %v2856_v5  ;;  %v91_v10 = vld [vmem:[#allocation4] sm:$0xf]  ;;  %v86_v36 = vld [vmem:[#allocation9] sm:$0xf] }
  0x50   :  { %2291 = vmatprep.subr.bf16.mxu0 %v2732_v0  ;;  %2297 = vmatprep.subr.bf16.mxu1 %v2732_v0  ;;  %v269_v26 = vsub.s32 2, %v2888_v24  ;;  %87 = vst.msk [vmem:[#allocation3] sm:$0xf] %vm84_vm1, %v86_v36  ;;  %v225_v45 = vsub.s32 1, %v2888_v24  ;;  %v188_v61 = vsub.s32 0, %v2888_v24  ;;  %s2648_s17 = scalar_lea.vmem %s2088_s16, 512 }
  0x51   :  { %p2649_p4 = scmp.ne.s32.totalorder %s2088_s16, %s2648_s17  ;;  %p2654_p6 = scmp.lt.s32.totalorder %s2648_s17, %s2648_s17 }
  0x52   :  { %v279_v29 = vrot.slane %v2894_v27, %v269_v26  ;;  %v270_v35 = vrot.slane %v2908_v34, %v269_v26  ;;  %v226_v46 = vrot.slane %v2908_v34, %v225_v45  ;;  %v235_v57 = vrot.slane %v2894_v27, %v225_v45 }
  0x53   :  { %2293 = vmatpush3.bf16.msra.mxu0 %v2860_v8  ;;  %2299 = vmatpush3.bf16.msra.mxu1 %v2860_v8  ;;  %v2931_v63 = vrot.slane %v2908_v34, %v188_v61  ;;  %v2934_v3 = vrot.slane %v2894_v27, %v188_v61  ;;  %p2655_p7 = por %p2654_p6, %p2653_p5 }
  0x54   :  { %2300 = vmatprep.subr.bf16.mxu0 %v2732_v0  ;;  %2306 = vmatprep.subr.bf16.mxu1 %v2732_v0 }
  0x55   :  { %p2656_p8 = pnand %p2655_p7, %p2649_p4 }
  0x56   :  { %v90_v9 = vld [vmem:[#allocation2] sm:$0xf] }
  0x57   :  { %2209 = vmatmul.mubr.msk.f32.vlgmr.msra.gmra.mrb[0].mxu0 %vm96_vm2, %v90_v9  ;;  %v330_v47 = vld [vmem:[#allocation3] sm:$0xf] }
  0x58   :  { %2302 = vmatpush3.bf16.msra.mxu0 %v2856_v5  ;;  %2230 = vmatprep.mubr.msk.f32.mxu0 %vm2733_vm0, %v2734_v1 }
  0x59   :  { %2303 = vmatprep.subr.bf16.mxu0 %v2732_v0 }
  0x5c   :  { %2305 = vmatpush3.bf16.msra.mxu0 %v2860_v8 }
  0x5d   :  { %2312 = vmatprep.subr.bf16.mxu0 %v2732_v0 }
 0x12a   :  { %v166_v11 = vpop.f32.mrb[0].mxu0 }
 0x12b   :  { %v2876_v12 = vadd.f32 %v166_v11, %v91_v10  ;;  %v2210_v13 = vpop.f32.mrb[1].mxu0 }
 0x12d   :  { %203 = vrot.lane.b32.xlu1 %v2876_v12, %s2735_s3  ;;  %247 = vrot.lane.b32.xlu0 %v2876_v12, %s2726_s1  ;;  %v172_v22 = vsel %vm84_vm1, %v2876_v12, 0.0 }
 0x19f   :  { %v248_v14 = vpop.permute.xlu0 %247  ;;  %v204_v16 = vpop.permute.xlu1 %203 }
 0x1a0   :  { %v250_v15 = vsel %vm84_vm1, %v248_v14, 0.0  ;;  %v206_v17 = vsel %vm84_vm1, %v204_v16, 0.0 }
 0x1a1   :  { %251 = vadd.xlane.f32.xlu0 %v250_v15 }
 0x1a5   :  { %207 = vadd.xlane.f32.xlu0 %v206_v17 }
 0x22e   :  { %v252_v18 = vpop.xlane.xlu0 %251 }
 0x22f   :  { %v253_v19 = vmul.f32 0.03125, %v252_v18 }
 0x231   :  { %v254_v20 = vsub.f32 %v2876_v12, %v253_v19 }
 0x232   :  { %v208_v25 = vpop.xlane.xlu0 %207 }
 0x233   :  { %v255_v21 = vmul.f32 %v254_v20, %v254_v20  ;;  %v209_v28 = vmul.f32 0.03125, %v208_v25 }
 0x235   :  { %257 = vrot.lane.b32.xlu1 %v255_v21, %s2726_s1  ;;  %v2898_v30 = vsub.f32 %v2876_v12, %v209_v28 }
 0x237   :  { %v211_v31 = vmul.f32 %v2898_v30, %v2898_v30 }
 0x259   :  { %173 = vadd.xlane.f32.xlu1 %v172_v22 }
 0x26a   :  { %281 = vrot.lane.b32.xlu1 %v279_v29, %s2726_s1 }
 0x26e   :  { %213 = vrot.lane.b32.xlu1 %v211_v31, %s2735_s3 }
 0x2a7   :  { %v258_v32 = vpop.permute.xlu1 %257 }
 0x2a8   :  { %v260_v33 = vsel %vm84_vm1, %v258_v32, 0.0 }
 0x2a9   :  { %261 = vadd.xlane.f32.xlu0 %v260_v33 }
 0x2bf   :  { %272 = vrot.lane.b32.xlu0 %v270_v35, %s2726_s1 }
 0x2e6   :  { %v174_v37 = vpop.xlane.xlu1 %173 }
 0x2e7   :  { %v176_v38 = vmul.f32 0.03125, %v174_v37 }
 0x2e9   :  { %v177_v39 = vsub.f32 %v2876_v12, %v176_v38 }
 0x2ea   :  { %v2914_v40 = vpop.permute.xlu1 %281 }
 0x2eb   :  { %v178_v41 = vmul.f32 %v177_v39, %v177_v39 }
 0x2ed   :  { %v179_v42 = vsel %vm84_vm1, %v178_v41, 0.0 }
 0x2ee   :  { %180 = vadd.xlane.f32.xlu0 %v179_v42  ;;  %v214_v43 = vpop.permute.xlu1 %213 }
 0x2ef   :  { %v216_v44 = vsel %vm84_vm1, %v214_v43, 0.0 }
 0x2f0   :  { %217 = vadd.xlane.f32.xlu1 %v216_v44 }
 0x301   :  { %228 = vrot.lane.b32.xlu1 %v226_v46, %s2736_s4 }
 0x305   :  { %332 = vrot.lane.b32.xlu1 %v330_v47, %s2736_s4  ;;  %v369_v47 = vsub.s32 4, %v2888_v24 }
 0x336   :  { %v262_v48 = vpop.xlane.xlu0 %261 }
 0x337   :  { %v263_v49 = vmul.f32 0.03125, %v262_v48 }
 0x339   :  { %v264_v50 = vadd.f32 1e-05, %v263_v49  ;;  %v370_v49 = vrot.slane %v2908_v34, %v369_v47 }
 0x33a   :  { %v2922_v52 = vpop.permute.xlu0 %272 }
 0x33b   :  { %2352 = vrsqrt.f32 %v264_v50  ;;  %v379_v50 = vrot.slane %v2894_v27, %v369_v47 }
 0x345   :  { %v2353_v51 = vpop.eup %2352 }
 0x346   :  { %v266_v53 = vmul.f32 %v2353_v51, %v254_v20 }
 0x348   :  { %v275_v54 = vmul.f32 %v2922_v52, %v266_v53  ;;  %v308_v53 = vsub.s32 3, %v2888_v24 }
 0x34a   :  { %v284_v55 = vadd.f32 %v2914_v40, %v275_v54  ;;  %v318_v54 = vrot.slane %v2894_v27, %v308_v53 }
 0x34c   :  { %2354 = vtanh.f32 %v284_v55 }
 0x356   :  { %v2355_v56 = vpop.eup %2354 }
 0x357   :  { %337 = vrot.lane.b32.xlu0 %v2355_v56, %s2726_s1 }
 0x35b   :  { %237 = vrot.lane.b32.xlu0 %v235_v57, %s2736_s4  ;;  %v309_v57 = vrot.slane %v2908_v34, %v308_v53 }
 0x37b   :  { %v181_v58 = vpop.xlane.xlu0 %180 }
 0x37c   :  { %v182_v59 = vmul.f32 0.03125, %v181_v58 }
 0x37d   :  { %v218_v15 = vpop.xlane.xlu1 %217 }
 0x37e   :  { %v183_v60 = vadd.f32 1e-05, %v182_v59  ;;  %v219_v16 = vmul.f32 0.03125, %v218_v15 }
 0x380   :  { %2356 = vrsqrt.f32 %v183_v60  ;;  %v220_v17 = vadd.f32 1e-05, %v219_v16 }
 0x381   :  { %v2942_v20 = vpop.permute.xlu1 %228 }
 0x385   :  { %v333_v31 = vpop.permute.xlu1 %332 }
 0x38a   :  { %v2357_v62 = vpop.eup %2356 }
 0x38b   :  { %v185_v2 = vmul.f32 %v2357_v62, %v177_v39 }
 0x38d   :  { %v190_v4 = vmul.f32 %v2931_v63, %v185_v2 }
 0x38f   :  { %v195_v6 = vadd.f32 %v2934_v3, %v190_v4 }
 0x391   :  { %v2129_v7 = vmul.f32 -1.442695, %v195_v6 }
 0x393   :  { %2358 = vpow2.f32 %v2129_v7 }
 0x39d   :  { %v2359_v9 = vpop.eup %2358 }
 0x39e   :  { %v199_v10 = vadd.f32 1.0, %v2359_v9 }
 0x3a0   :  { %2360 = vrcp.f32 %v199_v10 }
 0x3a1   :  { %2362 = vrsqrt.f32 %v220_v17 }
 0x3aa   :  { %v2361_v11 = vpop.eup %2360 }
 0x3ab   :  { %v2363_v18 = vpop.eup %2362 }
 0x3ac   :  { %v222_v19 = vmul.f32 %v2363_v18, %v2898_v30 }
 0x3ae   :  { %v231_v22 = vmul.f32 %v2942_v20, %v222_v19 }
 0x3c9   :  { %v338_v13 = vpop.permute.xlu0 %337 }
 0x3ca   :  { %v340_v14 = vmul.f32 %v2361_v11, %v338_v13 }
 0x3cc   :  { %342 = vrot.lane.b32.xlu0 %v340_v14, %s2736_s4 }
 0x3cd   :  { %v2944_v21 = vpop.permute.xlu0 %237 }
 0x3ce   :  { %v240_v23 = vadd.f32 %v2944_v21, %v231_v22 }
 0x3d0   :  { %286 = vrot.lane.b32.xlu0 %v2876_v12, %s2736_s4  ;;  %v2130_v25 = vmul.f32 -1.442695, %v240_v23 }
 0x3d2   :  { %2364 = vpow2.f32 %v2130_v25 }
 0x3dc   :  { %v2365_v26 = vpop.eup %2364 }
 0x3dd   :  { %v244_v28 = vadd.f32 1.0, %v2365_v26 }
 0x3df   :  { %2366 = vrcp.f32 %v244_v28 }
 0x3e9   :  { %v2367_v29 = vpop.eup %2366 }
 0x3ea   :  { %v335_v32 = vmul.f32 %v2367_v29, %v333_v31  ;;  %v404_v29 = vld [vmem:[#allocation4 + $0x4] sm:$0xf] }
 0x43e   :  { %v343_v33 = vpop.permute.xlu0 %342 }
 0x43f   :  { %v345_v35 = vadd.f32 %v343_v33, %v335_v32 }
 0x441   :  { %347 = vrot.lane.b32.xlu1 %v345_v35, %s2735_s3 }
 0x442   :  { %v287_v30 = vpop.permute.xlu0 %286 }
 0x443   :  { %v289_v36 = vsel %vm84_vm1, %v287_v30, 0.0 }
 0x444   :  { %290 = vadd.xlane.f32.xlu0 %v289_v36 }
 0x4b3   :  { %v348_v37 = vpop.permute.xlu1 %347 }
 0x4b4   :  { %v350_v38 = vsel %vm84_vm1, %v348_v37, 0.0 }
 0x4b5   :  { %351 = vadd.xlane.f32.xlu1 %v350_v38 }
 0x4d1   :  { %v291_v39 = vpop.xlane.xlu0 %290 }
 0x4d2   :  { %v292_v41 = vmul.f32 0.03125, %v291_v39 }
 0x4d4   :  { %v293_v42 = vsub.f32 %v2876_v12, %v292_v41 }
 0x4d6   :  { %v294_v43 = vmul.f32 %v293_v42, %v293_v42 }
 0x4d8   :  { %296 = vrot.lane.b32.xlu1 %v294_v43, %s2736_s4 }
 0x542   :  { %v352_v44 = vpop.xlane.xlu1 %351 }
 0x543   :  { %v353_v45 = vmul.f32 0.03125, %v352_v44 }
 0x545   :  { %v354_v46 = vsub.f32 %v345_v35, %v353_v45 }
 0x547   :  { %v355_v48 = vmul.f32 %v354_v46, %v354_v46 }
 0x549   :  { %357 = vrot.lane.b32.xlu0 %v355_v48, %s2735_s3 }
 0x54a   :  { %v297_v12 = vpop.permute.xlu1 %296 }
 0x54b   :  { %v299_v51 = vsel %vm84_vm1, %v297_v12, 0.0 }
 0x54d   :  { %372 = vrot.lane.b32.xlu0 %v370_v49, %s2736_s4 }
 0x551   :  { %381 = vrot.lane.b32.xlu0 %v379_v50, %s2736_s4 }
 0x570   :  { %300 = vadd.xlane.f32.xlu0 %v299_v51 }
 0x586   :  { %320 = vrot.lane.b32.xlu0 %v318_v54, %s2735_s3 }
 0x5bb   :  { %v358_v55 = vpop.permute.xlu0 %357 }
 0x5bc   :  { %v360_v56 = vsel %vm84_vm1, %v358_v55, 0.0 }
 0x5bd   :  { %361 = vadd.xlane.f32.xlu1 %v360_v56 }
 0x5bf   :  { %v2966_v61 = vpop.permute.xlu0 %372 }
 0x5c3   :  { %v2969_v2 = vpop.permute.xlu0 %381 }
 0x5ce   :  { %311 = vrot.lane.b32.xlu1 %v309_v57, %s2735_s3 }
 0x5fd   :  { %v301_v6 = vpop.xlane.xlu0 %300 }
 0x5fe   :  { %v302_v7 = vmul.f32 0.03125, %v301_v6 }
 0x600   :  { %v303_v9 = vadd.f32 1e-05, %v302_v7 }
 0x601   :  { %v2979_v15 = vpop.permute.xlu0 %320 }
 0x64a   :  { %v362_v58 = vpop.xlane.xlu1 %361 }
 0x64b   :  { %v363_v59 = vmul.f32 0.03125, %v362_v58 }
 0x64d   :  { %v364_v60 = vadd.f32 1e-05, %v363_v59 }
 0x64e   :  { %v2976_v11 = vpop.permute.xlu1 %311 }
 0x64f   :  { %2368 = vrsqrt.f32 %v364_v60 }
 0x659   :  { %v2369_v62 = vpop.eup %2368 }
 0x65a   :  { %v366_v24 = vmul.f32 %v2369_v62, %v354_v46 }
 0x65c   :  { %v375_v27 = vmul.f32 %v2966_v61, %v366_v24 }
 0x65e   :  { %v2972_v4 = vadd.f32 %v2969_v2, %v375_v27 }
 0x660   :  { %2370 = vtanh.f32 %v2972_v4 }
 0x661   :  { %2372 = vrsqrt.f32 %v303_v9 }
 0x66a   :  { %v2371_v34 = vpop.eup %2370 }
 0x66b   :  { %387 = vrot.lane.b32.xlu1 %v2371_v34, %s2726_s1  ;;  %v2373_v10 = vpop.eup %2372 }
 0x66c   :  { %v305_v13 = vmul.f32 %v2373_v10, %v293_v42 }
 0x66e   :  { %v314_v14 = vmul.f32 %v2976_v11, %v305_v13 }
 0x670   :  { %v323_v16 = vadd.f32 %v2979_v15, %v314_v14 }
 0x672   :  { %v2131_v17 = vmul.f32 -1.442695, %v323_v16 }
 0x674   :  { %2374 = vpow2.f32 %v2131_v17 }
 0x67e   :  { %v2375_v18 = vpop.eup %2374 }
 0x67f   :  { %v327_v19 = vadd.f32 1.0, %v2375_v18 }
 0x681   :  { %2376 = vrcp.f32 %v327_v19 }
 0x68b   :  { %v2377_v22 = vpop.eup %2376 }
 0x6dd   :  { %v388_v23 = vpop.permute.xlu1 %387 }
 0x6de   :  { %v390_v25 = vmul.f32 %v2377_v22, %v388_v23 }
 0x6e0   :  { %392 = vrot.lane.b32.xlu1 %v390_v25, %s2736_s4 }
 0x752   :  { %v393_v26 = vpop.permute.xlu1 %392 }
 0x753   :  { %395 = vst.msk [vmem:[#allocation2] sm:$0xf] %vm84_vm1, %v393_v26  ;;  %401 = vst.msk [vmem:[#allocation12] sm:$0xf] %vm84_vm1, %v393_v26 }
 0x75a   :  { %v402_v28 = vld [vmem:[#allocation2] sm:$0xf] }
 0x75b   :  { %2220 = vmatmul.mubr.msk.f32.vlgmr.msra.gmra.mrb[0].mxu1 %vm96_vm2, %v402_v28 }
 0x75c   :  { %2308 = vmatpush3.bf16.msra.mxu1 %v2856_v5  ;;  %2241 = vmatprep.mubr.msk.f32.mxu1 %vm2733_vm0, %v2734_v1 }
 0x75d   :  { %2309 = vmatprep.subr.bf16.mxu1 %v2732_v0 }
 0x760   :  { %2311 = vmatpush3.bf16.msra.mxu1 %v2860_v8 }
 0x761   :  { %2318 = vmatprep.subr.bf16.mxu1 %v2732_v0 }
 0x82e   :  { %v478_v31 = vpop.f32.mrb[0].mxu1 }
 0x82f   :  { %v2992_v32 = vadd.f32 %v478_v31, %v404_v29  ;;  %v2221_v33 = vpop.f32.mrb[1].mxu1 }
 0x831   :  { %533 = vrot.lane.b32.xlu1 %v2992_v32, %s2726_s1  ;;  %v483_v41 = vsel %vm84_vm1, %v2992_v32, 0.0 }
 0x835   :  { %505 = vrot.lane.b32.xlu1 %v2992_v32, %s2735_s3 }
 0x8a3   :  { %v534_v5 = vpop.permute.xlu1 %533 }
 0x8a4   :  { %v536_v35 = vsel %vm84_vm1, %v534_v5, 0.0 }
 0x8a5   :  { %537 = vadd.xlane.f32.xlu0 %v536_v35 }
 0x8a7   :  { %v506_v30 = vpop.permute.xlu1 %505 }
 0x8a8   :  { %v508_v8 = vsel %vm84_vm1, %v506_v30, 0.0 }
 0x8a9   :  { %509 = vadd.xlane.f32.xlu0 %v508_v8 }
 0x932   :  { %v538_v36 = vpop.xlane.xlu0 %537 }
 0x933   :  { %v539_v37 = vmul.f32 0.03125, %v538_v36 }
 0x935   :  { %v540_v38 = vsub.f32 %v2992_v32, %v539_v37 }
 0x936   :  { %v510_v44 = vpop.xlane.xlu0 %509 }
 0x937   :  { %v541_v39 = vmul.f32 %v540_v38, %v540_v38  ;;  %v511_v45 = vmul.f32 0.03125, %v510_v44 }
 0x939   :  { %543 = vrot.lane.b32.xlu1 %v541_v39, %s2726_s1  ;;  %v512_v46 = vsub.f32 %v2992_v32, %v511_v45 }
 0x93b   :  { %v513_v47 = vmul.f32 %v512_v46, %v512_v46 }
 0x95d   :  { %484 = vadd.xlane.f32.xlu1 %v483_v41 }
 0x9ab   :  { %v544_v42 = vpop.permute.xlu1 %543 }
 0x9ac   :  { %v546_v43 = vsel %vm84_vm1, %v544_v42, 0.0 }
 0x9ad   :  { %547 = vadd.xlane.f32.xlu0 %v546_v43 }
 0x9c3   :  { %515 = vrot.lane.b32.xlu0 %v513_v47, %s2735_s3 }
 0x9ea   :  { %v485_v48 = vpop.xlane.xlu1 %484 }
 0x9eb   :  { %v486_v49 = vmul.f32 0.03125, %v485_v48 }
 0x9ed   :  { %v487_v50 = vsub.f32 %v2992_v32, %v486_v49 }
 0x9ef   :  { %v488_v12 = vmul.f32 %v487_v50, %v487_v50 }
 0x9f1   :  { %v489_v51 = vsel %vm84_vm1, %v488_v12, 0.0 }
 0x9f2   :  { %490 = vadd.xlane.f32.xlu1 %v489_v51 }
 0xa03   :  { %397 = vrot.lane.b32.xlu1 %v2972_v4, %s2735_s3 }
 0xa3a   :  { %v548_v53 = vpop.xlane.xlu0 %547 }
 0xa3b   :  { %v549_v54 = vmul.f32 0.03125, %v548_v53 }
 0xa3d   :  { %v550_v55 = vadd.f32 1e-05, %v549_v54 }
 0xa3e   :  { %v516_v56 = vpop.permute.xlu0 %515 }
 0xa3f   :  { %2378 = vrsqrt.f32 %v550_v55  ;;  %v518_v57 = vsel %vm84_vm1, %v516_v56, 0.0 }
 0xa40   :  { %519 = vadd.xlane.f32.xlu0 %v518_v57 }
 0xa49   :  { %v2379_v58 = vpop.eup %2378 }
 0xa4a   :  { %v552_v59 = vmul.f32 %v2379_v58, %v540_v38 }
 0xa4c   :  { %v553_v60 = vmul.f32 %v552_v59, %v2922_v52 }
 0xa4e   :  { %v554_v62 = vadd.f32 %v553_v60, %v2914_v40 }
 0xa50   :  { %2380 = vtanh.f32 %v554_v62 }
 0xa5a   :  { %v2381_v24 = vpop.eup %2380 }
 0xa5b   :  { %591 = vrot.lane.b32.xlu1 %v2381_v24, %s2726_s1 }
 0xa7f   :  { %v491_v27 = vpop.xlane.xlu1 %490 }
 0xa80   :  { %v492_v6 = vmul.f32 0.03125, %v491_v27 }
 0xa82   :  { %v493_v7 = vadd.f32 1e-05, %v492_v6 }
 0xa83   :  { %v398_v4 = vpop.permute.xlu1 %397 }
 0xa84   :  { %400 = vst.msk [vmem:[#allocation3] sm:$0xf] %vm84_vm1, %v398_v4  ;;  %2382 = vrsqrt.f32 %v493_v7 }
 0xa8b   :  { %v584_v34 = vld [vmem:[#allocation3] sm:$0xf] }
 0xa8c   :  { %586 = vrot.lane.b32.xlu1 %v584_v34, %s2736_s4 }
 0xa8e   :  { %v2383_v9 = vpop.eup %2382 }
 0xa8f   :  { %v495_v10 = vmul.f32 %v2383_v9, %v487_v50 }
 0xa91   :  { %v496_v13 = vmul.f32 %v495_v10, %v2931_v63 }
 0xa93   :  { %v497_v14 = vadd.f32 %v496_v13, %v2934_v3 }
 0xa95   :  { %v2133_v16 = vmul.f32 -1.442695, %v497_v14 }
 0xa97   :  { %2384 = vpow2.f32 %v2133_v16 }
 0xaa1   :  { %v2385_v17 = vpop.eup %2384 }
 0xaa2   :  { %v501_v18 = vadd.f32 1.0, %v2385_v17 }
 0xaa4   :  { %2386 = vrcp.f32 %v501_v18 }
 0xaae   :  { %v2387_v19 = vpop.eup %2386 }
 0xacd   :  { %v592_v22 = vpop.permute.xlu1 %591  ;;  %v520_v25 = vpop.xlane.xlu0 %519 }
 0xace   :  { %v594_v23 = vmul.f32 %v2387_v19, %v592_v22  ;;  %v521_v26 = vmul.f32 0.03125, %v520_v25 }
 0xad0   :  { %596 = vrot.lane.b32.xlu1 %v594_v23, %s2736_s4  ;;  %v522_v28 = vadd.f32 1e-05, %v521_v26 }
 0xad2   :  { %2388 = vrsqrt.f32 %v522_v28  ;;  %v643_v28 = vld [vmem:[#allocation4 + $0x8] sm:$0xf] }
 0xadc   :  { %v2389_v29 = vpop.eup %2388 }
 0xadd   :  { %v524_v31 = vmul.f32 %v2389_v29, %v512_v46 }
 0xadf   :  { %v525_v33 = vmul.f32 %v524_v31, %v2942_v20 }
 0xae1   :  { %v526_v5 = vadd.f32 %v525_v33, %v2944_v21 }
 0xae3   :  { %v2134_v35 = vmul.f32 -1.442695, %v526_v5 }
 0xae5   :  { %2390 = vpow2.f32 %v2134_v35 }
 0xaef   :  { %v2391_v30 = vpop.eup %2390 }
 0xaf0   :  { %v530_v8 = vadd.f32 1.0, %v2391_v30 }
 0xaf2   :  { %2392 = vrcp.f32 %v530_v8 }
 0xafc   :  { %v2393_v37 = vpop.eup %2392 }
 0xafe   :  { %v587_v36 = vpop.permute.xlu1 %586 }
 0xaff   :  { %v589_v38 = vmul.f32 %v2393_v37, %v587_v36 }
 0xb42   :  { %v597_v39 = vpop.permute.xlu1 %596 }
 0xb43   :  { %v599_v41 = vadd.f32 %v597_v39, %v589_v38 }
 0xb45   :  { %601 = vrot.lane.b32.xlu1 %v599_v41, %s2735_s3 }
 0xb49   :  { %556 = vrot.lane.b32.xlu1 %v2992_v32, %s2736_s4 }
 0xbb7   :  { %v602_v42 = vpop.permute.xlu1 %601 }
 0xbb8   :  { %v604_v43 = vsel %vm84_vm1, %v602_v42, 0.0 }
 0xbb9   :  { %605 = vadd.xlane.f32.xlu1 %v604_v43 }
 0xbbb   :  { %v557_v44 = vpop.permute.xlu1 %556 }
 0xbbc   :  { %v559_v45 = vsel %vm84_vm1, %v557_v44, 0.0 }
 0xbbd   :  { %560 = vadd.xlane.f32.xlu0 %v559_v45 }
 0xc46   :  { %v606_v46 = vpop.xlane.xlu1 %605 }
 0xc47   :  { %v607_v47 = vmul.f32 0.03125, %v606_v46 }
 0xc49   :  { %v608_v48 = vsub.f32 %v599_v41, %v607_v47 }
 0xc4a   :  { %v561_v49 = vpop.xlane.xlu0 %560 }
 0xc4b   :  { %v562_v50 = vmul.f32 0.03125, %v561_v49  ;;  %v609_v12 = vmul.f32 %v608_v48, %v608_v48 }
 0xc4d   :  { %v563_v51 = vsub.f32 %v2992_v32, %v562_v50  ;;  %611 = vrot.lane.b32.xlu0 %v609_v12, %s2735_s3 }
 0xc4f   :  { %v564_v53 = vmul.f32 %v563_v51, %v563_v51 }
 0xc51   :  { %566 = vrot.lane.b32.xlu0 %v564_v53, %s2736_s4 }
 0xcbf   :  { %v612_v54 = vpop.permute.xlu0 %611 }
 0xcc0   :  { %v614_v55 = vsel %vm84_vm1, %v612_v54, 0.0 }
 0xcc1   :  { %615 = vadd.xlane.f32.xlu1 %v614_v55 }
 0xcc3   :  { %v567_v56 = vpop.permute.xlu0 %566 }
 0xcc4   :  { %v569_v57 = vsel %vm84_vm1, %v567_v56, 0.0 }
 0xcc5   :  { %570 = vadd.xlane.f32.xlu0 %v569_v57 }
 0xd4e   :  { %v616_v58 = vpop.xlane.xlu1 %615 }
 0xd4f   :  { %v617_v59 = vmul.f32 0.03125, %v616_v58 }
 0xd51   :  { %v618_v60 = vadd.f32 1e-05, %v617_v59 }
 0xd52   :  { %v571_v34 = vpop.xlane.xlu0 %570 }
 0xd53   :  { %2394 = vrsqrt.f32 %v618_v60  ;;  %v572_v6 = vmul.f32 0.03125, %v571_v34 }
 0xd55   :  { %v573_v7 = vadd.f32 1e-05, %v572_v6 }
 0xd5d   :  { %v2395_v62 = vpop.eup %2394 }
 0xd5e   :  { %v620_v24 = vmul.f32 %v2395_v62, %v608_v48 }
 0xd60   :  { %v621_v32 = vmul.f32 %v620_v24, %v2966_v61 }
 0xd62   :  { %v622_v27 = vadd.f32 %v621_v32, %v2969_v2 }
 0xd64   :  { %2396 = vtanh.f32 %v622_v27 }
 0xd65   :  { %2398 = vrsqrt.f32 %v573_v7 }
 0xd6e   :  { %v2397_v4 = vpop.eup %2396 }
 0xd6f   :  { %625 = vrot.lane.b32.xlu1 %v2397_v4, %s2726_s1  ;;  %v2399_v9 = vpop.eup %2398 }
 0xd70   :  { %v575_v10 = vmul.f32 %v2399_v9, %v563_v51 }
 0xd72   :  { %v576_v13 = vmul.f32 %v575_v10, %v2976_v11 }
 0xd74   :  { %v577_v14 = vadd.f32 %v576_v13, %v2979_v15 }
 0xd76   :  { %v2135_v16 = vmul.f32 -1.442695, %v577_v14 }
 0xd78   :  { %2400 = vpow2.f32 %v2135_v16 }
 0xd82   :  { %v2401_v17 = vpop.eup %2400 }
 0xd83   :  { %v581_v18 = vadd.f32 1.0, %v2401_v17 }
 0xd85   :  { %2402 = vrcp.f32 %v581_v18 }
 0xd8f   :  { %v2403_v19 = vpop.eup %2402 }
 0xde1   :  { %v626_v22 = vpop.permute.xlu1 %625 }
 0xde2   :  { %v628_v23 = vmul.f32 %v2403_v19, %v626_v22 }
 0xde4   :  { %630 = vrot.lane.b32.xlu1 %v628_v23, %s2736_s4 }
 0xe56   :  { %v631_v25 = vpop.permute.xlu1 %630 }
 0xe57   :  { %633 = vst.msk [vmem:[#allocation2] sm:$0xf] %vm84_vm1, %v631_v25  ;;  %640 = vst.msk [vmem:[#allocation12 + $0x4] sm:$0xf] %vm84_vm1, %v631_v25 }
 0xe5e   :  { %v641_v26 = vld [vmem:[#allocation2] sm:$0xf] }
 0xe5f   :  { %2231 = vmatmul.mubr.msk.f32.vlgmr.msra.gmra.mrb[2].mxu0 %vm96_vm2, %v641_v26 }
 0xe60   :  { %2252 = vmatprep.mubr.msk.f32.mxu0 %vm2733_vm0, %v2734_v1 }
 0xf32   :  { %v717_v29 = vpop.f32.mrb[2].mxu0 }
 0xf33   :  { %v3043_v31 = vadd.f32 %v717_v29, %v643_v28  ;;  %v2232_v33 = vpop.f32.mrb[3].mxu0 }
 0xf35   :  { %744 = vrot.lane.b32.xlu0 %v3043_v31, %s2735_s3  ;;  %772 = vrot.lane.b32.xlu1 %v3043_v31, %s2726_s1  ;;  %v722_v41 = vsel %vm84_vm1, %v3043_v31, 0.0 }
 0xfa7   :  { %v773_v5 = vpop.permute.xlu1 %772  ;;  %v745_v30 = vpop.permute.xlu0 %744 }
 0xfa8   :  { %v775_v35 = vsel %vm84_vm1, %v773_v5, 0.0  ;;  %v747_v8 = vsel %vm84_vm1, %v745_v30, 0.0 }
 0xfa9   :  { %776 = vadd.xlane.f32.xlu1 %v775_v35 }
 0xfad   :  { %748 = vadd.xlane.f32.xlu1 %v747_v8 }
0x1036   :  { %v777_v36 = vpop.xlane.xlu1 %776 }
0x1037   :  { %v778_v37 = vmul.f32 0.03125, %v777_v36 }
0x1039   :  { %v779_v38 = vsub.f32 %v3043_v31, %v778_v37 }
0x103a   :  { %v749_v44 = vpop.xlane.xlu1 %748 }
0x103b   :  { %v780_v39 = vmul.f32 %v779_v38, %v779_v38  ;;  %v750_v45 = vmul.f32 0.03125, %v749_v44 }
0x103d   :  { %782 = vrot.lane.b32.xlu0 %v780_v39, %s2726_s1  ;;  %v751_v46 = vsub.f32 %v3043_v31, %v750_v45 }
0x103f   :  { %v752_v47 = vmul.f32 %v751_v46, %v751_v46 }
0x105c   :  { %723 = vadd.xlane.f32.xlu0 %v722_v41 }
0x10af   :  { %v783_v42 = vpop.permute.xlu0 %782 }
0x10b0   :  { %v785_v43 = vsel %vm84_vm1, %v783_v42, 0.0 }
0x10b1   :  { %786 = vadd.xlane.f32.xlu1 %v785_v43 }
0x10c2   :  { %754 = vrot.lane.b32.xlu1 %v752_v47, %s2735_s3 }
0x10c6   :  { %635 = vrot.lane.b32.xlu1 %v622_v27, %s2735_s3 }
0x10e9   :  { %v724_v48 = vpop.xlane.xlu0 %723 }
0x10ea   :  { %v725_v49 = vmul.f32 0.03125, %v724_v48 }
0x10ec   :  { %v726_v50 = vsub.f32 %v3043_v31, %v725_v49 }
0x10ee   :  { %v727_v12 = vmul.f32 %v726_v50, %v726_v50 }
0x10f0   :  { %v728_v51 = vsel %vm84_vm1, %v727_v12, 0.0 }
0x10f1   :  { %729 = vadd.xlane.f32.xlu0 %v728_v51 }
0x113e   :  { %v787_v53 = vpop.xlane.xlu1 %786 }
0x113f   :  { %v788_v54 = vmul.f32 0.03125, %v787_v53 }
0x1141   :  { %v789_v55 = vadd.f32 1e-05, %v788_v54 }
0x1142   :  { %v755_v56 = vpop.permute.xlu1 %754 }
0x1143   :  { %2404 = vrsqrt.f32 %v789_v55  ;;  %v757_v57 = vsel %vm84_vm1, %v755_v56, 0.0 }
0x1144   :  { %758 = vadd.xlane.f32.xlu0 %v757_v57 }
0x1146   :  { %v636_v58 = vpop.permute.xlu1 %635 }
0x1147   :  { %638 = vst.msk [vmem:[#allocation3] sm:$0xf] %vm84_vm1, %v636_v58 }
0x114d   :  { %v2405_v59 = vpop.eup %2404 }
0x114e   :  { %v791_v60 = vmul.f32 %v2405_v59, %v779_v38  ;;  %v823_v32 = vld [vmem:[#allocation3] sm:$0xf] }
0x1150   :  { %v792_v62 = vmul.f32 %v791_v60, %v2922_v52 }
0x1152   :  { %v793_v24 = vadd.f32 %v792_v62, %v2914_v40 }
0x1154   :  { %2406 = vtanh.f32 %v793_v24 }
0x115a   :  { %825 = vrot.lane.b32.xlu0 %v823_v32, %s2736_s4 }
0x115e   :  { %v2407_v27 = vpop.eup %2406 }
0x115f   :  { %830 = vrot.lane.b32.xlu1 %v2407_v27, %s2726_s1 }
0x117e   :  { %v730_v4 = vpop.xlane.xlu0 %729 }
0x117f   :  { %v731_v34 = vmul.f32 0.03125, %v730_v4 }
0x1181   :  { %v732_v6 = vadd.f32 1e-05, %v731_v34 }
0x1183   :  { %2408 = vrsqrt.f32 %v732_v6 }
0x118d   :  { %v2409_v7 = vpop.eup %2408 }
0x118e   :  { %v734_v9 = vmul.f32 %v2409_v7, %v726_v50 }
0x1190   :  { %v735_v10 = vmul.f32 %v734_v9, %v2931_v63 }
0x1192   :  { %v736_v13 = vadd.f32 %v735_v10, %v2934_v3 }
0x1194   :  { %v2137_v14 = vmul.f32 -1.442695, %v736_v13 }
0x1196   :  { %2410 = vpow2.f32 %v2137_v14 }
0x11a0   :  { %v2411_v16 = vpop.eup %2410 }
0x11a1   :  { %v740_v17 = vadd.f32 1.0, %v2411_v16 }
0x11a3   :  { %2412 = vrcp.f32 %v740_v17 }
0x11ad   :  { %v2413_v18 = vpop.eup %2412 }
0x11d1   :  { %v831_v19 = vpop.permute.xlu1 %830  ;;  %v759_v23 = vpop.xlane.xlu0 %758 }
0x11d2   :  { %v833_v22 = vmul.f32 %v2413_v18, %v831_v19  ;;  %v760_v25 = vmul.f32 0.03125, %v759_v23 }
0x11d4   :  { %835 = vrot.lane.b32.xlu1 %v833_v22, %s2736_s4  ;;  %v761_v26 = vadd.f32 1e-05, %v760_v25 }
0x11d5   :  { %v826_v37 = vpop.permute.xlu0 %825 }
0x11d6   :  { %2414 = vrsqrt.f32 %v761_v26  ;;  %v882_v26 = vld [vmem:[#allocation4 + $0xc] sm:$0xf] }
0x11e0   :  { %v2415_v28 = vpop.eup %2414 }
0x11e1   :  { %v763_v29 = vmul.f32 %v2415_v28, %v751_v46 }
0x11e3   :  { %v764_v33 = vmul.f32 %v763_v29, %v2942_v20 }
0x11e5   :  { %v765_v5 = vadd.f32 %v764_v33, %v2944_v21 }
0x11e7   :  { %v2138_v35 = vmul.f32 -1.442695, %v765_v5 }
0x11e9   :  { %2416 = vpow2.f32 %v2138_v35 }
0x11f3   :  { %v2417_v30 = vpop.eup %2416 }
0x11f4   :  { %v769_v8 = vadd.f32 1.0, %v2417_v30 }
0x11f6   :  { %2418 = vrcp.f32 %v769_v8 }
0x1200   :  { %v2419_v36 = vpop.eup %2418 }
0x1201   :  { %v828_v38 = vmul.f32 %v2419_v36, %v826_v37 }
0x1246   :  { %v836_v39 = vpop.permute.xlu1 %835 }
0x1247   :  { %v838_v41 = vadd.f32 %v836_v39, %v828_v38 }
0x1249   :  { %840 = vrot.lane.b32.xlu1 %v838_v41, %s2735_s3 }
0x124d   :  { %795 = vrot.lane.b32.xlu1 %v3043_v31, %s2736_s4 }
0x12bb   :  { %v841_v42 = vpop.permute.xlu1 %840 }
0x12bc   :  { %v843_v43 = vsel %vm84_vm1, %v841_v42, 0.0 }
0x12bd   :  { %844 = vadd.xlane.f32.xlu1 %v843_v43 }
0x12bf   :  { %v796_v44 = vpop.permute.xlu1 %795 }
0x12c0   :  { %v798_v45 = vsel %vm84_vm1, %v796_v44, 0.0 }
0x12c1   :  { %799 = vadd.xlane.f32.xlu0 %v798_v45 }
0x134a   :  { %v845_v46 = vpop.xlane.xlu1 %844 }
0x134b   :  { %v846_v47 = vmul.f32 0.03125, %v845_v46 }
0x134d   :  { %v847_v48 = vsub.f32 %v838_v41, %v846_v47 }
0x134e   :  { %v800_v49 = vpop.xlane.xlu0 %799 }
0x134f   :  { %v801_v50 = vmul.f32 0.03125, %v800_v49  ;;  %v848_v12 = vmul.f32 %v847_v48, %v847_v48 }
0x1351   :  { %v802_v51 = vsub.f32 %v3043_v31, %v801_v50  ;;  %850 = vrot.lane.b32.xlu1 %v848_v12, %s2735_s3 }
0x1353   :  { %v803_v53 = vmul.f32 %v802_v51, %v802_v51 }
0x1355   :  { %805 = vrot.lane.b32.xlu0 %v803_v53, %s2736_s4 }
0x13c3   :  { %v851_v54 = vpop.permute.xlu1 %850 }
0x13c4   :  { %v853_v55 = vsel %vm84_vm1, %v851_v54, 0.0 }
0x13c5   :  { %854 = vadd.xlane.f32.xlu1 %v853_v55 }
0x13c7   :  { %v806_v56 = vpop.permute.xlu0 %805 }
0x13c8   :  { %v808_v57 = vsel %vm84_vm1, %v806_v56, 0.0 }
0x13c9   :  { %809 = vadd.xlane.f32.xlu0 %v808_v57 }
0x1452   :  { %v855_v58 = vpop.xlane.xlu1 %854 }
0x1453   :  { %v856_v59 = vmul.f32 0.03125, %v855_v58 }
0x1455   :  { %v857_v60 = vadd.f32 1e-05, %v856_v59 }
0x1456   :  { %v810_v4 = vpop.xlane.xlu0 %809 }
0x1457   :  { %2420 = vrsqrt.f32 %v857_v60  ;;  %v811_v34 = vmul.f32 0.03125, %v810_v4 }
0x1459   :  { %v812_v6 = vadd.f32 1e-05, %v811_v34 }
0x1461   :  { %v2421_v62 = vpop.eup %2420 }
0x1462   :  { %v859_v24 = vmul.f32 %v2421_v62, %v847_v48 }
0x1464   :  { %v860_v31 = vmul.f32 %v859_v24, %v2966_v61 }
0x1466   :  { %v861_v32 = vadd.f32 %v860_v31, %v2969_v2 }
0x1468   :  { %2422 = vtanh.f32 %v861_v32 }
0x1469   :  { %2424 = vrsqrt.f32 %v812_v6 }
0x1472   :  { %v2423_v27 = vpop.eup %2422 }
0x1473   :  { %864 = vrot.lane.b32.xlu1 %v2423_v27, %s2726_s1  ;;  %v2425_v7 = vpop.eup %2424 }
0x1474   :  { %v814_v9 = vmul.f32 %v2425_v7, %v802_v51 }
0x1476   :  { %v815_v10 = vmul.f32 %v814_v9, %v2976_v11 }
0x1478   :  { %v816_v13 = vadd.f32 %v815_v10, %v2979_v15 }
0x147a   :  { %v2139_v14 = vmul.f32 -1.442695, %v816_v13 }
0x147c   :  { %2426 = vpow2.f32 %v2139_v14 }
0x1486   :  { %v2427_v16 = vpop.eup %2426 }
0x1487   :  { %v820_v17 = vadd.f32 1.0, %v2427_v16 }
0x1489   :  { %2428 = vrcp.f32 %v820_v17 }
0x1493   :  { %v2429_v18 = vpop.eup %2428 }
0x14e5   :  { %v865_v19 = vpop.permute.xlu1 %864 }
0x14e6   :  { %v867_v22 = vmul.f32 %v2429_v18, %v865_v19 }
0x14e8   :  { %869 = vrot.lane.b32.xlu0 %v867_v22, %s2736_s4 }
0x155a   :  { %v870_v23 = vpop.permute.xlu0 %869 }
0x155b   :  { %872 = vst.msk [vmem:[#allocation2] sm:$0xf] %vm84_vm1, %v870_v23  ;;  %879 = vst.msk [vmem:[#allocation12 + $0x8] sm:$0xf] %vm84_vm1, %v870_v23 }
0x1562   :  { %v880_v25 = vld [vmem:[#allocation2] sm:$0xf] }
0x1563   :  { %2242 = vmatmul.mubr.msk.f32.vlgmr.msra.gmra.mrb[2].mxu1 %vm96_vm2, %v880_v25 }
0x1564   :  { %2263 = vmatprep.mubr.msk.f32.mxu1 %vm2733_vm0, %v2734_v1 }
0x1636   :  { %v956_v28 = vpop.f32.mrb[2].mxu1 }
0x1637   :  { %v3093_v29 = vadd.f32 %v956_v28, %v882_v26  ;;  %v2243_v33 = vpop.f32.mrb[3].mxu1 }
0x1639   :  { %983 = vrot.lane.b32.xlu0 %v3093_v29, %s2735_s3  ;;  %1011 = vrot.lane.b32.xlu1 %v3093_v29, %s2726_s1  ;;  %v961_v41 = vsel %vm84_vm1, %v3093_v29, 0.0 }
0x16ab   :  { %v1012_v5 = vpop.permute.xlu1 %1011  ;;  %v984_v30 = vpop.permute.xlu0 %983 }
0x16ac   :  { %v1014_v35 = vsel %vm84_vm1, %v1012_v5, 0.0  ;;  %v986_v8 = vsel %vm84_vm1, %v984_v30, 0.0 }
0x16ad   :  { %1015 = vadd.xlane.f32.xlu1 %v1014_v35 }
0x16b1   :  { %987 = vadd.xlane.f32.xlu1 %v986_v8 }
0x173a   :  { %v1016_v36 = vpop.xlane.xlu1 %1015 }
0x173b   :  { %v1017_v37 = vmul.f32 0.03125, %v1016_v36 }
0x173d   :  { %v1018_v38 = vsub.f32 %v3093_v29, %v1017_v37 }
0x173e   :  { %v988_v42 = vpop.xlane.xlu1 %987 }
0x173f   :  { %v1019_v39 = vmul.f32 %v1018_v38, %v1018_v38  ;;  %v989_v43 = vmul.f32 0.03125, %v988_v42 }
0x1741   :  { %1021 = vrot.lane.b32.xlu0 %v1019_v39, %s2726_s1  ;;  %v990_v44 = vsub.f32 %v3093_v29, %v989_v43 }
0x1743   :  { %v991_v45 = vmul.f32 %v990_v44, %v990_v44 }
0x1760   :  { %962 = vadd.xlane.f32.xlu0 %v961_v41 }
0x1776   :  { %993 = vrot.lane.b32.xlu0 %v991_v45, %s2735_s3 }
0x17b3   :  { %v1022_v46 = vpop.permute.xlu0 %1021 }
0x17b4   :  { %v1024_v47 = vsel %vm84_vm1, %v1022_v46, 0.0 }
0x17b5   :  { %1025 = vadd.xlane.f32.xlu1 %v1024_v47 }
0x17ed   :  { %v963_v48 = vpop.xlane.xlu0 %962 }
0x17ee   :  { %v964_v49 = vmul.f32 0.03125, %v963_v48 }
0x17f0   :  { %v965_v50 = vsub.f32 %v3093_v29, %v964_v49 }
0x17f1   :  { %v994_v53 = vpop.permute.xlu0 %993 }
0x17f2   :  { %v966_v12 = vmul.f32 %v965_v50, %v965_v50  ;;  %v996_v54 = vsel %vm84_vm1, %v994_v53, 0.0 }
0x17f4   :  { %v967_v51 = vsel %vm84_vm1, %v966_v12, 0.0 }
0x17f5   :  { %968 = vadd.xlane.f32.xlu1 %v967_v51 }
0x1806   :  { %874 = vrot.lane.b32.xlu1 %v861_v32, %s2735_s3 }
0x182a   :  { %997 = vadd.xlane.f32.xlu1 %v996_v54 }
0x1842   :  { %v1026_v55 = vpop.xlane.xlu1 %1025 }
0x1843   :  { %v1027_v56 = vmul.f32 0.03125, %v1026_v55 }
0x1845   :  { %v1028_v57 = vadd.f32 1e-05, %v1027_v56 }
0x1847   :  { %2430 = vrsqrt.f32 %v1028_v57 }
0x1851   :  { %v2431_v58 = vpop.eup %2430 }
0x1852   :  { %v1030_v59 = vmul.f32 %v2431_v58, %v1018_v38 }
0x1854   :  { %v1031_v60 = vmul.f32 %v1030_v59, %v2922_v52 }
0x1856   :  { %v1032_v62 = vadd.f32 %v1031_v60, %v2914_v40 }
0x1858   :  { %2432 = vtanh.f32 %v1032_v62 }
0x1862   :  { %v2433_v24 = vpop.eup %2432 }
0x1863   :  { %1069 = vrot.lane.b32.xlu0 %v2433_v24, %s2726_s1 }
0x1882   :  { %v969_v31 = vpop.xlane.xlu1 %968 }
0x1883   :  { %v970_v4 = vmul.f32 0.03125, %v969_v31 }
0x1885   :  { %v971_v34 = vadd.f32 1e-05, %v970_v4 }
0x1886   :  { %v875_v32 = vpop.permute.xlu1 %874 }
0x1887   :  { %877 = vst.msk [vmem:[#allocation3] sm:$0xf] %vm84_vm1, %v875_v32  ;;  %2434 = vrsqrt.f32 %v971_v34 }
0x188e   :  { %v1062_v27 = vld [vmem:[#allocation3] sm:$0xf] }
0x188f   :  { %1064 = vrot.lane.b32.xlu0 %v1062_v27, %s2736_s4 }
0x1891   :  { %v2435_v6 = vpop.eup %2434 }
0x1892   :  { %v973_v7 = vmul.f32 %v2435_v6, %v965_v50 }
0x1894   :  { %v974_v9 = vmul.f32 %v973_v7, %v2931_v63 }
0x1896   :  { %v975_v10 = vadd.f32 %v974_v9, %v2934_v3 }
0x1898   :  { %v2141_v13 = vmul.f32 -1.442695, %v975_v10 }
0x189a   :  { %2436 = vpow2.f32 %v2141_v13 }
0x18a4   :  { %v2437_v14 = vpop.eup %2436 }
0x18a5   :  { %v979_v16 = vadd.f32 1.0, %v2437_v14 }
0x18a7   :  { %2438 = vrcp.f32 %v979_v16 }
0x18b1   :  { %v2439_v17 = vpop.eup %2438 }
0x18b7   :  { %v998_v22 = vpop.xlane.xlu1 %997 }
0x18b8   :  { %v999_v23 = vmul.f32 0.03125, %v998_v22  ;;  %v1124_v22 = vld [vmem:[#allocation10 + $0x10] sm:$0xff] }
0x18ba   :  { %v1000_v25 = vadd.f32 1e-05, %v999_v23  ;;  %v1125_v23 = vld [vmem:[#allocation10 + $0x18] sm:$0xff] }
0x18bc   :  { %2440 = vrsqrt.f32 %v1000_v25  ;;  %v3143_v25 = vpack.c.bf16 %v1125_v23, %v1124_v22 }
0x18c6   :  { %v2441_v26 = vpop.eup %2440 }
0x18c7   :  { %v1002_v28 = vmul.f32 %v2441_v26, %v990_v44 }
0x18c9   :  { %v1003_v33 = vmul.f32 %v1002_v28, %v2942_v20 }
0x18cb   :  { %v1004_v5 = vadd.f32 %v1003_v33, %v2944_v21 }
0x18cd   :  { %v2142_v35 = vmul.f32 -1.442695, %v1004_v5 }
0x18cf   :  { %2442 = vpow2.f32 %v2142_v35 }
0x18d5   :  { %v1070_v18 = vpop.permute.xlu0 %1069 }
0x18d6   :  { %v1072_v19 = vmul.f32 %v2439_v17, %v1070_v18  ;;  %v1122_v17 = vld [vmem:[#allocation10] sm:$0xff]  ;;  %v1123_v18 = vld [vmem:[#allocation10 + $0x8] sm:$0xff] }
0x18d8   :  { %1074 = vrot.lane.b32.xlu0 %v1072_v19, %s2736_s4  ;;  %v3140_v19 = vpack.c.bf16 %v1123_v18, %v1122_v17 }
0x18d9   :  { %v2443_v30 = vpop.eup %2442 }
0x18da   :  { %v1008_v8 = vadd.f32 1.0, %v2443_v30  ;;  %2314 = vmatpush3.bf16.msra.mxu0 %v3140_v19  ;;  %2320 = vmatpush3.bf16.msra.mxu1 %v3140_v19  ;;  %v1121_v30 = vld [vmem:[#allocation4 + $0x10] sm:$0xf] }
0x18db   :  { %2315 = vmatprep.subr.bf16.mxu0 %v2732_v0  ;;  %2321 = vmatprep.subr.bf16.mxu1 %v2732_v0 }
0x18dc   :  { %2444 = vrcp.f32 %v1008_v8 }
0x18de   :  { %2317 = vmatpush3.bf16.msra.mxu0 %v3143_v25  ;;  %2323 = vmatpush3.bf16.msra.mxu1 %v3143_v25 }
0x18df   :  { %2324 = vmatprep.subr.bf16.mxu0 %v2732_v0  ;;  %2330 = vmatprep.subr.bf16.mxu1 %v2732_v0 }
0x18e6   :  { %v2445_v37 = vpop.eup %2444 }
0x1901   :  { %v1065_v36 = vpop.permute.xlu0 %1064 }
0x1902   :  { %v1067_v38 = vmul.f32 %v2445_v37, %v1065_v36 }
0x194a   :  { %v1075_v39 = vpop.permute.xlu0 %1074 }
0x194b   :  { %v1077_v41 = vadd.f32 %v1075_v39, %v1067_v38 }
0x194d   :  { %1079 = vrot.lane.b32.xlu0 %v1077_v41, %s2735_s3 }
0x1951   :  { %1034 = vrot.lane.b32.xlu0 %v3093_v29, %s2736_s4 }
0x19bf   :  { %v1080_v42 = vpop.permute.xlu0 %1079 }
0x19c0   :  { %v1082_v43 = vsel %vm84_vm1, %v1080_v42, 0.0 }
0x19c1   :  { %1083 = vadd.xlane.f32.xlu0 %v1082_v43 }
0x19c3   :  { %v1035_v44 = vpop.permute.xlu0 %1034 }
0x19c4   :  { %v1037_v45 = vsel %vm84_vm1, %v1035_v44, 0.0 }
0x19c5   :  { %1038 = vadd.xlane.f32.xlu1 %v1037_v45 }
0x1a4e   :  { %v1084_v46 = vpop.xlane.xlu0 %1083 }
0x1a4f   :  { %v1085_v47 = vmul.f32 0.03125, %v1084_v46 }
0x1a51   :  { %v1086_v48 = vsub.f32 %v1077_v41, %v1085_v47 }
0x1a52   :  { %v1039_v49 = vpop.xlane.xlu1 %1038 }
0x1a53   :  { %v1087_v50 = vmul.f32 %v1086_v48, %v1086_v48  ;;  %v1040_v12 = vmul.f32 0.03125, %v1039_v49 }
0x1a55   :  { %v1041_v51 = vsub.f32 %v3093_v29, %v1040_v12  ;;  %1089 = vrot.lane.b32.xlu1 %v1087_v50, %s2735_s3 }
0x1a57   :  { %v1042_v53 = vmul.f32 %v1041_v51, %v1041_v51 }
0x1a59   :  { %1044 = vrot.lane.b32.xlu0 %v1042_v53, %s2736_s4 }
0x1ac7   :  { %v1090_v54 = vpop.permute.xlu1 %1089 }
0x1ac8   :  { %v1092_v55 = vsel %vm84_vm1, %v1090_v54, 0.0 }
0x1ac9   :  { %1093 = vadd.xlane.f32.xlu1 %v1092_v55 }
0x1acb   :  { %v1045_v56 = vpop.permute.xlu0 %1044 }
0x1acc   :  { %v1047_v57 = vsel %vm84_vm1, %v1045_v56, 0.0 }
0x1acd   :  { %1048 = vadd.xlane.f32.xlu0 %v1047_v57 }
0x1b56   :  { %v1094_v58 = vpop.xlane.xlu1 %1093 }
0x1b57   :  { %v1095_v59 = vmul.f32 0.03125, %v1094_v58 }
0x1b59   :  { %v1096_v60 = vadd.f32 1e-05, %v1095_v59 }
0x1b5a   :  { %v1049_v27 = vpop.xlane.xlu0 %1048 }
0x1b5b   :  { %2446 = vrsqrt.f32 %v1096_v60  ;;  %v1050_v4 = vmul.f32 0.03125, %v1049_v27 }
0x1b5d   :  { %v1051_v34 = vadd.f32 1e-05, %v1050_v4 }
0x1b65   :  { %v2447_v62 = vpop.eup %2446 }
0x1b66   :  { %v1098_v24 = vmul.f32 %v2447_v62, %v1086_v48 }
0x1b68   :  { %v1099_v29 = vmul.f32 %v1098_v24, %v2966_v61 }
0x1b6a   :  { %v3134_v31 = vadd.f32 %v1099_v29, %v2969_v2 }
0x1b6c   :  { %2448 = vtanh.f32 %v3134_v31 }
0x1b6d   :  { %2450 = vrsqrt.f32 %v1051_v34 }
0x1b76   :  { %v2449_v32 = vpop.eup %2448 }
0x1b77   :  { %1103 = vrot.lane.b32.xlu1 %v2449_v32, %s2726_s1  ;;  %v2451_v6 = vpop.eup %2450 }
0x1b78   :  { %v1053_v7 = vmul.f32 %v2451_v6, %v1041_v51 }
0x1b7a   :  { %v1054_v9 = vmul.f32 %v1053_v7, %v2976_v11 }
0x1b7c   :  { %v1055_v10 = vadd.f32 %v1054_v9, %v2979_v15 }
0x1b7e   :  { %v2143_v13 = vmul.f32 -1.442695, %v1055_v10 }
0x1b80   :  { %2452 = vpow2.f32 %v2143_v13 }
0x1b8a   :  { %v2453_v14 = vpop.eup %2452 }
0x1b8b   :  { %v1059_v16 = vadd.f32 1.0, %v2453_v14 }
0x1b8d   :  { %2454 = vrcp.f32 %v1059_v16 }
0x1b97   :  { %v2455_v26 = vpop.eup %2454 }
0x1be9   :  { %v1104_v28 = vpop.permute.xlu1 %1103 }
0x1bea   :  { %v1106_v33 = vmul.f32 %v2455_v26, %v1104_v28 }
0x1bec   :  { %1108 = vrot.lane.b32.xlu0 %v1106_v33, %s2736_s4 }
0x1c5e   :  { %v1109_v5 = vpop.permute.xlu0 %1108 }
0x1c5f   :  { %1111 = vst.msk [vmem:[#allocation2] sm:$0xf] %vm84_vm1, %v1109_v5  ;;  %1118 = vst.msk [vmem:[#allocation12 + $0xc] sm:$0xf] %vm84_vm1, %v1109_v5 }
0x1c66   :  { %v1119_v35 = vld [vmem:[#allocation2] sm:$0xf] }
0x1c67   :  { %2253 = vmatmul.mubr.msk.f32.vlgmr.msra.gmra.mrb[4].mxu0 %vm96_vm2, %v1119_v35 }
0x1c68   :  { %2326 = vmatpush3.bf16.msra.mxu0 %v3140_v19  ;;  %2274 = vmatprep.mubr.msk.f32.mxu0 %vm2733_vm0, %v2734_v1 }
0x1c69   :  { %2327 = vmatprep.subr.bf16.mxu0 %v2732_v0 }
0x1c6c   :  { %2329 = vmatpush3.bf16.msra.mxu0 %v3143_v25 }
0x1d3a   :  { %v1195_v8 = vpop.f32.mrb[4].mxu0 }
0x1d3b   :  { %v3161_v36 = vadd.f32 %v1195_v8, %v1121_v30  ;;  %v2254_v37 = vpop.f32.mrb[5].mxu0 }
0x1d3d   :  { %1222 = vrot.lane.b32.xlu0 %v3161_v36, %s2735_s3  ;;  %1250 = vrot.lane.b32.xlu1 %v3161_v36, %s2726_s1  ;;  %v1200_v47 = vsel %vm84_vm1, %v3161_v36, 0.0 }
0x1daf   :  { %v1251_v38 = vpop.permute.xlu1 %1250  ;;  %v1223_v41 = vpop.permute.xlu0 %1222 }
0x1db0   :  { %v1253_v39 = vsel %vm84_vm1, %v1251_v38, 0.0  ;;  %v1225_v42 = vsel %vm84_vm1, %v1223_v41, 0.0 }
0x1db1   :  { %1254 = vadd.xlane.f32.xlu1 %v1253_v39 }
0x1db5   :  { %1226 = vadd.xlane.f32.xlu1 %v1225_v42 }
0x1e3e   :  { %v1255_v43 = vpop.xlane.xlu1 %1254 }
0x1e3f   :  { %v1256_v44 = vmul.f32 0.03125, %v1255_v43 }
0x1e41   :  { %v1257_v45 = vsub.f32 %v3161_v36, %v1256_v44 }
0x1e42   :  { %v1227_v50 = vpop.xlane.xlu1 %1226 }
0x1e43   :  { %v1258_v46 = vmul.f32 %v1257_v45, %v1257_v45  ;;  %v1228_v12 = vmul.f32 0.03125, %v1227_v50 }
0x1e45   :  { %1260 = vrot.lane.b32.xlu0 %v1258_v46, %s2726_s1  ;;  %v1229_v51 = vsub.f32 %v3161_v36, %v1228_v12 }
0x1e47   :  { %v1230_v53 = vmul.f32 %v1229_v51, %v1229_v51 }
0x1e64   :  { %1201 = vadd.xlane.f32.xlu0 %v1200_v47 }
0x1eb7   :  { %v1261_v48 = vpop.permute.xlu0 %1260 }
0x1eb8   :  { %v1263_v49 = vsel %vm84_vm1, %v1261_v48, 0.0 }
0x1eb9   :  { %1264 = vadd.xlane.f32.xlu1 %v1263_v49 }
0x1eca   :  { %1232 = vrot.lane.b32.xlu1 %v1230_v53, %s2735_s3 }
0x1ef1   :  { %v1202_v54 = vpop.xlane.xlu0 %1201 }
0x1ef2   :  { %v1203_v55 = vmul.f32 0.03125, %v1202_v54 }
0x1ef4   :  { %v1204_v56 = vsub.f32 %v3161_v36, %v1203_v55 }
0x1ef6   :  { %v1205_v57 = vmul.f32 %v1204_v56, %v1204_v56 }
0x1ef8   :  { %v1206_v58 = vsel %vm84_vm1, %v1205_v57, 0.0 }
0x1ef9   :  { %1207 = vadd.xlane.f32.xlu0 %v1206_v58 }
0x1f0f   :  { %1113 = vrot.lane.b32.xlu0 %v3134_v31, %s2735_s3 }
0x1f46   :  { %v1265_v59 = vpop.xlane.xlu1 %1264 }
0x1f47   :  { %v1266_v60 = vmul.f32 0.03125, %v1265_v59 }
0x1f49   :  { %v1267_v62 = vadd.f32 1e-05, %v1266_v60 }
0x1f4a   :  { %v1233_v24 = vpop.permute.xlu1 %1232 }
0x1f4b   :  { %2456 = vrsqrt.f32 %v1267_v62  ;;  %v1235_v29 = vsel %vm84_vm1, %v1233_v24, 0.0 }
0x1f4c   :  { %1236 = vadd.xlane.f32.xlu1 %v1235_v29 }
0x1f55   :  { %v2457_v32 = vpop.eup %2456 }
0x1f56   :  { %v1269_v27 = vmul.f32 %v2457_v32, %v1257_v45 }
0x1f58   :  { %v1270_v4 = vmul.f32 %v1269_v27, %v2922_v52 }
0x1f5a   :  { %v1271_v34 = vadd.f32 %v1270_v4, %v2914_v40 }
0x1f5c   :  { %2458 = vtanh.f32 %v1271_v34 }
0x1f66   :  { %v2459_v6 = vpop.eup %2458 }
0x1f67   :  { %1308 = vrot.lane.b32.xlu0 %v2459_v6, %s2726_s1 }
0x1f86   :  { %v1208_v7 = vpop.xlane.xlu0 %1207 }
0x1f87   :  { %v1209_v10 = vmul.f32 0.03125, %v1208_v7 }
0x1f89   :  { %v1210_v13 = vadd.f32 1e-05, %v1209_v10 }
0x1f8a   :  { %v1114_v31 = vpop.permute.xlu0 %1113 }
0x1f8b   :  { %1116 = vst.msk [vmem:[#allocation3] sm:$0xf] %vm84_vm1, %v1114_v31  ;;  %2460 = vrsqrt.f32 %v1210_v13 }
0x1f92   :  { %v1301_v9 = vld [vmem:[#allocation3] sm:$0xf] }
0x1f93   :  { %1303 = vrot.lane.b32.xlu0 %v1301_v9, %s2736_s4 }
0x1f95   :  { %v2461_v14 = vpop.eup %2460 }
0x1f96   :  { %v1212_v16 = vmul.f32 %v2461_v14, %v1204_v56 }
0x1f98   :  { %v1213_v17 = vmul.f32 %v1212_v16, %v2931_v63 }
0x1f9a   :  { %v1214_v18 = vadd.f32 %v1213_v17, %v2934_v3 }
0x1f9c   :  { %v2145_v22 = vmul.f32 -1.442695, %v1214_v18 }
0x1f9e   :  { %2462 = vpow2.f32 %v2145_v22 }
0x1fa8   :  { %v2463_v23 = vpop.eup %2462 }
0x1fa9   :  { %v1218_v26 = vadd.f32 1.0, %v2463_v23 }
0x1fab   :  { %2464 = vrcp.f32 %v1218_v26 }
0x1fb5   :  { %v2465_v28 = vpop.eup %2464 }
0x1fd9   :  { %v1309_v33 = vpop.permute.xlu0 %1308  ;;  %v1237_v35 = vpop.xlane.xlu1 %1236 }
0x1fda   :  { %v1311_v5 = vmul.f32 %v2465_v28, %v1309_v33  ;;  %v1238_v30 = vmul.f32 0.03125, %v1237_v35 }
0x1fdc   :  { %1313 = vrot.lane.b32.xlu0 %v1311_v5, %s2736_s4  ;;  %v1239_v8 = vadd.f32 1e-05, %v1238_v30 }
0x1fde   :  { %2466 = vrsqrt.f32 %v1239_v8 }
0x1fe8   :  { %v2467_v37 = vpop.eup %2466 }
0x1fe9   :  { %v1241_v38 = vmul.f32 %v2467_v37, %v1229_v51 }
0x1feb   :  { %v1242_v39 = vmul.f32 %v1241_v38, %v2942_v20  ;;  %v1360_v38 = vld [vmem:[#allocation4 + $0x14] sm:$0xf] }
0x1fed   :  { %v1243_v41 = vadd.f32 %v1242_v39, %v2944_v21 }
0x1fef   :  { %v2146_v42 = vmul.f32 -1.442695, %v1243_v41 }
0x1ff1   :  { %2468 = vpow2.f32 %v2146_v42 }
0x1ffb   :  { %v2469_v43 = vpop.eup %2468 }
0x1ffc   :  { %v1247_v44 = vadd.f32 1.0, %v2469_v43 }
0x1ffe   :  { %2470 = vrcp.f32 %v1247_v44 }
0x2005   :  { %v1304_v46 = vpop.permute.xlu0 %1303 }
0x2008   :  { %v2471_v45 = vpop.eup %2470 }
0x2009   :  { %v1306_v47 = vmul.f32 %v2471_v45, %v1304_v46 }
0x204e   :  { %v1314_v48 = vpop.permute.xlu0 %1313 }
0x204f   :  { %v1316_v49 = vadd.f32 %v1314_v48, %v1306_v47 }
0x2051   :  { %1318 = vrot.lane.b32.xlu0 %v1316_v49, %s2735_s3 }
0x2055   :  { %1273 = vrot.lane.b32.xlu0 %v3161_v36, %s2736_s4 }
0x20c3   :  { %v1319_v50 = vpop.permute.xlu0 %1318 }
0x20c4   :  { %v1321_v12 = vsel %vm84_vm1, %v1319_v50, 0.0 }
0x20c5   :  { %1322 = vadd.xlane.f32.xlu1 %v1321_v12 }
0x20c7   :  { %v1274_v51 = vpop.permute.xlu0 %1273 }
0x20c8   :  { %v1276_v53 = vsel %vm84_vm1, %v1274_v51, 0.0 }
0x20c9   :  { %1277 = vadd.xlane.f32.xlu0 %v1276_v53 }
0x2152   :  { %v1323_v54 = vpop.xlane.xlu1 %1322 }
0x2153   :  { %v1324_v55 = vmul.f32 0.03125, %v1323_v54 }
0x2155   :  { %v1325_v56 = vsub.f32 %v1316_v49, %v1324_v55 }
0x2156   :  { %v1278_v57 = vpop.xlane.xlu0 %1277 }
0x2157   :  { %v1326_v58 = vmul.f32 %v1325_v56, %v1325_v56  ;;  %v1279_v59 = vmul.f32 0.03125, %v1278_v57 }
0x2159   :  { %v1280_v60 = vsub.f32 %v3161_v36, %v1279_v59  ;;  %1328 = vrot.lane.b32.xlu1 %v1326_v58, %s2735_s3 }
0x215b   :  { %v1281_v62 = vmul.f32 %v1280_v60, %v1280_v60 }
0x215d   :  { %1283 = vrot.lane.b32.xlu1 %v1281_v62, %s2736_s4 }
0x21cb   :  { %v1329_v24 = vpop.permute.xlu1 %1328 }
0x21cc   :  { %v1331_v29 = vsel %vm84_vm1, %v1329_v24, 0.0 }
0x21cd   :  { %1332 = vadd.xlane.f32.xlu1 %v1331_v29 }
0x21cf   :  { %v1284_v32 = vpop.permute.xlu1 %1283 }
0x21d0   :  { %v1286_v27 = vsel %vm84_vm1, %v1284_v32, 0.0 }
0x21d1   :  { %1287 = vadd.xlane.f32.xlu0 %v1286_v27 }
0x225a   :  { %v1333_v4 = vpop.xlane.xlu1 %1332 }
0x225b   :  { %v1334_v34 = vmul.f32 0.03125, %v1333_v4 }
0x225d   :  { %v1335_v6 = vadd.f32 1e-05, %v1334_v34 }
0x225e   :  { %v1288_v13 = vpop.xlane.xlu0 %1287 }
0x225f   :  { %2472 = vrsqrt.f32 %v1335_v6  ;;  %v1289_v14 = vmul.f32 0.03125, %v1288_v13 }
0x2261   :  { %v1290_v16 = vadd.f32 1e-05, %v1289_v14 }
0x2269   :  { %v2473_v7 = vpop.eup %2472 }
0x226a   :  { %v1337_v31 = vmul.f32 %v2473_v7, %v1325_v56 }
0x226c   :  { %v1338_v36 = vmul.f32 %v1337_v31, %v2966_v61 }
0x226e   :  { %v1339_v9 = vadd.f32 %v1338_v36, %v2969_v2 }
0x2270   :  { %2474 = vtanh.f32 %v1339_v9 }
0x2271   :  { %2476 = vrsqrt.f32 %v1290_v16 }
0x227a   :  { %v2475_v10 = vpop.eup %2474 }
0x227b   :  { %1342 = vrot.lane.b32.xlu0 %v2475_v10, %s2726_s1  ;;  %v2477_v17 = vpop.eup %2476 }
0x227c   :  { %v1292_v18 = vmul.f32 %v2477_v17, %v1280_v60 }
0x227e   :  { %v1293_v22 = vmul.f32 %v1292_v18, %v2976_v11 }
0x2280   :  { %v1294_v23 = vadd.f32 %v1293_v22, %v2979_v15 }
0x2282   :  { %v2147_v26 = vmul.f32 -1.442695, %v1294_v23 }
0x2284   :  { %2478 = vpow2.f32 %v2147_v26 }
0x228e   :  { %v2479_v28 = vpop.eup %2478 }
0x228f   :  { %v1298_v33 = vadd.f32 1.0, %v2479_v28 }
0x2291   :  { %2480 = vrcp.f32 %v1298_v33 }
0x229b   :  { %v2481_v5 = vpop.eup %2480 }
0x22ed   :  { %v1343_v35 = vpop.permute.xlu0 %1342 }
0x22ee   :  { %v1345_v30 = vmul.f32 %v2481_v5, %v1343_v35 }
0x22f0   :  { %1347 = vrot.lane.b32.xlu0 %v1345_v30, %s2736_s4 }
0x2362   :  { %v1348_v8 = vpop.permute.xlu0 %1347 }
0x2363   :  { %1350 = vst.msk [vmem:[#allocation2] sm:$0xf] %vm84_vm1, %v1348_v8  ;;  %1357 = vst.msk [vmem:[#allocation12 + $0x10] sm:$0xf] %vm84_vm1, %v1348_v8 }
0x236a   :  { %v1358_v37 = vld [vmem:[#allocation2] sm:$0xf] }
0x236b   :  { %2264 = vmatmul.mubr.msk.f32.vlgmr.msra.gmra.mrb[4].mxu1 %vm96_vm2, %v1358_v37 }
0x236c   :  { %2332 = vmatpush3.bf16.msra.mxu1 %v3140_v19  ;;  %2285 = vmatprep.mubr.msk.f32.mxu1 %vm2733_vm0, %v2734_v1 }
0x236d   :  { %2333 = vmatprep.subr.bf16.mxu1 %v2732_v0 }
0x2370   :  { %2335 = vmatpush3.bf16.msra.mxu1 %v3143_v25 }
0x243e   :  { %v1434_v39 = vpop.f32.mrb[4].mxu1 }
0x243f   :  { %v3215_v41 = vadd.f32 %v1434_v39, %v1360_v38  ;;  %v2265_v42 = vpop.f32.mrb[5].mxu1 }
0x2441   :  { %1489 = vrot.lane.b32.xlu1 %v3215_v41, %s2726_s1  ;;  %v1439_v47 = vsel %vm84_vm1, %v3215_v41, 0.0 }
0x2445   :  { %1461 = vrot.lane.b32.xlu1 %v3215_v41, %s2735_s3 }
0x24b3   :  { %v1490_v43 = vpop.permute.xlu1 %1489 }
0x24b4   :  { %v1492_v19 = vsel %vm84_vm1, %v1490_v43, 0.0 }
0x24b5   :  { %1493 = vadd.xlane.f32.xlu0 %v1492_v19 }
0x24b7   :  { %v1462_v1 = vpop.permute.xlu1 %1461 }
0x24b8   :  { %v1464_v0 = vsel %vm84_vm1, %v1462_v1, 0.0 }
0x24b9   :  { %1465 = vadd.xlane.f32.xlu0 %v1464_v0 }
0x2542   :  { %v1494_v25 = vpop.xlane.xlu0 %1493 }
0x2543   :  { %v1495_v44 = vmul.f32 0.03125, %v1494_v25 }
0x2545   :  { %v1496_v45 = vsub.f32 %v3215_v41, %v1495_v44 }
0x2546   :  { %v1466_v50 = vpop.xlane.xlu0 %1465 }
0x2547   :  { %v1497_v46 = vmul.f32 %v1496_v45, %v1496_v45  ;;  %v1467_v12 = vmul.f32 0.03125, %v1466_v50 }
0x2549   :  { %1499 = vrot.lane.b32.xlu1 %v1497_v46, %s2726_s1  ;;  %v1468_v51 = vsub.f32 %v3215_v41, %v1467_v12 }
0x254b   :  { %v1469_v53 = vmul.f32 %v1468_v51, %v1468_v51 }
0x256d   :  { %1440 = vadd.xlane.f32.xlu1 %v1439_v47 }
0x25bb   :  { %v1500_v48 = vpop.permute.xlu1 %1499 }
0x25bc   :  { %v1502_v49 = vsel %vm84_vm1, %v1500_v48, 0.0 }
0x25bd   :  { %1503 = vadd.xlane.f32.xlu0 %v1502_v49 }
0x25d3   :  { %1471 = vrot.lane.b32.xlu0 %v1469_v53, %s2735_s3 }
0x25d7   :  { %1352 = vrot.lane.b32.xlu0 %v1339_v9, %s2735_s3 }
0x25fa   :  { %v1441_v54 = vpop.xlane.xlu1 %1440 }
0x25fb   :  { %v1442_v55 = vmul.f32 0.03125, %v1441_v54 }
0x25fd   :  { %v1443_v56 = vsub.f32 %v3215_v41, %v1442_v55 }
0x25ff   :  { %v1444_v57 = vmul.f32 %v1443_v56, %v1443_v56 }
0x2601   :  { %v1445_v58 = vsel %vm84_vm1, %v1444_v57, 0.0 }
0x2602   :  { %1446 = vadd.xlane.f32.xlu1 %v1445_v58 }
0x264a   :  { %v1504_v59 = vpop.xlane.xlu0 %1503 }
0x264b   :  { %v1505_v60 = vmul.f32 0.03125, %v1504_v59 }
0x264d   :  { %v1506_v62 = vadd.f32 1e-05, %v1505_v60 }
0x264e   :  { %v1472_v24 = vpop.permute.xlu0 %1471 }
0x264f   :  { %2482 = vrsqrt.f32 %v1506_v62  ;;  %v1474_v29 = vsel %vm84_vm1, %v1472_v24, 0.0 }
0x2650   :  { %1475 = vadd.xlane.f32.xlu1 %v1474_v29 }
0x2652   :  { %v1353_v32 = vpop.permute.xlu0 %1352 }
0x2653   :  { %1355 = vst.msk [vmem:[#allocation3] sm:$0xf] %vm84_vm1, %v1353_v32 }
0x2659   :  { %v2483_v27 = vpop.eup %2482 }
0x265a   :  { %v1508_v4 = vmul.f32 %v2483_v27, %v1496_v45  ;;  %v1540_v7 = vld [vmem:[#allocation3] sm:$0xf] }
0x265c   :  { %v1509_v34 = vmul.f32 %v1508_v4, %v2922_v52 }
0x265e   :  { %v1510_v6 = vadd.f32 %v1509_v34, %v2914_v40 }
0x2660   :  { %2484 = vtanh.f32 %v1510_v6 }
0x2661   :  { %1542 = vrot.lane.b32.xlu1 %v1540_v7, %s2736_s4 }
0x266a   :  { %v2485_v31 = vpop.eup %2484 }
0x266b   :  { %1547 = vrot.lane.b32.xlu0 %v2485_v31, %s2726_s1 }
0x268f   :  { %v1447_v36 = vpop.xlane.xlu1 %1446 }
0x2690   :  { %v1448_v9 = vmul.f32 0.03125, %v1447_v36 }
0x2692   :  { %v1449_v10 = vadd.f32 1e-05, %v1448_v9 }
0x2694   :  { %2486 = vrsqrt.f32 %v1449_v10 }
0x269e   :  { %v2487_v13 = vpop.eup %2486 }
0x269f   :  { %v1451_v14 = vmul.f32 %v2487_v13, %v1443_v56 }
0x26a1   :  { %v1452_v16 = vmul.f32 %v1451_v14, %v2931_v63 }
0x26a3   :  { %v1453_v17 = vadd.f32 %v1452_v16, %v2934_v3 }
0x26a5   :  { %v2149_v18 = vmul.f32 -1.442695, %v1453_v17 }
0x26a7   :  { %2488 = vpow2.f32 %v2149_v18 }
0x26b1   :  { %v2489_v22 = vpop.eup %2488 }
0x26b2   :  { %v1457_v23 = vadd.f32 1.0, %v2489_v22 }
0x26b4   :  { %2490 = vrcp.f32 %v1457_v23 }
0x26be   :  { %v2491_v26 = vpop.eup %2490 }
0x26dd   :  { %v1548_v28 = vpop.permute.xlu0 %1547  ;;  %v1476_v5 = vpop.xlane.xlu1 %1475 }
0x26de   :  { %v1550_v33 = vmul.f32 %v2491_v26, %v1548_v28  ;;  %v1477_v35 = vmul.f32 0.03125, %v1476_v5  ;;  %v1599_v5 = vld [vmem:[#allocation4 + $0x18] sm:$0xf] }
0x26e0   :  { %1552 = vrot.lane.b32.xlu0 %v1550_v33, %s2736_s4  ;;  %v1478_v30 = vadd.f32 1e-05, %v1477_v35 }
0x26e1   :  { %v1543_v0 = vpop.permute.xlu1 %1542 }
0x26e2   :  { %2492 = vrsqrt.f32 %v1478_v30 }
0x26ec   :  { %v2493_v8 = vpop.eup %2492 }
0x26ed   :  { %v1480_v37 = vmul.f32 %v2493_v8, %v1468_v51 }
0x26ef   :  { %v1481_v38 = vmul.f32 %v1480_v37, %v2942_v20 }
0x26f1   :  { %v1482_v39 = vadd.f32 %v1481_v38, %v2944_v21 }
0x26f3   :  { %v2150_v42 = vmul.f32 -1.442695, %v1482_v39 }
0x26f5   :  { %2494 = vpow2.f32 %v2150_v42 }
0x26ff   :  { %v2495_v43 = vpop.eup %2494 }
0x2700   :  { %v1486_v19 = vadd.f32 1.0, %v2495_v43 }
0x2702   :  { %2496 = vrcp.f32 %v1486_v19 }
0x270c   :  { %v2497_v1 = vpop.eup %2496 }
0x270d   :  { %v1545_v25 = vmul.f32 %v2497_v1, %v1543_v0 }
0x2752   :  { %v1553_v44 = vpop.permute.xlu0 %1552 }
0x2753   :  { %v1555_v45 = vadd.f32 %v1553_v44, %v1545_v25 }
0x2755   :  { %1557 = vrot.lane.b32.xlu0 %v1555_v45, %s2735_s3 }
0x2759   :  { %1512 = vrot.lane.b32.xlu0 %v3215_v41, %s2736_s4 }
0x27c7   :  { %v1558_v46 = vpop.permute.xlu0 %1557 }
0x27c8   :  { %v1560_v47 = vsel %vm84_vm1, %v1558_v46, 0.0 }
0x27c9   :  { %1561 = vadd.xlane.f32.xlu0 %v1560_v47 }
0x27cb   :  { %v1513_v48 = vpop.permute.xlu0 %1512 }
0x27cc   :  { %v1515_v49 = vsel %vm84_vm1, %v1513_v48, 0.0 }
0x27cd   :  { %1516 = vadd.xlane.f32.xlu1 %v1515_v49 }
0x2856   :  { %v1562_v50 = vpop.xlane.xlu0 %1561 }
0x2857   :  { %v1563_v12 = vmul.f32 0.03125, %v1562_v50 }
0x2859   :  { %v1564_v51 = vsub.f32 %v1555_v45, %v1563_v12 }
0x285a   :  { %v1517_v53 = vpop.xlane.xlu1 %1516 }
0x285b   :  { %v1565_v54 = vmul.f32 %v1564_v51, %v1564_v51  ;;  %v1518_v55 = vmul.f32 0.03125, %v1517_v53 }
0x285d   :  { %v1519_v56 = vsub.f32 %v3215_v41, %v1518_v55  ;;  %1567 = vrot.lane.b32.xlu0 %v1565_v54, %s2735_s3 }
0x285f   :  { %v1520_v57 = vmul.f32 %v1519_v56, %v1519_v56 }
0x2861   :  { %1522 = vrot.lane.b32.xlu1 %v1520_v57, %s2736_s4 }
0x28cf   :  { %v1568_v58 = vpop.permute.xlu0 %1567 }
0x28d0   :  { %v1570_v59 = vsel %vm84_vm1, %v1568_v58, 0.0 }
0x28d1   :  { %1571 = vadd.xlane.f32.xlu0 %v1570_v59 }
0x28d3   :  { %v1523_v60 = vpop.permute.xlu1 %1522 }
0x28d4   :  { %v1525_v62 = vsel %vm84_vm1, %v1523_v60, 0.0 }
0x28d5   :  { %1526 = vadd.xlane.f32.xlu1 %v1525_v62 }
0x295e   :  { %v1572_v24 = vpop.xlane.xlu0 %1571 }
0x295f   :  { %v1573_v29 = vmul.f32 0.03125, %v1572_v24 }
0x2961   :  { %v1574_v32 = vadd.f32 1e-05, %v1573_v29 }
0x2962   :  { %v1527_v7 = vpop.xlane.xlu1 %1526 }
0x2963   :  { %2498 = vrsqrt.f32 %v1574_v32  ;;  %v1528_v31 = vmul.f32 0.03125, %v1527_v7 }
0x2965   :  { %v1529_v36 = vadd.f32 1e-05, %v1528_v31 }
0x296d   :  { %v2499_v27 = vpop.eup %2498 }
0x296e   :  { %v1576_v4 = vmul.f32 %v2499_v27, %v1564_v51 }
0x2970   :  { %v1577_v41 = vmul.f32 %v1576_v4, %v2966_v61 }
0x2972   :  { %v1578_v34 = vadd.f32 %v1577_v41, %v2969_v2 }
0x2974   :  { %2500 = vtanh.f32 %v1578_v34 }
0x2975   :  { %2502 = vrsqrt.f32 %v1529_v36 }
0x297e   :  { %v2501_v6 = vpop.eup %2500 }
0x297f   :  { %1581 = vrot.lane.b32.xlu0 %v2501_v6, %s2726_s1  ;;  %v2503_v9 = vpop.eup %2502 }
0x2980   :  { %v1531_v10 = vmul.f32 %v2503_v9, %v1519_v56 }
0x2982   :  { %v1532_v13 = vmul.f32 %v1531_v10, %v2976_v11 }
0x2984   :  { %v1533_v14 = vadd.f32 %v1532_v13, %v2979_v15 }
0x2986   :  { %v2151_v16 = vmul.f32 -1.442695, %v1533_v14 }
0x2988   :  { %2504 = vpow2.f32 %v2151_v16 }
0x2992   :  { %v2505_v17 = vpop.eup %2504 }
0x2993   :  { %v1537_v18 = vadd.f32 1.0, %v2505_v17 }
0x2995   :  { %2506 = vrcp.f32 %v1537_v18 }
0x299f   :  { %v2507_v22 = vpop.eup %2506 }
0x29f1   :  { %v1582_v23 = vpop.permute.xlu0 %1581 }
0x29f2   :  { %v1584_v26 = vmul.f32 %v2507_v22, %v1582_v23 }
0x29f4   :  { %1586 = vrot.lane.b32.xlu1 %v1584_v26, %s2736_s4 }
0x2a66   :  { %v1587_v28 = vpop.permute.xlu1 %1586 }
0x2a67   :  { %1589 = vst.msk [vmem:[#allocation2] sm:$0xf] %vm84_vm1, %v1587_v28  ;;  %1596 = vst.msk [vmem:[#allocation12 + $0x14] sm:$0xf] %vm84_vm1, %v1587_v28 }
0x2a6e   :  { %v1597_v33 = vld [vmem:[#allocation2] sm:$0xf] }
0x2a6f   :  { %2275 = vmatmul.mubr.msk.f32.vlgmr.msra.gmra.mrb[6].mxu0 %vm96_vm2, %v1597_v33 }
0x2b42   :  { %v1673_v35 = vpop.f32.mrb[6].mxu0 }
0x2b43   :  { %v3263_v30 = vadd.f32 %v1673_v35, %v1599_v5  ;;  %v2276_v8 = vpop.f32.mrb[7].mxu0 }
0x2b45   :  { %1700 = vrot.lane.b32.xlu1 %v3263_v30, %s2735_s3  ;;  %1728 = vrot.lane.b32.xlu0 %v3263_v30, %s2726_s1  ;;  %v1678_v25 = vsel %vm84_vm1, %v3263_v30, 0.0 }
0x2bb7   :  { %v1729_v37 = vpop.permute.xlu0 %1728  ;;  %v1701_v39 = vpop.permute.xlu1 %1700 }
0x2bb8   :  { %v1731_v38 = vsel %vm84_vm1, %v1729_v37, 0.0  ;;  %v1703_v42 = vsel %vm84_vm1, %v1701_v39, 0.0 }
0x2bb9   :  { %1732 = vadd.xlane.f32.xlu0 %v1731_v38 }
0x2bbd   :  { %1704 = vadd.xlane.f32.xlu0 %v1703_v42 }
0x2c46   :  { %v1733_v43 = vpop.xlane.xlu0 %1732 }
0x2c47   :  { %v1734_v19 = vmul.f32 0.03125, %v1733_v43 }
0x2c49   :  { %v1735_v1 = vsub.f32 %v3263_v30, %v1734_v19 }
0x2c4a   :  { %v1705_v46 = vpop.xlane.xlu0 %1704 }
0x2c4b   :  { %v1736_v0 = vmul.f32 %v1735_v1, %v1735_v1  ;;  %v1706_v47 = vmul.f32 0.03125, %v1705_v46 }
0x2c4d   :  { %1738 = vrot.lane.b32.xlu1 %v1736_v0, %s2726_s1  ;;  %v1707_v48 = vsub.f32 %v3263_v30, %v1706_v47 }
0x2c4f   :  { %v1708_v49 = vmul.f32 %v1707_v48, %v1707_v48 }
0x2c71   :  { %1679 = vadd.xlane.f32.xlu1 %v1678_v25 }
0x2cbf   :  { %v1739_v44 = vpop.permute.xlu1 %1738 }
0x2cc0   :  { %v1741_v45 = vsel %vm84_vm1, %v1739_v44, 0.0 }
0x2cc1   :  { %1742 = vadd.xlane.f32.xlu0 %v1741_v45 }
0x2cd7   :  { %1710 = vrot.lane.b32.xlu0 %v1708_v49, %s2735_s3 }
0x2cfe   :  { %v1680_v50 = vpop.xlane.xlu1 %1679 }
0x2cff   :  { %v1681_v12 = vmul.f32 0.03125, %v1680_v50 }
0x2d01   :  { %v1682_v51 = vsub.f32 %v3263_v30, %v1681_v12 }
0x2d03   :  { %v1683_v53 = vmul.f32 %v1682_v51, %v1682_v51 }
0x2d05   :  { %v1684_v54 = vsel %vm84_vm1, %v1683_v53, 0.0 }
0x2d06   :  { %1685 = vadd.xlane.f32.xlu1 %v1684_v54 }
0x2d17   :  { %1591 = vrot.lane.b32.xlu1 %v1578_v34, %s2735_s3 }
0x2d4e   :  { %v1743_v55 = vpop.xlane.xlu0 %1742 }
0x2d4f   :  { %v1744_v56 = vmul.f32 0.03125, %v1743_v55 }
0x2d51   :  { %v1745_v57 = vadd.f32 1e-05, %v1744_v56 }
0x2d52   :  { %v1711_v58 = vpop.permute.xlu0 %1710 }
0x2d53   :  { %2508 = vrsqrt.f32 %v1745_v57  ;;  %v1713_v59 = vsel %vm84_vm1, %v1711_v58, 0.0 }
0x2d54   :  { %1714 = vadd.xlane.f32.xlu0 %v1713_v59 }
0x2d5d   :  { %v2509_v60 = vpop.eup %2508 }
0x2d5e   :  { %v1747_v62 = vmul.f32 %v2509_v60, %v1735_v1 }
0x2d60   :  { %v1748_v24 = vmul.f32 %v1747_v62, %v2922_v52 }
0x2d62   :  { %v1749_v29 = vadd.f32 %v1748_v24, %v2914_v40 }
0x2d64   :  { %2510 = vtanh.f32 %v1749_v29 }
0x2d6e   :  { %v2511_v32 = vpop.eup %2510 }
0x2d6f   :  { %1786 = vrot.lane.b32.xlu1 %v2511_v32, %s2726_s1 }
0x2d93   :  { %v1686_v27 = vpop.xlane.xlu1 %1685 }
0x2d94   :  { %v1687_v34 = vmul.f32 0.03125, %v1686_v27 }
0x2d96   :  { %v1688_v6 = vadd.f32 1e-05, %v1687_v34 }
0x2d97   :  { %v1592_v4 = vpop.permute.xlu1 %1591 }
0x2d98   :  { %1594 = vst.msk [vmem:[#allocation3] sm:$0xf] %vm84_vm1, %v1592_v4  ;;  %2512 = vrsqrt.f32 %v1688_v6 }
0x2d9f   :  { %v1779_v41 = vld [vmem:[#allocation3] sm:$0xf] }
0x2da0   :  { %1781 = vrot.lane.b32.xlu1 %v1779_v41, %s2736_s4 }
0x2da2   :  { %v2513_v7 = vpop.eup %2512 }
0x2da3   :  { %v1690_v31 = vmul.f32 %v2513_v7, %v1682_v51 }
0x2da5   :  { %v1691_v36 = vmul.f32 %v1690_v31, %v2931_v63 }
0x2da7   :  { %v1692_v9 = vadd.f32 %v1691_v36, %v2934_v3 }
0x2da9   :  { %v2153_v10 = vmul.f32 -1.442695, %v1692_v9 }
0x2dab   :  { %2514 = vpow2.f32 %v2153_v10 }
0x2db5   :  { %v2515_v13 = vpop.eup %2514 }
0x2db6   :  { %v1696_v14 = vadd.f32 1.0, %v2515_v13 }
0x2db8   :  { %2516 = vrcp.f32 %v1696_v14 }
0x2dc2   :  { %v2517_v16 = vpop.eup %2516 }
0x2de1   :  { %v1787_v17 = vpop.permute.xlu1 %1786  ;;  %v1715_v22 = vpop.xlane.xlu0 %1714 }
0x2de2   :  { %v1789_v18 = vmul.f32 %v2517_v16, %v1787_v17  ;;  %v1716_v23 = vmul.f32 0.03125, %v1715_v22  ;;  %v1838_v22 = vld [vmem:[#allocation4 + $0x1c] sm:$0xf] }
0x2de4   :  { %1791 = vrot.lane.b32.xlu1 %v1789_v18, %s2736_s4  ;;  %v1717_v26 = vadd.f32 1e-05, %v1716_v23 }
0x2de6   :  { %2518 = vrsqrt.f32 %v1717_v26 }
0x2df0   :  { %v2519_v28 = vpop.eup %2518 }
0x2df1   :  { %v1719_v33 = vmul.f32 %v2519_v28, %v1707_v48 }
0x2df3   :  { %v1720_v5 = vmul.f32 %v1719_v33, %v2942_v20 }
0x2df5   :  { %v1721_v35 = vadd.f32 %v1720_v5, %v2944_v21 }
0x2df7   :  { %v2154_v8 = vmul.f32 -1.442695, %v1721_v35 }
0x2df9   :  { %2520 = vpow2.f32 %v2154_v8 }
0x2e03   :  { %v2521_v37 = vpop.eup %2520 }
0x2e04   :  { %v1725_v38 = vadd.f32 1.0, %v2521_v37 }
0x2e06   :  { %2522 = vrcp.f32 %v1725_v38 }
0x2e10   :  { %v2523_v42 = vpop.eup %2522 }
0x2e12   :  { %v1782_v39 = vpop.permute.xlu1 %1781 }
0x2e13   :  { %v1784_v43 = vmul.f32 %v2523_v42, %v1782_v39 }
0x2e56   :  { %v1792_v19 = vpop.permute.xlu1 %1791 }
0x2e57   :  { %v1794_v1 = vadd.f32 %v1792_v19, %v1784_v43 }
0x2e59   :  { %1796 = vrot.lane.b32.xlu1 %v1794_v1, %s2735_s3 }
0x2e5d   :  { %1751 = vrot.lane.b32.xlu1 %v3263_v30, %s2736_s4 }
0x2ecb   :  { %v1797_v0 = vpop.permute.xlu1 %1796 }
0x2ecc   :  { %v1799_v25 = vsel %vm84_vm1, %v1797_v0, 0.0 }
0x2ecd   :  { %1800 = vadd.xlane.f32.xlu1 %v1799_v25 }
0x2ecf   :  { %v1752_v44 = vpop.permute.xlu1 %1751 }
0x2ed0   :  { %v1754_v45 = vsel %vm84_vm1, %v1752_v44, 0.0 }
0x2ed1   :  { %1755 = vadd.xlane.f32.xlu0 %v1754_v45 }
0x2f5a   :  { %v1801_v46 = vpop.xlane.xlu1 %1800 }
0x2f5b   :  { %v1802_v47 = vmul.f32 0.03125, %v1801_v46 }
0x2f5d   :  { %v1803_v48 = vsub.f32 %v1794_v1, %v1802_v47 }
0x2f5e   :  { %v1756_v49 = vpop.xlane.xlu0 %1755 }
0x2f5f   :  { %v1804_v50 = vmul.f32 %v1803_v48, %v1803_v48  ;;  %v1757_v12 = vmul.f32 0.03125, %v1756_v49 }
0x2f61   :  { %v1758_v51 = vsub.f32 %v3263_v30, %v1757_v12  ;;  %1806 = vrot.lane.b32.xlu0 %v1804_v50, %s2735_s3 }
0x2f63   :  { %v1759_v53 = vmul.f32 %v1758_v51, %v1758_v51 }
0x2f65   :  { %1761 = vrot.lane.b32.xlu0 %v1759_v53, %s2736_s4 }
0x2fd3   :  { %v1807_v54 = vpop.permute.xlu0 %1806 }
0x2fd4   :  { %v1809_v55 = vsel %vm84_vm1, %v1807_v54, 0.0 }
0x2fd5   :  { %1810 = vadd.xlane.f32.xlu1 %v1809_v55 }
0x2fd7   :  { %v1762_v56 = vpop.permute.xlu0 %1761 }
0x2fd8   :  { %v1764_v57 = vsel %vm84_vm1, %v1762_v56, 0.0 }
0x2fd9   :  { %1765 = vadd.xlane.f32.xlu0 %v1764_v57 }
0x3062   :  { %v1811_v58 = vpop.xlane.xlu1 %1810 }
0x3063   :  { %v1812_v59 = vmul.f32 0.03125, %v1811_v58 }
0x3065   :  { %v1813_v60 = vadd.f32 1e-05, %v1812_v59 }
0x3066   :  { %v1766_v27 = vpop.xlane.xlu0 %1765 }
0x3067   :  { %2524 = vrsqrt.f32 %v1813_v60  ;;  %v1767_v4 = vmul.f32 0.03125, %v1766_v27 }
0x3069   :  { %v1768_v41 = vadd.f32 1e-05, %v1767_v4 }
0x3071   :  { %v2525_v62 = vpop.eup %2524 }
0x3072   :  { %v1815_v24 = vmul.f32 %v2525_v62, %v1803_v48 }
0x3074   :  { %v1816_v30 = vmul.f32 %v1815_v24, %v2966_v61 }
0x3076   :  { %v1817_v29 = vadd.f32 %v1816_v30, %v2969_v2 }
0x3078   :  { %2526 = vtanh.f32 %v1817_v29 }
0x3079   :  { %2528 = vrsqrt.f32 %v1768_v41 }
0x3082   :  { %v2527_v32 = vpop.eup %2526 }
0x3083   :  { %1820 = vrot.lane.b32.xlu1 %v2527_v32, %s2726_s1  ;;  %v2529_v34 = vpop.eup %2528 }
0x3084   :  { %v1770_v6 = vmul.f32 %v2529_v34, %v1758_v51 }
0x3086   :  { %v1771_v7 = vmul.f32 %v1770_v6, %v2976_v11 }
0x3088   :  { %v1772_v31 = vadd.f32 %v1771_v7, %v2979_v15 }
0x308a   :  { %v2155_v36 = vmul.f32 -1.442695, %v1772_v31 }
0x308c   :  { %2530 = vpow2.f32 %v2155_v36 }
0x3096   :  { %v2531_v9 = vpop.eup %2530 }
0x3097   :  { %v1776_v10 = vadd.f32 1.0, %v2531_v9 }
0x3099   :  { %2532 = vrcp.f32 %v1776_v10 }
0x30a3   :  { %v2533_v13 = vpop.eup %2532 }
0x30f5   :  { %v1821_v14 = vpop.permute.xlu1 %1820 }
0x30f6   :  { %v1823_v16 = vmul.f32 %v2533_v13, %v1821_v14 }
0x30f8   :  { %1825 = vrot.lane.b32.xlu1 %v1823_v16, %s2736_s4 }
0x316a   :  { %v1826_v17 = vpop.permute.xlu1 %1825 }
0x316b   :  { %1828 = vst.msk [vmem:[#allocation2] sm:$0xf] %vm84_vm1, %v1826_v17  ;;  %1835 = vst.msk [vmem:[#allocation12 + $0x18] sm:$0xf] %vm84_vm1, %v1826_v17 }
0x3172   :  { %v1836_v18 = vld [vmem:[#allocation2] sm:$0xf] }
0x3173   :  { %2286 = vmatmul.mubr.msk.f32.vlgmr.msra.gmra.mrb[6].mxu1 %vm96_vm2, %v1836_v18 }
0x3246   :  { %v1912_v23 = vpop.f32.mrb[6].mxu1 }
0x3247   :  { %v3311_v26 = vadd.f32 %v1912_v23, %v1838_v22  ;;  %v2287_v28 = vpop.f32.mrb[7].mxu1 }
0x3249   :  { %1939 = vrot.lane.b32.xlu0 %v3311_v26, %s2735_s3  ;;  %1967 = vrot.lane.b32.xlu1 %v3311_v26, %s2726_s1  ;;  %v1917_v43 = vsel %vm84_vm1, %v3311_v26, 0.0 }
0x32bb   :  { %v1968_v33 = vpop.permute.xlu1 %1967  ;;  %v1940_v35 = vpop.permute.xlu0 %1939 }
0x32bc   :  { %v1970_v5 = vsel %vm84_vm1, %v1968_v33, 0.0  ;;  %v1942_v8 = vsel %vm84_vm1, %v1940_v35, 0.0 }
0x32bd   :  { %1971 = vadd.xlane.f32.xlu1 %v1970_v5 }
0x32c1   :  { %1943 = vadd.xlane.f32.xlu1 %v1942_v8 }
0x334a   :  { %v1972_v37 = vpop.xlane.xlu1 %1971 }
0x334b   :  { %v1973_v38 = vmul.f32 0.03125, %v1972_v37 }
0x334d   :  { %v1974_v39 = vsub.f32 %v3311_v26, %v1973_v38 }
0x334e   :  { %v1944_v48 = vpop.xlane.xlu1 %1943 }
0x334f   :  { %v1975_v42 = vmul.f32 %v1974_v39, %v1974_v39  ;;  %v1945_v49 = vmul.f32 0.03125, %v1944_v48 }
0x3351   :  { %1977 = vrot.lane.b32.xlu0 %v1975_v42, %s2726_s1  ;;  %v1946_v50 = vsub.f32 %v3311_v26, %v1945_v49 }
0x3353   :  { %v1947_v12 = vmul.f32 %v1946_v50, %v1946_v50 }
0x3355   :  { %1830 = vrot.lane.b32.xlu0 %v1817_v29, %s2735_s3 }
0x3374   :  { %1918 = vadd.xlane.f32.xlu0 %v1917_v43 }
0x33c3   :  { %v1978_v19 = vpop.permute.xlu0 %1977 }
0x33c4   :  { %v1980_v1 = vsel %vm84_vm1, %v1978_v19, 0.0 }
0x33c5   :  { %1981 = vadd.xlane.f32.xlu0 %v1980_v1 }
0x33c7   :  { %v1831_v0 = vpop.permute.xlu0 %1830 }
0x33c8   :  { %1833 = vst.msk [vmem:[#allocation3] sm:$0xf] %vm84_vm1, %v1831_v0 }
0x33cf   :  { %v2018_v62 = vld [vmem:[#allocation3] sm:$0xf] }
0x33db   :  { %1990 = vrot.lane.b32.xlu0 %v3311_v26, %s2736_s4 }
0x3401   :  { %v1919_v25 = vpop.xlane.xlu0 %1918 }
0x3402   :  { %v1920_v44 = vmul.f32 0.03125, %v1919_v25 }
0x3404   :  { %v1921_v45 = vsub.f32 %v3311_v26, %v1920_v44 }
0x3406   :  { %v1922_v46 = vmul.f32 %v1921_v45, %v1921_v45 }
0x3408   :  { %v1923_v47 = vsel %vm84_vm1, %v1922_v46, 0.0 }
0x3409   :  { %1924 = vadd.xlane.f32.xlu1 %v1923_v47 }
0x341a   :  { %1949 = vrot.lane.b32.xlu1 %v1947_v12, %s2735_s3 }
0x3452   :  { %v1982_v51 = vpop.xlane.xlu0 %1981 }
0x3453   :  { %v1983_v53 = vmul.f32 0.03125, %v1982_v51 }
0x3455   :  { %v1984_v54 = vadd.f32 1e-05, %v1983_v53 }
0x3456   :  { %v1991_v55 = vpop.permute.xlu0 %1990 }
0x3457   :  { %2534 = vrsqrt.f32 %v1984_v54  ;;  %v1993_v56 = vsel %vm84_vm1, %v1991_v55, 0.0 }
0x3458   :  { %1994 = vadd.xlane.f32.xlu0 %v1993_v56 }
0x3461   :  { %v2535_v57 = vpop.eup %2534 }
0x3462   :  { %v1986_v58 = vmul.f32 %v2535_v57, %v1974_v39 }
0x3464   :  { %v1987_v59 = vmul.f32 %v1986_v58, %v2922_v52 }
0x3466   :  { %v1988_v60 = vadd.f32 %v1987_v59, %v2914_v40 }
0x3468   :  { %2536 = vtanh.f32 %v1988_v60 }
0x346e   :  { %2020 = vrot.lane.b32.xlu0 %v2018_v62, %s2736_s4 }
0x3472   :  { %v2537_v24 = vpop.eup %2536 }
0x3473   :  { %2025 = vrot.lane.b32.xlu0 %v2537_v24, %s2726_s1 }
0x3496   :  { %v1925_v30 = vpop.xlane.xlu1 %1924 }
0x3497   :  { %v1926_v27 = vmul.f32 0.03125, %v1925_v30 }
0x3499   :  { %v1927_v4 = vadd.f32 1e-05, %v1926_v27 }
0x349a   :  { %v1950_v29 = vpop.permute.xlu1 %1949 }
0x349b   :  { %v1952_v32 = vsel %vm84_vm1, %v1950_v29, 0.0  ;;  %2538 = vrsqrt.f32 %v1927_v4 }
0x349c   :  { %1953 = vadd.xlane.f32.xlu1 %v1952_v32 }
0x34a5   :  { %v2539_v41 = vpop.eup %2538 }
0x34a6   :  { %v1929_v34 = vmul.f32 %v2539_v41, %v1921_v45 }
0x34a8   :  { %v1930_v52 = vmul.f32 %v1929_v34, %v2931_v63 }
0x34aa   :  { %v1931_v40 = vadd.f32 %v1930_v52, %v2934_v3 }
0x34ac   :  { %v2157_v6 = vmul.f32 -1.442695, %v1931_v40 }
0x34ae   :  { %2540 = vpow2.f32 %v2157_v6 }
0x34b8   :  { %v2541_v7 = vpop.eup %2540 }
0x34b9   :  { %v1935_v31 = vadd.f32 1.0, %v2541_v7 }
0x34bb   :  { %2542 = vrcp.f32 %v1935_v31 }
0x34c5   :  { %v2543_v16 = vpop.eup %2542 }
0x34e5   :  { %v1995_v36 = vpop.xlane.xlu0 %1994 }
0x34e6   :  { %v1996_v9 = vmul.f32 0.03125, %v1995_v36 }
0x34e8   :  { %v1997_v10 = vsub.f32 %v3311_v26, %v1996_v9 }
0x34e9   :  { %v2021_v13 = vpop.permute.xlu0 %2020 }
0x34ea   :  { %v1998_v14 = vmul.f32 %v1997_v10, %v1997_v10 }
0x34ec   :  { %2000 = vrot.lane.b32.xlu1 %v1998_v14, %s2736_s4 }
0x34ed   :  { %v2026_v17 = vpop.permute.xlu0 %2025 }
0x34ee   :  { %v2028_v18 = vmul.f32 %v2543_v16, %v2026_v17 }
0x34f0   :  { %2030 = vrot.lane.b32.xlu0 %v2028_v18, %s2736_s4 }
0x3529   :  { %v1954_v63 = vpop.xlane.xlu1 %1953 }
0x352a   :  { %v1955_v3 = vmul.f32 0.03125, %v1954_v63 }
0x352c   :  { %v1956_v22 = vadd.f32 1e-05, %v1955_v3 }
0x352e   :  { %2544 = vrsqrt.f32 %v1956_v22 }
0x3538   :  { %v2545_v23 = vpop.eup %2544 }
0x3539   :  { %v1958_v28 = vmul.f32 %v2545_v23, %v1946_v50 }
0x353b   :  { %v1959_v33 = vmul.f32 %v1958_v28, %v2942_v20 }
0x353d   :  { %v1960_v5 = vadd.f32 %v1959_v33, %v2944_v21 }
0x353f   :  { %v2158_v26 = vmul.f32 -1.442695, %v1960_v5 }
0x3541   :  { %2546 = vpow2.f32 %v2158_v26 }
0x354b   :  { %v2547_v35 = vpop.eup %2546 }
0x354c   :  { %v1964_v8 = vadd.f32 1.0, %v2547_v35 }
0x354e   :  { %2548 = vrcp.f32 %v1964_v8 }
0x3558   :  { %v2549_v39 = vpop.eup %2548 }
0x3559   :  { %v2023_v43 = vmul.f32 %v2549_v39, %v2021_v13 }
0x355e   :  { %v2001_v37 = vpop.permute.xlu1 %2000 }
0x355f   :  { %v2003_v38 = vsel %vm84_vm1, %v2001_v37, 0.0 }
0x3560   :  { %2004 = vadd.xlane.f32.xlu1 %v2003_v38 }
0x3562   :  { %v2031_v42 = vpop.permute.xlu0 %2030 }
0x3563   :  { %v2033_v19 = vadd.f32 %v2031_v42, %v2023_v43 }
0x3571   :  { %2035 = vrot.lane.b32.xlu1 %v2033_v19, %s2735_s3 }
0x35ed   :  { %v2005_v1 = vpop.xlane.xlu1 %2004 }
0x35ee   :  { %v2006_v56 = vmul.f32 0.03125, %v2005_v1 }
0x35f0   :  { %v2007_v57 = vadd.f32 1e-05, %v2006_v56 }
0x35f1   :  { %v2036_v0 = vpop.permute.xlu1 %2035 }
0x35f2   :  { %v2038_v20 = vsel %vm84_vm1, %v2036_v0, 0.0 }
0x35f3   :  { %2039 = vadd.xlane.f32.xlu0 %v2038_v20 }
0x3680   :  { %v2040_v21 = vpop.xlane.xlu0 %2039 }
0x3681   :  { %v2041_v25 = vmul.f32 0.03125, %v2040_v21 }
0x3683   :  { %v2042_v44 = vsub.f32 %v2033_v19, %v2041_v25 }
0x3685   :  { %v2043_v45 = vmul.f32 %v2042_v44, %v2042_v44 }
0x3687   :  { %2045 = vrot.lane.b32.xlu1 %v2043_v45, %s2735_s3 }
0x36f9   :  { %v2046_v46 = vpop.permute.xlu1 %2045 }
0x36fa   :  { %v2048_v47 = vsel %vm84_vm1, %v2046_v46, 0.0 }
0x36fb   :  { %2049 = vadd.xlane.f32.xlu1 %v2048_v47 }
0x3788   :  { %v2050_v48 = vpop.xlane.xlu1 %2049 }
0x3789   :  { %v2051_v49 = vmul.f32 0.03125, %v2050_v48 }
0x378b   :  { %v2052_v50 = vadd.f32 1e-05, %v2051_v49 }
0x378d   :  { %2550 = vrsqrt.f32 %v2052_v50 }
0x3797   :  { %v2551_v12 = vpop.eup %2550 }
0x3798   :  { %v2054_v51 = vmul.f32 %v2551_v12, %v2042_v44 }
0x379a   :  { %v2055_v53 = vmul.f32 %v2054_v51, %v2966_v61 }
0x379c   :  { %v2056_v54 = vadd.f32 %v2055_v53, %v2969_v2 }
0x379e   :  { %2069 = vrot.lane.b32.xlu1 %v2056_v54, %s2735_s3  ;;  %2552 = vtanh.f32 %v2056_v54 }
0x379f   :  { %2554 = vrsqrt.f32 %v2007_v57 }
0x37a8   :  { %v2553_v55 = vpop.eup %2552 }
0x37a9   :  { %2059 = vrot.lane.b32.xlu0 %v2553_v55, %s2726_s1  ;;  %v2555_v58 = vpop.eup %2554 }
0x37aa   :  { %v2009_v59 = vmul.f32 %v2555_v58, %v1997_v10 }
0x37ac   :  { %v2010_v60 = vmul.f32 %v2009_v59, %v2976_v11 }
0x37ae   :  { %v2011_v62 = vadd.f32 %v2010_v60, %v2979_v15 }
0x37b0   :  { %v2159_v24 = vmul.f32 -1.442695, %v2011_v62 }
0x37b2   :  { %2556 = vpow2.f32 %v2159_v24 }
0x37bc   :  { %v2557_v61 = vpop.eup %2556 }
0x37bd   :  { %v2015_v30 = vadd.f32 1.0, %v2557_v61 }
0x37bf   :  { %2558 = vrcp.f32 %v2015_v30 }
0x37c9   :  { %v2559_v32 = vpop.eup %2558 }
0x3810   :  { %v2070_v2 = vpop.permute.xlu1 %2069 }
0x3811   :  { %2072 = vst.msk [vmem:[#allocation3] sm:$0xf] %vm84_vm1, %v2070_v2 }
0x3818   :  { %v2080_v29 = vld [vmem:[#allocation3] sm:$0xf] }
0x3819   :  { %2081 = vst.msk [vmem:[#allocation15] sm:$0xf] %vm84_vm1, %v2080_v29 }
0x381b   :  { %v2060_v27 = vpop.permute.xlu0 %2059 }
0x381c   :  { %v2062_v4 = vmul.f32 %v2559_v32, %v2060_v27 }
0x381e   :  { %2064 = vrot.lane.b32.xlu0 %v2062_v4, %s2736_s4 }
0x3890   :  { %v2065_v11 = vpop.permute.xlu0 %2064 }
0x3891   :  { %2067 = vst.msk [vmem:[#allocation2] sm:$0xf] %vm84_vm1, %v2065_v11  ;;  %2074 = vst.msk [vmem:[#allocation12 + $0x1c] sm:$0xf] %vm84_vm1, %v2065_v11 }
0x3892   :  { %2659 = shalt.err (!%p2656_p8)
}
0x3893   :  { %s2660_s0 = scalar_lea.hbm %s3407_s6, 512 }
0x3894   :  { %p2661_p9 = scmp.ne.s32.totalorder %s3407_s6, %s2660_s0  ;;  %p2664_p10 = scmp.lt.u32.totalorder %s2660_s0, %s3407_s6 }
0x3896   :  { %p2666_p11 = pnand %p2664_p10, %p2661_p9 }
0x3898   :  { %2669 = shalt.err (!%p2666_p11)
}
0x3899   :  { %2093 = dma.vmem_to_hbm [thread:$0]  %s2088_s16, 512, %s3407_s6, [#allocation6], %s2726_s1, %s2726_s1, %s2727_s27   ;;  %v2078_v15 = vld [vmem:[#allocation2] sm:$0xf] }
0x389a   :  { %s2738_s25 = smov [#allocation13]   ;;  %s2739_s28 = smov [#allocation15]   ;;  %2079 = vst.msk [vmem:[#allocation13] sm:$0xf] %vm84_vm1, %v2078_v15 }
0x389b   :  { %s2100_s26 = sshll.u32 %s2738_s25, 4  ;;  %s2110_s29 = sshll.u32 %s2739_s28, 4  ;;  %s2101_s26 = int_to_ptr.vmem [resolvable:$true] %s2100_s26  ;;  %s2111_s29 = int_to_ptr.vmem [resolvable:$true] %s2110_s29 }
0x389c   :  { %s2670_s2 = scalar_lea.vmem %s2101_s26, 64  ;;  %p2675_p13 = scmp.lt.s32.totalorder %s2101_s26, %s2101_s26 }
0x389d   :  { %p2671_p12 = scmp.ne.s32.totalorder %s2101_s26, %s2670_s2  ;;  %p2676_p0 = scmp.lt.s32.totalorder %s2670_s2, %s2670_s2 }
0x389f   :  { %p2677_p1 = por %p2676_p0, %p2675_p13 }
0x38a1   :  { %p2678_p2 = pnand %p2677_p1, %p2671_p12 }
0x38a3   :  { %2681 = shalt.err (!%p2678_p2)
}
0x38a4   :  { %s2682_s6 = scalar_lea.hbm %s3408_s7, 64 }
0x38a5   :  { %p2683_p3 = scmp.ne.s32.totalorder %s3408_s7, %s2682_s6  ;;  %p2686_p4 = scmp.lt.u32.totalorder %s2682_s6, %s3408_s7 }
0x38a7   :  { %p2688_p5 = pnand %p2686_p4, %p2683_p3 }
0x38a9   :  { %2691 = shalt.err (!%p2688_p5)
}
0x38aa   :  { %2103 = dma.vmem_to_hbm [thread:$0]  %s2101_s26, 64, %s3408_s7, [#allocation14]  }
0x38ab   :  { %s2692_s14 = scalar_lea.vmem %s2111_s29, 64  ;;  %p2697_p7 = scmp.lt.s32.totalorder %s2111_s29, %s2111_s29 }
0x38ac   :  { %p2693_p6 = scmp.ne.s32.totalorder %s2111_s29, %s2692_s14  ;;  %p2698_p8 = scmp.lt.s32.totalorder %s2692_s14, %s2692_s14 }
0x38ae   :  { %p2699_p9 = por %p2698_p8, %p2697_p7 }
0x38b0   :  { %p2700_p10 = pnand %p2699_p9, %p2693_p6 }
0x38b2   :  { %2703 = shalt.err (!%p2700_p10)
}
0x38b3   :  { %s2704_s15 = scalar_lea.hbm %s3409_s8, 64 }
0x38b4   :  { %p2705_p11 = scmp.ne.s32.totalorder %s3409_s8, %s2704_s15  ;;  %p2708_p12 = scmp.lt.u32.totalorder %s2704_s15, %s3409_s8 }
0x38b6   :  { %p2710_p13 = pnand %p2708_p12, %p2705_p11 }
0x38b8   :  { %2713 = shalt.err (!%p2710_p13)
}
0x38b9   :  { %2113 = dma.vmem_to_hbm [thread:$0]  %s2111_s29, 64, %s3409_s8, [#allocation14]  }
0x38ba   :  { %2720 = dma.done.wait [#allocation6], 512  }
0x38bb   :  { %2721 = vsyncadd [#allocation6], 4294966784 }
0x38bc   :  { %2722 = dma.done.wait [#allocation14], 128  }
0x38bd   :  { %2723 = vsyncadd [#allocation14], 4294967168 }
0x38be   :  { %2123 = vsyncpa [#allocation5], 1 }
0x38bf   :  { %2124 = vsyncpa [#allocation8], 1 }
0x38c0   :  { %2125 = vsyncpa [#allocation11], 1 }
0x38c1   :  { %2126 = vsyncpa [#allocation6], 1 }
0x38c2   :  { %2127 = vsyncpa [#allocation14], 1 }

</bundles_post_ra>
